<compile_context>
chip_gen: v6e
topology: v6e:2x2x1
jax: 0.10.0
libtpu: 0.0.40
codegen_flags: <defaults>
</compile_context>

<pallas_src>
import functools
import jax
import jax.numpy as jnp
from jax import lax
from jax.experimental import pallas as pl
from jax.experimental.pallas import tpu as pltpu

SLAB_WIDTH = 128      # lane-padded weight slabs (one DMA per encoder / MLP)
NEG_INF = -1e9
LN_EPS = 1e-5


def _round_up(x, m):
    return (x + m - 1) // m * m


def _idiv(x, m):
    m = int(m)
    if m & (m - 1) == 0:
        return jnp.right_shift(x, m.bit_length() - 1)
    return x // m        # TODO(synk): non-power-of-two divisor path (unused in demo)


def _imod(x, m):
    m = int(m)
    if m & (m - 1) == 0:
        return jnp.bitwise_and(x, m - 1)
    return x - _idiv(x, m) * m


def _block_diag_mask(T, B):
    """Additive attention mask for a seq-major (row = s*B + b) flattened batch."""
    ri = lax.broadcasted_iota(jnp.int32, (T, T), 0)
    ci = lax.broadcasted_iota(jnp.int32, (T, T), 1)
    same = _imod(ri, B) == _imod(ci, B)
    return jnp.where(same, 0.0, NEG_INF).astype(jnp.float32)


# ----------------------------------------------------------------------------
# Shared encoder core (post-LN TransformerEncoderLayer, ReLU FFN, dropout=0)
# ----------------------------------------------------------------------------
def _encoder_core(x, slab, *, d, dff, nhead, B):
    """Runs one encoder layer on a flattened (T, d) block.

    `slab` is the packed weight ref:
      rows [0, d)            : wqkv (d, 3d)      == in_proj_weight.T  [Q | K | V]
      rows [d, d+8)          : bqkv, bo, b1, b2, ln1_g, ln1_b, ln2_g, ln2_b (one/row)
      rows [d+8, 2d+8)       : wo  (d, d)        == out_proj.weight.T
      rows [2d+8, 3d+8)      : w1  (d, dff)
      rows [3d+8, 3d+8+dff)  : w2  (dff, d)
    Batch isolation of the attention is enforced with an in-kernel block-diagonal
    iota mask (seq-major layout: batch id = row % B).
    """
    T = x.shape[0]
    dh = d // nhead
    scale = 1.0 / float(dh) ** 0.5
    mask = _block_diag_mask(T, B)

    rv = d
    r_wo = d + 8
    r_w1 = r_wo + d
    r_w2 = r_w1 + d

    wqkv = slab[0:d, 0:3 * d]
    bqkv = slab[rv + 0:rv + 1, 0:3 * d]
    bo = slab[rv + 1:rv + 2, 0:d]
    b1 = slab[rv + 2:rv + 3, 0:dff]
    b2 = slab[rv + 3:rv + 4, 0:d]
    g1 = slab[rv + 4:rv + 5, 0:d]
    be1 = slab[rv + 5:rv + 6, 0:d]
    g2 = slab[rv + 6:rv + 7, 0:d]
    be2 = slab[rv + 7:rv + 8, 0:d]

    # fused QKV projection: one (T, d) @ (d, 3d) matmul
    qkv = jnp.dot(x, wqkv, preferred_element_type=jnp.float32) + bqkv

    # per-head attention with the output projection folded into the head loop
    ct_last = (((1,), (1,)), ((), ()))
    attn = None
    for h in range(nhead):
        q = qkv[:, h * dh:(h + 1) * dh]
        k = qkv[:, d + h * dh:d + (h + 1) * dh]
        v = qkv[:, 2 * d + h * dh:2 * d + (h + 1) * dh]
        s = lax.dot_general(q, k, ct_last,
                            preferred_element_type=jnp.float32) * scale + mask
        s = s - jnp.max(s, axis=-1, keepdims=True)
        p = jnp.exp(s)
        p = p * pl.reciprocal(jnp.sum(p, axis=-1, keepdims=True), approx=True)
        ctx = jnp.dot(p, v, preferred_element_type=jnp.float32)
        wo_h = slab[r_wo + h * dh:r_wo + (h + 1) * dh, 0:d]
        part = jnp.dot(ctx, wo_h, preferred_element_type=jnp.float32)
        attn = part if attn is None else attn + part

    # residual + LayerNorm 1
    y = x + attn + bo
    mu = jnp.mean(y, axis=-1, keepdims=True)
    var = jnp.mean((y - mu) ** 2, axis=-1, keepdims=True)
    y = (y - mu) * lax.rsqrt(var + LN_EPS) * g1 + be1

    # feed-forward (ReLU) + residual + LayerNorm 2
    w1 = slab[r_w1:r_w1 + d, 0:dff]
    w2 = slab[r_w2:r_w2 + dff, 0:d]
    h1 = jnp.maximum(jnp.dot(y, w1, preferred_element_type=jnp.float32) + b1, 0.0)
    ff = jnp.dot(h1, w2, preferred_element_type=jnp.float32) + b2
    z = y + ff
    mu2 = jnp.mean(z, axis=-1, keepdims=True)
    var2 = jnp.mean((z - mu2) ** 2, axis=-1, keepdims=True)
    return (z - mu2) * lax.rsqrt(var2 + LN_EPS) * g2 + be2


# ----------------------------------------------------------------------------
# Kernel 1: inner encoder + fused Joint_To_Person, emits x_m for the middle scale
# ----------------------------------------------------------------------------
def inner_kernel(xf_ref, enc_slab_ref, j2p_slab_ref, mid_res_ref,
                 enc_out_ref, xm_out_ref, zcat_scr, *, d, dff, nhead, B, N, J):
    z = _encoder_core(xf_ref[...], enc_slab_ref, d=d, dff=dff, nhead=nhead, B=B)
    enc_out_ref[...] = z.astype(enc_out_ref.dtype)

    P = B * N
    Tf = 1 + N * J
    # Gather joint j of every (person, batch) with an in-kernel one-hot matmul and
    # lane-concatenate the J blocks (VMEM scratch) -> one K = J*d matmul below.
    ri = lax.broadcasted_iota(jnp.int32, (P, B * Tf), 0)
    ci = lax.broadcasted_iota(jnp.int32, (P, B * Tf), 1)
    n_idx = _idiv(ri, B)                 # output row p = n*B + b (seq-major persons)
    b_idx = _imod(ri, B)
    for j in range(J):
        tgt = (1 + n_idx * J + j) * B + b_idx       # x_f row of joint (n, j), batch b
        sel = (ci == tgt).astype(jnp.float32)
        zcat_scr[:, j * d:(j + 1) * d] = jnp.dot(
            sel, z, preferred_element_type=jnp.float32)

    hid = d
    w1 = j2p_slab_ref[0:J * d, 0:hid]
    w2 = j2p_slab_ref[J * d:J * d + hid, 0:d]
    b1 = j2p_slab_ref[J * d + hid:J * d + hid + 1, 0:hid]
    b2 = j2p_slab_ref[J * d + hid + 1:J * d + hid + 2, 0:d]
    h = jnp.maximum(jnp.dot(zcat_scr[...], w1,
                            preferred_element_type=jnp.float32) + b1, 0.0)
    proj = jnp.dot(h, w2, preferred_element_type=jnp.float32) + b2

    # x_m = [CLS_f rows | middle + Joint_To_Person(output_fine)]  (seq-major rows)
    xm_out_ref[0:B, :] = z[0:B, :].astype(xm_out_ref.dtype)
    xm_out_ref[B:B + P, :] = (mid_res_ref[...] + proj).astype(xm_out_ref.dtype)


# ----------------------------------------------------------------------------
# Kernel 2: middle encoder + fused Person_To_PersonInteraction + in-kernel
#           cosine k-means Person_To_Group; emits x_c and group_update
# ----------------------------------------------------------------------------
def middle_kernel(xm_ref, enc_slab_ref, p2i_slab_ref, coarse_res_ref, group_res_ref,
                  enc_out_ref, xc_out_ref, grp_out_ref, *,
                  d, dff, nhead, B, N, G, kmeans_iters):
    z = _encoder_core(xm_ref[...], enc_slab_ref, d=d, dff=dff, nhead=nhead, B=B)
    enc_out_ref[...] = z.astype(enc_out_ref.dtype)

    Tm = 1 + N
    C = N * (N - 1)
    hid = d

    # ---- Person_To_PersonInteraction (ordered (i, j), i != j, i-major) ----------
    w1a = p2i_slab_ref[0:d, 0:hid]            # multiplies person_i features
    w1b = p2i_slab_ref[d:2 * d, 0:hid]        # multiplies person_j features
    w2 = p2i_slab_ref[2 * d:2 * d + hid, 0:d]
    b1 = p2i_slab_ref[2 * d + hid:2 * d + hid + 1, 0:hid]
    b2 = p2i_slab_ref[2 * d + hid + 1:2 * d + hid + 2, 0:d]

    p1 = jnp.dot(z, w1a, preferred_element_type=jnp.float32)     # (B*Tm, hid)
    p2 = jnp.dot(z, w1b, preferred_element_type=jnp.float32)

    R = B * C
    ri = lax.broadcasted_iota(jnp.int32, (R, B * Tm), 0)
    ci = lax.broadcasted_iota(jnp.int32, (R, B * Tm), 1)
    c_idx = _idiv(ri, B)                       # pair index (output rows = c*B + b)
    b_idx = _imod(ri, B)
    i_idx = jnp.zeros_like(c_idx)
    for t in range(1, N):                      # i = c // (N-1) without an int divide
        i_idx = i_idx + (c_idx >= t * (N - 1)).astype(jnp.int32)
    k_idx = c_idx - i_idx * (N - 1)
    j_idx = k_idx + (k_idx >= i_idx).astype(jnp.int32)
    seli = (ci == (1 + i_idx) * B + b_idx).astype(jnp.float32)
    selj = (ci == (1 + j_idx) * B + b_idx).astype(jnp.float32)

    hmat = jnp.maximum(jnp.dot(seli, p1, preferred_element_type=jnp.float32)
                       + jnp.dot(selj, p2, preferred_element_type=jnp.float32)
                       + b1, 0.0)
    proj = jnp.dot(hmat, w2, preferred_element_type=jnp.float32) + b2

    # x_c = [CLS_m rows | coarse + Person_To_PersonInteraction(output_middle)]
    xc_out_ref[0:B, :] = z[0:B, :].astype(xc_out_ref.dtype)
    xc_out_ref[B:B + R, :] = (coarse_res_ref[...] + proj).astype(xc_out_ref.dtype)

    # ---- Person_To_Group: fixed-iteration cosine k-means over all B*N persons ----
    # TODO(synk): reference re-runs kmeans until converged (<100 iters) with random
    # init and has a .squeeze() quirk for single-member clusters; deterministic
    # fixed-iteration cosine k-means with first-G init is used here instead.
    P = B * N
    rp = lax.broadcasted_iota(jnp.int32, (P, B * Tm), 0)
    cp = lax.broadcasted_iota(jnp.int32, (P, B * Tm), 1)
    bb = _idiv(rp, N)                          # k-means rows ordered b*N + n
    nn = _imod(rp, N)
    selp = (cp == (1 + nn) * B + bb).astype(jnp.float32)
    Xp = jnp.dot(selp, z, preferred_element_type=jnp.float32)              # (P, d)
    Xn = Xp * lax.rsqrt(jnp.maximum(jnp.sum(Xp * Xp, axis=-1, keepdims=True), 1e-12))

    col_g = lax.broadcasted_iota(jnp.int32, (P, G), 1).astype(jnp.float32)
    ones_pd = jnp.ones_like(Xn)
    ct0 = (((0,), (0,)), ((), ()))
    ct1 = (((1,), (1,)), ((), ()))

    def onehot_assign(centers):
        cn = centers * lax.rsqrt(
            jnp.maximum(jnp.sum(centers * centers, axis=-1, keepdims=True), 1e-12))
        sim = lax.dot_general(Xn, cn, ct1, preferred_element_type=jnp.float32)  # (P, G)
        mx = jnp.max(sim, axis=-1, keepdims=True)
        cand = jnp.where(sim >= mx, col_g, float(G))
        first = jnp.min(cand, axis=-1, keepdims=True)
        return (col_g == first).astype(jnp.float32)          # argmax one-hot (first tie)

    def body(_, centers):
        oh = onehot_assign(centers)
        sums = lax.dot_general(oh, Xn, ct0, preferred_element_type=jnp.float32)  # (G, d)
        cnt = lax.dot_general(oh, ones_pd, ct0, preferred_element_type=jnp.float32)
        return jnp.where(cnt > 0.5, sums / jnp.maximum(cnt, 1.0), centers)

    centers = lax.fori_loop(0, kmeans_iters, body, Xn[0:G, :])
    oh = onehot_assign(centers)                                            # (P, G)

    # per-batch, per-cluster sums of the (un-normalized) person features, scattered
    # to seq-major group rows (g*B + b)
    rg = lax.broadcasted_iota(jnp.int32, (G * B, G), 0)
    cg = lax.broadcasted_iota(jnp.int32, (G * B, G), 1)
    acc = None
    for b in range(B):
        grp_b = lax.dot_general(oh[b * N:(b + 1) * N, :], Xp[b * N:(b + 1) * N, :],
                                ct0, preferred_element_type=jnp.float32)   # (G, d)
        scat_b = (rg == cg * B + b).astype(jnp.float32)                    # (G*B, G)
        part = jnp.dot(scat_b, grp_b, preferred_element_type=jnp.float32)
        acc = part if acc is None else acc + part
    grp_out_ref[...] = (group_res_ref[...] + acc).astype(grp_out_ref.dtype)


# ----------------------------------------------------------------------------
# Kernel 3: fused outer-scale + group-scale encoders (CLS_c handed over in VMEM)
# ----------------------------------------------------------------------------
def outer_group_kernel(xc_ref, outer_slab_ref, group_slab_ref, grp_upd_ref,
                       enc_c_ref, enc_g_ref, xg_scr, *, d, dff, nhead, B, G):
    z_c = _encoder_core(xc_ref[...], outer_slab_ref, d=d, dff=dff, nhead=nhead, B=B)
    enc_c_ref[...] = z_c.astype(enc_c_ref.dtype)

    # x_g = [CLS_c rows | group_update]  (seq-major rows), assembled in VMEM
    xg_scr[0:B, :] = z_c[0:B, :]
    xg_scr[B:B + G * B, :] = grp_upd_ref[...]

    z_g = _encoder_core(xg_scr[...], group_slab_ref, d=d, dff=dff, nhead=nhead, B=B)
    enc_g_ref[...] = z_g.astype(enc_g_ref.dtype)


# ----------------------------------------------------------------------------
# Packed parameter slabs (one lane-padded 2-D array == one DMA per encoder / MLP)
# ----------------------------------------------------------------------------
def _vmem_spec():
    return pl.BlockSpec(memory_space=pltpu.MemorySpace.VMEM)


def init_encoder_slab(key, d, dff, width=SLAB_WIDTH):
    assert width >= max(3 * d, dff) and d % 8 == 0 and dff % 8 == 0
    ks = jax.random.split(key, 4)

    def w(k, shape, fan_in):
        return jax.random.normal(k, shape, jnp.float32) / jnp.sqrt(float(fan_in))

    def padw(a):
        return jnp.pad(a, ((0, 0), (0, width - a.shape[1])))

    vec = jnp.zeros((8, width), jnp.float32)
    vec = vec.at[4, :d].set(1.0)       # ln1 gamma
    vec = vec.at[6, :d].set(1.0)       # ln2 gamma
    return jnp.concatenate([
        padw(w(ks[0], (d, 3 * d), d)),        # wqkv  (in_proj_weight.T, [Q|K|V])
        vec,                                   # bqkv, bo, b1, b2, ln1_g, ln1_b, ln2_g, ln2_b
        padw(w(ks[1], (d, d), d)),             # wo    (out_proj.weight.T)
        padw(w(ks[2], (d, dff), d)),           # w1
        padw(w(ks[3], (dff, d), dff)),         # w2
    ], axis=0)


def init_mlp_slab(key, din, dhid, dout, width=SLAB_WIDTH):
    assert width >= max(dhid, dout)
    k1, k2 = jax.random.split(key)
    w1 = jax.random.normal(k1, (din, dhid), jnp.float32) / jnp.sqrt(float(din))
    w2 = jax.random.normal(k2, (dhid, dout), jnp.float32) / jnp.sqrt(float(dhid))
    rows = _round_up(din + dhid + 2, 8)

    def padw(a):
        return jnp.pad(a, ((0, 0), (0, width - a.shape[1])))

    tail = jnp.zeros((rows - din - dhid, width), jnp.float32)   # b1, b2 (zero) + pad
    return jnp.concatenate([padw(w1), padw(w2), tail], axis=0)


# ----------------------------------------------------------------------------
# TNT_Block forward
# ----------------------------------------------------------------------------
def make_tnt_block(key, *, N, J, d, nhead, dff, G, kmeans_iters=10):
    keys = jax.random.split(key, 6)
    slab_inner = init_encoder_slab(keys[0], d, dff)
    slab_middle = init_encoder_slab(keys[1], d, dff)
    slab_outer = init_encoder_slab(keys[2], d, dff)
    slab_group = init_encoder_slab(keys[3], d, dff)
    slab_j2p = init_mlp_slab(keys[4], J * d, d, d)       # Joint_To_Person MLP
    slab_p2i = init_mlp_slab(keys[5], 2 * d, d, d)       # Person_To_PersonInteraction MLP
    C = N * (N - 1)

    def forward(CLS, fine, middle, coarse, group):
        B = CLS.shape[1]
        Tf, Tm, Tc, Tg = 1 + N * J, 1 + N, 1 + C, 1 + G
        f32 = jnp.float32

        # seq-major flattening (row = s*B + b): inputs consumed as laid out,
        # no (S,B,d)->(B,S,d) transposes anywhere.
        x_f = jnp.concatenate([CLS, fine], axis=0).reshape(B * Tf, d)
        mid_res = middle.reshape(N * B, d)
        coarse_res = coarse.reshape(C * B, d)
        group_res = group.reshape(G * B, d)

        # ---- inner scale + Joint_To_Person (fused) --------------------------
        enc_f, x_m = pl.pallas_call(
            functools.partial(inner_kernel, d=d, dff=dff, nhead=nhead, B=B, N=N, J=J),
            out_shape=(jax.ShapeDtypeStruct((B * Tf, d), f32),
                       jax.ShapeDtypeStruct((B * Tm, d), f32)),
            in_specs=[_vmem_spec()] * 4,
            out_specs=(_vmem_spec(), _vmem_spec()),
            scratch_shapes=[pltpu.VMEM((B * N, J * d), jnp.float32)],
        )(x_f, slab_inner, slab_j2p, mid_res)

        # ---- middle scale + Person_To_PersonInteraction + k-means (fused) ---
        enc_m, x_c, grp_upd = pl.pallas_call(
            functools.partial(middle_kernel, d=d, dff=dff, nhead=nhead, B=B, N=N, G=G,
                              kmeans_iters=kmeans_iters),
            out_shape=(jax.ShapeDtypeStruct((B * Tm, d), f32),
                       jax.ShapeDtypeStruct((B * Tc, d), f32),
                       jax.ShapeDtypeStruct((G * B, d), f32)),
            in_specs=[_vmem_spec()] * 5,
            out_specs=(_vmem_spec(), _vmem_spec(), _vmem_spec()),
        )(x_m, slab_middle, slab_p2i, coarse_res, group_res)

        # ---- fused outer + group scales --------------------------------------
        enc_c, enc_g = pl.pallas_call(
            functools.partial(outer_group_kernel, d=d, dff=dff, nhead=nhead, B=B, G=G),
            out_shape=(jax.ShapeDtypeStruct((B * Tc, d), f32),
                       jax.ShapeDtypeStruct((B * Tg, d), f32)),
            in_specs=[_vmem_spec()] * 4,
            out_specs=(_vmem_spec(), _vmem_spec()),
            scratch_shapes=[pltpu.VMEM((B * Tg, d), jnp.float32)],
        )(x_c, slab_outer, slab_group, grp_upd)

        # pure output formatting (free reshapes + slices; seq-major == native layout)
        enc_f = enc_f.reshape(Tf, B, d)
        enc_m = enc_m.reshape(Tm, B, d)
        enc_c = enc_c.reshape(Tc, B, d)
        enc_g = enc_g.reshape(Tg, B, d)
        return (enc_f[:1], enc_m[:1], enc_c[:1], enc_g[:1],
                enc_f[1:], enc_m[1:], enc_c[1:], enc_g[1:])

    return jax.jit(forward)


# ----------------------------------------------------------------------------
if __name__ == "__main__":
    B, N, J, d = 2, 4, 4, 32
    nhead, dff, G = 4, 64, 2
    F_tok = N * J                # fine tokens
    M_tok = N                    # middle tokens (persons)
    C_tok = N * (N - 1)          # coarse tokens (ordered person pairs)

    key = jax.random.PRNGKey(0)
    kp, k1, k2, k3, k4, k5 = jax.random.split(key, 6)

    CLS = jax.random.normal(k1, (1, B, d), jnp.float32)
    fine = jax.random.normal(k2, (F_tok, B, d), jnp.float32)
    middle = jax.random.normal(k3, (M_tok, B, d), jnp.float32)
    coarse = jax.random.normal(k4, (C_tok, B, d), jnp.float32)
    group = jax.random.normal(k5, (G, B, d), jnp.float32)

    tnt_block = make_tnt_block(kp, N=N, J=J, d=d, nhead=nhead, dff=dff, G=G)
    outs = jax.block_until_ready(tnt_block(CLS, fine, middle, coarse, group))

    expected_shapes = [(1, B, d), (1, B, d), (1, B, d), (1, B, d),
                       (F_tok, B, d), (M_tok, B, d), (C_tok, B, d), (G, B, d)]
    assert all(o.shape == s for o, s in zip(outs, expected_shapes))
    assert all(bool(jnp.all(jnp.isfinite(o))) for o in outs)
    print("KERNEL_OK")
</pallas_src>

<mosaic_0001>
module attributes {stable_mosaic.version = 11 : i64} {
  func.func @middle_kernel(%arg0: memref<10x32xf32, #tpu.memory_space<vmem>>, %arg1: memref<168x128xf32, #tpu.memory_space<vmem>>, %arg2: memref<104x128xf32, #tpu.memory_space<vmem>>, %arg3: memref<24x32xf32, #tpu.memory_space<vmem>>, %arg4: memref<4x32xf32, #tpu.memory_space<vmem>>, %arg5: memref<10x32xf32, #tpu.memory_space<vmem>>, %arg6: memref<26x32xf32, #tpu.memory_space<vmem>>, %arg7: memref<4x32xf32, #tpu.memory_space<vmem>>) attributes {dimension_semantics = [], scalar_prefetch = 0 : i64, scratch_operands = 0 : i64, tpu.core_type = #tpu.core_type<tc>} {
    %c0 = arith.constant 0 : index
    %c0_0 = arith.constant 0 : index
    %0 = vector.load %arg0[%c0, %c0_0] : memref<10x32xf32, #tpu.memory_space<vmem>>, vector<10x32xf32>
    %1 = tpu.iota {dimensions = array<i32: 0>} : vector<10x10xi32>
    %2 = tpu.iota {dimensions = array<i32: 1>} : vector<10x10xi32>
    %c1_i32 = arith.constant 1 : i32
    %3 = vector.broadcast %c1_i32 : i32 to vector<10x10xi32>
    %4 = arith.andi %1, %3 : vector<10x10xi32>
    %c1_i32_1 = arith.constant 1 : i32
    %5 = vector.broadcast %c1_i32_1 : i32 to vector<10x10xi32>
    %6 = arith.andi %2, %5 : vector<10x10xi32>
    %7 = arith.cmpi eq, %4, %6 : vector<10x10xi32>
    %cst = arith.constant 0.000000e+00 : f32
    %cst_2 = arith.constant -1.000000e+09 : f32
    %8 = vector.broadcast %cst : f32 to vector<10x10xf32>
    %9 = vector.broadcast %cst_2 : f32 to vector<10x10xf32>
    %10 = arith.select %7, %8, %9 : vector<10x10xi1>, vector<10x10xf32>
    %c0_3 = arith.constant 0 : index
    %c0_4 = arith.constant 0 : index
    %11 = vector.load %arg1[%c0_3, %c0_4] : memref<168x128xf32, #tpu.memory_space<vmem>>, vector<32x96xf32>
    %c32 = arith.constant 32 : index
    %c0_5 = arith.constant 0 : index
    %12 = vector.load %arg1[%c32, %c0_5] : memref<168x128xf32, #tpu.memory_space<vmem>>, vector<1x96xf32>
    %c33 = arith.constant 33 : index
    %c0_6 = arith.constant 0 : index
    %13 = vector.load %arg1[%c33, %c0_6] : memref<168x128xf32, #tpu.memory_space<vmem>>, vector<1x32xf32>
    %c34 = arith.constant 34 : index
    %c0_7 = arith.constant 0 : index
    %14 = vector.load %arg1[%c34, %c0_7] : memref<168x128xf32, #tpu.memory_space<vmem>>, vector<1x64xf32>
    %c35 = arith.constant 35 : index
    %c0_8 = arith.constant 0 : index
    %15 = vector.load %arg1[%c35, %c0_8] : memref<168x128xf32, #tpu.memory_space<vmem>>, vector<1x32xf32>
    %c36 = arith.constant 36 : index
    %c0_9 = arith.constant 0 : index
    %16 = vector.load %arg1[%c36, %c0_9] : memref<168x128xf32, #tpu.memory_space<vmem>>, vector<1x32xf32>
    %c37 = arith.constant 37 : index
    %c0_10 = arith.constant 0 : index
    %17 = vector.load %arg1[%c37, %c0_10] : memref<168x128xf32, #tpu.memory_space<vmem>>, vector<1x32xf32>
    %c38 = arith.constant 38 : index
    %c0_11 = arith.constant 0 : index
    %18 = vector.load %arg1[%c38, %c0_11] : memref<168x128xf32, #tpu.memory_space<vmem>>, vector<1x32xf32>
    %c39 = arith.constant 39 : index
    %c0_12 = arith.constant 0 : index
    %19 = vector.load %arg1[%c39, %c0_12] : memref<168x128xf32, #tpu.memory_space<vmem>>, vector<1x32xf32>
    %cst_13 = arith.constant dense<0.000000e+00> : vector<10x96xf32>
    %20 = tpu.matmul %0, %11, %cst_13 {dimension_numbers = #tpu.dot_dimension_numbers<[1], [0], [0], [1], [0, 0, 1, 1], [], []>} : vector<10x32xf32>, vector<32x96xf32>, vector<10x96xf32> -> vector<10x96xf32>
    %21 = vector.broadcast %12 : vector<1x96xf32> to vector<10x96xf32>
    %22 = arith.addf %20, %21 : vector<10x96xf32>
    %23 = vector.extract_strided_slice %22 {offsets = [0, 0], sizes = [10, 8], strides = [1, 1]} : vector<10x96xf32> to vector<10x8xf32>
    %24 = vector.extract_strided_slice %22 {offsets = [0, 32], sizes = [10, 8], strides = [1, 1]} : vector<10x96xf32> to vector<10x8xf32>
    %25 = vector.extract_strided_slice %22 {offsets = [0, 64], sizes = [10, 8], strides = [1, 1]} : vector<10x96xf32> to vector<10x8xf32>
    %cst_14 = arith.constant dense<0.000000e+00> : vector<10x10xf32>
    %26 = tpu.matmul %23, %24, %cst_14 {dimension_numbers = #tpu.dot_dimension_numbers<[1], [1], [0], [0], [0, 0, 1, 0], [], []>} : vector<10x8xf32>, vector<10x8xf32>, vector<10x10xf32> -> vector<10x10xf32>
    %cst_15 = arith.constant 0.353553385 : f32
    %27 = vector.broadcast %cst_15 : f32 to vector<10x10xf32>
    %28 = arith.mulf %26, %27 : vector<10x10xf32>
    %29 = arith.addf %28, %10 : vector<10x10xf32>
    %cst_16 = arith.constant dense<0xFF800000> : vector<10xf32>
    %30 = vector.multi_reduction <maximumf>, %29, %cst_16 [1] : vector<10x10xf32> to vector<10xf32>
    %31 = vector.shape_cast %30 : vector<10xf32> to vector<10x1xf32>
    %32 = vector.broadcast %31 : vector<10x1xf32> to vector<10x10xf32>
    %33 = arith.subf %29, %32 : vector<10x10xf32>
    %34 = math.exp %33 : vector<10x10xf32>
    %cst_17 = arith.constant dense<0.000000e+00> : vector<10xf32>
    %35 = vector.multi_reduction <add>, %34, %cst_17 [1] : vector<10x10xf32> to vector<10xf32>
    %36 = vector.shape_cast %35 : vector<10xf32> to vector<10x1xf32>
    %37 = tpu.reciprocal %36 {approx = true} : vector<10x1xf32> -> vector<10x1xf32>
    %38 = vector.broadcast %37 : vector<10x1xf32> to vector<10x10xf32>
    %39 = arith.mulf %34, %38 : vector<10x10xf32>
    %cst_18 = arith.constant dense<0.000000e+00> : vector<10x8xf32>
    %40 = tpu.matmul %39, %25, %cst_18 {dimension_numbers = #tpu.dot_dimension_numbers<[1], [0], [0], [1], [0, 0, 1, 1], [], []>} : vector<10x10xf32>, vector<10x8xf32>, vector<10x8xf32> -> vector<10x8xf32>
    %c40 = arith.constant 40 : index
    %c0_19 = arith.constant 0 : index
    %41 = vector.load %arg1[%c40, %c0_19] : memref<168x128xf32, #tpu.memory_space<vmem>>, vector<8x32xf32>
    %cst_20 = arith.constant dense<0.000000e+00> : vector<10x32xf32>
    %42 = tpu.matmul %40, %41, %cst_20 {dimension_numbers = #tpu.dot_dimension_numbers<[1], [0], [0], [1], [0, 0, 1, 1], [], []>} : vector<10x8xf32>, vector<8x32xf32>, vector<10x32xf32> -> vector<10x32xf32>
    %43 = vector.extract_strided_slice %22 {offsets = [0, 8], sizes = [10, 8], strides = [1, 1]} : vector<10x96xf32> to vector<10x8xf32>
    %44 = vector.extract_strided_slice %22 {offsets = [0, 40], sizes = [10, 8], strides = [1, 1]} : vector<10x96xf32> to vector<10x8xf32>
    %45 = vector.extract_strided_slice %22 {offsets = [0, 72], sizes = [10, 8], strides = [1, 1]} : vector<10x96xf32> to vector<10x8xf32>
    %cst_21 = arith.constant dense<0.000000e+00> : vector<10x10xf32>
    %46 = tpu.matmul %43, %44, %cst_21 {dimension_numbers = #tpu.dot_dimension_numbers<[1], [1], [0], [0], [0, 0, 1, 0], [], []>} : vector<10x8xf32>, vector<10x8xf32>, vector<10x10xf32> -> vector<10x10xf32>
    %cst_22 = arith.constant 0.353553385 : f32
    %47 = vector.broadcast %cst_22 : f32 to vector<10x10xf32>
    %48 = arith.mulf %46, %47 : vector<10x10xf32>
    %49 = arith.addf %48, %10 : vector<10x10xf32>
    %cst_23 = arith.constant dense<0xFF800000> : vector<10xf32>
    %50 = vector.multi_reduction <maximumf>, %49, %cst_23 [1] : vector<10x10xf32> to vector<10xf32>
    %51 = vector.shape_cast %50 : vector<10xf32> to vector<10x1xf32>
    %52 = vector.broadcast %51 : vector<10x1xf32> to vector<10x10xf32>
    %53 = arith.subf %49, %52 : vector<10x10xf32>
    %54 = math.exp %53 : vector<10x10xf32>
    %cst_24 = arith.constant dense<0.000000e+00> : vector<10xf32>
    %55 = vector.multi_reduction <add>, %54, %cst_24 [1] : vector<10x10xf32> to vector<10xf32>
    %56 = vector.shape_cast %55 : vector<10xf32> to vector<10x1xf32>
    %57 = tpu.reciprocal %56 {approx = true} : vector<10x1xf32> -> vector<10x1xf32>
    %58 = vector.broadcast %57 : vector<10x1xf32> to vector<10x10xf32>
    %59 = arith.mulf %54, %58 : vector<10x10xf32>
    %cst_25 = arith.constant dense<0.000000e+00> : vector<10x8xf32>
    %60 = tpu.matmul %59, %45, %cst_25 {dimension_numbers = #tpu.dot_dimension_numbers<[1], [0], [0], [1], [0, 0, 1, 1], [], []>} : vector<10x10xf32>, vector<10x8xf32>, vector<10x8xf32> -> vector<10x8xf32>
    %c48 = arith.constant 48 : index
    %c0_26 = arith.constant 0 : index
    %61 = vector.load %arg1[%c48, %c0_26] : memref<168x128xf32, #tpu.memory_space<vmem>>, vector<8x32xf32>
    %cst_27 = arith.constant dense<0.000000e+00> : vector<10x32xf32>
    %62 = tpu.matmul %60, %61, %cst_27 {dimension_numbers = #tpu.dot_dimension_numbers<[1], [0], [0], [1], [0, 0, 1, 1], [], []>} : vector<10x8xf32>, vector<8x32xf32>, vector<10x32xf32> -> vector<10x32xf32>
    %63 = arith.addf %42, %62 : vector<10x32xf32>
    %64 = vector.extract_strided_slice %22 {offsets = [0, 16], sizes = [10, 8], strides = [1, 1]} : vector<10x96xf32> to vector<10x8xf32>
    %65 = vector.extract_strided_slice %22 {offsets = [0, 48], sizes = [10, 8], strides = [1, 1]} : vector<10x96xf32> to vector<10x8xf32>
    %66 = vector.extract_strided_slice %22 {offsets = [0, 80], sizes = [10, 8], strides = [1, 1]} : vector<10x96xf32> to vector<10x8xf32>
    %cst_28 = arith.constant dense<0.000000e+00> : vector<10x10xf32>
    %67 = tpu.matmul %64, %65, %cst_28 {dimension_numbers = #tpu.dot_dimension_numbers<[1], [1], [0], [0], [0, 0, 1, 0], [], []>} : vector<10x8xf32>, vector<10x8xf32>, vector<10x10xf32> -> vector<10x10xf32>
    %cst_29 = arith.constant 0.353553385 : f32
    %68 = vector.broadcast %cst_29 : f32 to vector<10x10xf32>
    %69 = arith.mulf %67, %68 : vector<10x10xf32>
    %70 = arith.addf %69, %10 : vector<10x10xf32>
    %cst_30 = arith.constant dense<0xFF800000> : vector<10xf32>
    %71 = vector.multi_reduction <maximumf>, %70, %cst_30 [1] : vector<10x10xf32> to vector<10xf32>
    %72 = vector.shape_cast %71 : vector<10xf32> to vector<10x1xf32>
    %73 = vector.broadcast %72 : vector<10x1xf32> to vector<10x10xf32>
    %74 = arith.subf %70, %73 : vector<10x10xf32>
    %75 = math.exp %74 : vector<10x10xf32>
    %cst_31 = arith.constant dense<0.000000e+00> : vector<10xf32>
    %76 = vector.multi_reduction <add>, %75, %cst_31 [1] : vector<10x10xf32> to vector<10xf32>
    %77 = vector.shape_cast %76 : vector<10xf32> to vector<10x1xf32>
    %78 = tpu.reciprocal %77 {approx = true} : vector<10x1xf32> -> vector<10x1xf32>
    %79 = vector.broadcast %78 : vector<10x1xf32> to vector<10x10xf32>
    %80 = arith.mulf %75, %79 : vector<10x10xf32>
    %cst_32 = arith.constant dense<0.000000e+00> : vector<10x8xf32>
    %81 = tpu.matmul %80, %66, %cst_32 {dimension_numbers = #tpu.dot_dimension_numbers<[1], [0], [0], [1], [0, 0, 1, 1], [], []>} : vector<10x10xf32>, vector<10x8xf32>, vector<10x8xf32> -> vector<10x8xf32>
    %c56 = arith.constant 56 : index
    %c0_33 = arith.constant 0 : index
    %82 = vector.load %arg1[%c56, %c0_33] : memref<168x128xf32, #tpu.memory_space<vmem>>, vector<8x32xf32>
    %cst_34 = arith.constant dense<0.000000e+00> : vector<10x32xf32>
    %83 = tpu.matmul %81, %82, %cst_34 {dimension_numbers = #tpu.dot_dimension_numbers<[1], [0], [0], [1], [0, 0, 1, 1], [], []>} : vector<10x8xf32>, vector<8x32xf32>, vector<10x32xf32> -> vector<10x32xf32>
    %84 = arith.addf %63, %83 : vector<10x32xf32>
    %85 = vector.extract_strided_slice %22 {offsets = [0, 24], sizes = [10, 8], strides = [1, 1]} : vector<10x96xf32> to vector<10x8xf32>
    %86 = vector.extract_strided_slice %22 {offsets = [0, 56], sizes = [10, 8], strides = [1, 1]} : vector<10x96xf32> to vector<10x8xf32>
    %87 = vector.extract_strided_slice %22 {offsets = [0, 88], sizes = [10, 8], strides = [1, 1]} : vector<10x96xf32> to vector<10x8xf32>
    %cst_35 = arith.constant dense<0.000000e+00> : vector<10x10xf32>
    %88 = tpu.matmul %85, %86, %cst_35 {dimension_numbers = #tpu.dot_dimension_numbers<[1], [1], [0], [0], [0, 0, 1, 0], [], []>} : vector<10x8xf32>, vector<10x8xf32>, vector<10x10xf32> -> vector<10x10xf32>
    %cst_36 = arith.constant 0.353553385 : f32
    %89 = vector.broadcast %cst_36 : f32 to vector<10x10xf32>
    %90 = arith.mulf %88, %89 : vector<10x10xf32>
    %91 = arith.addf %90, %10 : vector<10x10xf32>
    %cst_37 = arith.constant dense<0xFF800000> : vector<10xf32>
    %92 = vector.multi_reduction <maximumf>, %91, %cst_37 [1] : vector<10x10xf32> to vector<10xf32>
    %93 = vector.shape_cast %92 : vector<10xf32> to vector<10x1xf32>
    %94 = vector.broadcast %93 : vector<10x1xf32> to vector<10x10xf32>
    %95 = arith.subf %91, %94 : vector<10x10xf32>
    %96 = math.exp %95 : vector<10x10xf32>
    %cst_38 = arith.constant dense<0.000000e+00> : vector<10xf32>
    %97 = vector.multi_reduction <add>, %96, %cst_38 [1] : vector<10x10xf32> to vector<10xf32>
    %98 = vector.shape_cast %97 : vector<10xf32> to vector<10x1xf32>
    %99 = tpu.reciprocal %98 {approx = true} : vector<10x1xf32> -> vector<10x1xf32>
    %100 = vector.broadcast %99 : vector<10x1xf32> to vector<10x10xf32>
    %101 = arith.mulf %96, %100 : vector<10x10xf32>
    %cst_39 = arith.constant dense<0.000000e+00> : vector<10x8xf32>
    %102 = tpu.matmul %101, %87, %cst_39 {dimension_numbers = #tpu.dot_dimension_numbers<[1], [0], [0], [1], [0, 0, 1, 1], [], []>} : vector<10x10xf32>, vector<10x8xf32>, vector<10x8xf32> -> vector<10x8xf32>
    %c64 = arith.constant 64 : index
    %c0_40 = arith.constant 0 : index
    %103 = vector.load %arg1[%c64, %c0_40] : memref<168x128xf32, #tpu.memory_space<vmem>>, vector<8x32xf32>
    %cst_41 = arith.constant dense<0.000000e+00> : vector<10x32xf32>
    %104 = tpu.matmul %102, %103, %cst_41 {dimension_numbers = #tpu.dot_dimension_numbers<[1], [0], [0], [1], [0, 0, 1, 1], [], []>} : vector<10x8xf32>, vector<8x32xf32>, vector<10x32xf32> -> vector<10x32xf32>
    %105 = arith.addf %84, %104 : vector<10x32xf32>
    %106 = arith.addf %0, %105 : vector<10x32xf32>
    %107 = vector.broadcast %13 : vector<1x32xf32> to vector<10x32xf32>
    %108 = arith.addf %106, %107 : vector<10x32xf32>
    %cst_42 = arith.constant dense<0.000000e+00> : vector<10xf32>
    %109 = vector.multi_reduction <add>, %108, %cst_42 [1] : vector<10x32xf32> to vector<10xf32>
    %110 = vector.shape_cast %109 : vector<10xf32> to vector<10x1xf32>
    %cst_43 = arith.constant 3.200000e+01 : f32
    %111 = vector.broadcast %cst_43 : f32 to vector<10x1xf32>
    %112 = arith.divf %110, %111 : vector<10x1xf32>
    %113 = vector.broadcast %112 : vector<10x1xf32> to vector<10x32xf32>
    %114 = arith.subf %108, %113 : vector<10x32xf32>
    %115 = arith.mulf %114, %114 : vector<10x32xf32>
    %cst_44 = arith.constant dense<0.000000e+00> : vector<10xf32>
    %116 = vector.multi_reduction <add>, %115, %cst_44 [1] : vector<10x32xf32> to vector<10xf32>
    %117 = vector.shape_cast %116 : vector<10xf32> to vector<10x1xf32>
    %cst_45 = arith.constant 3.200000e+01 : f32
    %118 = vector.broadcast %cst_45 : f32 to vector<10x1xf32>
    %119 = arith.divf %117, %118 : vector<10x1xf32>
    %120 = vector.broadcast %112 : vector<10x1xf32> to vector<10x32xf32>
    %121 = arith.subf %108, %120 : vector<10x32xf32>
    %cst_46 = arith.constant 9.99999974E-6 : f32
    %122 = vector.broadcast %cst_46 : f32 to vector<10x1xf32>
    %123 = arith.addf %119, %122 : vector<10x1xf32>
    %124 = math.rsqrt %123 : vector<10x1xf32>
    %125 = vector.broadcast %124 : vector<10x1xf32> to vector<10x32xf32>
    %126 = arith.mulf %121, %125 : vector<10x32xf32>
    %127 = vector.broadcast %16 : vector<1x32xf32> to vector<10x32xf32>
    %128 = arith.mulf %126, %127 : vector<10x32xf32>
    %129 = vector.broadcast %17 : vector<1x32xf32> to vector<10x32xf32>
    %130 = arith.addf %128, %129 : vector<10x32xf32>
    %c72 = arith.constant 72 : index
    %c0_47 = arith.constant 0 : index
    %131 = vector.load %arg1[%c72, %c0_47] : memref<168x128xf32, #tpu.memory_space<vmem>>, vector<32x64xf32>
    %c104 = arith.constant 104 : index
    %c0_48 = arith.constant 0 : index
    %132 = vector.load %arg1[%c104, %c0_48] : memref<168x128xf32, #tpu.memory_space<vmem>>, vector<64x32xf32>
    %cst_49 = arith.constant dense<0.000000e+00> : vector<10x64xf32>
    %133 = tpu.matmul %130, %131, %cst_49 {dimension_numbers = #tpu.dot_dimension_numbers<[1], [0], [0], [1], [0, 0, 1, 1], [], []>} : vector<10x32xf32>, vector<32x64xf32>, vector<10x64xf32> -> vector<10x64xf32>
    %134 = vector.broadcast %14 : vector<1x64xf32> to vector<10x64xf32>
    %135 = arith.addf %133, %134 : vector<10x64xf32>
    %cst_50 = arith.constant 0.000000e+00 : f32
    %136 = vector.broadcast %cst_50 : f32 to vector<10x64xf32>
    %137 = arith.maximumf %135, %136 : vector<10x64xf32>
    %cst_51 = arith.constant dense<0.000000e+00> : vector<10x32xf32>
    %138 = tpu.matmul %137, %132, %cst_51 {dimension_numbers = #tpu.dot_dimension_numbers<[1], [0], [0], [1], [0, 0, 1, 1], [], []>} : vector<10x64xf32>, vector<64x32xf32>, vector<10x32xf32> -> vector<10x32xf32>
    %139 = vector.broadcast %15 : vector<1x32xf32> to vector<10x32xf32>
    %140 = arith.addf %138, %139 : vector<10x32xf32>
    %141 = arith.addf %130, %140 : vector<10x32xf32>
    %cst_52 = arith.constant dense<0.000000e+00> : vector<10xf32>
    %142 = vector.multi_reduction <add>, %141, %cst_52 [1] : vector<10x32xf32> to vector<10xf32>
    %143 = vector.shape_cast %142 : vector<10xf32> to vector<10x1xf32>
    %cst_53 = arith.constant 3.200000e+01 : f32
    %144 = vector.broadcast %cst_53 : f32 to vector<10x1xf32>
    %145 = arith.divf %143, %144 : vector<10x1xf32>
    %146 = vector.broadcast %145 : vector<10x1xf32> to vector<10x32xf32>
    %147 = arith.subf %141, %146 : vector<10x32xf32>
    %148 = arith.mulf %147, %147 : vector<10x32xf32>
    %cst_54 = arith.constant dense<0.000000e+00> : vector<10xf32>
    %149 = vector.multi_reduction <add>, %148, %cst_54 [1] : vector<10x32xf32> to vector<10xf32>
    %150 = vector.shape_cast %149 : vector<10xf32> to vector<10x1xf32>
    %cst_55 = arith.constant 3.200000e+01 : f32
    %151 = vector.broadcast %cst_55 : f32 to vector<10x1xf32>
    %152 = arith.divf %150, %151 : vector<10x1xf32>
    %153 = vector.broadcast %145 : vector<10x1xf32> to vector<10x32xf32>
    %154 = arith.subf %141, %153 : vector<10x32xf32>
    %cst_56 = arith.constant 9.99999974E-6 : f32
    %155 = vector.broadcast %cst_56 : f32 to vector<10x1xf32>
    %156 = arith.addf %152, %155 : vector<10x1xf32>
    %157 = math.rsqrt %156 : vector<10x1xf32>
    %158 = vector.broadcast %157 : vector<10x1xf32> to vector<10x32xf32>
    %159 = arith.mulf %154, %158 : vector<10x32xf32>
    %160 = vector.broadcast %18 : vector<1x32xf32> to vector<10x32xf32>
    %161 = arith.mulf %159, %160 : vector<10x32xf32>
    %162 = vector.broadcast %19 : vector<1x32xf32> to vector<10x32xf32>
    %163 = arith.addf %161, %162 : vector<10x32xf32>
    %c0_57 = arith.constant 0 : index
    %c0_58 = arith.constant 0 : index
    %164 = vector.load %arg5[%c0_57, %c0_58] : memref<10x32xf32, #tpu.memory_space<vmem>>, vector<10x32xf32>
    tpu.vector_store %arg5[%c0_57, %c0_58], %163 {strides = array<i32>} : memref<10x32xf32, #tpu.memory_space<vmem>>, vector<10x32xf32>,
    %c0_59 = arith.constant 0 : index
    %c0_60 = arith.constant 0 : index
    %165 = vector.load %arg2[%c0_59, %c0_60] : memref<104x128xf32, #tpu.memory_space<vmem>>, vector<32x32xf32>
    %c32_61 = arith.constant 32 : index
    %c0_62 = arith.constant 0 : index
    %166 = vector.load %arg2[%c32_61, %c0_62] : memref<104x128xf32, #tpu.memory_space<vmem>>, vector<32x32xf32>
    %c64_63 = arith.constant 64 : index
    %c0_64 = arith.constant 0 : index
    %167 = vector.load %arg2[%c64_63, %c0_64] : memref<104x128xf32, #tpu.memory_space<vmem>>, vector<32x32xf32>
    %c96 = arith.constant 96 : index
    %c0_65 = arith.constant 0 : index
    %168 = vector.load %arg2[%c96, %c0_65] : memref<104x128xf32, #tpu.memory_space<vmem>>, vector<1x32xf32>
    %c97 = arith.constant 97 : index
    %c0_66 = arith.constant 0 : index
    %169 = vector.load %arg2[%c97, %c0_66] : memref<104x128xf32, #tpu.memory_space<vmem>>, vector<1x32xf32>
    %cst_67 = arith.constant dense<0.000000e+00> : vector<10x32xf32>
    %170 = tpu.matmul %163, %165, %cst_67 {dimension_numbers = #tpu.dot_dimension_numbers<[1], [0], [0], [1], [0, 0, 1, 1], [], []>} : vector<10x32xf32>, vector<32x32xf32>, vector<10x32xf32> -> vector<10x32xf32>
    %cst_68 = arith.constant dense<0.000000e+00> : vector<10x32xf32>
    %171 = tpu.matmul %163, %166, %cst_68 {dimension_numbers = #tpu.dot_dimension_numbers<[1], [0], [0], [1], [0, 0, 1, 1], [], []>} : vector<10x32xf32>, vector<32x32xf32>, vector<10x32xf32> -> vector<10x32xf32>
    %172 = tpu.iota {dimensions = array<i32: 0>} : vector<24x10xi32>
    %173 = tpu.iota {dimensions = array<i32: 1>} : vector<24x10xi32>
    %c1_i32_69 = arith.constant 1 : i32
    %174 = vector.broadcast %c1_i32_69 : i32 to vector<24x10xi32>
    %175 = arith.shrsi %172, %174 : vector<24x10xi32>
    %c1_i32_70 = arith.constant 1 : i32
    %176 = vector.broadcast %c1_i32_70 : i32 to vector<24x10xi32>
    %177 = arith.andi %172, %176 : vector<24x10xi32>
    %c0_i32 = arith.constant 0 : i32
    %178 = vector.broadcast %c0_i32 : i32 to vector<24x10xi32>
    %c3_i32 = arith.constant 3 : i32
    %179 = vector.broadcast %c3_i32 : i32 to vector<24x10xi32>
    %180 = arith.cmpi sge, %175, %179 : vector<24x10xi32>
    %181 = arith.extui %180 : vector<24x10xi1> to vector<24x10xi32>
    %182 = arith.addi %178, %181 : vector<24x10xi32>
    %c6_i32 = arith.constant 6 : i32
    %183 = vector.broadcast %c6_i32 : i32 to vector<24x10xi32>
    %184 = arith.cmpi sge, %175, %183 : vector<24x10xi32>
    %185 = arith.extui %184 : vector<24x10xi1> to vector<24x10xi32>
    %186 = arith.addi %182, %185 : vector<24x10xi32>
    %c9_i32 = arith.constant 9 : i32
    %187 = vector.broadcast %c9_i32 : i32 to vector<24x10xi32>
    %188 = arith.cmpi sge, %175, %187 : vector<24x10xi32>
    %189 = arith.extui %188 : vector<24x10xi1> to vector<24x10xi32>
    %190 = arith.addi %186, %189 : vector<24x10xi32>
    %c3_i32_71 = arith.constant 3 : i32
    %191 = vector.broadcast %c3_i32_71 : i32 to vector<24x10xi32>
    %192 = arith.muli %190, %191 : vector<24x10xi32>
    %193 = arith.subi %175, %192 : vector<24x10xi32>
    %194 = arith.cmpi sge, %193, %190 : vector<24x10xi32>
    %195 = arith.extui %194 : vector<24x10xi1> to vector<24x10xi32>
    %196 = arith.addi %193, %195 : vector<24x10xi32>
    %c1_i32_72 = arith.constant 1 : i32
    %197 = vector.broadcast %c1_i32_72 : i32 to vector<24x10xi32>
    %198 = arith.addi %197, %190 : vector<24x10xi32>
    %c2_i32 = arith.constant 2 : i32
    %199 = vector.broadcast %c2_i32 : i32 to vector<24x10xi32>
    %200 = arith.muli %198, %199 : vector<24x10xi32>
    %201 = arith.addi %200, %177 : vector<24x10xi32>
    %202 = arith.cmpi eq, %173, %201 : vector<24x10xi32>
    %203 = arith.extui %202 : vector<24x10xi1> to vector<24x10xi32>
    %204 = arith.sitofp %203 : vector<24x10xi32> to vector<24x10xf32>
    %c1_i32_73 = arith.constant 1 : i32
    %205 = vector.broadcast %c1_i32_73 : i32 to vector<24x10xi32>
    %206 = arith.addi %205, %196 : vector<24x10xi32>
    %c2_i32_74 = arith.constant 2 : i32
    %207 = vector.broadcast %c2_i32_74 : i32 to vector<24x10xi32>
    %208 = arith.muli %206, %207 : vector<24x10xi32>
    %209 = arith.addi %208, %177 : vector<24x10xi32>
    %210 = arith.cmpi eq, %173, %209 : vector<24x10xi32>
    %211 = arith.extui %210 : vector<24x10xi1> to vector<24x10xi32>
    %212 = arith.sitofp %211 : vector<24x10xi32> to vector<24x10xf32>
    %cst_75 = arith.constant dense<0.000000e+00> : vector<24x32xf32>
    %213 = tpu.matmul %204, %170, %cst_75 {dimension_numbers = #tpu.dot_dimension_numbers<[1], [0], [0], [1], [0, 0, 1, 1], [], []>} : vector<24x10xf32>, vector<10x32xf32>, vector<24x32xf32> -> vector<24x32xf32>
    %cst_76 = arith.constant dense<0.000000e+00> : vector<24x32xf32>
    %214 = tpu.matmul %212, %171, %cst_76 {dimension_numbers = #tpu.dot_dimension_numbers<[1], [0], [0], [1], [0, 0, 1, 1], [], []>} : vector<24x10xf32>, vector<10x32xf32>, vector<24x32xf32> -> vector<24x32xf32>
    %215 = arith.addf %213, %214 : vector<24x32xf32>
    %216 = vector.broadcast %168 : vector<1x32xf32> to vector<24x32xf32>
    %217 = arith.addf %215, %216 : vector<24x32xf32>
    %cst_77 = arith.constant 0.000000e+00 : f32
    %218 = vector.broadcast %cst_77 : f32 to vector<24x32xf32>
    %219 = arith.maximumf %217, %218 : vector<24x32xf32>
    %cst_78 = arith.constant dense<0.000000e+00> : vector<24x32xf32>
    %220 = tpu.matmul %219, %167, %cst_78 {dimension_numbers = #tpu.dot_dimension_numbers<[1], [0], [0], [1], [0, 0, 1, 1], [], []>} : vector<24x32xf32>, vector<32x32xf32>, vector<24x32xf32> -> vector<24x32xf32>
    %221 = vector.broadcast %169 : vector<1x32xf32> to vector<24x32xf32>
    %222 = arith.addf %220, %221 : vector<24x32xf32>
    %223 = vector.extract_strided_slice %163 {offsets = [0, 0], sizes = [2, 32], strides = [1, 1]} : vector<10x32xf32> to vector<2x32xf32>
    %c0_79 = arith.constant 0 : index
    %c0_80 = arith.constant 0 : index
    %224 = vector.load %arg6[%c0_79, %c0_80] : memref<26x32xf32, #tpu.memory_space<vmem>>, vector<2x32xf32>
    tpu.vector_store %arg6[%c0_79, %c0_80], %223 {strides = array<i32>} : memref<26x32xf32, #tpu.memory_space<vmem>>, vector<2x32xf32>,
    %c0_81 = arith.constant 0 : index
    %c0_82 = arith.constant 0 : index
    %225 = vector.load %arg3[%c0_81, %c0_82] : memref<24x32xf32, #tpu.memory_space<vmem>>, vector<24x32xf32>
    %226 = arith.addf %225, %222 : vector<24x32xf32>
    %c2 = arith.constant 2 : index
    %c0_83 = arith.constant 0 : index
    %227 = vector.load %arg6[%c2, %c0_83] : memref<26x32xf32, #tpu.memory_space<vmem>>, vector<24x32xf32>
    tpu.vector_store %arg6[%c2, %c0_83], %226 {strides = array<i32>} : memref<26x32xf32, #tpu.memory_space<vmem>>, vector<24x32xf32>,
    %228 = tpu.iota {dimensions = array<i32: 0>} : vector<8x10xi32>
    %229 = tpu.iota {dimensions = array<i32: 1>} : vector<8x10xi32>
    %c2_i32_84 = arith.constant 2 : i32
    %230 = vector.broadcast %c2_i32_84 : i32 to vector<8x10xi32>
    %231 = arith.shrsi %228, %230 : vector<8x10xi32>
    %c3_i32_85 = arith.constant 3 : i32
    %232 = vector.broadcast %c3_i32_85 : i32 to vector<8x10xi32>
    %233 = arith.andi %228, %232 : vector<8x10xi32>
    %c1_i32_86 = arith.constant 1 : i32
    %234 = vector.broadcast %c1_i32_86 : i32 to vector<8x10xi32>
    %235 = arith.addi %234, %233 : vector<8x10xi32>
    %c2_i32_87 = arith.constant 2 : i32
    %236 = vector.broadcast %c2_i32_87 : i32 to vector<8x10xi32>
    %237 = arith.muli %235, %236 : vector<8x10xi32>
    %238 = arith.addi %237, %231 : vector<8x10xi32>
    %239 = arith.cmpi eq, %229, %238 : vector<8x10xi32>
    %240 = arith.extui %239 : vector<8x10xi1> to vector<8x10xi32>
    %241 = arith.sitofp %240 : vector<8x10xi32> to vector<8x10xf32>
    %cst_88 = arith.constant dense<0.000000e+00> : vector<8x32xf32>
    %242 = tpu.matmul %241, %163, %cst_88 {dimension_numbers = #tpu.dot_dimension_numbers<[1], [0], [0], [1], [0, 0, 1, 1], [], []>} : vector<8x10xf32>, vector<10x32xf32>, vector<8x32xf32> -> vector<8x32xf32>
    %243 = arith.mulf %242, %242 : vector<8x32xf32>
    %cst_89 = arith.constant dense<0.000000e+00> : vector<8xf32>
    %244 = vector.multi_reduction <add>, %243, %cst_89 [1] : vector<8x32xf32> to vector<8xf32>
    %245 = vector.shape_cast %244 : vector<8xf32> to vector<8x1xf32>
    %cst_90 = arith.constant 9.99999996E-13 : f32
    %246 = vector.broadcast %cst_90 : f32 to vector<8x1xf32>
    %247 = arith.maximumf %245, %246 : vector<8x1xf32>
    %248 = math.rsqrt %247 : vector<8x1xf32>
    %249 = vector.broadcast %248 : vector<8x1xf32> to vector<8x32xf32>
    %250 = arith.mulf %242, %249 : vector<8x32xf32>
    %251 = tpu.iota {dimensions = array<i32: 1>} : vector<8x2xi32>
    %252 = arith.sitofp %251 : vector<8x2xi32> to vector<8x2xf32>
    %cst_91 = arith.constant 1.000000e+00 : f32
    %253 = vector.broadcast %cst_91 : f32 to vector<8x32xf32>
    %254 = vector.extract_strided_slice %250 {offsets = [0, 0], sizes = [2, 32], strides = [1, 1]} : vector<8x32xf32> to vector<2x32xf32>
    %c0_i32_92 = arith.constant 0 : i32
    %c10_i32 = arith.constant 10 : i32
    %255 = arith.addi %c0_i32_92, %c10_i32 : i32
    %c1_i32_93 = arith.constant 1 : i32
    %256 = scf.for %arg8 = %c0_i32_92 to %255 step %c1_i32_93 iter_args(%arg9 = %254) -> (vector<2x32xf32>)  : i32 {
      %306 = arith.mulf %arg9, %arg9 : vector<2x32xf32>
      %cst_112 = arith.constant dense<0.000000e+00> : vector<2xf32>
      %307 = vector.multi_reduction <add>, %306, %cst_112 [1] : vector<2x32xf32> to vector<2xf32>
      %308 = vector.shape_cast %307 : vector<2xf32> to vector<2x1xf32>
      %cst_113 = arith.constant 9.99999996E-13 : f32
      %309 = vector.broadcast %cst_113 : f32 to vector<2x1xf32>
      %310 = arith.maximumf %308, %309 : vector<2x1xf32>
      %311 = math.rsqrt %310 : vector<2x1xf32>
      %312 = vector.broadcast %311 : vector<2x1xf32> to vector<2x32xf32>
      %313 = arith.mulf %arg9, %312 : vector<2x32xf32>
      %cst_114 = arith.constant dense<0.000000e+00> : vector<8x2xf32>
      %314 = tpu.matmul %250, %313, %cst_114 {dimension_numbers = #tpu.dot_dimension_numbers<[1], [1], [0], [0], [0, 0, 1, 0], [], []>} : vector<8x32xf32>, vector<2x32xf32>, vector<8x2xf32> -> vector<8x2xf32>
      %cst_115 = arith.constant dense<0xFF800000> : vector<8xf32>
      %315 = vector.multi_reduction <maximumf>, %314, %cst_115 [1] : vector<8x2xf32> to vector<8xf32>
      %316 = vector.shape_cast %315 : vector<8xf32> to vector<8x1xf32>
      %317 = vector.broadcast %316 : vector<8x1xf32> to vector<8x2xf32>
      %318 = arith.cmpf oge, %314, %317 : vector<8x2xf32>
      %cst_116 = arith.constant 2.000000e+00 : f32
      %319 = vector.broadcast %cst_116 : f32 to vector<8x2xf32>
      %320 = arith.select %318, %252, %319 : vector<8x2xi1>, vector<8x2xf32>
      %cst_117 = arith.constant dense<0x7F800000> : vector<8xf32>
      %321 = vector.multi_reduction <minimumf>, %320, %cst_117 [1] : vector<8x2xf32> to vector<8xf32>
      %322 = vector.shape_cast %321 : vector<8xf32> to vector<8x1xf32>
      %323 = vector.broadcast %322 : vector<8x1xf32> to vector<8x2xf32>
      %324 = arith.cmpf oeq, %252, %323 : vector<8x2xf32>
      %325 = arith.extui %324 : vector<8x2xi1> to vector<8x2xi32>
      %326 = arith.sitofp %325 : vector<8x2xi32> to vector<8x2xf32>
      %cst_118 = arith.constant dense<0.000000e+00> : vector<2x32xf32>
      %327 = tpu.matmul %326, %250, %cst_118 {dimension_numbers = #tpu.dot_dimension_numbers<[0], [0], [1], [1], [0, 1, 1, 1], [], []>} : vector<8x2xf32>, vector<8x32xf32>, vector<2x32xf32> -> vector<2x32xf32>
      %cst_119 = arith.constant dense<0.000000e+00> : vector<2x32xf32>
      %328 = tpu.matmul %326, %253, %cst_119 {dimension_numbers = #tpu.dot_dimension_numbers<[0], [0], [1], [1], [0, 1, 1, 1], [], []>} : vector<8x2xf32>, vector<8x32xf32>, vector<2x32xf32> -> vector<2x32xf32>
      %cst_120 = arith.constant 5.000000e-01 : f32
      %329 = vector.broadcast %cst_120 : f32 to vector<2x32xf32>
      %330 = arith.cmpf ogt, %328, %329 : vector<2x32xf32>
      %cst_121 = arith.constant 1.000000e+00 : f32
      %331 = vector.broadcast %cst_121 : f32 to vector<2x32xf32>
      %332 = arith.maximumf %328, %331 : vector<2x32xf32>
      %333 = arith.divf %327, %332 : vector<2x32xf32>
      %334 = arith.select %330, %333, %arg9 : vector<2x32xi1>, vector<2x32xf32>
      scf.yield %334 : vector<2x32xf32>
    }
    %257 = arith.mulf %256, %256 : vector<2x32xf32>
    %cst_94 = arith.constant dense<0.000000e+00> : vector<2xf32>
    %258 = vector.multi_reduction <add>, %257, %cst_94 [1] : vector<2x32xf32> to vector<2xf32>
    %259 = vector.shape_cast %258 : vector<2xf32> to vector<2x1xf32>
    %cst_95 = arith.constant 9.99999996E-13 : f32
    %260 = vector.broadcast %cst_95 : f32 to vector<2x1xf32>
    %261 = arith.maximumf %259, %260 : vector<2x1xf32>
    %262 = math.rsqrt %261 : vector<2x1xf32>
    %263 = vector.broadcast %262 : vector<2x1xf32> to vector<2x32xf32>
    %264 = arith.mulf %256, %263 : vector<2x32xf32>
    %cst_96 = arith.constant dense<0.000000e+00> : vector<8x2xf32>
    %265 = tpu.matmul %250, %264, %cst_96 {dimension_numbers = #tpu.dot_dimension_numbers<[1], [1], [0], [0], [0, 0, 1, 0], [], []>} : vector<8x32xf32>, vector<2x32xf32>, vector<8x2xf32> -> vector<8x2xf32>
    %cst_97 = arith.constant dense<0xFF800000> : vector<8xf32>
    %266 = vector.multi_reduction <maximumf>, %265, %cst_97 [1] : vector<8x2xf32> to vector<8xf32>
    %267 = vector.shape_cast %266 : vector<8xf32> to vector<8x1xf32>
    %268 = vector.broadcast %267 : vector<8x1xf32> to vector<8x2xf32>
    %269 = arith.cmpf oge, %265, %268 : vector<8x2xf32>
    %cst_98 = arith.constant 2.000000e+00 : f32
    %270 = vector.broadcast %cst_98 : f32 to vector<8x2xf32>
    %271 = arith.select %269, %252, %270 : vector<8x2xi1>, vector<8x2xf32>
    %cst_99 = arith.constant dense<0x7F800000> : vector<8xf32>
    %272 = vector.multi_reduction <minimumf>, %271, %cst_99 [1] : vector<8x2xf32> to vector<8xf32>
    %273 = vector.shape_cast %272 : vector<8xf32> to vector<8x1xf32>
    %274 = vector.broadcast %273 : vector<8x1xf32> to vector<8x2xf32>
    %275 = arith.cmpf oeq, %252, %274 : vector<8x2xf32>
    %276 = arith.extui %275 : vector<8x2xi1> to vector<8x2xi32>
    %277 = arith.sitofp %276 : vector<8x2xi32> to vector<8x2xf32>
    %278 = tpu.iota {dimensions = array<i32: 0>} : vector<4x2xi32>
    %279 = tpu.iota {dimensions = array<i32: 1>} : vector<4x2xi32>
    %280 = vector.extract_strided_slice %277 {offsets = [0, 0], sizes = [4, 2], strides = [1, 1]} : vector<8x2xf32> to vector<4x2xf32>
    %281 = vector.extract_strided_slice %242 {offsets = [0, 0], sizes = [4, 32], strides = [1, 1]} : vector<8x32xf32> to vector<4x32xf32>
    %cst_100 = arith.constant dense<0.000000e+00> : vector<2x32xf32>
    %282 = tpu.matmul %280, %281, %cst_100 {dimension_numbers = #tpu.dot_dimension_numbers<[0], [0], [1], [1], [0, 1, 1, 1], [], []>} : vector<4x2xf32>, vector<4x32xf32>, vector<2x32xf32> -> vector<2x32xf32>
    %c2_i32_101 = arith.constant 2 : i32
    %283 = vector.broadcast %c2_i32_101 : i32 to vector<4x2xi32>
    %284 = arith.muli %279, %283 : vector<4x2xi32>
    %c0_i32_102 = arith.constant 0 : i32
    %285 = vector.broadcast %c0_i32_102 : i32 to vector<4x2xi32>
    %286 = arith.addi %284, %285 : vector<4x2xi32>
    %287 = arith.cmpi eq, %278, %286 : vector<4x2xi32>
    %288 = arith.extui %287 : vector<4x2xi1> to vector<4x2xi32>
    %289 = arith.sitofp %288 : vector<4x2xi32> to vector<4x2xf32>
    %cst_103 = arith.constant dense<0.000000e+00> : vector<4x32xf32>
    %290 = tpu.matmul %289, %282, %cst_103 {dimension_numbers = #tpu.dot_dimension_numbers<[1], [0], [0], [1], [0, 0, 1, 1], [], []>} : vector<4x2xf32>, vector<2x32xf32>, vector<4x32xf32> -> vector<4x32xf32>
    %291 = vector.extract_strided_slice %277 {offsets = [4, 0], sizes = [4, 2], strides = [1, 1]} : vector<8x2xf32> to vector<4x2xf32>
    %292 = vector.extract_strided_slice %242 {offsets = [4, 0], sizes = [4, 32], strides = [1, 1]} : vector<8x32xf32> to vector<4x32xf32>
    %cst_104 = arith.constant dense<0.000000e+00> : vector<2x32xf32>
    %293 = tpu.matmul %291, %292, %cst_104 {dimension_numbers = #tpu.dot_dimension_numbers<[0], [0], [1], [1], [0, 1, 1, 1], [], []>} : vector<4x2xf32>, vector<4x32xf32>, vector<2x32xf32> -> vector<2x32xf32>
    %c2_i32_105 = arith.constant 2 : i32
    %294 = vector.broadcast %c2_i32_105 : i32 to vector<4x2xi32>
    %295 = arith.muli %279, %294 : vector<4x2xi32>
    %c1_i32_106 = arith.constant 1 : i32
    %296 = vector.broadcast %c1_i32_106 : i32 to vector<4x2xi32>
    %297 = arith.addi %295, %296 : vector<4x2xi32>
    %298 = arith.cmpi eq, %278, %297 : vector<4x2xi32>
    %299 = arith.extui %298 : vector<4x2xi1> to vector<4x2xi32>
    %300 = arith.sitofp %299 : vector<4x2xi32> to vector<4x2xf32>
    %cst_107 = arith.constant dense<0.000000e+00> : vector<4x32xf32>
    %301 = tpu.matmul %300, %293, %cst_107 {dimension_numbers = #tpu.dot_dimension_numbers<[1], [0], [0], [1], [0, 0, 1, 1], [], []>} : vector<4x2xf32>, vector<2x32xf32>, vector<4x32xf32> -> vector<4x32xf32>
    %302 = arith.addf %290, %301 : vector<4x32xf32>
    %c0_108 = arith.constant 0 : index
    %c0_109 = arith.constant 0 : index
    %303 = vector.load %arg4[%c0_108, %c0_109] : memref<4x32xf32, #tpu.memory_space<vmem>>, vector<4x32xf32>
    %304 = arith.addf %303, %302 : vector<4x32xf32>
    %c0_110 = arith.constant 0 : index
    %c0_111 = arith.constant 0 : index
    %305 = vector.load %arg7[%c0_110, %c0_111] : memref<4x32xf32, #tpu.memory_space<vmem>>, vector<4x32xf32>
    tpu.vector_store %arg7[%c0_110, %c0_111], %304 {strides = array<i32>} : memref<4x32xf32, #tpu.memory_space<vmem>>, vector<4x32xf32>,
    return
  }
}

module attributes {stable_mosaic.version = 11 : i64} {
  func.func @inner_kernel(%arg0: memref<34x32xf32, #tpu.memory_space<vmem>>, %arg1: memref<168x128xf32, #tpu.memory_space<vmem>>, %arg2: memref<168x128xf32, #tpu.memory_space<vmem>>, %arg3: memref<8x32xf32, #tpu.memory_space<vmem>>, %arg4: memref<34x32xf32, #tpu.memory_space<vmem>>, %arg5: memref<10x32xf32, #tpu.memory_space<vmem>>, %arg6: memref<8x128xf32, #tpu.memory_space<vmem>>) attributes {dimension_semantics = [], scalar_prefetch = 0 : i64, scratch_operands = 1 : i64, tpu.core_type = #tpu.core_type<tc>} {
    %c0 = arith.constant 0 : index
    %c0_0 = arith.constant 0 : index
    %0 = vector.load %arg0[%c0, %c0_0] : memref<34x32xf32, #tpu.memory_space<vmem>>, vector<34x32xf32>
    %1 = tpu.iota {dimensions = array<i32: 0>} : vector<34x34xi32>
    %2 = tpu.iota {dimensions = array<i32: 1>} : vector<34x34xi32>
    %c1_i32 = arith.constant 1 : i32
    %3 = vector.broadcast %c1_i32 : i32 to vector<34x34xi32>
    %4 = arith.andi %1, %3 : vector<34x34xi32>
    %c1_i32_1 = arith.constant 1 : i32
    %5 = vector.broadcast %c1_i32_1 : i32 to vector<34x34xi32>
    %6 = arith.andi %2, %5 : vector<34x34xi32>
    %7 = arith.cmpi eq, %4, %6 : vector<34x34xi32>
    %cst = arith.constant 0.000000e+00 : f32
    %cst_2 = arith.constant -1.000000e+09 : f32
    %8 = vector.broadcast %cst : f32 to vector<34x34xf32>
    %9 = vector.broadcast %cst_2 : f32 to vector<34x34xf32>
    %10 = arith.select %7, %8, %9 : vector<34x34xi1>, vector<34x34xf32>
    %c0_3 = arith.constant 0 : index
    %c0_4 = arith.constant 0 : index
    %11 = vector.load %arg1[%c0_3, %c0_4] : memref<168x128xf32, #tpu.memory_space<vmem>>, vector<32x96xf32>
    %c32 = arith.constant 32 : index
    %c0_5 = arith.constant 0 : index
    %12 = vector.load %arg1[%c32, %c0_5] : memref<168x128xf32, #tpu.memory_space<vmem>>, vector<1x96xf32>
    %c33 = arith.constant 33 : index
    %c0_6 = arith.constant 0 : index
    %13 = vector.load %arg1[%c33, %c0_6] : memref<168x128xf32, #tpu.memory_space<vmem>>, vector<1x32xf32>
    %c34 = arith.constant 34 : index
    %c0_7 = arith.constant 0 : index
    %14 = vector.load %arg1[%c34, %c0_7] : memref<168x128xf32, #tpu.memory_space<vmem>>, vector<1x64xf32>
    %c35 = arith.constant 35 : index
    %c0_8 = arith.constant 0 : index
    %15 = vector.load %arg1[%c35, %c0_8] : memref<168x128xf32, #tpu.memory_space<vmem>>, vector<1x32xf32>
    %c36 = arith.constant 36 : index
    %c0_9 = arith.constant 0 : index
    %16 = vector.load %arg1[%c36, %c0_9] : memref<168x128xf32, #tpu.memory_space<vmem>>, vector<1x32xf32>
    %c37 = arith.constant 37 : index
    %c0_10 = arith.constant 0 : index
    %17 = vector.load %arg1[%c37, %c0_10] : memref<168x128xf32, #tpu.memory_space<vmem>>, vector<1x32xf32>
    %c38 = arith.constant 38 : index
    %c0_11 = arith.constant 0 : index
    %18 = vector.load %arg1[%c38, %c0_11] : memref<168x128xf32, #tpu.memory_space<vmem>>, vector<1x32xf32>
    %c39 = arith.constant 39 : index
    %c0_12 = arith.constant 0 : index
    %19 = vector.load %arg1[%c39, %c0_12] : memref<168x128xf32, #tpu.memory_space<vmem>>, vector<1x32xf32>
    %cst_13 = arith.constant dense<0.000000e+00> : vector<34x96xf32>
    %20 = tpu.matmul %0, %11, %cst_13 {dimension_numbers = #tpu.dot_dimension_numbers<[1], [0], [0], [1], [0, 0, 1, 1], [], []>} : vector<34x32xf32>, vector<32x96xf32>, vector<34x96xf32> -> vector<34x96xf32>
    %21 = vector.broadcast %12 : vector<1x96xf32> to vector<34x96xf32>
    %22 = arith.addf %20, %21 : vector<34x96xf32>
    %23 = vector.extract_strided_slice %22 {offsets = [0, 0], sizes = [34, 8], strides = [1, 1]} : vector<34x96xf32> to vector<34x8xf32>
    %24 = vector.extract_strided_slice %22 {offsets = [0, 32], sizes = [34, 8], strides = [1, 1]} : vector<34x96xf32> to vector<34x8xf32>
    %25 = vector.extract_strided_slice %22 {offsets = [0, 64], sizes = [34, 8], strides = [1, 1]} : vector<34x96xf32> to vector<34x8xf32>
    %cst_14 = arith.constant dense<0.000000e+00> : vector<34x34xf32>
    %26 = tpu.matmul %23, %24, %cst_14 {dimension_numbers = #tpu.dot_dimension_numbers<[1], [1], [0], [0], [0, 0, 1, 0], [], []>} : vector<34x8xf32>, vector<34x8xf32>, vector<34x34xf32> -> vector<34x34xf32>
    %cst_15 = arith.constant 0.353553385 : f32
    %27 = vector.broadcast %cst_15 : f32 to vector<34x34xf32>
    %28 = arith.mulf %26, %27 : vector<34x34xf32>
    %29 = arith.addf %28, %10 : vector<34x34xf32>
    %cst_16 = arith.constant dense<0xFF800000> : vector<34xf32>
    %30 = vector.multi_reduction <maximumf>, %29, %cst_16 [1] : vector<34x34xf32> to vector<34xf32>
    %31 = vector.shape_cast %30 : vector<34xf32> to vector<34x1xf32>
    %32 = vector.broadcast %31 : vector<34x1xf32> to vector<34x34xf32>
    %33 = arith.subf %29, %32 : vector<34x34xf32>
    %34 = math.exp %33 : vector<34x34xf32>
    %cst_17 = arith.constant dense<0.000000e+00> : vector<34xf32>
    %35 = vector.multi_reduction <add>, %34, %cst_17 [1] : vector<34x34xf32> to vector<34xf32>
    %36 = vector.shape_cast %35 : vector<34xf32> to vector<34x1xf32>
    %37 = tpu.reciprocal %36 {approx = true} : vector<34x1xf32> -> vector<34x1xf32>
    %38 = vector.broadcast %37 : vector<34x1xf32> to vector<34x34xf32>
    %39 = arith.mulf %34, %38 : vector<34x34xf32>
    %cst_18 = arith.constant dense<0.000000e+00> : vector<34x8xf32>
    %40 = tpu.matmul %39, %25, %cst_18 {dimension_numbers = #tpu.dot_dimension_numbers<[1], [0], [0], [1], [0, 0, 1, 1], [], []>} : vector<34x34xf32>, vector<34x8xf32>, vector<34x8xf32> -> vector<34x8xf32>
    %c40 = arith.constant 40 : index
    %c0_19 = arith.constant 0 : index
    %41 = vector.load %arg1[%c40, %c0_19] : memref<168x128xf32, #tpu.memory_space<vmem>>, vector<8x32xf32>
    %cst_20 = arith.constant dense<0.000000e+00> : vector<34x32xf32>
    %42 = tpu.matmul %40, %41, %cst_20 {dimension_numbers = #tpu.dot_dimension_numbers<[1], [0], [0], [1], [0, 0, 1, 1], [], []>} : vector<34x8xf32>, vector<8x32xf32>, vector<34x32xf32> -> vector<34x32xf32>
    %43 = vector.extract_strided_slice %22 {offsets = [0, 8], sizes = [34, 8], strides = [1, 1]} : vector<34x96xf32> to vector<34x8xf32>
    %44 = vector.extract_strided_slice %22 {offsets = [0, 40], sizes = [34, 8], strides = [1, 1]} : vector<34x96xf32> to vector<34x8xf32>
    %45 = vector.extract_strided_slice %22 {offsets = [0, 72], sizes = [34, 8], strides = [1, 1]} : vector<34x96xf32> to vector<34x8xf32>
    %cst_21 = arith.constant dense<0.000000e+00> : vector<34x34xf32>
    %46 = tpu.matmul %43, %44, %cst_21 {dimension_numbers = #tpu.dot_dimension_numbers<[1], [1], [0], [0], [0, 0, 1, 0], [], []>} : vector<34x8xf32>, vector<34x8xf32>, vector<34x34xf32> -> vector<34x34xf32>
    %cst_22 = arith.constant 0.353553385 : f32
    %47 = vector.broadcast %cst_22 : f32 to vector<34x34xf32>
    %48 = arith.mulf %46, %47 : vector<34x34xf32>
    %49 = arith.addf %48, %10 : vector<34x34xf32>
    %cst_23 = arith.constant dense<0xFF800000> : vector<34xf32>
    %50 = vector.multi_reduction <maximumf>, %49, %cst_23 [1] : vector<34x34xf32> to vector<34xf32>
    %51 = vector.shape_cast %50 : vector<34xf32> to vector<34x1xf32>
    %52 = vector.broadcast %51 : vector<34x1xf32> to vector<34x34xf32>
    %53 = arith.subf %49, %52 : vector<34x34xf32>
    %54 = math.exp %53 : vector<34x34xf32>
    %cst_24 = arith.constant dense<0.000000e+00> : vector<34xf32>
    %55 = vector.multi_reduction <add>, %54, %cst_24 [1] : vector<34x34xf32> to vector<34xf32>
    %56 = vector.shape_cast %55 : vector<34xf32> to vector<34x1xf32>
    %57 = tpu.reciprocal %56 {approx = true} : vector<34x1xf32> -> vector<34x1xf32>
    %58 = vector.broadcast %57 : vector<34x1xf32> to vector<34x34xf32>
    %59 = arith.mulf %54, %58 : vector<34x34xf32>
    %cst_25 = arith.constant dense<0.000000e+00> : vector<34x8xf32>
    %60 = tpu.matmul %59, %45, %cst_25 {dimension_numbers = #tpu.dot_dimension_numbers<[1], [0], [0], [1], [0, 0, 1, 1], [], []>} : vector<34x34xf32>, vector<34x8xf32>, vector<34x8xf32> -> vector<34x8xf32>
    %c48 = arith.constant 48 : index
    %c0_26 = arith.constant 0 : index
    %61 = vector.load %arg1[%c48, %c0_26] : memref<168x128xf32, #tpu.memory_space<vmem>>, vector<8x32xf32>
    %cst_27 = arith.constant dense<0.000000e+00> : vector<34x32xf32>
    %62 = tpu.matmul %60, %61, %cst_27 {dimension_numbers = #tpu.dot_dimension_numbers<[1], [0], [0], [1], [0, 0, 1, 1], [], []>} : vector<34x8xf32>, vector<8x32xf32>, vector<34x32xf32> -> vector<34x32xf32>
    %63 = arith.addf %42, %62 : vector<34x32xf32>
    %64 = vector.extract_strided_slice %22 {offsets = [0, 16], sizes = [34, 8], strides = [1, 1]} : vector<34x96xf32> to vector<34x8xf32>
    %65 = vector.extract_strided_slice %22 {offsets = [0, 48], sizes = [34, 8], strides = [1, 1]} : vector<34x96xf32> to vector<34x8xf32>
    %66 = vector.extract_strided_slice %22 {offsets = [0, 80], sizes = [34, 8], strides = [1, 1]} : vector<34x96xf32> to vector<34x8xf32>
    %cst_28 = arith.constant dense<0.000000e+00> : vector<34x34xf32>
    %67 = tpu.matmul %64, %65, %cst_28 {dimension_numbers = #tpu.dot_dimension_numbers<[1], [1], [0], [0], [0, 0, 1, 0], [], []>} : vector<34x8xf32>, vector<34x8xf32>, vector<34x34xf32> -> vector<34x34xf32>
    %cst_29 = arith.constant 0.353553385 : f32
    %68 = vector.broadcast %cst_29 : f32 to vector<34x34xf32>
    %69 = arith.mulf %67, %68 : vector<34x34xf32>
    %70 = arith.addf %69, %10 : vector<34x34xf32>
    %cst_30 = arith.constant dense<0xFF800000> : vector<34xf32>
    %71 = vector.multi_reduction <maximumf>, %70, %cst_30 [1] : vector<34x34xf32> to vector<34xf32>
    %72 = vector.shape_cast %71 : vector<34xf32> to vector<34x1xf32>
    %73 = vector.broadcast %72 : vector<34x1xf32> to vector<34x34xf32>
    %74 = arith.subf %70, %73 : vector<34x34xf32>
    %75 = math.exp %74 : vector<34x34xf32>
    %cst_31 = arith.constant dense<0.000000e+00> : vector<34xf32>
    %76 = vector.multi_reduction <add>, %75, %cst_31 [1] : vector<34x34xf32> to vector<34xf32>
    %77 = vector.shape_cast %76 : vector<34xf32> to vector<34x1xf32>
    %78 = tpu.reciprocal %77 {approx = true} : vector<34x1xf32> -> vector<34x1xf32>
    %79 = vector.broadcast %78 : vector<34x1xf32> to vector<34x34xf32>
    %80 = arith.mulf %75, %79 : vector<34x34xf32>
    %cst_32 = arith.constant dense<0.000000e+00> : vector<34x8xf32>
    %81 = tpu.matmul %80, %66, %cst_32 {dimension_numbers = #tpu.dot_dimension_numbers<[1], [0], [0], [1], [0, 0, 1, 1], [], []>} : vector<34x34xf32>, vector<34x8xf32>, vector<34x8xf32> -> vector<34x8xf32>
    %c56 = arith.constant 56 : index
    %c0_33 = arith.constant 0 : index
    %82 = vector.load %arg1[%c56, %c0_33] : memref<168x128xf32, #tpu.memory_space<vmem>>, vector<8x32xf32>
    %cst_34 = arith.constant dense<0.000000e+00> : vector<34x32xf32>
    %83 = tpu.matmul %81, %82, %cst_34 {dimension_numbers = #tpu.dot_dimension_numbers<[1], [0], [0], [1], [0, 0, 1, 1], [], []>} : vector<34x8xf32>, vector<8x32xf32>, vector<34x32xf32> -> vector<34x32xf32>
    %84 = arith.addf %63, %83 : vector<34x32xf32>
    %85 = vector.extract_strided_slice %22 {offsets = [0, 24], sizes = [34, 8], strides = [1, 1]} : vector<34x96xf32> to vector<34x8xf32>
    %86 = vector.extract_strided_slice %22 {offsets = [0, 56], sizes = [34, 8], strides = [1, 1]} : vector<34x96xf32> to vector<34x8xf32>
    %87 = vector.extract_strided_slice %22 {offsets = [0, 88], sizes = [34, 8], strides = [1, 1]} : vector<34x96xf32> to vector<34x8xf32>
    %cst_35 = arith.constant dense<0.000000e+00> : vector<34x34xf32>
    %88 = tpu.matmul %85, %86, %cst_35 {dimension_numbers = #tpu.dot_dimension_numbers<[1], [1], [0], [0], [0, 0, 1, 0], [], []>} : vector<34x8xf32>, vector<34x8xf32>, vector<34x34xf32> -> vector<34x34xf32>
    %cst_36 = arith.constant 0.353553385 : f32
    %89 = vector.broadcast %cst_36 : f32 to vector<34x34xf32>
    %90 = arith.mulf %88, %89 : vector<34x34xf32>
    %91 = arith.addf %90, %10 : vector<34x34xf32>
    %cst_37 = arith.constant dense<0xFF800000> : vector<34xf32>
    %92 = vector.multi_reduction <maximumf>, %91, %cst_37 [1] : vector<34x34xf32> to vector<34xf32>
    %93 = vector.shape_cast %92 : vector<34xf32> to vector<34x1xf32>
    %94 = vector.broadcast %93 : vector<34x1xf32> to vector<34x34xf32>
    %95 = arith.subf %91, %94 : vector<34x34xf32>
    %96 = math.exp %95 : vector<34x34xf32>
    %cst_38 = arith.constant dense<0.000000e+00> : vector<34xf32>
    %97 = vector.multi_reduction <add>, %96, %cst_38 [1] : vector<34x34xf32> to vector<34xf32>
    %98 = vector.shape_cast %97 : vector<34xf32> to vector<34x1xf32>
    %99 = tpu.reciprocal %98 {approx = true} : vector<34x1xf32> -> vector<34x1xf32>
    %100 = vector.broadcast %99 : vector<34x1xf32> to vector<34x34xf32>
    %101 = arith.mulf %96, %100 : vector<34x34xf32>
    %cst_39 = arith.constant dense<0.000000e+00> : vector<34x8xf32>
    %102 = tpu.matmul %101, %87, %cst_39 {dimension_numbers = #tpu.dot_dimension_numbers<[1], [0], [0], [1], [0, 0, 1, 1], [], []>} : vector<34x34xf32>, vector<34x8xf32>, vector<34x8xf32> -> vector<34x8xf32>
    %c64 = arith.constant 64 : index
    %c0_40 = arith.constant 0 : index
    %103 = vector.load %arg1[%c64, %c0_40] : memref<168x128xf32, #tpu.memory_space<vmem>>, vector<8x32xf32>
    %cst_41 = arith.constant dense<0.000000e+00> : vector<34x32xf32>
    %104 = tpu.matmul %102, %103, %cst_41 {dimension_numbers = #tpu.dot_dimension_numbers<[1], [0], [0], [1], [0, 0, 1, 1], [], []>} : vector<34x8xf32>, vector<8x32xf32>, vector<34x32xf32> -> vector<34x32xf32>
    %105 = arith.addf %84, %104 : vector<34x32xf32>
    %106 = arith.addf %0, %105 : vector<34x32xf32>
    %107 = vector.broadcast %13 : vector<1x32xf32> to vector<34x32xf32>
    %108 = arith.addf %106, %107 : vector<34x32xf32>
    %cst_42 = arith.constant dense<0.000000e+00> : vector<34xf32>
    %109 = vector.multi_reduction <add>, %108, %cst_42 [1] : vector<34x32xf32> to vector<34xf32>
    %110 = vector.shape_cast %109 : vector<34xf32> to vector<34x1xf32>
    %cst_43 = arith.constant 3.200000e+01 : f32
    %111 = vector.broadcast %cst_43 : f32 to vector<34x1xf32>
    %112 = arith.divf %110, %111 : vector<34x1xf32>
    %113 = vector.broadcast %112 : vector<34x1xf32> to vector<34x32xf32>
    %114 = arith.subf %108, %113 : vector<34x32xf32>
    %115 = arith.mulf %114, %114 : vector<34x32xf32>
    %cst_44 = arith.constant dense<0.000000e+00> : vector<34xf32>
    %116 = vector.multi_reduction <add>, %115, %cst_44 [1] : vector<34x32xf32> to vector<34xf32>
    %117 = vector.shape_cast %116 : vector<34xf32> to vector<34x1xf32>
    %cst_45 = arith.constant 3.200000e+01 : f32
    %118 = vector.broadcast %cst_45 : f32 to vector<34x1xf32>
    %119 = arith.divf %117, %118 : vector<34x1xf32>
    %120 = vector.broadcast %112 : vector<34x1xf32> to vector<34x32xf32>
    %121 = arith.subf %108, %120 : vector<34x32xf32>
    %cst_46 = arith.constant 9.99999974E-6 : f32
    %122 = vector.broadcast %cst_46 : f32 to vector<34x1xf32>
    %123 = arith.addf %119, %122 : vector<34x1xf32>
    %124 = math.rsqrt %123 : vector<34x1xf32>
    %125 = vector.broadcast %124 : vector<34x1xf32> to vector<34x32xf32>
    %126 = arith.mulf %121, %125 : vector<34x32xf32>
    %127 = vector.broadcast %16 : vector<1x32xf32> to vector<34x32xf32>
    %128 = arith.mulf %126, %127 : vector<34x32xf32>
    %129 = vector.broadcast %17 : vector<1x32xf32> to vector<34x32xf32>
    %130 = arith.addf %128, %129 : vector<34x32xf32>
    %c72 = arith.constant 72 : index
    %c0_47 = arith.constant 0 : index
    %131 = vector.load %arg1[%c72, %c0_47] : memref<168x128xf32, #tpu.memory_space<vmem>>, vector<32x64xf32>
    %c104 = arith.constant 104 : index
    %c0_48 = arith.constant 0 : index
    %132 = vector.load %arg1[%c104, %c0_48] : memref<168x128xf32, #tpu.memory_space<vmem>>, vector<64x32xf32>
    %cst_49 = arith.constant dense<0.000000e+00> : vector<34x64xf32>
    %133 = tpu.matmul %130, %131, %cst_49 {dimension_numbers = #tpu.dot_dimension_numbers<[1], [0], [0], [1], [0, 0, 1, 1], [], []>} : vector<34x32xf32>, vector<32x64xf32>, vector<34x64xf32> -> vector<34x64xf32>
    %134 = vector.broadcast %14 : vector<1x64xf32> to vector<34x64xf32>
    %135 = arith.addf %133, %134 : vector<34x64xf32>
    %cst_50 = arith.constant 0.000000e+00 : f32
    %136 = vector.broadcast %cst_50 : f32 to vector<34x64xf32>
    %137 = arith.maximumf %135, %136 : vector<34x64xf32>
    %cst_51 = arith.constant dense<0.000000e+00> : vector<34x32xf32>
    %138 = tpu.matmul %137, %132, %cst_51 {dimension_numbers = #tpu.dot_dimension_numbers<[1], [0], [0], [1], [0, 0, 1, 1], [], []>} : vector<34x64xf32>, vector<64x32xf32>, vector<34x32xf32> -> vector<34x32xf32>
    %139 = vector.broadcast %15 : vector<1x32xf32> to vector<34x32xf32>
    %140 = arith.addf %138, %139 : vector<34x32xf32>
    %141 = arith.addf %130, %140 : vector<34x32xf32>
    %cst_52 = arith.constant dense<0.000000e+00> : vector<34xf32>
    %142 = vector.multi_reduction <add>, %141, %cst_52 [1] : vector<34x32xf32> to vector<34xf32>
    %143 = vector.shape_cast %142 : vector<34xf32> to vector<34x1xf32>
    %cst_53 = arith.constant 3.200000e+01 : f32
    %144 = vector.broadcast %cst_53 : f32 to vector<34x1xf32>
    %145 = arith.divf %143, %144 : vector<34x1xf32>
    %146 = vector.broadcast %145 : vector<34x1xf32> to vector<34x32xf32>
    %147 = arith.subf %141, %146 : vector<34x32xf32>
    %148 = arith.mulf %147, %147 : vector<34x32xf32>
    %cst_54 = arith.constant dense<0.000000e+00> : vector<34xf32>
    %149 = vector.multi_reduction <add>, %148, %cst_54 [1] : vector<34x32xf32> to vector<34xf32>
    %150 = vector.shape_cast %149 : vector<34xf32> to vector<34x1xf32>
    %cst_55 = arith.constant 3.200000e+01 : f32
    %151 = vector.broadcast %cst_55 : f32 to vector<34x1xf32>
    %152 = arith.divf %150, %151 : vector<34x1xf32>
    %153 = vector.broadcast %145 : vector<34x1xf32> to vector<34x32xf32>
    %154 = arith.subf %141, %153 : vector<34x32xf32>
    %cst_56 = arith.constant 9.99999974E-6 : f32
    %155 = vector.broadcast %cst_56 : f32 to vector<34x1xf32>
    %156 = arith.addf %152, %155 : vector<34x1xf32>
    %157 = math.rsqrt %156 : vector<34x1xf32>
    %158 = vector.broadcast %157 : vector<34x1xf32> to vector<34x32xf32>
    %159 = arith.mulf %154, %158 : vector<34x32xf32>
    %160 = vector.broadcast %18 : vector<1x32xf32> to vector<34x32xf32>
    %161 = arith.mulf %159, %160 : vector<34x32xf32>
    %162 = vector.broadcast %19 : vector<1x32xf32> to vector<34x32xf32>
    %163 = arith.addf %161, %162 : vector<34x32xf32>
    %c0_57 = arith.constant 0 : index
    %c0_58 = arith.constant 0 : index
    %164 = vector.load %arg4[%c0_57, %c0_58] : memref<34x32xf32, #tpu.memory_space<vmem>>, vector<34x32xf32>
    tpu.vector_store %arg4[%c0_57, %c0_58], %163 {strides = array<i32>} : memref<34x32xf32, #tpu.memory_space<vmem>>, vector<34x32xf32>,
    %165 = tpu.iota {dimensions = array<i32: 0>} : vector<8x34xi32>
    %166 = tpu.iota {dimensions = array<i32: 1>} : vector<8x34xi32>
    %c1_i32_59 = arith.constant 1 : i32
    %167 = vector.broadcast %c1_i32_59 : i32 to vector<8x34xi32>
    %168 = arith.shrsi %165, %167 : vector<8x34xi32>
    %c1_i32_60 = arith.constant 1 : i32
    %169 = vector.broadcast %c1_i32_60 : i32 to vector<8x34xi32>
    %170 = arith.andi %165, %169 : vector<8x34xi32>
    %c4_i32 = arith.constant 4 : i32
    %171 = vector.broadcast %c4_i32 : i32 to vector<8x34xi32>
    %172 = arith.muli %168, %171 : vector<8x34xi32>
    %c1_i32_61 = arith.constant 1 : i32
    %173 = vector.broadcast %c1_i32_61 : i32 to vector<8x34xi32>
    %174 = arith.addi %173, %172 : vector<8x34xi32>
    %c0_i32 = arith.constant 0 : i32
    %175 = vector.broadcast %c0_i32 : i32 to vector<8x34xi32>
    %176 = arith.addi %174, %175 : vector<8x34xi32>
    %c2_i32 = arith.constant 2 : i32
    %177 = vector.broadcast %c2_i32 : i32 to vector<8x34xi32>
    %178 = arith.muli %176, %177 : vector<8x34xi32>
    %179 = arith.addi %178, %170 : vector<8x34xi32>
    %180 = arith.cmpi eq, %166, %179 : vector<8x34xi32>
    %181 = arith.extui %180 : vector<8x34xi1> to vector<8x34xi32>
    %182 = arith.sitofp %181 : vector<8x34xi32> to vector<8x34xf32>
    %cst_62 = arith.constant dense<0.000000e+00> : vector<8x32xf32>
    %183 = tpu.matmul %182, %163, %cst_62 {dimension_numbers = #tpu.dot_dimension_numbers<[1], [0], [0], [1], [0, 0, 1, 1], [], []>} : vector<8x34xf32>, vector<34x32xf32>, vector<8x32xf32> -> vector<8x32xf32>
    %c0_63 = arith.constant 0 : index
    %c0_64 = arith.constant 0 : index
    %184 = vector.load %arg6[%c0_63, %c0_64] : memref<8x128xf32, #tpu.memory_space<vmem>>, vector<8x32xf32>
    tpu.vector_store %arg6[%c0_63, %c0_64], %183 {strides = array<i32>} : memref<8x128xf32, #tpu.memory_space<vmem>>, vector<8x32xf32>,
    %c4_i32_65 = arith.constant 4 : i32
    %185 = vector.broadcast %c4_i32_65 : i32 to vector<8x34xi32>
    %186 = arith.muli %168, %185 : vector<8x34xi32>
    %c1_i32_66 = arith.constant 1 : i32
    %187 = vector.broadcast %c1_i32_66 : i32 to vector<8x34xi32>
    %188 = arith.addi %187, %186 : vector<8x34xi32>
    %c1_i32_67 = arith.constant 1 : i32
    %189 = vector.broadcast %c1_i32_67 : i32 to vector<8x34xi32>
    %190 = arith.addi %188, %189 : vector<8x34xi32>
    %c2_i32_68 = arith.constant 2 : i32
    %191 = vector.broadcast %c2_i32_68 : i32 to vector<8x34xi32>
    %192 = arith.muli %190, %191 : vector<8x34xi32>
    %193 = arith.addi %192, %170 : vector<8x34xi32>
    %194 = arith.cmpi eq, %166, %193 : vector<8x34xi32>
    %195 = arith.extui %194 : vector<8x34xi1> to vector<8x34xi32>
    %196 = arith.sitofp %195 : vector<8x34xi32> to vector<8x34xf32>
    %cst_69 = arith.constant dense<0.000000e+00> : vector<8x32xf32>
    %197 = tpu.matmul %196, %163, %cst_69 {dimension_numbers = #tpu.dot_dimension_numbers<[1], [0], [0], [1], [0, 0, 1, 1], [], []>} : vector<8x34xf32>, vector<34x32xf32>, vector<8x32xf32> -> vector<8x32xf32>
    %c0_70 = arith.constant 0 : index
    %c32_71 = arith.constant 32 : index
    %198 = vector.load %arg6[%c0_70, %c32_71] : memref<8x128xf32, #tpu.memory_space<vmem>>, vector<8x32xf32>
    tpu.vector_store %arg6[%c0_70, %c32_71], %197 {strides = array<i32>} : memref<8x128xf32, #tpu.memory_space<vmem>>, vector<8x32xf32>,
    %c4_i32_72 = arith.constant 4 : i32
    %199 = vector.broadcast %c4_i32_72 : i32 to vector<8x34xi32>
    %200 = arith.muli %168, %199 : vector<8x34xi32>
    %c1_i32_73 = arith.constant 1 : i32
    %201 = vector.broadcast %c1_i32_73 : i32 to vector<8x34xi32>
    %202 = arith.addi %201, %200 : vector<8x34xi32>
    %c2_i32_74 = arith.constant 2 : i32
    %203 = vector.broadcast %c2_i32_74 : i32 to vector<8x34xi32>
    %204 = arith.addi %202, %203 : vector<8x34xi32>
    %c2_i32_75 = arith.constant 2 : i32
    %205 = vector.broadcast %c2_i32_75 : i32 to vector<8x34xi32>
    %206 = arith.muli %204, %205 : vector<8x34xi32>
    %207 = arith.addi %206, %170 : vector<8x34xi32>
    %208 = arith.cmpi eq, %166, %207 : vector<8x34xi32>
    %209 = arith.extui %208 : vector<8x34xi1> to vector<8x34xi32>
    %210 = arith.sitofp %209 : vector<8x34xi32> to vector<8x34xf32>
    %cst_76 = arith.constant dense<0.000000e+00> : vector<8x32xf32>
    %211 = tpu.matmul %210, %163, %cst_76 {dimension_numbers = #tpu.dot_dimension_numbers<[1], [0], [0], [1], [0, 0, 1, 1], [], []>} : vector<8x34xf32>, vector<34x32xf32>, vector<8x32xf32> -> vector<8x32xf32>
    %c0_77 = arith.constant 0 : index
    %c64_78 = arith.constant 64 : index
    %212 = vector.load %arg6[%c0_77, %c64_78] : memref<8x128xf32, #tpu.memory_space<vmem>>, vector<8x32xf32>
    tpu.vector_store %arg6[%c0_77, %c64_78], %211 {strides = array<i32>} : memref<8x128xf32, #tpu.memory_space<vmem>>, vector<8x32xf32>,
    %c4_i32_79 = arith.constant 4 : i32
    %213 = vector.broadcast %c4_i32_79 : i32 to vector<8x34xi32>
    %214 = arith.muli %168, %213 : vector<8x34xi32>
    %c1_i32_80 = arith.constant 1 : i32
    %215 = vector.broadcast %c1_i32_80 : i32 to vector<8x34xi32>
    %216 = arith.addi %215, %214 : vector<8x34xi32>
    %c3_i32 = arith.constant 3 : i32
    %217 = vector.broadcast %c3_i32 : i32 to vector<8x34xi32>
    %218 = arith.addi %216, %217 : vector<8x34xi32>
    %c2_i32_81 = arith.constant 2 : i32
    %219 = vector.broadcast %c2_i32_81 : i32 to vector<8x34xi32>
    %220 = arith.muli %218, %219 : vector<8x34xi32>
    %221 = arith.addi %220, %170 : vector<8x34xi32>
    %222 = arith.cmpi eq, %166, %221 : vector<8x34xi32>
    %223 = arith.extui %222 : vector<8x34xi1> to vector<8x34xi32>
    %224 = arith.sitofp %223 : vector<8x34xi32> to vector<8x34xf32>
    %cst_82 = arith.constant dense<0.000000e+00> : vector<8x32xf32>
    %225 = tpu.matmul %224, %163, %cst_82 {dimension_numbers = #tpu.dot_dimension_numbers<[1], [0], [0], [1], [0, 0, 1, 1], [], []>} : vector<8x34xf32>, vector<34x32xf32>, vector<8x32xf32> -> vector<8x32xf32>
    %c0_83 = arith.constant 0 : index
    %c96 = arith.constant 96 : index
    %226 = vector.load %arg6[%c0_83, %c96] : memref<8x128xf32, #tpu.memory_space<vmem>>, vector<8x32xf32>
    tpu.vector_store %arg6[%c0_83, %c96], %225 {strides = array<i32>} : memref<8x128xf32, #tpu.memory_space<vmem>>, vector<8x32xf32>,
    %c0_84 = arith.constant 0 : index
    %c0_85 = arith.constant 0 : index
    %227 = vector.load %arg2[%c0_84, %c0_85] : memref<168x128xf32, #tpu.memory_space<vmem>>, vector<128x32xf32>
    %c128 = arith.constant 128 : index
    %c0_86 = arith.constant 0 : index
    %228 = vector.load %arg2[%c128, %c0_86] : memref<168x128xf32, #tpu.memory_space<vmem>>, vector<32x32xf32>
    %c160 = arith.constant 160 : index
    %c0_87 = arith.constant 0 : index
    %229 = vector.load %arg2[%c160, %c0_87] : memref<168x128xf32, #tpu.memory_space<vmem>>, vector<1x32xf32>
    %c161 = arith.constant 161 : index
    %c0_88 = arith.constant 0 : index
    %230 = vector.load %arg2[%c161, %c0_88] : memref<168x128xf32, #tpu.memory_space<vmem>>, vector<1x32xf32>
    %c0_89 = arith.constant 0 : index
    %c0_90 = arith.constant 0 : index
    %231 = vector.load %arg6[%c0_89, %c0_90] : memref<8x128xf32, #tpu.memory_space<vmem>>, vector<8x128xf32>
    %cst_91 = arith.constant dense<0.000000e+00> : vector<8x32xf32>
    %232 = tpu.matmul %231, %227, %cst_91 {dimension_numbers = #tpu.dot_dimension_numbers<[1], [0], [0], [1], [0, 0, 1, 1], [], []>} : vector<8x128xf32>, vector<128x32xf32>, vector<8x32xf32> -> vector<8x32xf32>
    %233 = vector.broadcast %229 : vector<1x32xf32> to vector<8x32xf32>
    %234 = arith.addf %232, %233 : vector<8x32xf32>
    %cst_92 = arith.constant 0.000000e+00 : f32
    %235 = vector.broadcast %cst_92 : f32 to vector<8x32xf32>
    %236 = arith.maximumf %234, %235 : vector<8x32xf32>
    %cst_93 = arith.constant dense<0.000000e+00> : vector<8x32xf32>
    %237 = tpu.matmul %236, %228, %cst_93 {dimension_numbers = #tpu.dot_dimension_numbers<[1], [0], [0], [1], [0, 0, 1, 1], [], []>} : vector<8x32xf32>, vector<32x32xf32>, vector<8x32xf32> -> vector<8x32xf32>
    %238 = vector.broadcast %230 : vector<1x32xf32> to vector<8x32xf32>
    %239 = arith.addf %237, %238 : vector<8x32xf32>
    %240 = vector.extract_strided_slice %163 {offsets = [0, 0], sizes = [2, 32], strides = [1, 1]} : vector<34x32xf32> to vector<2x32xf32>
    %c0_94 = arith.constant 0 : index
    %c0_95 = arith.constant 0 : index
    %241 = vector.load %arg5[%c0_94, %c0_95] : memref<10x32xf32, #tpu.memory_space<vmem>>, vector<2x32xf32>
    tpu.vector_store %arg5[%c0_94, %c0_95], %240 {strides = array<i32>} : memref<10x32xf32, #tpu.memory_space<vmem>>, vector<2x32xf32>,
    %c0_96 = arith.constant 0 : index
    %c0_97 = arith.constant 0 : index
    %242 = vector.load %arg3[%c0_96, %c0_97] : memref<8x32xf32, #tpu.memory_space<vmem>>, vector<8x32xf32>
    %243 = arith.addf %242, %239 : vector<8x32xf32>
    %c2 = arith.constant 2 : index
    %c0_98 = arith.constant 0 : index
    %244 = vector.load %arg5[%c2, %c0_98] : memref<10x32xf32, #tpu.memory_space<vmem>>, vector<8x32xf32>
    tpu.vector_store %arg5[%c2, %c0_98], %243 {strides = array<i32>} : memref<10x32xf32, #tpu.memory_space<vmem>>, vector<8x32xf32>,
    return
  }
}

module attributes {stable_mosaic.version = 11 : i64} {
  func.func @outer_group_kernel(%arg0: memref<26x32xf32, #tpu.memory_space<vmem>>, %arg1: memref<168x128xf32, #tpu.memory_space<vmem>>, %arg2: memref<168x128xf32, #tpu.memory_space<vmem>>, %arg3: memref<4x32xf32, #tpu.memory_space<vmem>>, %arg4: memref<26x32xf32, #tpu.memory_space<vmem>>, %arg5: memref<6x32xf32, #tpu.memory_space<vmem>>, %arg6: memref<6x32xf32, #tpu.memory_space<vmem>>) attributes {dimension_semantics = [], scalar_prefetch = 0 : i64, scratch_operands = 1 : i64, tpu.core_type = #tpu.core_type<tc>} {
    %c0 = arith.constant 0 : index
    %c0_0 = arith.constant 0 : index
    %0 = vector.load %arg0[%c0, %c0_0] : memref<26x32xf32, #tpu.memory_space<vmem>>, vector<26x32xf32>
    %1 = tpu.iota {dimensions = array<i32: 0>} : vector<26x26xi32>
    %2 = tpu.iota {dimensions = array<i32: 1>} : vector<26x26xi32>
    %c1_i32 = arith.constant 1 : i32
    %3 = vector.broadcast %c1_i32 : i32 to vector<26x26xi32>
    %4 = arith.andi %1, %3 : vector<26x26xi32>
    %c1_i32_1 = arith.constant 1 : i32
    %5 = vector.broadcast %c1_i32_1 : i32 to vector<26x26xi32>
    %6 = arith.andi %2, %5 : vector<26x26xi32>
    %7 = arith.cmpi eq, %4, %6 : vector<26x26xi32>
    %cst = arith.constant 0.000000e+00 : f32
    %cst_2 = arith.constant -1.000000e+09 : f32
    %8 = vector.broadcast %cst : f32 to vector<26x26xf32>
    %9 = vector.broadcast %cst_2 : f32 to vector<26x26xf32>
    %10 = arith.select %7, %8, %9 : vector<26x26xi1>, vector<26x26xf32>
    %c0_3 = arith.constant 0 : index
    %c0_4 = arith.constant 0 : index
    %11 = vector.load %arg1[%c0_3, %c0_4] : memref<168x128xf32, #tpu.memory_space<vmem>>, vector<32x96xf32>
    %c32 = arith.constant 32 : index
    %c0_5 = arith.constant 0 : index
    %12 = vector.load %arg1[%c32, %c0_5] : memref<168x128xf32, #tpu.memory_space<vmem>>, vector<1x96xf32>
    %c33 = arith.constant 33 : index
    %c0_6 = arith.constant 0 : index
    %13 = vector.load %arg1[%c33, %c0_6] : memref<168x128xf32, #tpu.memory_space<vmem>>, vector<1x32xf32>
    %c34 = arith.constant 34 : index
    %c0_7 = arith.constant 0 : index
    %14 = vector.load %arg1[%c34, %c0_7] : memref<168x128xf32, #tpu.memory_space<vmem>>, vector<1x64xf32>
    %c35 = arith.constant 35 : index
    %c0_8 = arith.constant 0 : index
    %15 = vector.load %arg1[%c35, %c0_8] : memref<168x128xf32, #tpu.memory_space<vmem>>, vector<1x32xf32>
    %c36 = arith.constant 36 : index
    %c0_9 = arith.constant 0 : index
    %16 = vector.load %arg1[%c36, %c0_9] : memref<168x128xf32, #tpu.memory_space<vmem>>, vector<1x32xf32>
    %c37 = arith.constant 37 : index
    %c0_10 = arith.constant 0 : index
    %17 = vector.load %arg1[%c37, %c0_10] : memref<168x128xf32, #tpu.memory_space<vmem>>, vector<1x32xf32>
    %c38 = arith.constant 38 : index
    %c0_11 = arith.constant 0 : index
    %18 = vector.load %arg1[%c38, %c0_11] : memref<168x128xf32, #tpu.memory_space<vmem>>, vector<1x32xf32>
    %c39 = arith.constant 39 : index
    %c0_12 = arith.constant 0 : index
    %19 = vector.load %arg1[%c39, %c0_12] : memref<168x128xf32, #tpu.memory_space<vmem>>, vector<1x32xf32>
    %cst_13 = arith.constant dense<0.000000e+00> : vector<26x96xf32>
    %20 = tpu.matmul %0, %11, %cst_13 {dimension_numbers = #tpu.dot_dimension_numbers<[1], [0], [0], [1], [0, 0, 1, 1], [], []>} : vector<26x32xf32>, vector<32x96xf32>, vector<26x96xf32> -> vector<26x96xf32>
    %21 = vector.broadcast %12 : vector<1x96xf32> to vector<26x96xf32>
    %22 = arith.addf %20, %21 : vector<26x96xf32>
    %23 = vector.extract_strided_slice %22 {offsets = [0, 0], sizes = [26, 8], strides = [1, 1]} : vector<26x96xf32> to vector<26x8xf32>
    %24 = vector.extract_strided_slice %22 {offsets = [0, 32], sizes = [26, 8], strides = [1, 1]} : vector<26x96xf32> to vector<26x8xf32>
    %25 = vector.extract_strided_slice %22 {offsets = [0, 64], sizes = [26, 8], strides = [1, 1]} : vector<26x96xf32> to vector<26x8xf32>
    %cst_14 = arith.constant dense<0.000000e+00> : vector<26x26xf32>
    %26 = tpu.matmul %23, %24, %cst_14 {dimension_numbers = #tpu.dot_dimension_numbers<[1], [1], [0], [0], [0, 0, 1, 0], [], []>} : vector<26x8xf32>, vector<26x8xf32>, vector<26x26xf32> -> vector<26x26xf32>
    %cst_15 = arith.constant 0.353553385 : f32
    %27 = vector.broadcast %cst_15 : f32 to vector<26x26xf32>
    %28 = arith.mulf %26, %27 : vector<26x26xf32>
    %29 = arith.addf %28, %10 : vector<26x26xf32>
    %cst_16 = arith.constant dense<0xFF800000> : vector<26xf32>
    %30 = vector.multi_reduction <maximumf>, %29, %cst_16 [1] : vector<26x26xf32> to vector<26xf32>
    %31 = vector.shape_cast %30 : vector<26xf32> to vector<26x1xf32>
    %32 = vector.broadcast %31 : vector<26x1xf32> to vector<26x26xf32>
    %33 = arith.subf %29, %32 : vector<26x26xf32>
    %34 = math.exp %33 : vector<26x26xf32>
    %cst_17 = arith.constant dense<0.000000e+00> : vector<26xf32>
    %35 = vector.multi_reduction <add>, %34, %cst_17 [1] : vector<26x26xf32> to vector<26xf32>
    %36 = vector.shape_cast %35 : vector<26xf32> to vector<26x1xf32>
    %37 = tpu.reciprocal %36 {approx = true} : vector<26x1xf32> -> vector<26x1xf32>
    %38 = vector.broadcast %37 : vector<26x1xf32> to vector<26x26xf32>
    %39 = arith.mulf %34, %38 : vector<26x26xf32>
    %cst_18 = arith.constant dense<0.000000e+00> : vector<26x8xf32>
    %40 = tpu.matmul %39, %25, %cst_18 {dimension_numbers = #tpu.dot_dimension_numbers<[1], [0], [0], [1], [0, 0, 1, 1], [], []>} : vector<26x26xf32>, vector<26x8xf32>, vector<26x8xf32> -> vector<26x8xf32>
    %c40 = arith.constant 40 : index
    %c0_19 = arith.constant 0 : index
    %41 = vector.load %arg1[%c40, %c0_19] : memref<168x128xf32, #tpu.memory_space<vmem>>, vector<8x32xf32>
    %cst_20 = arith.constant dense<0.000000e+00> : vector<26x32xf32>
    %42 = tpu.matmul %40, %41, %cst_20 {dimension_numbers = #tpu.dot_dimension_numbers<[1], [0], [0], [1], [0, 0, 1, 1], [], []>} : vector<26x8xf32>, vector<8x32xf32>, vector<26x32xf32> -> vector<26x32xf32>
    %43 = vector.extract_strided_slice %22 {offsets = [0, 8], sizes = [26, 8], strides = [1, 1]} : vector<26x96xf32> to vector<26x8xf32>
    %44 = vector.extract_strided_slice %22 {offsets = [0, 40], sizes = [26, 8], strides = [1, 1]} : vector<26x96xf32> to vector<26x8xf32>
    %45 = vector.extract_strided_slice %22 {offsets = [0, 72], sizes = [26, 8], strides = [1, 1]} : vector<26x96xf32> to vector<26x8xf32>
    %cst_21 = arith.constant dense<0.000000e+00> : vector<26x26xf32>
    %46 = tpu.matmul %43, %44, %cst_21 {dimension_numbers = #tpu.dot_dimension_numbers<[1], [1], [0], [0], [0, 0, 1, 0], [], []>} : vector<26x8xf32>, vector<26x8xf32>, vector<26x26xf32> -> vector<26x26xf32>
    %cst_22 = arith.constant 0.353553385 : f32
    %47 = vector.broadcast %cst_22 : f32 to vector<26x26xf32>
    %48 = arith.mulf %46, %47 : vector<26x26xf32>
    %49 = arith.addf %48, %10 : vector<26x26xf32>
    %cst_23 = arith.constant dense<0xFF800000> : vector<26xf32>
    %50 = vector.multi_reduction <maximumf>, %49, %cst_23 [1] : vector<26x26xf32> to vector<26xf32>
    %51 = vector.shape_cast %50 : vector<26xf32> to vector<26x1xf32>
    %52 = vector.broadcast %51 : vector<26x1xf32> to vector<26x26xf32>
    %53 = arith.subf %49, %52 : vector<26x26xf32>
    %54 = math.exp %53 : vector<26x26xf32>
    %cst_24 = arith.constant dense<0.000000e+00> : vector<26xf32>
    %55 = vector.multi_reduction <add>, %54, %cst_24 [1] : vector<26x26xf32> to vector<26xf32>
    %56 = vector.shape_cast %55 : vector<26xf32> to vector<26x1xf32>
    %57 = tpu.reciprocal %56 {approx = true} : vector<26x1xf32> -> vector<26x1xf32>
    %58 = vector.broadcast %57 : vector<26x1xf32> to vector<26x26xf32>
    %59 = arith.mulf %54, %58 : vector<26x26xf32>
    %cst_25 = arith.constant dense<0.000000e+00> : vector<26x8xf32>
    %60 = tpu.matmul %59, %45, %cst_25 {dimension_numbers = #tpu.dot_dimension_numbers<[1], [0], [0], [1], [0, 0, 1, 1], [], []>} : vector<26x26xf32>, vector<26x8xf32>, vector<26x8xf32> -> vector<26x8xf32>
    %c48 = arith.constant 48 : index
    %c0_26 = arith.constant 0 : index
    %61 = vector.load %arg1[%c48, %c0_26] : memref<168x128xf32, #tpu.memory_space<vmem>>, vector<8x32xf32>
    %cst_27 = arith.constant dense<0.000000e+00> : vector<26x32xf32>
    %62 = tpu.matmul %60, %61, %cst_27 {dimension_numbers = #tpu.dot_dimension_numbers<[1], [0], [0], [1], [0, 0, 1, 1], [], []>} : vector<26x8xf32>, vector<8x32xf32>, vector<26x32xf32> -> vector<26x32xf32>
    %63 = arith.addf %42, %62 : vector<26x32xf32>
    %64 = vector.extract_strided_slice %22 {offsets = [0, 16], sizes = [26, 8], strides = [1, 1]} : vector<26x96xf32> to vector<26x8xf32>
    %65 = vector.extract_strided_slice %22 {offsets = [0, 48], sizes = [26, 8], strides = [1, 1]} : vector<26x96xf32> to vector<26x8xf32>
    %66 = vector.extract_strided_slice %22 {offsets = [0, 80], sizes = [26, 8], strides = [1, 1]} : vector<26x96xf32> to vector<26x8xf32>
    %cst_28 = arith.constant dense<0.000000e+00> : vector<26x26xf32>
    %67 = tpu.matmul %64, %65, %cst_28 {dimension_numbers = #tpu.dot_dimension_numbers<[1], [1], [0], [0], [0, 0, 1, 0], [], []>} : vector<26x8xf32>, vector<26x8xf32>, vector<26x26xf32> -> vector<26x26xf32>
    %cst_29 = arith.constant 0.353553385 : f32
    %68 = vector.broadcast %cst_29 : f32 to vector<26x26xf32>
    %69 = arith.mulf %67, %68 : vector<26x26xf32>
    %70 = arith.addf %69, %10 : vector<26x26xf32>
    %cst_30 = arith.constant dense<0xFF800000> : vector<26xf32>
    %71 = vector.multi_reduction <maximumf>, %70, %cst_30 [1] : vector<26x26xf32> to vector<26xf32>
    %72 = vector.shape_cast %71 : vector<26xf32> to vector<26x1xf32>
    %73 = vector.broadcast %72 : vector<26x1xf32> to vector<26x26xf32>
    %74 = arith.subf %70, %73 : vector<26x26xf32>
    %75 = math.exp %74 : vector<26x26xf32>
    %cst_31 = arith.constant dense<0.000000e+00> : vector<26xf32>
    %76 = vector.multi_reduction <add>, %75, %cst_31 [1] : vector<26x26xf32> to vector<26xf32>
    %77 = vector.shape_cast %76 : vector<26xf32> to vector<26x1xf32>
    %78 = tpu.reciprocal %77 {approx = true} : vector<26x1xf32> -> vector<26x1xf32>
    %79 = vector.broadcast %78 : vector<26x1xf32> to vector<26x26xf32>
    %80 = arith.mulf %75, %79 : vector<26x26xf32>
    %cst_32 = arith.constant dense<0.000000e+00> : vector<26x8xf32>
    %81 = tpu.matmul %80, %66, %cst_32 {dimension_numbers = #tpu.dot_dimension_numbers<[1], [0], [0], [1], [0, 0, 1, 1], [], []>} : vector<26x26xf32>, vector<26x8xf32>, vector<26x8xf32> -> vector<26x8xf32>
    %c56 = arith.constant 56 : index
    %c0_33 = arith.constant 0 : index
    %82 = vector.load %arg1[%c56, %c0_33] : memref<168x128xf32, #tpu.memory_space<vmem>>, vector<8x32xf32>
    %cst_34 = arith.constant dense<0.000000e+00> : vector<26x32xf32>
    %83 = tpu.matmul %81, %82, %cst_34 {dimension_numbers = #tpu.dot_dimension_numbers<[1], [0], [0], [1], [0, 0, 1, 1], [], []>} : vector<26x8xf32>, vector<8x32xf32>, vector<26x32xf32> -> vector<26x32xf32>
    %84 = arith.addf %63, %83 : vector<26x32xf32>
    %85 = vector.extract_strided_slice %22 {offsets = [0, 24], sizes = [26, 8], strides = [1, 1]} : vector<26x96xf32> to vector<26x8xf32>
    %86 = vector.extract_strided_slice %22 {offsets = [0, 56], sizes = [26, 8], strides = [1, 1]} : vector<26x96xf32> to vector<26x8xf32>
    %87 = vector.extract_strided_slice %22 {offsets = [0, 88], sizes = [26, 8], strides = [1, 1]} : vector<26x96xf32> to vector<26x8xf32>
    %cst_35 = arith.constant dense<0.000000e+00> : vector<26x26xf32>
    %88 = tpu.matmul %85, %86, %cst_35 {dimension_numbers = #tpu.dot_dimension_numbers<[1], [1], [0], [0], [0, 0, 1, 0], [], []>} : vector<26x8xf32>, vector<26x8xf32>, vector<26x26xf32> -> vector<26x26xf32>
    %cst_36 = arith.constant 0.353553385 : f32
    %89 = vector.broadcast %cst_36 : f32 to vector<26x26xf32>
    %90 = arith.mulf %88, %89 : vector<26x26xf32>
    %91 = arith.addf %90, %10 : vector<26x26xf32>
    %cst_37 = arith.constant dense<0xFF800000> : vector<26xf32>
    %92 = vector.multi_reduction <maximumf>, %91, %cst_37 [1] : vector<26x26xf32> to vector<26xf32>
    %93 = vector.shape_cast %92 : vector<26xf32> to vector<26x1xf32>
    %94 = vector.broadcast %93 : vector<26x1xf32> to vector<26x26xf32>
    %95 = arith.subf %91, %94 : vector<26x26xf32>
    %96 = math.exp %95 : vector<26x26xf32>
    %cst_38 = arith.constant dense<0.000000e+00> : vector<26xf32>
    %97 = vector.multi_reduction <add>, %96, %cst_38 [1] : vector<26x26xf32> to vector<26xf32>
    %98 = vector.shape_cast %97 : vector<26xf32> to vector<26x1xf32>
    %99 = tpu.reciprocal %98 {approx = true} : vector<26x1xf32> -> vector<26x1xf32>
    %100 = vector.broadcast %99 : vector<26x1xf32> to vector<26x26xf32>
    %101 = arith.mulf %96, %100 : vector<26x26xf32>
    %cst_39 = arith.constant dense<0.000000e+00> : vector<26x8xf32>
    %102 = tpu.matmul %101, %87, %cst_39 {dimension_numbers = #tpu.dot_dimension_numbers<[1], [0], [0], [1], [0, 0, 1, 1], [], []>} : vector<26x26xf32>, vector<26x8xf32>, vector<26x8xf32> -> vector<26x8xf32>
    %c64 = arith.constant 64 : index
    %c0_40 = arith.constant 0 : index
    %103 = vector.load %arg1[%c64, %c0_40] : memref<168x128xf32, #tpu.memory_space<vmem>>, vector<8x32xf32>
    %cst_41 = arith.constant dense<0.000000e+00> : vector<26x32xf32>
    %104 = tpu.matmul %102, %103, %cst_41 {dimension_numbers = #tpu.dot_dimension_numbers<[1], [0], [0], [1], [0, 0, 1, 1], [], []>} : vector<26x8xf32>, vector<8x32xf32>, vector<26x32xf32> -> vector<26x32xf32>
    %105 = arith.addf %84, %104 : vector<26x32xf32>
    %106 = arith.addf %0, %105 : vector<26x32xf32>
    %107 = vector.broadcast %13 : vector<1x32xf32> to vector<26x32xf32>
    %108 = arith.addf %106, %107 : vector<26x32xf32>
    %cst_42 = arith.constant dense<0.000000e+00> : vector<26xf32>
    %109 = vector.multi_reduction <add>, %108, %cst_42 [1] : vector<26x32xf32> to vector<26xf32>
    %110 = vector.shape_cast %109 : vector<26xf32> to vector<26x1xf32>
    %cst_43 = arith.constant 3.200000e+01 : f32
    %111 = vector.broadcast %cst_43 : f32 to vector<26x1xf32>
    %112 = arith.divf %110, %111 : vector<26x1xf32>
    %113 = vector.broadcast %112 : vector<26x1xf32> to vector<26x32xf32>
    %114 = arith.subf %108, %113 : vector<26x32xf32>
    %115 = arith.mulf %114, %114 : vector<26x32xf32>
    %cst_44 = arith.constant dense<0.000000e+00> : vector<26xf32>
    %116 = vector.multi_reduction <add>, %115, %cst_44 [1] : vector<26x32xf32> to vector<26xf32>
    %117 = vector.shape_cast %116 : vector<26xf32> to vector<26x1xf32>
    %cst_45 = arith.constant 3.200000e+01 : f32
    %118 = vector.broadcast %cst_45 : f32 to vector<26x1xf32>
    %119 = arith.divf %117, %118 : vector<26x1xf32>
    %120 = vector.broadcast %112 : vector<26x1xf32> to vector<26x32xf32>
    %121 = arith.subf %108, %120 : vector<26x32xf32>
    %cst_46 = arith.constant 9.99999974E-6 : f32
    %122 = vector.broadcast %cst_46 : f32 to vector<26x1xf32>
    %123 = arith.addf %119, %122 : vector<26x1xf32>
    %124 = math.rsqrt %123 : vector<26x1xf32>
    %125 = vector.broadcast %124 : vector<26x1xf32> to vector<26x32xf32>
    %126 = arith.mulf %121, %125 : vector<26x32xf32>
    %127 = vector.broadcast %16 : vector<1x32xf32> to vector<26x32xf32>
    %128 = arith.mulf %126, %127 : vector<26x32xf32>
    %129 = vector.broadcast %17 : vector<1x32xf32> to vector<26x32xf32>
    %130 = arith.addf %128, %129 : vector<26x32xf32>
    %c72 = arith.constant 72 : index
    %c0_47 = arith.constant 0 : index
    %131 = vector.load %arg1[%c72, %c0_47] : memref<168x128xf32, #tpu.memory_space<vmem>>, vector<32x64xf32>
    %c104 = arith.constant 104 : index
    %c0_48 = arith.constant 0 : index
    %132 = vector.load %arg1[%c104, %c0_48] : memref<168x128xf32, #tpu.memory_space<vmem>>, vector<64x32xf32>
    %cst_49 = arith.constant dense<0.000000e+00> : vector<26x64xf32>
    %133 = tpu.matmul %130, %131, %cst_49 {dimension_numbers = #tpu.dot_dimension_numbers<[1], [0], [0], [1], [0, 0, 1, 1], [], []>} : vector<26x32xf32>, vector<32x64xf32>, vector<26x64xf32> -> vector<26x64xf32>
    %134 = vector.broadcast %14 : vector<1x64xf32> to vector<26x64xf32>
    %135 = arith.addf %133, %134 : vector<26x64xf32>
    %cst_50 = arith.constant 0.000000e+00 : f32
    %136 = vector.broadcast %cst_50 : f32 to vector<26x64xf32>
    %137 = arith.maximumf %135, %136 : vector<26x64xf32>
    %cst_51 = arith.constant dense<0.000000e+00> : vector<26x32xf32>
    %138 = tpu.matmul %137, %132, %cst_51 {dimension_numbers = #tpu.dot_dimension_numbers<[1], [0], [0], [1], [0, 0, 1, 1], [], []>} : vector<26x64xf32>, vector<64x32xf32>, vector<26x32xf32> -> vector<26x32xf32>
    %139 = vector.broadcast %15 : vector<1x32xf32> to vector<26x32xf32>
    %140 = arith.addf %138, %139 : vector<26x32xf32>
    %141 = arith.addf %130, %140 : vector<26x32xf32>
    %cst_52 = arith.constant dense<0.000000e+00> : vector<26xf32>
    %142 = vector.multi_reduction <add>, %141, %cst_52 [1] : vector<26x32xf32> to vector<26xf32>
    %143 = vector.shape_cast %142 : vector<26xf32> to vector<26x1xf32>
    %cst_53 = arith.constant 3.200000e+01 : f32
    %144 = vector.broadcast %cst_53 : f32 to vector<26x1xf32>
    %145 = arith.divf %143, %144 : vector<26x1xf32>
    %146 = vector.broadcast %145 : vector<26x1xf32> to vector<26x32xf32>
    %147 = arith.subf %141, %146 : vector<26x32xf32>
    %148 = arith.mulf %147, %147 : vector<26x32xf32>
    %cst_54 = arith.constant dense<0.000000e+00> : vector<26xf32>
    %149 = vector.multi_reduction <add>, %148, %cst_54 [1] : vector<26x32xf32> to vector<26xf32>
    %150 = vector.shape_cast %149 : vector<26xf32> to vector<26x1xf32>
    %cst_55 = arith.constant 3.200000e+01 : f32
    %151 = vector.broadcast %cst_55 : f32 to vector<26x1xf32>
    %152 = arith.divf %150, %151 : vector<26x1xf32>
    %153 = vector.broadcast %145 : vector<26x1xf32> to vector<26x32xf32>
    %154 = arith.subf %141, %153 : vector<26x32xf32>
    %cst_56 = arith.constant 9.99999974E-6 : f32
    %155 = vector.broadcast %cst_56 : f32 to vector<26x1xf32>
    %156 = arith.addf %152, %155 : vector<26x1xf32>
    %157 = math.rsqrt %156 : vector<26x1xf32>
    %158 = vector.broadcast %157 : vector<26x1xf32> to vector<26x32xf32>
    %159 = arith.mulf %154, %158 : vector<26x32xf32>
    %160 = vector.broadcast %18 : vector<1x32xf32> to vector<26x32xf32>
    %161 = arith.mulf %159, %160 : vector<26x32xf32>
    %162 = vector.broadcast %19 : vector<1x32xf32> to vector<26x32xf32>
    %163 = arith.addf %161, %162 : vector<26x32xf32>
    %c0_57 = arith.constant 0 : index
    %c0_58 = arith.constant 0 : index
    %164 = vector.load %arg4[%c0_57, %c0_58] : memref<26x32xf32, #tpu.memory_space<vmem>>, vector<26x32xf32>
    tpu.vector_store %arg4[%c0_57, %c0_58], %163 {strides = array<i32>} : memref<26x32xf32, #tpu.memory_space<vmem>>, vector<26x32xf32>,
    %165 = vector.extract_strided_slice %163 {offsets = [0, 0], sizes = [2, 32], strides = [1, 1]} : vector<26x32xf32> to vector<2x32xf32>
    %c0_59 = arith.constant 0 : index
    %c0_60 = arith.constant 0 : index
    %166 = vector.load %arg6[%c0_59, %c0_60] : memref<6x32xf32, #tpu.memory_space<vmem>>, vector<2x32xf32>
    tpu.vector_store %arg6[%c0_59, %c0_60], %165 {strides = array<i32>} : memref<6x32xf32, #tpu.memory_space<vmem>>, vector<2x32xf32>,
    %c0_61 = arith.constant 0 : index
    %c0_62 = arith.constant 0 : index
    %167 = vector.load %arg3[%c0_61, %c0_62] : memref<4x32xf32, #tpu.memory_space<vmem>>, vector<4x32xf32>
    %c2 = arith.constant 2 : index
    %c0_63 = arith.constant 0 : index
    %168 = vector.load %arg6[%c2, %c0_63] : memref<6x32xf32, #tpu.memory_space<vmem>>, vector<4x32xf32>
    tpu.vector_store %arg6[%c2, %c0_63], %167 {strides = array<i32>} : memref<6x32xf32, #tpu.memory_space<vmem>>, vector<4x32xf32>,
    %c0_64 = arith.constant 0 : index
    %c0_65 = arith.constant 0 : index
    %169 = vector.load %arg6[%c0_64, %c0_65] : memref<6x32xf32, #tpu.memory_space<vmem>>, vector<6x32xf32>
    %170 = tpu.iota {dimensions = array<i32: 0>} : vector<6x6xi32>
    %171 = tpu.iota {dimensions = array<i32: 1>} : vector<6x6xi32>
    %c1_i32_66 = arith.constant 1 : i32
    %172 = vector.broadcast %c1_i32_66 : i32 to vector<6x6xi32>
    %173 = arith.andi %170, %172 : vector<6x6xi32>
    %c1_i32_67 = arith.constant 1 : i32
    %174 = vector.broadcast %c1_i32_67 : i32 to vector<6x6xi32>
    %175 = arith.andi %171, %174 : vector<6x6xi32>
    %176 = arith.cmpi eq, %173, %175 : vector<6x6xi32>
    %cst_68 = arith.constant 0.000000e+00 : f32
    %cst_69 = arith.constant -1.000000e+09 : f32
    %177 = vector.broadcast %cst_68 : f32 to vector<6x6xf32>
    %178 = vector.broadcast %cst_69 : f32 to vector<6x6xf32>
    %179 = arith.select %176, %177, %178 : vector<6x6xi1>, vector<6x6xf32>
    %c0_70 = arith.constant 0 : index
    %c0_71 = arith.constant 0 : index
    %180 = vector.load %arg2[%c0_70, %c0_71] : memref<168x128xf32, #tpu.memory_space<vmem>>, vector<32x96xf32>
    %c32_72 = arith.constant 32 : index
    %c0_73 = arith.constant 0 : index
    %181 = vector.load %arg2[%c32_72, %c0_73] : memref<168x128xf32, #tpu.memory_space<vmem>>, vector<1x96xf32>
    %c33_74 = arith.constant 33 : index
    %c0_75 = arith.constant 0 : index
    %182 = vector.load %arg2[%c33_74, %c0_75] : memref<168x128xf32, #tpu.memory_space<vmem>>, vector<1x32xf32>
    %c34_76 = arith.constant 34 : index
    %c0_77 = arith.constant 0 : index
    %183 = vector.load %arg2[%c34_76, %c0_77] : memref<168x128xf32, #tpu.memory_space<vmem>>, vector<1x64xf32>
    %c35_78 = arith.constant 35 : index
    %c0_79 = arith.constant 0 : index
    %184 = vector.load %arg2[%c35_78, %c0_79] : memref<168x128xf32, #tpu.memory_space<vmem>>, vector<1x32xf32>
    %c36_80 = arith.constant 36 : index
    %c0_81 = arith.constant 0 : index
    %185 = vector.load %arg2[%c36_80, %c0_81] : memref<168x128xf32, #tpu.memory_space<vmem>>, vector<1x32xf32>
    %c37_82 = arith.constant 37 : index
    %c0_83 = arith.constant 0 : index
    %186 = vector.load %arg2[%c37_82, %c0_83] : memref<168x128xf32, #tpu.memory_space<vmem>>, vector<1x32xf32>
    %c38_84 = arith.constant 38 : index
    %c0_85 = arith.constant 0 : index
    %187 = vector.load %arg2[%c38_84, %c0_85] : memref<168x128xf32, #tpu.memory_space<vmem>>, vector<1x32xf32>
    %c39_86 = arith.constant 39 : index
    %c0_87 = arith.constant 0 : index
    %188 = vector.load %arg2[%c39_86, %c0_87] : memref<168x128xf32, #tpu.memory_space<vmem>>, vector<1x32xf32>
    %cst_88 = arith.constant dense<0.000000e+00> : vector<6x96xf32>
    %189 = tpu.matmul %169, %180, %cst_88 {dimension_numbers = #tpu.dot_dimension_numbers<[1], [0], [0], [1], [0, 0, 1, 1], [], []>} : vector<6x32xf32>, vector<32x96xf32>, vector<6x96xf32> -> vector<6x96xf32>
    %190 = vector.broadcast %181 : vector<1x96xf32> to vector<6x96xf32>
    %191 = arith.addf %189, %190 : vector<6x96xf32>
    %192 = vector.extract_strided_slice %191 {offsets = [0, 0], sizes = [6, 8], strides = [1, 1]} : vector<6x96xf32> to vector<6x8xf32>
    %193 = vector.extract_strided_slice %191 {offsets = [0, 32], sizes = [6, 8], strides = [1, 1]} : vector<6x96xf32> to vector<6x8xf32>
    %194 = vector.extract_strided_slice %191 {offsets = [0, 64], sizes = [6, 8], strides = [1, 1]} : vector<6x96xf32> to vector<6x8xf32>
    %cst_89 = arith.constant dense<0.000000e+00> : vector<6x6xf32>
    %195 = tpu.matmul %192, %193, %cst_89 {dimension_numbers = #tpu.dot_dimension_numbers<[1], [1], [0], [0], [0, 0, 1, 0], [], []>} : vector<6x8xf32>, vector<6x8xf32>, vector<6x6xf32> -> vector<6x6xf32>
    %cst_90 = arith.constant 0.353553385 : f32
    %196 = vector.broadcast %cst_90 : f32 to vector<6x6xf32>
    %197 = arith.mulf %195, %196 : vector<6x6xf32>
    %198 = arith.addf %197, %179 : vector<6x6xf32>
    %cst_91 = arith.constant dense<0xFF800000> : vector<6xf32>
    %199 = vector.multi_reduction <maximumf>, %198, %cst_91 [1] : vector<6x6xf32> to vector<6xf32>
    %200 = vector.shape_cast %199 : vector<6xf32> to vector<6x1xf32>
    %201 = vector.broadcast %200 : vector<6x1xf32> to vector<6x6xf32>
    %202 = arith.subf %198, %201 : vector<6x6xf32>
    %203 = math.exp %202 : vector<6x6xf32>
    %cst_92 = arith.constant dense<0.000000e+00> : vector<6xf32>
    %204 = vector.multi_reduction <add>, %203, %cst_92 [1] : vector<6x6xf32> to vector<6xf32>
    %205 = vector.shape_cast %204 : vector<6xf32> to vector<6x1xf32>
    %206 = tpu.reciprocal %205 {approx = true} : vector<6x1xf32> -> vector<6x1xf32>
    %207 = vector.broadcast %206 : vector<6x1xf32> to vector<6x6xf32>
    %208 = arith.mulf %203, %207 : vector<6x6xf32>
    %cst_93 = arith.constant dense<0.000000e+00> : vector<6x8xf32>
    %209 = tpu.matmul %208, %194, %cst_93 {dimension_numbers = #tpu.dot_dimension_numbers<[1], [0], [0], [1], [0, 0, 1, 1], [], []>} : vector<6x6xf32>, vector<6x8xf32>, vector<6x8xf32> -> vector<6x8xf32>
    %c40_94 = arith.constant 40 : index
    %c0_95 = arith.constant 0 : index
    %210 = vector.load %arg2[%c40_94, %c0_95] : memref<168x128xf32, #tpu.memory_space<vmem>>, vector<8x32xf32>
    %cst_96 = arith.constant dense<0.000000e+00> : vector<6x32xf32>
    %211 = tpu.matmul %209, %210, %cst_96 {dimension_numbers = #tpu.dot_dimension_numbers<[1], [0], [0], [1], [0, 0, 1, 1], [], []>} : vector<6x8xf32>, vector<8x32xf32>, vector<6x32xf32> -> vector<6x32xf32>
    %212 = vector.extract_strided_slice %191 {offsets = [0, 8], sizes = [6, 8], strides = [1, 1]} : vector<6x96xf32> to vector<6x8xf32>
    %213 = vector.extract_strided_slice %191 {offsets = [0, 40], sizes = [6, 8], strides = [1, 1]} : vector<6x96xf32> to vector<6x8xf32>
    %214 = vector.extract_strided_slice %191 {offsets = [0, 72], sizes = [6, 8], strides = [1, 1]} : vector<6x96xf32> to vector<6x8xf32>
    %cst_97 = arith.constant dense<0.000000e+00> : vector<6x6xf32>
    %215 = tpu.matmul %212, %213, %cst_97 {dimension_numbers = #tpu.dot_dimension_numbers<[1], [1], [0], [0], [0, 0, 1, 0], [], []>} : vector<6x8xf32>, vector<6x8xf32>, vector<6x6xf32> -> vector<6x6xf32>
    %cst_98 = arith.constant 0.353553385 : f32
    %216 = vector.broadcast %cst_98 : f32 to vector<6x6xf32>
    %217 = arith.mulf %215, %216 : vector<6x6xf32>
    %218 = arith.addf %217, %179 : vector<6x6xf32>
    %cst_99 = arith.constant dense<0xFF800000> : vector<6xf32>
    %219 = vector.multi_reduction <maximumf>, %218, %cst_99 [1] : vector<6x6xf32> to vector<6xf32>
    %220 = vector.shape_cast %219 : vector<6xf32> to vector<6x1xf32>
    %221 = vector.broadcast %220 : vector<6x1xf32> to vector<6x6xf32>
    %222 = arith.subf %218, %221 : vector<6x6xf32>
    %223 = math.exp %222 : vector<6x6xf32>
    %cst_100 = arith.constant dense<0.000000e+00> : vector<6xf32>
    %224 = vector.multi_reduction <add>, %223, %cst_100 [1] : vector<6x6xf32> to vector<6xf32>
    %225 = vector.shape_cast %224 : vector<6xf32> to vector<6x1xf32>
    %226 = tpu.reciprocal %225 {approx = true} : vector<6x1xf32> -> vector<6x1xf32>
    %227 = vector.broadcast %226 : vector<6x1xf32> to vector<6x6xf32>
    %228 = arith.mulf %223, %227 : vector<6x6xf32>
    %cst_101 = arith.constant dense<0.000000e+00> : vector<6x8xf32>
    %229 = tpu.matmul %228, %214, %cst_101 {dimension_numbers = #tpu.dot_dimension_numbers<[1], [0], [0], [1], [0, 0, 1, 1], [], []>} : vector<6x6xf32>, vector<6x8xf32>, vector<6x8xf32> -> vector<6x8xf32>
    %c48_102 = arith.constant 48 : index
    %c0_103 = arith.constant 0 : index
    %230 = vector.load %arg2[%c48_102, %c0_103] : memref<168x128xf32, #tpu.memory_space<vmem>>, vector<8x32xf32>
    %cst_104 = arith.constant dense<0.000000e+00> : vector<6x32xf32>
    %231 = tpu.matmul %229, %230, %cst_104 {dimension_numbers = #tpu.dot_dimension_numbers<[1], [0], [0], [1], [0, 0, 1, 1], [], []>} : vector<6x8xf32>, vector<8x32xf32>, vector<6x32xf32> -> vector<6x32xf32>
    %232 = arith.addf %211, %231 : vector<6x32xf32>
    %233 = vector.extract_strided_slice %191 {offsets = [0, 16], sizes = [6, 8], strides = [1, 1]} : vector<6x96xf32> to vector<6x8xf32>
    %234 = vector.extract_strided_slice %191 {offsets = [0, 48], sizes = [6, 8], strides = [1, 1]} : vector<6x96xf32> to vector<6x8xf32>
    %235 = vector.extract_strided_slice %191 {offsets = [0, 80], sizes = [6, 8], strides = [1, 1]} : vector<6x96xf32> to vector<6x8xf32>
    %cst_105 = arith.constant dense<0.000000e+00> : vector<6x6xf32>
    %236 = tpu.matmul %233, %234, %cst_105 {dimension_numbers = #tpu.dot_dimension_numbers<[1], [1], [0], [0], [0, 0, 1, 0], [], []>} : vector<6x8xf32>, vector<6x8xf32>, vector<6x6xf32> -> vector<6x6xf32>
    %cst_106 = arith.constant 0.353553385 : f32
    %237 = vector.broadcast %cst_106 : f32 to vector<6x6xf32>
    %238 = arith.mulf %236, %237 : vector<6x6xf32>
    %239 = arith.addf %238, %179 : vector<6x6xf32>
    %cst_107 = arith.constant dense<0xFF800000> : vector<6xf32>
    %240 = vector.multi_reduction <maximumf>, %239, %cst_107 [1] : vector<6x6xf32> to vector<6xf32>
    %241 = vector.shape_cast %240 : vector<6xf32> to vector<6x1xf32>
    %242 = vector.broadcast %241 : vector<6x1xf32> to vector<6x6xf32>
    %243 = arith.subf %239, %242 : vector<6x6xf32>
    %244 = math.exp %243 : vector<6x6xf32>
    %cst_108 = arith.constant dense<0.000000e+00> : vector<6xf32>
    %245 = vector.multi_reduction <add>, %244, %cst_108 [1] : vector<6x6xf32> to vector<6xf32>
    %246 = vector.shape_cast %245 : vector<6xf32> to vector<6x1xf32>
    %247 = tpu.reciprocal %246 {approx = true} : vector<6x1xf32> -> vector<6x1xf32>
    %248 = vector.broadcast %247 : vector<6x1xf32> to vector<6x6xf32>
    %249 = arith.mulf %244, %248 : vector<6x6xf32>
    %cst_109 = arith.constant dense<0.000000e+00> : vector<6x8xf32>
    %250 = tpu.matmul %249, %235, %cst_109 {dimension_numbers = #tpu.dot_dimension_numbers<[1], [0], [0], [1], [0, 0, 1, 1], [], []>} : vector<6x6xf32>, vector<6x8xf32>, vector<6x8xf32> -> vector<6x8xf32>
    %c56_110 = arith.constant 56 : index
    %c0_111 = arith.constant 0 : index
    %251 = vector.load %arg2[%c56_110, %c0_111] : memref<168x128xf32, #tpu.memory_space<vmem>>, vector<8x32xf32>
    %cst_112 = arith.constant dense<0.000000e+00> : vector<6x32xf32>
    %252 = tpu.matmul %250, %251, %cst_112 {dimension_numbers = #tpu.dot_dimension_numbers<[1], [0], [0], [1], [0, 0, 1, 1], [], []>} : vector<6x8xf32>, vector<8x32xf32>, vector<6x32xf32> -> vector<6x32xf32>
    %253 = arith.addf %232, %252 : vector<6x32xf32>
    %254 = vector.extract_strided_slice %191 {offsets = [0, 24], sizes = [6, 8], strides = [1, 1]} : vector<6x96xf32> to vector<6x8xf32>
    %255 = vector.extract_strided_slice %191 {offsets = [0, 56], sizes = [6, 8], strides = [1, 1]} : vector<6x96xf32> to vector<6x8xf32>
    %256 = vector.extract_strided_slice %191 {offsets = [0, 88], sizes = [6, 8], strides = [1, 1]} : vector<6x96xf32> to vector<6x8xf32>
    %cst_113 = arith.constant dense<0.000000e+00> : vector<6x6xf32>
    %257 = tpu.matmul %254, %255, %cst_113 {dimension_numbers = #tpu.dot_dimension_numbers<[1], [1], [0], [0], [0, 0, 1, 0], [], []>} : vector<6x8xf32>, vector<6x8xf32>, vector<6x6xf32> -> vector<6x6xf32>
    %cst_114 = arith.constant 0.353553385 : f32
    %258 = vector.broadcast %cst_114 : f32 to vector<6x6xf32>
    %259 = arith.mulf %257, %258 : vector<6x6xf32>
    %260 = arith.addf %259, %179 : vector<6x6xf32>
    %cst_115 = arith.constant dense<0xFF800000> : vector<6xf32>
    %261 = vector.multi_reduction <maximumf>, %260, %cst_115 [1] : vector<6x6xf32> to vector<6xf32>
    %262 = vector.shape_cast %261 : vector<6xf32> to vector<6x1xf32>
    %263 = vector.broadcast %262 : vector<6x1xf32> to vector<6x6xf32>
    %264 = arith.subf %260, %263 : vector<6x6xf32>
    %265 = math.exp %264 : vector<6x6xf32>
    %cst_116 = arith.constant dense<0.000000e+00> : vector<6xf32>
    %266 = vector.multi_reduction <add>, %265, %cst_116 [1] : vector<6x6xf32> to vector<6xf32>
    %267 = vector.shape_cast %266 : vector<6xf32> to vector<6x1xf32>
    %268 = tpu.reciprocal %267 {approx = true} : vector<6x1xf32> -> vector<6x1xf32>
    %269 = vector.broadcast %268 : vector<6x1xf32> to vector<6x6xf32>
    %270 = arith.mulf %265, %269 : vector<6x6xf32>
    %cst_117 = arith.constant dense<0.000000e+00> : vector<6x8xf32>
    %271 = tpu.matmul %270, %256, %cst_117 {dimension_numbers = #tpu.dot_dimension_numbers<[1], [0], [0], [1], [0, 0, 1, 1], [], []>} : vector<6x6xf32>, vector<6x8xf32>, vector<6x8xf32> -> vector<6x8xf32>
    %c64_118 = arith.constant 64 : index
    %c0_119 = arith.constant 0 : index
    %272 = vector.load %arg2[%c64_118, %c0_119] : memref<168x128xf32, #tpu.memory_space<vmem>>, vector<8x32xf32>
    %cst_120 = arith.constant dense<0.000000e+00> : vector<6x32xf32>
    %273 = tpu.matmul %271, %272, %cst_120 {dimension_numbers = #tpu.dot_dimension_numbers<[1], [0], [0], [1], [0, 0, 1, 1], [], []>} : vector<6x8xf32>, vector<8x32xf32>, vector<6x32xf32> -> vector<6x32xf32>
    %274 = arith.addf %253, %273 : vector<6x32xf32>
    %275 = arith.addf %169, %274 : vector<6x32xf32>
    %276 = vector.broadcast %182 : vector<1x32xf32> to vector<6x32xf32>
    %277 = arith.addf %275, %276 : vector<6x32xf32>
    %cst_121 = arith.constant dense<0.000000e+00> : vector<6xf32>
    %278 = vector.multi_reduction <add>, %277, %cst_121 [1] : vector<6x32xf32> to vector<6xf32>
    %279 = vector.shape_cast %278 : vector<6xf32> to vector<6x1xf32>
    %cst_122 = arith.constant 3.200000e+01 : f32
    %280 = vector.broadcast %cst_122 : f32 to vector<6x1xf32>
    %281 = arith.divf %279, %280 : vector<6x1xf32>
    %282 = vector.broadcast %281 : vector<6x1xf32> to vector<6x32xf32>
    %283 = arith.subf %277, %282 : vector<6x32xf32>
    %284 = arith.mulf %283, %283 : vector<6x32xf32>
    %cst_123 = arith.constant dense<0.000000e+00> : vector<6xf32>
    %285 = vector.multi_reduction <add>, %284, %cst_123 [1] : vector<6x32xf32> to vector<6xf32>
    %286 = vector.shape_cast %285 : vector<6xf32> to vector<6x1xf32>
    %cst_124 = arith.constant 3.200000e+01 : f32
    %287 = vector.broadcast %cst_124 : f32 to vector<6x1xf32>
    %288 = arith.divf %286, %287 : vector<6x1xf32>
    %289 = vector.broadcast %281 : vector<6x1xf32> to vector<6x32xf32>
    %290 = arith.subf %277, %289 : vector<6x32xf32>
    %cst_125 = arith.constant 9.99999974E-6 : f32
    %291 = vector.broadcast %cst_125 : f32 to vector<6x1xf32>
    %292 = arith.addf %288, %291 : vector<6x1xf32>
    %293 = math.rsqrt %292 : vector<6x1xf32>
    %294 = vector.broadcast %293 : vector<6x1xf32> to vector<6x32xf32>
    %295 = arith.mulf %290, %294 : vector<6x32xf32>
    %296 = vector.broadcast %185 : vector<1x32xf32> to vector<6x32xf32>
    %297 = arith.mulf %295, %296 : vector<6x32xf32>
    %298 = vector.broadcast %186 : vector<1x32xf32> to vector<6x32xf32>
    %299 = arith.addf %297, %298 : vector<6x32xf32>
    %c72_126 = arith.constant 72 : index
    %c0_127 = arith.constant 0 : index
    %300 = vector.load %arg2[%c72_126, %c0_127] : memref<168x128xf32, #tpu.memory_space<vmem>>, vector<32x64xf32>
    %c104_128 = arith.constant 104 : index
    %c0_129 = arith.constant 0 : index
    %301 = vector.load %arg2[%c104_128, %c0_129] : memref<168x128xf32, #tpu.memory_space<vmem>>, vector<64x32xf32>
    %cst_130 = arith.constant dense<0.000000e+00> : vector<6x64xf32>
    %302 = tpu.matmul %299, %300, %cst_130 {dimension_numbers = #tpu.dot_dimension_numbers<[1], [0], [0], [1], [0, 0, 1, 1], [], []>} : vector<6x32xf32>, vector<32x64xf32>, vector<6x64xf32> -> vector<6x64xf32>
    %303 = vector.broadcast %183 : vector<1x64xf32> to vector<6x64xf32>
    %304 = arith.addf %302, %303 : vector<6x64xf32>
    %cst_131 = arith.constant 0.000000e+00 : f32
    %305 = vector.broadcast %cst_131 : f32 to vector<6x64xf32>
    %306 = arith.maximumf %304, %305 : vector<6x64xf32>
    %cst_132 = arith.constant dense<0.000000e+00> : vector<6x32xf32>
    %307 = tpu.matmul %306, %301, %cst_132 {dimension_numbers = #tpu.dot_dimension_numbers<[1], [0], [0], [1], [0, 0, 1, 1], [], []>} : vector<6x64xf32>, vector<64x32xf32>, vector<6x32xf32> -> vector<6x32xf32>
    %308 = vector.broadcast %184 : vector<1x32xf32> to vector<6x32xf32>
    %309 = arith.addf %307, %308 : vector<6x32xf32>
    %310 = arith.addf %299, %309 : vector<6x32xf32>
    %cst_133 = arith.constant dense<0.000000e+00> : vector<6xf32>
    %311 = vector.multi_reduction <add>, %310, %cst_133 [1] : vector<6x32xf32> to vector<6xf32>
    %312 = vector.shape_cast %311 : vector<6xf32> to vector<6x1xf32>
    %cst_134 = arith.constant 3.200000e+01 : f32
    %313 = vector.broadcast %cst_134 : f32 to vector<6x1xf32>
    %314 = arith.divf %312, %313 : vector<6x1xf32>
    %315 = vector.broadcast %314 : vector<6x1xf32> to vector<6x32xf32>
    %316 = arith.subf %310, %315 : vector<6x32xf32>
    %317 = arith.mulf %316, %316 : vector<6x32xf32>
    %cst_135 = arith.constant dense<0.000000e+00> : vector<6xf32>
    %318 = vector.multi_reduction <add>, %317, %cst_135 [1] : vector<6x32xf32> to vector<6xf32>
    %319 = vector.shape_cast %318 : vector<6xf32> to vector<6x1xf32>
    %cst_136 = arith.constant 3.200000e+01 : f32
    %320 = vector.broadcast %cst_136 : f32 to vector<6x1xf32>
    %321 = arith.divf %319, %320 : vector<6x1xf32>
    %322 = vector.broadcast %314 : vector<6x1xf32> to vector<6x32xf32>
    %323 = arith.subf %310, %322 : vector<6x32xf32>
    %cst_137 = arith.constant 9.99999974E-6 : f32
    %324 = vector.broadcast %cst_137 : f32 to vector<6x1xf32>
    %325 = arith.addf %321, %324 : vector<6x1xf32>
    %326 = math.rsqrt %325 : vector<6x1xf32>
    %327 = vector.broadcast %326 : vector<6x1xf32> to vector<6x32xf32>
    %328 = arith.mulf %323, %327 : vector<6x32xf32>
    %329 = vector.broadcast %187 : vector<1x32xf32> to vector<6x32xf32>
    %330 = arith.mulf %328, %329 : vector<6x32xf32>
    %331 = vector.broadcast %188 : vector<1x32xf32> to vector<6x32xf32>
    %332 = arith.addf %330, %331 : vector<6x32xf32>
    %c0_138 = arith.constant 0 : index
    %c0_139 = arith.constant 0 : index
    %333 = vector.load %arg5[%c0_138, %c0_139] : memref<6x32xf32, #tpu.memory_space<vmem>>, vector<6x32xf32>
    tpu.vector_store %arg5[%c0_138, %c0_139], %332 {strides = array<i32>} : memref<6x32xf32, #tpu.memory_space<vmem>>, vector<6x32xf32>,
    return
  }
}

</mosaic_0001>

<bundles_post_ra>
// kernel: forward.3
= control target key start
LH: loop header
LB: loop body
LE: loop exit
PB: predicated region body
PF: predicated region fallthrough
CT: control target
= control target key end

     0   :  { %11 = vsyncpa [#allocation4], 0  ;;  %s4632_s0 = inlined_call_operand.vmem [shape: f32[34,32], index: 0, kind: input, shape index: {}]   ;;  %s4633_s1 = inlined_call_operand.hbm [shape: f32[168,128], index: 1, kind: input, shape index: {}]   ;;  %s4634_s2 = inlined_call_operand.hbm [shape: f32[168,128], index: 2, kind: input, shape index: {}]   ;;  %s4635_s3 = inlined_call_operand.vmem [shape: f32[8,32], index: 3, kind: input, shape index: {}]   ;;  %s4636_s4 = inlined_call_operand.vmem [shape: f32[34,32], index: 4, kind: output, shape index: {0}]   ;;  %s4637_s5 = inlined_call_operand.vmem [shape: f32[10,32], index: 5, kind: output, shape index: {1}]  }
   0x1   :  { %12 = vsyncpa [#allocation6], 0  ;;  %s3776_s18 = smov [#allocation3]  }
   0x2   :  { %s20_s19 = sshll.u32 %s3776_s18, 4  ;;  %s21_s19 = int_to_ptr.vmem [resolvable:$true] %s20_s19 }
   0x3   :  { %s3740_s20 = scalar_lea.vmem %s21_s19, 2688  ;;  %p3745_p1 = scmp.lt.s32.totalorder %s21_s19, %s21_s19 }
   0x4   :  { %p3741_p0 = scmp.ne.s32.totalorder %s21_s19, %s3740_s20  ;;  %p3746_p2 = scmp.lt.s32.totalorder %s3740_s20, %s3740_s20 }
   0x6   :  { %p3747_p3 = por %p3746_p2, %p3745_p1 }
   0x8   :  { %p3748_p4 = pnand %p3747_p3, %p3741_p0 }
   0xa   :  { %3751 = shalt.err (!%p3748_p4)
}
   0xb   :  { %s3777_s21 = smov 128   ;;  %s3778_s22 = smov 8  }
   0xc   :  { %26 = dma.hbm_to_vmem [thread:$0]  %s4633_s1, 2688, %s21_s19, [#allocation4], %s3777_s21, %s3777_s21, %s3778_s22  }
   0xd   :  { %s3779_s25 = smov [#allocation5]  }
   0xe   :  { %s32_s26 = sshll.u32 %s3779_s25, 4  ;;  %s33_s26 = int_to_ptr.vmem [resolvable:$true] %s32_s26 }
   0xf   :  { %s3760_s27 = scalar_lea.vmem %s33_s26, 2688  ;;  %p3765_p6 = scmp.lt.s32.totalorder %s33_s26, %s33_s26 }
  0x10   :  { %p3761_p5 = scmp.ne.s32.totalorder %s33_s26, %s3760_s27  ;;  %p3766_p7 = scmp.lt.s32.totalorder %s3760_s27, %s3760_s27 }
  0x12   :  { %p3767_p8 = por %p3766_p7, %p3765_p6 }
  0x14   :  { %p3768_p9 = pnand %p3767_p8, %p3761_p5 }
  0x16   :  { %3771 = shalt.err (!%p3768_p9)
}
  0x17   :  { %38 = dma.hbm_to_vmem [thread:$0]  %s4634_s2, 2688, %s33_s26, [#allocation6], %s3777_s21, %s3777_s21, %s3778_s22  }
  0x18   :  { %3772 = dma.done.wait [#allocation4], 2688  }
  0x19   :  { %3773 = vsyncadd [#allocation4], 4294964608 }
  0x1a   :  { %3774 = dma.done.wait [#allocation6], 2688  }
  0x1b   :  { %3775 = vsyncadd [#allocation6], 4294964608  ;;  %v3780_v0 = vmov 0.0   ;;  %vm3781_vm0 = vmmov 0   ;;  %v79_v1 = vld [vmem:[#allocation3 + $0x18] sm:$0xff]  ;;  %v78_v2 = vld [vmem:[#allocation3 + $0x10] sm:$0xff]  ;;  %v52_v44 = vlaneseq }
  0x1c   :  { %3155 = vmatprep.subr.mxu0 %v3780_v0  ;;  %3163 = vmatprep.mubr.msk.f32.mxu0 %vm3781_vm0, %v3780_v0  ;;  %v77_v3 = vld [vmem:[#allocation3 + $0x8] sm:$0xff]  ;;  %v76_v4 = vld [vmem:[#allocation3] sm:$0xff]  ;;  %v47_v5 = vld [vmem:[%s4632_s0] sm:$0xff]  ;;  %vm92_vm1 = vcmask 261120   ;;  %s3782_s13 = smov 96   ;;  %s3783_s14 = smov 88  }
  0x1d   :  { %3178 = vmatprep.subr.mxu1 %v3780_v0  ;;  %3188 = vmatprep.mubr.msk.f32.mxu1 %vm3781_vm0, %v3780_v0  ;;  %v48_v6 = vld [vmem:[%s4632_s0 + $0x8] sm:$0xff]  ;;  %v49_v7 = vld [vmem:[%s4632_s0 + $0x10] sm:$0xff]  ;;  %v50_v8 = vld [vmem:[%s4632_s0 + $0x18] sm:$0xff]  ;;  %s3784_s15 = smov 120   ;;  %s3785_s16 = smov 64   ;;  %vm213_vm2 = vcmask 64512  }
  0x1e   :  { %3156 = vmatpush3.msra.mxu0 %v79_v1  ;;  %v51_v9 = vld [vmem:[%s4632_s0 + $0x20] sm:$0x3]  ;;  %v2852_v14 = vld [vmem:[#allocation3 + $0x20] ss:$0 sm:$0xff]  ;;  %vm420_vm3 = vcmask 1041408   ;;  %v3966_v45 = vshrl.u32 %v52_v44, 7 }
  0x1f   :  { %3157 = vmatprep.subr.mxu0 %v3780_v0  ;;  %v3968_v46 = vand.u32 127, %v52_v44  ;;  %v3786_v53 = vmov -1e+09   ;;  %vm334_vm6 = vcmask 277504   ;;  %vm347_vm10 = vcmask 271360   ;;  %s3787_s17 = smov 56  }
  0x20   :  { %3158 = vmatpush3.msra.mxu0 %v78_v2  ;;  %v3971_v47 = vand.u32 1, %v3966_v45  ;;  %v54_v49 = vadd.s32 8, %v3966_v45  ;;  %v55_v50 = vadd.s32 16, %v3966_v45  ;;  %v56_v57 = vadd.s32 24, %v3966_v45  ;;  %s3788_s18 = smov 80   ;;  %s3789_s19 = smov 112  }
  0x21   :  { %3159 = vmatprep.subr.mxu0 %v3780_v0  ;;  %v65_v48 = vand.u32 1, %v3968_v46  ;;  %v57_v2 = vadd.s32 32, %v3966_v45  ;;  %s3790_s20 = smov 48   ;;  %s3791_s21 = smov 72   ;;  %vm1921_vm11 = vcmask 254976   ;;  %vm2124_vm12 = vcmask 523264  }
  0x22   :  { %3160 = vmatpush3.msra.mxu0 %v77_v3  ;;  %v61_v51 = vand.u32 1, %v54_v49  ;;  %v62_v55 = vand.u32 1, %v55_v50  ;;  %v63_v1 = vand.u32 1, %v56_v57  ;;  %s3792_s22 = smov 104   ;;  %s3793_s23 = smov 40  }
  0x23   :  { %3161 = vmatprep.subr.mxu0 %v3780_v0  ;;  %vm66_vm4 = vcmp.eq.s32.totalorder %v3971_v47, %v65_v48 }
  0x24   :  { %3162 = vmatpush3.msra.mxu0 %v76_v4  ;;  %v3977_v54 = vsel %vm66_vm4, 0.0, %v3786_v53  ;;  %vm67_vm5 = vcmp.eq.s32.totalorder %v61_v51, %v65_v48  ;;  %vm68_vm7 = vcmp.eq.s32.totalorder %v62_v55, %v65_v48  ;;  %vm69_vm8 = vcmp.eq.s32.totalorder %v63_v1, %v65_v48 }
  0x25   :  { %3164 = vmatmul.mubr.msk.f32.vlgmr.msra.gmra.mxu0 %vm92_vm1, %v47_v5  ;;  %3203 = vmatprep.subr.mxu0 %v3780_v0  ;;  %v3983_v61 = vsel %vm67_vm5, 0.0, %v3786_v53  ;;  %vm2661_vm4 = vcmask 1048320  }
  0x26   :  { %3166 = vmatprep.mubr.msk.f32.mxu0 %vm3781_vm0, %v3780_v0 }
  0x29   :  { %3167 = vmatmul.mubr.msk.f32.gmra.mxu0 %vm92_vm1, %v48_v6  ;;  %v3991_v6 = vsel %vm68_vm7, 0.0, %v3786_v53 }
  0x2a   :  { %3169 = vmatprep.mubr.msk.f32.mxu0 %vm3781_vm0, %v3780_v0 }
  0x2d   :  { %3170 = vmatmul.mubr.msk.f32.gmra.mxu0 %vm92_vm1, %v49_v7 }
  0x2e   :  { %3172 = vmatprep.mubr.msk.f32.mxu0 %vm3781_vm0, %v3780_v0 }
  0x31   :  { %3173 = vmatmul.mubr.msk.f32.gmra.mxu0 %vm92_vm1, %v50_v8 }
  0x32   :  { %3175 = vmatprep.mubr.msk.f32.mxu0 %vm3781_vm0, %v3780_v0 }
  0x35   :  { %3176 = vmatmul.mubr.msk.f32.gmra.mxu0 %vm92_vm1, %v51_v9  ;;  %v64_v9 = vand.u32 1, %v57_v2 }
  0x36   :  { %3213 = vmatprep.mubr.msk.f32.mxu0 %vm3781_vm0, %v3780_v0 }
  0x37   :  { %vm70_vm9 = vcmp.eq.s32.totalorder %v64_v9, %v65_v48 }
  0xe5   :  { %v174_v10 = vpop.f32.mrf.mxu0 }
  0xe6   :  { %v3889_v25 = vadd.f32 %v2852_v14, %v174_v10 }
  0xe7   :  { %v3165_v11 = vpop.f32.mrf.mxu0 }
  0xe9   :  { %v179_v12 = vpop.f32.mrf.mxu0 }
  0xea   :  { %v3875_v19 = vadd.f32 %v2852_v14, %v179_v12 }
  0xeb   :  { %v3168_v13 = vpop.f32.mrf.mxu0 }
  0xec   :  { %v3998_v13 = vsel %vm69_vm8, 0.0, %v3786_v53 }
  0xed   :  { %v184_v15 = vpop.f32.mrf.mxu0 }
  0xee   :  { %v3871_v16 = vadd.f32 %v2852_v14, %v184_v15 }
  0xef   :  { %v3171_v17 = vpop.f32.mrf.mxu0 }
  0xf0   :  { %207 = vrot.lane.b32.xlu1 %v3871_v16, %s3782_s13 }
  0xf1   :  { %v189_v18 = vpop.f32.mrf.mxu0 }
  0xf2   :  { %v3884_v24 = vadd.f32 %v2852_v14, %v189_v18 }
  0xf3   :  { %v3174_v20 = vpop.f32.mrf.mxu0 }
  0xf4   :  { %205 = vrot.lane.b32.xlu1 %v3875_v19, %s3782_s13 }
  0xf5   :  { %v194_v21 = vpop.f32.mrf.mxu0 }
  0xf6   :  { %v3879_v22 = vadd.f32 %v2852_v14, %v194_v21  ;;  %v4003_v21 = vsel %vm70_vm9, 0.0, %v3786_v53 }
  0xf7   :  { %v3177_v23 = vpop.f32.mrf.mxu0 }
  0xf8   :  { %532 = vrot.lane.b32.xlu1 %v3879_v22, %s3783_s14  ;;  %211 = vrot.lane.b32.xlu0 %v3879_v22, %s3782_s13 }
  0xfc   :  { %528 = vrot.lane.b32.xlu1 %v3871_v16, %s3783_s14  ;;  %209 = vrot.lane.b32.xlu0 %v3884_v24, %s3782_s13 }
 0x100   :  { %524 = vrot.lane.b32.xlu1 %v3889_v25, %s3783_s14  ;;  %203 = vrot.lane.b32.xlu0 %v3889_v25, %s3782_s13 }
 0x104   :  { %516 = vrot.lane.b32.xlu1 %v3875_v19, %s3784_s15  ;;  %530 = vrot.lane.b32.xlu0 %v3884_v24, %s3783_s14 }
 0x108   :  { %520 = vrot.lane.b32.xlu1 %v3884_v24, %s3784_s15  ;;  %526 = vrot.lane.b32.xlu0 %v3875_v19, %s3783_s14 }
 0x10c   :  { %395 = vrot.lane.b32.xlu1 %v3871_v16, %s3785_s16  ;;  %514 = vrot.lane.b32.xlu0 %v3889_v25, %s3784_s15 }
 0x110   :  { %399 = vrot.lane.b32.xlu1 %v3879_v22, %s3785_s16  ;;  %518 = vrot.lane.b32.xlu0 %v3871_v16, %s3784_s15 }
 0x114   :  { %522 = vrot.lane.b32.xlu0 %v3879_v22, %s3784_s15 }
 0x118   :  { %397 = vrot.lane.b32.xlu0 %v3884_v24, %s3785_s16 }
 0x162   :  { %v208_v26 = vpop.permute.xlu1 %207 }
 0x166   :  { %v206_v27 = vpop.permute.xlu1 %205 }
 0x16a   :  { %v533_v28 = vpop.permute.xlu1 %532  ;;  %v212_v29 = vpop.permute.xlu0 %211 }
 0x16b   :  { %3179 = vmatpush3.xpose.msk.msra.mxu1 %vm213_vm2, %v212_v29 }
 0x16c   :  { %3180 = vmatprep.subr.mxu1 %v3780_v0 }
 0x16e   :  { %v529_v30 = vpop.permute.xlu1 %528  ;;  %v210_v31 = vpop.permute.xlu0 %209 }
 0x16f   :  { %3181 = vmatpush3.xpose.msk.msra.mxu1 %vm213_vm2, %v210_v31 }
 0x170   :  { %3182 = vmatprep.subr.mxu1 %v3780_v0 }
 0x172   :  { %v525_v32 = vpop.permute.xlu1 %524  ;;  %v204_v33 = vpop.permute.xlu0 %203 }
 0x173   :  { %3183 = vmatpush3.xpose.msk.msra.mxu1 %vm213_vm2, %v208_v26 }
 0x174   :  { %3184 = vmatprep.subr.mxu1 %v3780_v0 }
 0x176   :  { %v517_v34 = vpop.permute.xlu1 %516  ;;  %v531_v35 = vpop.permute.xlu0 %530 }
 0x177   :  { %3185 = vmatpush3.xpose.msk.msra.mxu1 %vm213_vm2, %v206_v27 }
 0x178   :  { %3186 = vmatprep.subr.mxu1 %v3780_v0 }
 0x17a   :  { %v521_v36 = vpop.permute.xlu1 %520  ;;  %v527_v37 = vpop.permute.xlu0 %526 }
 0x17b   :  { %3187 = vmatpush3.xpose.msk.msra.mxu1 %vm213_vm2, %v204_v33 }
 0x17c   :  { %3228 = vmatprep.subr.mxu1 %v3780_v0 }
 0x17e   :  { %v396_v38 = vpop.permute.xlu1 %395  ;;  %3189 = vmatmul.mubr.msk.f32.vlgmr.msra.gmra.mxu1 %vm213_vm2, %v3889_v25  ;;  %v515_v39 = vpop.permute.xlu0 %514 }
 0x17f   :  { %3229 = vmatpush3.xpose.msk.msra.mxu1 %vm213_vm2, %v533_v28  ;;  %3191 = vmatprep.mubr.msk.f32.mxu1 %vm3781_vm0, %v3780_v0 }
 0x180   :  { %3230 = vmatprep.subr.mxu1 %v3780_v0 }
 0x182   :  { %v400_v40 = vpop.permute.xlu1 %399  ;;  %3192 = vmatmul.mubr.msk.f32.gmra.mxu1 %vm213_vm2, %v3875_v19  ;;  %v519_v41 = vpop.permute.xlu0 %518 }
 0x183   :  { %3204 = vmatpush3.msk.msra.mxu0 %vm420_vm3, %v400_v40  ;;  %3231 = vmatpush3.xpose.msk.msra.mxu1 %vm213_vm2, %v531_v35 }
 0x184   :  { %3194 = vmatprep.mubr.msk.f32.mxu1 %vm3781_vm0, %v3780_v0  ;;  %3232 = vmatprep.subr.mxu1 %v3780_v0 }
 0x185   :  { %3205 = vmatprep.subr.mxu0 %v3780_v0 }
 0x186   :  { %3195 = vmatmul.mubr.msk.f32.gmra.mxu1 %vm213_vm2, %v3871_v16  ;;  %v523_v42 = vpop.permute.xlu0 %522 }
 0x187   :  { %3233 = vmatpush3.xpose.msk.msra.mxu1 %vm213_vm2, %v529_v30  ;;  %3197 = vmatprep.mubr.msk.f32.mxu1 %vm3781_vm0, %v3780_v0 }
 0x188   :  { %3234 = vmatprep.subr.mxu1 %v3780_v0 }
 0x18a   :  { %3198 = vmatmul.mubr.msk.f32.gmra.mxu1 %vm213_vm2, %v3884_v24  ;;  %v398_v43 = vpop.permute.xlu0 %397 }
 0x18b   :  { %3206 = vmatpush3.msra.mxu0 %v398_v43  ;;  %3235 = vmatpush3.xpose.msk.msra.mxu1 %vm213_vm2, %v527_v37 }
 0x18c   :  { %3207 = vmatprep.subr.mxu0 %v3780_v0  ;;  %3200 = vmatprep.mubr.msk.f32.mxu1 %vm3781_vm0, %v3780_v0 }
 0x18d   :  { %3208 = vmatpush3.msra.mxu0 %v396_v38  ;;  %3236 = vmatprep.subr.mxu1 %v3780_v0 }
 0x18e   :  { %3201 = vmatmul.mubr.msk.f32.gmra.mxu1 %vm213_vm2, %v3879_v22  ;;  %3209 = vmatprep.subr.mxu0 %v3780_v0 }
 0x18f   :  { %3237 = vmatpush3.xpose.msk.msra.mxu1 %vm213_vm2, %v525_v32  ;;  %3238 = vmatprep.mubr.msk.f32.mxu1 %vm3781_vm0, %v3780_v0 }
 0x190   :  { %3278 = vmatprep.subr.mxu1 %v3780_v0 }
 0x192   :  { %3239 = vmatmul.mubr.msk.f32.vlgmr.msra.gmra.mxu1 %vm213_vm2, %v515_v39 }
 0x193   :  { %3241 = vmatprep.mubr.msk.f32.mxu1 %vm3781_vm0, %v3780_v0 }
 0x196   :  { %3242 = vmatmul.mubr.msk.f32.gmra.mxu1 %vm213_vm2, %v517_v34 }
 0x197   :  { %3244 = vmatprep.mubr.msk.f32.mxu1 %vm3781_vm0, %v3780_v0 }
 0x19a   :  { %3245 = vmatmul.mubr.msk.f32.gmra.mxu1 %vm213_vm2, %v519_v41 }
 0x19b   :  { %3247 = vmatprep.mubr.msk.f32.mxu1 %vm3781_vm0, %v3780_v0 }
 0x19e   :  { %3248 = vmatmul.mubr.msk.f32.gmra.mxu1 %vm213_vm2, %v521_v36 }
 0x19f   :  { %3250 = vmatprep.mubr.msk.f32.mxu1 %vm3781_vm0, %v3780_v0 }
 0x1a2   :  { %3251 = vmatmul.mubr.msk.f32.gmra.mxu1 %vm213_vm2, %v523_v42 }
 0x1a3   :  { %3280 = vmatprep.mubr.msk.f32.mxu1 %vm3781_vm0, %v3780_v0 }
 0x23e   :  { %v300_v52 = vpop.f32.mrf.mxu1 }
 0x23f   :  { %v324_v56 = vmul.f32 0.35355338, %v300_v52 }
 0x240   :  { %v3190_v58 = vpop.f32.mrf.mxu1 }
 0x241   :  { %v3981_v59 = vadd.f32 %v324_v56, %v3977_v54 }
 0x242   :  { %v305_v60 = vpop.f32.mrf.mxu1 }
 0x243   :  { %v325_v62 = vmul.f32 0.35355338, %v305_v60  ;;  %v335_v63 = vsel %vm334_vm6, %v3981_v59, -inf }
 0x244   :  { %336 = vmax.xlane.f32.xlu1 %v335_v63  ;;  %v3193_v3 = vpop.f32.mrf.mxu1 }
 0x245   :  { %v3989_v4 = vadd.f32 %v325_v62, %v3983_v61 }
 0x246   :  { %v310_v5 = vpop.f32.mrf.mxu1 }
 0x247   :  { %v326_v7 = vmul.f32 0.35355338, %v310_v5  ;;  %v338_v8 = vsel %vm334_vm6, %v3989_v4, -inf }
 0x248   :  { %339 = vmax.xlane.f32.xlu0 %v338_v8  ;;  %v3196_v10 = vpop.f32.mrf.mxu1 }
 0x249   :  { %v3996_v11 = vadd.f32 %v326_v7, %v3991_v6 }
 0x24a   :  { %v315_v12 = vpop.f32.mrf.mxu1 }
 0x24b   :  { %v327_v14 = vmul.f32 0.35355338, %v315_v12  ;;  %v341_v15 = vsel %vm334_vm6, %v3996_v11, -inf }
 0x24c   :  { %342 = vmax.xlane.f32.xlu0 %v341_v15  ;;  %v3199_v17 = vpop.f32.mrf.mxu1 }
 0x24d   :  { %v332_v18 = vadd.f32 %v327_v14, %v3998_v13 }
 0x24e   :  { %v320_v20 = vpop.f32.mrf.mxu1 }
 0x24f   :  { %v328_v23 = vmul.f32 0.35355338, %v320_v20  ;;  %v344_v26 = vsel %vm334_vm6, %v332_v18, -inf }
 0x250   :  { %345 = vmax.xlane.f32.xlu1 %v344_v26  ;;  %v3202_v27 = vpop.f32.mrf.mxu1 }
 0x251   :  { %v333_v28 = vadd.f32 %v328_v23, %v4003_v21 }
 0x252   :  { %v620_v29 = vpop.f32.mrf.mxu1 }
 0x253   :  { %v644_v30 = vmul.f32 0.35355338, %v620_v29  ;;  %v348_v31 = vsel %vm347_vm10, %v333_v28, -inf }
 0x254   :  { %349 = vmax.xlane.f32.xlu0 %v348_v31  ;;  %v3240_v32 = vpop.f32.mrf.mxu1 }
 0x255   :  { %v649_v33 = vadd.f32 %v644_v30, %v3977_v54 }
 0x256   :  { %v625_v34 = vpop.f32.mrf.mxu1 }
 0x257   :  { %v645_v35 = vmul.f32 0.35355338, %v625_v34  ;;  %v654_v36 = vsel %vm334_vm6, %v649_v33, -inf }
 0x258   :  { %655 = vmax.xlane.f32.xlu1 %v654_v36  ;;  %v3243_v37 = vpop.f32.mrf.mxu1 }
 0x259   :  { %v650_v38 = vadd.f32 %v645_v35, %v3983_v61 }
 0x25a   :  { %v630_v39 = vpop.f32.mrf.mxu1 }
 0x25b   :  { %v646_v40 = vmul.f32 0.35355338, %v630_v39  ;;  %v657_v41 = vsel %vm334_vm6, %v650_v38, -inf }
 0x25c   :  { %658 = vmax.xlane.f32.xlu0 %v657_v41  ;;  %v3246_v42 = vpop.f32.mrf.mxu1 }
 0x25d   :  { %v4013_v43 = vadd.f32 %v646_v40, %v3991_v6 }
 0x25e   :  { %v635_v44 = vpop.f32.mrf.mxu1 }
 0x25f   :  { %v660_v48 = vsel %vm334_vm6, %v4013_v43, -inf  ;;  %v647_v52 = vmul.f32 0.35355338, %v635_v44 }
 0x260   :  { %661 = vmax.xlane.f32.xlu1 %v660_v48  ;;  %v3249_v49 = vpop.f32.mrf.mxu1 }
 0x261   :  { %v4022_v55 = vadd.f32 %v647_v52, %v3998_v13 }
 0x262   :  { %v640_v50 = vpop.f32.mrf.mxu1 }
 0x263   :  { %v648_v53 = vmul.f32 0.35355338, %v640_v50  ;;  %v663_v56 = vsel %vm334_vm6, %v4022_v55, -inf }
 0x264   :  { %v3252_v51 = vpop.f32.mrf.mxu1 }
 0x265   :  { %v4027_v57 = vadd.f32 %v648_v53, %v4003_v21 }
 0x267   :  { %v666_v58 = vsel %vm347_vm10, %v4027_v57, -inf }
 0x271   :  { %717 = vrot.lane.b32.xlu1 %v3879_v22, %s3787_s17 }
 0x272   :  { %393 = vrot.lane.b32.xlu0 %v3875_v19, %s3785_s16 }
 0x291   :  { %664 = vmax.xlane.f32.xlu0 %v663_v56 }
 0x295   :  { %667 = vmax.xlane.f32.xlu1 %v666_v58 }
 0x2a6   :  { %713 = vrot.lane.b32.xlu1 %v3871_v16, %s3787_s17 }
 0x2a7   :  { %391 = vrot.lane.b32.xlu0 %v3889_v25, %s3785_s16 }
 0x2ab   :  { %715 = vrot.lane.b32.xlu0 %v3884_v24, %s3787_s17 }
 0x2cd   :  { %v337_v60 = vpop.xlane.xlu1 %336 }
 0x2ce   :  { %v351_v62 = vsub.f32 %v3981_v59, %v337_v60 }
 0x2d0   :  { %v356_v63 = vmul.f32 1.442695, %v351_v62 }
 0x2d1   :  { %v340_v1 = vpop.xlane.xlu0 %339 }
 0x2d2   :  { %3627 = vpow2.f32 %v356_v63  ;;  %v352_v2 = vsub.f32 %v3989_v4, %v340_v1 }
 0x2d4   :  { %v358_v3 = vmul.f32 1.442695, %v352_v2 }
 0x2d5   :  { %v343_v5 = vpop.xlane.xlu0 %342 }
 0x2d6   :  { %3629 = vpow2.f32 %v358_v3  ;;  %v353_v7 = vsub.f32 %v3996_v11, %v343_v5 }
 0x2d8   :  { %v360_v8 = vmul.f32 1.442695, %v353_v7 }
 0x2d9   :  { %v346_v9 = vpop.xlane.xlu1 %345 }
 0x2da   :  { %3631 = vpow2.f32 %v360_v8  ;;  %v354_v10 = vsub.f32 %v332_v18, %v346_v9 }
 0x2dc   :  { %v362_v12 = vmul.f32 1.442695, %v354_v10 }
 0x2dd   :  { %v350_v14 = vpop.xlane.xlu0 %349 }
 0x2de   :  { %3633 = vpow2.f32 %v362_v12  ;;  %v355_v15 = vsub.f32 %v333_v28, %v350_v14 }
 0x2df   :  { %v4040_v17 = vpop.eup %3627 }
 0x2e0   :  { %v364_v59 = vmul.f32 1.442695, %v355_v15  ;;  %v366_v20 = vsel %vm334_vm6, %v4040_v17, 0.0 }
 0x2e1   :  { %v656_v4 = vpop.xlane.xlu1 %655  ;;  %367 = vadd.xlane.f32.xlu0 %v366_v20 }
 0x2e2   :  { %3635 = vpow2.f32 %v364_v59  ;;  %v669_v23 = vsub.f32 %v649_v33, %v656_v4 }
 0x2e3   :  { %v4044_v26 = vpop.eup %3629 }
 0x2e4   :  { %v674_v11 = vmul.f32 1.442695, %v669_v23  ;;  %v369_v18 = vsel %vm334_vm6, %v4044_v26, 0.0 }
 0x2e5   :  { %370 = vadd.xlane.f32.xlu1 %v369_v18  ;;  %v659_v27 = vpop.xlane.xlu0 %658 }
 0x2e6   :  { %3637 = vpow2.f32 %v674_v11  ;;  %v670_v28 = vsub.f32 %v650_v38, %v659_v27 }
 0x2e7   :  { %v4048_v29 = vpop.eup %3631 }
 0x2e8   :  { %v676_v30 = vmul.f32 1.442695, %v670_v28  ;;  %v372_v31 = vsel %vm334_vm6, %v4048_v29, 0.0 }
 0x2e9   :  { %v662_v32 = vpop.xlane.xlu1 %661  ;;  %373 = vadd.xlane.f32.xlu0 %v372_v31  ;;  %v394_v34 = vpop.permute.xlu0 %393 }
 0x2ea   :  { %3639 = vpow2.f32 %v676_v30  ;;  %v671_v33 = vsub.f32 %v4013_v43, %v662_v32  ;;  %3210 = vmatpush3.msra.mxu0 %v394_v34 }
 0x2eb   :  { %v4053_v35 = vpop.eup %3633  ;;  %3211 = vmatprep.subr.mxu0 %v3780_v0 }
 0x2ec   :  { %v678_v36 = vmul.f32 1.442695, %v671_v33  ;;  %v375_v37 = vsel %vm334_vm6, %v4053_v35, 0.0  ;;  %v513_v33 = vld [vmem:[#allocation3 + $0x28] sm:$0xff] }
 0x2ed   :  { %376 = vadd.xlane.f32.xlu1 %v375_v37  ;;  %v718_v49 = vpop.permute.xlu1 %717 }
 0x2ee   :  { %3641 = vpow2.f32 %v678_v36 }
 0x2ef   :  { %v4058_v38 = vpop.eup %3635 }
 0x2f0   :  { %v378_v39 = vsel %vm347_vm10, %v4058_v38, 0.0 }
 0x2f1   :  { %379 = vadd.xlane.f32.xlu0 %v378_v39 }
 0x2f3   :  { %v4062_v40 = vpop.eup %3637 }
 0x2f4   :  { %v684_v41 = vsel %vm334_vm6, %v4062_v40, 0.0 }
 0x2f5   :  { %685 = vadd.xlane.f32.xlu0 %v684_v41  ;;  %v830_v41 = vld [vmem:[#allocation3 + $0x30] sm:$0xff] }
 0x2f6   :  { %3279 = vmatpush3.msra.mxu1 %v830_v41 }
 0x2f7   :  { %v4066_v42 = vpop.eup %3639  ;;  %3312 = vmatprep.subr.mxu1 %v3780_v0 }
 0x2f8   :  { %v687_v43 = vsel %vm334_vm6, %v4066_v42, 0.0 }
 0x2f9   :  { %688 = vadd.xlane.f32.xlu1 %v687_v43 }
 0x2fb   :  { %v4070_v44 = vpop.eup %3641 }
 0x2fc   :  { %v690_v48 = vsel %vm334_vm6, %v4070_v44, 0.0 }
 0x2fd   :  { %691 = vadd.xlane.f32.xlu0 %v690_v48 }
 0x313   :  { %709 = vrot.lane.b32.xlu0 %v3889_v25, %s3787_s17 }
 0x317   :  { %1057 = vrot.lane.b32.xlu0 %v3884_v24, %s3788_s18 }
 0x31a   :  { %v665_v50 = vpop.xlane.xlu0 %664 }
 0x31b   :  { %v672_v51 = vsub.f32 %v4022_v55, %v665_v50  ;;  %1053 = vrot.lane.b32.xlu0 %v3875_v19, %s3788_s18 }
 0x31d   :  { %v680_v52 = vmul.f32 1.442695, %v672_v51 }
 0x31e   :  { %v668_v53 = vpop.xlane.xlu1 %667  ;;  %v392_v56 = vpop.permute.xlu0 %391 }
 0x31f   :  { %3643 = vpow2.f32 %v680_v52  ;;  %v673_v58 = vsub.f32 %v4027_v57, %v668_v53  ;;  %1041 = vrot.lane.b32.xlu0 %v3889_v25, %s3789_s19  ;;  %3212 = vmatpush3.msra.mxu0 %v392_v56 }
 0x320   :  { %3253 = vmatprep.subr.mxu0 %v3780_v0 }
 0x321   :  { %v682_v60 = vmul.f32 1.442695, %v673_v58 }
 0x322   :  { %v716_v1 = vpop.permute.xlu0 %715  ;;  %v714_v2 = vpop.permute.xlu1 %713 }
 0x323   :  { %3645 = vpow2.f32 %v682_v60  ;;  %1045 = vrot.lane.b32.xlu0 %v3871_v16, %s3789_s19 }
 0x327   :  { %1049 = vrot.lane.b32.xlu0 %v3879_v22, %s3789_s19 }
 0x32c   :  { %v4084_v55 = vpop.eup %3643 }
 0x32d   :  { %v693_v62 = vsel %vm334_vm6, %v4084_v55, 0.0 }
 0x32e   :  { %694 = vadd.xlane.f32.xlu1 %v693_v62 }
 0x330   :  { %v4088_v63 = vpop.eup %3645 }
 0x331   :  { %v696_v57 = vsel %vm347_vm10, %v4088_v63, 0.0 }
 0x332   :  { %697 = vadd.xlane.f32.xlu1 %v696_v57 }
 0x343   :  { %711 = vrot.lane.b32.xlu1 %v3875_v19, %s3787_s17 }
 0x347   :  { %1059 = vrot.lane.b32.xlu1 %v3879_v22, %s3788_s18 }
 0x34b   :  { %1055 = vrot.lane.b32.xlu1 %v3871_v16, %s3788_s18 }
 0x34f   :  { %1051 = vrot.lane.b32.xlu1 %v3889_v25, %s3788_s18 }
 0x353   :  { %1043 = vrot.lane.b32.xlu1 %v3875_v19, %s3789_s19 }
 0x357   :  { %1047 = vrot.lane.b32.xlu1 %v3884_v24, %s3789_s19 }
 0x36a   :  { %v368_v3 = vpop.xlane.xlu0 %367 }
 0x36b   :  { %3647 = vrcp.f32 %v368_v3 }
 0x36e   :  { %v371_v5 = vpop.xlane.xlu1 %370 }
 0x36f   :  { %3649 = vrcp.f32 %v371_v5 }
 0x372   :  { %v374_v7 = vpop.xlane.xlu0 %373 }
 0x373   :  { %3651 = vrcp.f32 %v374_v7 }
 0x376   :  { %v377_v8 = vpop.xlane.xlu1 %376 }
 0x377   :  { %3653 = vrcp.f32 %v377_v8 }
 0x378   :  { %v3648_v9 = vpop.eup %3647 }
 0x379   :  { %v386_v10 = vmul.f32 %v3648_v9, %v4040_v17 }
 0x37a   :  { %v380_v12 = vpop.xlane.xlu0 %379 }
 0x37b   :  { %3655 = vrcp.f32 %v380_v12  ;;  %3214 = vmatmul.mubr.msk.f32.vlgmr.msra.gmra.mxu0 %vm334_vm6, %v386_v10 }
 0x37c   :  { %v3650_v14 = vpop.eup %3649  ;;  %3254 = vmatpush3.msk.msra.mxu0 %vm420_vm3, %v718_v49  ;;  %3216 = vmatprep.mubr.msk.f32.mxu0 %vm3781_vm0, %v3780_v0 }
 0x37d   :  { %3255 = vmatprep.subr.mxu0 %v3780_v0  ;;  %v387_v15 = vmul.f32 %v3650_v14, %v4044_v26 }
 0x37e   :  { %3256 = vmatpush3.msra.mxu0 %v716_v1  ;;  %v686_v11 = vpop.xlane.xlu0 %685 }
 0x37f   :  { %3257 = vmatprep.subr.mxu0 %v3780_v0  ;;  %3217 = vmatmul.mubr.msk.f32.gmra.mxu0 %vm334_vm6, %v387_v15  ;;  %3657 = vrcp.f32 %v686_v11 }
 0x380   :  { %v3652_v17 = vpop.eup %3651  ;;  %3258 = vmatpush3.msra.mxu0 %v714_v2  ;;  %3219 = vmatprep.mubr.msk.f32.mxu0 %vm3781_vm0, %v3780_v0 }
 0x381   :  { %v388_v59 = vmul.f32 %v3652_v17, %v4048_v29  ;;  %3259 = vmatprep.subr.mxu0 %v3780_v0 }
 0x382   :  { %v689_v18 = vpop.xlane.xlu1 %688 }
 0x383   :  { %3220 = vmatmul.mubr.msk.f32.gmra.mxu0 %vm334_vm6, %v388_v59  ;;  %3659 = vrcp.f32 %v689_v18 }
 0x384   :  { %v3654_v20 = vpop.eup %3653  ;;  %3222 = vmatprep.mubr.msk.f32.mxu0 %vm3781_vm0, %v3780_v0 }
 0x385   :  { %v389_v4 = vmul.f32 %v3654_v20, %v4053_v35 }
 0x386   :  { %v692_v27 = vpop.xlane.xlu0 %691 }
 0x387   :  { %3223 = vmatmul.mubr.msk.f32.gmra.mxu0 %vm334_vm6, %v389_v4  ;;  %3661 = vrcp.f32 %v692_v27 }
 0x388   :  { %v3656_v23 = vpop.eup %3655  ;;  %3225 = vmatprep.mubr.msk.f32.mxu0 %vm3781_vm0, %v3780_v0 }
 0x389   :  { %v390_v26 = vmul.f32 %v3656_v23, %v4058_v38 }
 0x38a   :  { %v710_v34 = vpop.permute.xlu0 %709 }
 0x38b   :  { %3226 = vmatmul.mubr.msk.f32.gmra.mxu0 %vm334_vm6, %v390_v26 }
 0x38c   :  { %3263 = vmatprep.mubr.msk.f32.mxu0 %vm3781_vm0, %v3780_v0  ;;  %v3658_v30 = vpop.eup %3657 }
 0x38d   :  { %v704_v32 = vmul.f32 %v3658_v30, %v4062_v40 }
 0x38e   :  { %v1058_v1 = vpop.permute.xlu0 %1057 }
 0x390   :  { %v3660_v35 = vpop.eup %3659 }
 0x391   :  { %v705_v36 = vmul.f32 %v3660_v35, %v4066_v42 }
 0x392   :  { %v1054_v9 = vpop.permute.xlu0 %1053 }
 0x394   :  { %v3662_v37 = vpop.eup %3661 }
 0x395   :  { %v706_v38 = vmul.f32 %v3662_v37, %v4070_v44 }
 0x396   :  { %v1042_v17 = vpop.permute.xlu0 %1041 }
 0x39a   :  { %v1046_v20 = vpop.permute.xlu0 %1045 }
 0x39e   :  { %v1050_v23 = vpop.permute.xlu0 %1049 }
 0x3b7   :  { %v695_v28 = vpop.xlane.xlu1 %694 }
 0x3b8   :  { %3663 = vrcp.f32 %v695_v28 }
 0x3bb   :  { %v698_v29 = vpop.xlane.xlu1 %697 }
 0x3bc   :  { %3665 = vrcp.f32 %v698_v29 }
 0x3bf   :  { %v712_v31 = vpop.permute.xlu1 %711 }
 0x3c0   :  { %3260 = vmatpush3.msra.mxu0 %v712_v31 }
 0x3c1   :  { %3261 = vmatprep.subr.mxu0 %v3780_v0 }
 0x3c2   :  { %3262 = vmatpush3.msra.mxu0 %v710_v34 }
 0x3c3   :  { %3264 = vmatmul.mubr.msk.f32.vlgmr.msra.gmra.mxu0 %vm334_vm6, %v704_v32  ;;  %3295 = vmatprep.subr.mxu0 %v3780_v0  ;;  %v1060_v62 = vpop.permute.xlu1 %1059 }
 0x3c4   :  { %3266 = vmatprep.mubr.msk.f32.mxu0 %vm3781_vm0, %v3780_v0  ;;  %3296 = vmatpush3.msra.mxu0 %v513_v33 }
 0x3c5   :  { %3337 = vmatprep.subr.mxu0 %v3780_v0  ;;  %v3664_v39 = vpop.eup %3663 }
 0x3c6   :  { %v707_v40 = vmul.f32 %v3664_v39, %v4084_v55 }
 0x3c7   :  { %3267 = vmatmul.mubr.msk.f32.gmra.mxu0 %vm334_vm6, %v705_v36  ;;  %v1056_v5 = vpop.permute.xlu1 %1055 }
 0x3c8   :  { %3269 = vmatprep.mubr.msk.f32.mxu0 %vm3781_vm0, %v3780_v0 }
 0x3c9   :  { %v3666_v42 = vpop.eup %3665 }
 0x3ca   :  { %v708_v43 = vmul.f32 %v3666_v42, %v4088_v63 }
 0x3cb   :  { %3270 = vmatmul.mubr.msk.f32.gmra.mxu0 %vm334_vm6, %v706_v38  ;;  %v1052_v14 = vpop.permute.xlu1 %1051 }
 0x3cc   :  { %3272 = vmatprep.mubr.msk.f32.mxu0 %vm3781_vm0, %v3780_v0 }
 0x3cf   :  { %3273 = vmatmul.mubr.msk.f32.gmra.mxu0 %vm334_vm6, %v707_v40  ;;  %v1044_v59 = vpop.permute.xlu1 %1043 }
 0x3d0   :  { %3275 = vmatprep.mubr.msk.f32.mxu0 %vm3781_vm0, %v3780_v0 }
 0x3d3   :  { %3276 = vmatmul.mubr.msk.f32.gmra.mxu0 %vm334_vm6, %v708_v43  ;;  %v1048_v4 = vpop.permute.xlu1 %1047 }
 0x3d4   :  { %3297 = vmatprep.mubr.msk.f32.mxu0 %vm3781_vm0, %v3780_v0 }
 0x43b   :  { %v489_v44 = vpop.f32.mrf.mxu0 }
 0x43c   :  { %3298 = vmatmul.mubr.msk.f32.vlgmr.msra.gmra.mxu0 %vm213_vm2, %v489_v44 }
 0x43d   :  { %v3215_v48 = vpop.f32.mrf.mxu0  ;;  %3300 = vmatprep.mubr.msk.f32.mxu0 %vm3781_vm0, %v3780_v0 }
 0x43f   :  { %v494_v49 = vpop.f32.mrf.mxu0 }
 0x440   :  { %3301 = vmatmul.mubr.msk.f32.gmra.mxu0 %vm213_vm2, %v494_v49 }
 0x441   :  { %v3218_v50 = vpop.f32.mrf.mxu0  ;;  %3303 = vmatprep.mubr.msk.f32.mxu0 %vm3781_vm0, %v3780_v0 }
 0x443   :  { %v499_v51 = vpop.f32.mrf.mxu0 }
 0x444   :  { %3304 = vmatmul.mubr.msk.f32.gmra.mxu0 %vm213_vm2, %v499_v51 }
 0x445   :  { %v3221_v52 = vpop.f32.mrf.mxu0  ;;  %3306 = vmatprep.mubr.msk.f32.mxu0 %vm3781_vm0, %v3780_v0 }
 0x447   :  { %v504_v53 = vpop.f32.mrf.mxu0 }
 0x448   :  { %3307 = vmatmul.mubr.msk.f32.gmra.mxu0 %vm213_vm2, %v504_v53 }
 0x449   :  { %v3224_v56 = vpop.f32.mrf.mxu0  ;;  %3309 = vmatprep.mubr.msk.f32.mxu0 %vm3781_vm0, %v3780_v0 }
 0x44b   :  { %v509_v58 = vpop.f32.mrf.mxu0 }
 0x44c   :  { %3310 = vmatmul.mubr.msk.f32.gmra.mxu0 %vm213_vm2, %v509_v58 }
 0x44d   :  { %v3227_v60 = vpop.f32.mrf.mxu0  ;;  %3347 = vmatprep.mubr.msk.f32.mxu0 %vm3781_vm0, %v3780_v0 }
 0x483   :  { %v806_v55 = vpop.f32.mrf.mxu0 }
 0x484   :  { %3281 = vmatmul.mubr.msk.f32.vlgmr.msra.gmra.mxu1 %vm213_vm2, %v806_v55 }
 0x485   :  { %3313 = vmatpush3.xpose.msk.msra.mxu1 %vm213_vm2, %v1060_v62  ;;  %v3265_v63 = vpop.f32.mrf.mxu0  ;;  %3283 = vmatprep.mubr.msk.f32.mxu1 %vm3781_vm0, %v3780_v0 }
 0x486   :  { %3314 = vmatprep.subr.mxu1 %v3780_v0 }
 0x487   :  { %v811_v57 = vpop.f32.mrf.mxu0 }
 0x488   :  { %3284 = vmatmul.mubr.msk.f32.gmra.mxu1 %vm213_vm2, %v811_v57 }
 0x489   :  { %3315 = vmatpush3.xpose.msk.msra.mxu1 %vm213_vm2, %v1058_v1  ;;  %v3268_v2 = vpop.f32.mrf.mxu0  ;;  %3286 = vmatprep.mubr.msk.f32.mxu1 %vm3781_vm0, %v3780_v0 }
 0x48a   :  { %3316 = vmatprep.subr.mxu1 %v3780_v0 }
 0x48b   :  { %v816_v3 = vpop.f32.mrf.mxu0 }
 0x48c   :  { %3287 = vmatmul.mubr.msk.f32.gmra.mxu1 %vm213_vm2, %v816_v3 }
 0x48d   :  { %3317 = vmatpush3.xpose.msk.msra.mxu1 %vm213_vm2, %v1056_v5  ;;  %v3271_v7 = vpop.f32.mrf.mxu0  ;;  %3289 = vmatprep.mubr.msk.f32.mxu1 %vm3781_vm0, %v3780_v0 }
 0x48e   :  { %3318 = vmatprep.subr.mxu1 %v3780_v0 }
 0x48f   :  { %v821_v8 = vpop.f32.mrf.mxu0 }
 0x490   :  { %3290 = vmatmul.mubr.msk.f32.gmra.mxu1 %vm213_vm2, %v821_v8 }
 0x491   :  { %3319 = vmatpush3.xpose.msk.msra.mxu1 %vm213_vm2, %v1054_v9  ;;  %v3274_v10 = vpop.f32.mrf.mxu0  ;;  %3292 = vmatprep.mubr.msk.f32.mxu1 %vm3781_vm0, %v3780_v0 }
 0x492   :  { %3320 = vmatprep.subr.mxu1 %v3780_v0 }
 0x493   :  { %v826_v12 = vpop.f32.mrf.mxu0 }
 0x494   :  { %3293 = vmatmul.mubr.msk.f32.gmra.mxu1 %vm213_vm2, %v826_v12 }
 0x495   :  { %3321 = vmatpush3.xpose.msk.msra.mxu1 %vm213_vm2, %v1052_v14  ;;  %v3277_v15 = vpop.f32.mrf.mxu0  ;;  %3322 = vmatprep.mubr.msk.f32.mxu1 %vm3781_vm0, %v3780_v0 }
 0x496   :  { %3362 = vmatprep.subr.mxu1 %v3780_v0 }
 0x498   :  { %3323 = vmatmul.mubr.msk.f32.vlgmr.msra.gmra.mxu1 %vm213_vm2, %v1042_v17 }
 0x499   :  { %3325 = vmatprep.mubr.msk.f32.mxu1 %vm3781_vm0, %v3780_v0 }
 0x49c   :  { %3326 = vmatmul.mubr.msk.f32.gmra.mxu1 %vm213_vm2, %v1044_v59 }
 0x49d   :  { %3328 = vmatprep.mubr.msk.f32.mxu1 %vm3781_vm0, %v3780_v0 }
 0x4a0   :  { %3329 = vmatmul.mubr.msk.f32.gmra.mxu1 %vm213_vm2, %v1046_v20 }
 0x4a1   :  { %3331 = vmatprep.mubr.msk.f32.mxu1 %vm3781_vm0, %v3780_v0 }
 0x4a4   :  { %3332 = vmatmul.mubr.msk.f32.gmra.mxu1 %vm213_vm2, %v1048_v4 }
 0x4a5   :  { %3334 = vmatprep.mubr.msk.f32.mxu1 %vm3781_vm0, %v3780_v0 }
 0x4a8   :  { %3335 = vmatmul.mubr.msk.f32.gmra.mxu1 %vm213_vm2, %v1050_v23 }
 0x4a9   :  { %3364 = vmatprep.mubr.msk.f32.mxu1 %vm3781_vm0, %v3780_v0 }
 0x4fc   :  { %v4202_v26 = vpop.f32.mrf.mxu0 }
 0x4fe   :  { %v3299_v11 = vpop.f32.mrf.mxu0 }
 0x500   :  { %v4204_v18 = vpop.f32.mrf.mxu0 }
 0x502   :  { %v3302_v27 = vpop.f32.mrf.mxu0 }
 0x504   :  { %v4206_v28 = vpop.f32.mrf.mxu0 }
 0x506   :  { %v3305_v29 = vpop.f32.mrf.mxu0 }
 0x508   :  { %v4208_v30 = vpop.f32.mrf.mxu0 }
 0x50a   :  { %v3308_v31 = vpop.f32.mrf.mxu0 }
 0x50c   :  { %v4210_v32 = vpop.f32.mrf.mxu0 }
 0x50e   :  { %v3311_v34 = vpop.f32.mrf.mxu0 }
 0x544   :  { %v4212_v33 = vpop.f32.mrf.mxu1 }
 0x546   :  { %v3282_v35 = vpop.f32.mrf.mxu1 }
 0x548   :  { %v4214_v36 = vpop.f32.mrf.mxu1 }
 0x54a   :  { %v3285_v37 = vpop.f32.mrf.mxu1 }
 0x54c   :  { %v4216_v38 = vpop.f32.mrf.mxu1 }
 0x54e   :  { %v3288_v39 = vpop.f32.mrf.mxu1 }
 0x550   :  { %v4218_v40 = vpop.f32.mrf.mxu1 }
 0x552   :  { %v3291_v41 = vpop.f32.mrf.mxu1 }
 0x554   :  { %v4220_v42 = vpop.f32.mrf.mxu1 }
 0x556   :  { %v3294_v43 = vpop.f32.mrf.mxu1 }
 0x558   :  { %v1147_v44 = vpop.f32.mrf.mxu1 }
 0x559   :  { %v1171_v48 = vmul.f32 0.35355338, %v1147_v44 }
 0x55a   :  { %v3324_v49 = vpop.f32.mrf.mxu1 }
 0x55b   :  { %v1176_v50 = vadd.f32 %v1171_v48, %v3977_v54 }
 0x55c   :  { %v1152_v51 = vpop.f32.mrf.mxu1 }
 0x55d   :  { %v1172_v52 = vmul.f32 0.35355338, %v1152_v51  ;;  %v1181_v53 = vsel %vm334_vm6, %v1176_v50, -inf }
 0x55e   :  { %1182 = vmax.xlane.f32.xlu1 %v1181_v53  ;;  %v3327_v56 = vpop.f32.mrf.mxu1 }
 0x55f   :  { %v1177_v58 = vadd.f32 %v1172_v52, %v3983_v61 }
 0x560   :  { %v1157_v60 = vpop.f32.mrf.mxu1 }
 0x561   :  { %v1173_v55 = vmul.f32 0.35355338, %v1157_v60  ;;  %v1184_v62 = vsel %vm334_vm6, %v1177_v58, -inf }
 0x562   :  { %1185 = vmax.xlane.f32.xlu0 %v1184_v62  ;;  %v3330_v63 = vpop.f32.mrf.mxu1 }
 0x563   :  { %v1178_v57 = vadd.f32 %v1173_v55, %v3991_v6 }
 0x564   :  { %v1162_v1 = vpop.f32.mrf.mxu1 }
 0x565   :  { %v1174_v2 = vmul.f32 0.35355338, %v1162_v1  ;;  %v1187_v3 = vsel %vm334_vm6, %v1178_v57, -inf }
 0x566   :  { %1188 = vmax.xlane.f32.xlu0 %v1187_v3  ;;  %v3333_v5 = vpop.f32.mrf.mxu1 }
 0x567   :  { %v1179_v7 = vadd.f32 %v1174_v2, %v3998_v13 }
 0x568   :  { %v1167_v8 = vpop.f32.mrf.mxu1 }
 0x569   :  { %v1175_v9 = vmul.f32 0.35355338, %v1167_v8  ;;  %v1190_v10 = vsel %vm334_vm6, %v1179_v7, -inf }
 0x56a   :  { %1191 = vmax.xlane.f32.xlu1 %v1190_v10  ;;  %v3336_v12 = vpop.f32.mrf.mxu1 }
 0x56b   :  { %v1180_v14 = vadd.f32 %v1175_v9, %v4003_v21 }
 0x56d   :  { %v1193_v15 = vsel %vm347_vm10, %v1180_v14, -inf }
 0x56e   :  { %1194 = vmax.xlane.f32.xlu0 %v1193_v15 }
 0x57b   :  { %1242 = vrot.lane.b32.xlu1 %v3884_v24, %s3790_s20 }
 0x57f   :  { %1240 = vrot.lane.b32.xlu1 %v3871_v16, %s3790_s20 }
 0x583   :  { %1236 = vrot.lane.b32.xlu1 %v3889_v25, %s3790_s20 }
 0x584   :  { %1244 = vrot.lane.b32.xlu0 %v3879_v22, %s3790_s20 }
 0x587   :  { %1484 = vrot.lane.b32.xlu1 %v3884_v24, %s3791_s21 }
 0x588   :  { %1238 = vrot.lane.b32.xlu0 %v3875_v19, %s3790_s20 }
 0x58c   :  { %1486 = vrot.lane.b32.xlu0 %v3879_v22, %s3791_s21 }
 0x5e7   :  { %v1183_v17 = vpop.xlane.xlu1 %1182 }
 0x5e8   :  { %v1196_v59 = vsub.f32 %v1176_v50, %v1183_v17 }
 0x5ea   :  { %v1201_v20 = vmul.f32 1.442695, %v1196_v59 }
 0x5eb   :  { %v1186_v4 = vpop.xlane.xlu0 %1185 }
 0x5ec   :  { %3667 = vpow2.f32 %v1201_v20  ;;  %v1197_v23 = vsub.f32 %v1177_v58, %v1186_v4 }
 0x5ee   :  { %v1203_v11 = vmul.f32 1.442695, %v1197_v23 }
 0x5ef   :  { %v1189_v27 = vpop.xlane.xlu0 %1188 }
 0x5f0   :  { %3669 = vpow2.f32 %v1203_v11  ;;  %v1198_v29 = vsub.f32 %v1178_v57, %v1189_v27 }
 0x5f2   :  { %v1205_v31 = vmul.f32 1.442695, %v1198_v29 }
 0x5f3   :  { %v1192_v34 = vpop.xlane.xlu1 %1191 }
 0x5f4   :  { %3671 = vpow2.f32 %v1205_v31  ;;  %v1199_v35 = vsub.f32 %v1179_v7, %v1192_v34 }
 0x5f6   :  { %v1207_v37 = vmul.f32 1.442695, %v1199_v35 }
 0x5f7   :  { %v1243_v39 = vpop.permute.xlu1 %1242  ;;  %v1195_v41 = vpop.xlane.xlu0 %1194 }
 0x5f8   :  { %3673 = vpow2.f32 %v1207_v37  ;;  %v1200_v62 = vsub.f32 %v1180_v14, %v1195_v41  ;;  %v1357_v37 = vld [vmem:[#allocation3 + $0x38] sm:$0xff] }
 0x5f9   :  { %v3668_v43 = vpop.eup %3667  ;;  %3363 = vmatpush3.msra.mxu1 %v1357_v37 }
 0x5fa   :  { %v1211_v44 = vsel %vm334_vm6, %v3668_v43, 0.0  ;;  %v1209_v63 = vmul.f32 1.442695, %v1200_v62  ;;  %3598 = vmatprep.subr.mxu1 %v3780_v0 }
 0x5fb   :  { %1212 = vadd.xlane.f32.xlu1 %v1211_v44  ;;  %v1245_v48 = vpop.permute.xlu0 %1244  ;;  %v1241_v50 = vpop.permute.xlu1 %1240 }
 0x5fc   :  { %3338 = vmatpush3.msk.msra.mxu0 %vm420_vm3, %v1245_v48  ;;  %3675 = vpow2.f32 %v1209_v63 }
 0x5fd   :  { %v3670_v49 = vpop.eup %3669  ;;  %3339 = vmatprep.subr.mxu0 %v3780_v0 }
 0x5fe   :  { %3340 = vmatpush3.msra.mxu0 %v1243_v39  ;;  %v1214_v51 = vsel %vm334_vm6, %v3670_v49, 0.0 }
 0x5ff   :  { %1215 = vadd.xlane.f32.xlu0 %v1214_v51  ;;  %3341 = vmatprep.subr.mxu0 %v3780_v0  ;;  %v1239_v53 = vpop.permute.xlu0 %1238  ;;  %v1237_v58 = vpop.permute.xlu1 %1236 }
 0x600   :  { %3342 = vmatpush3.msra.mxu0 %v1241_v50 }
 0x601   :  { %v3672_v52 = vpop.eup %3671  ;;  %3343 = vmatprep.subr.mxu0 %v3780_v0 }
 0x602   :  { %3344 = vmatpush3.msra.mxu0 %v1239_v53  ;;  %v1217_v56 = vsel %vm334_vm6, %v3672_v52, 0.0 }
 0x603   :  { %1218 = vadd.xlane.f32.xlu1 %v1217_v56  ;;  %3345 = vmatprep.subr.mxu0 %v3780_v0  ;;  %v1485_v2 = vpop.permute.xlu1 %1484  ;;  %v1487_v3 = vpop.permute.xlu0 %1486 }
 0x604   :  { %3346 = vmatpush3.msra.mxu0 %v1237_v58 }
 0x605   :  { %v3674_v60 = vpop.eup %3673  ;;  %3379 = vmatprep.subr.mxu0 %v3780_v0 }
 0x606   :  { %v1220_v55 = vsel %vm334_vm6, %v3674_v60, 0.0 }
 0x607   :  { %1221 = vadd.xlane.f32.xlu0 %v1220_v55 }
 0x609   :  { %v3676_v57 = vpop.eup %3675 }
 0x60a   :  { %v1223_v1 = vsel %vm347_vm10, %v3676_v57, 0.0 }
 0x614   :  { %1480 = vrot.lane.b32.xlu1 %v3875_v19, %s3791_s21 }
 0x61d   :  { %1482 = vrot.lane.b32.xlu0 %v3871_v16, %s3791_s21 }
 0x621   :  { %1478 = vrot.lane.b32.xlu0 %v3889_v25, %s3791_s21 }
 0x625   :  { %1470 = vrot.lane.b32.xlu0 %v3875_v19, %s3792_s22 }
 0x629   :  { %1474 = vrot.lane.b32.xlu0 %v3884_v24, %s3792_s22 }
 0x638   :  { %1224 = vadd.xlane.f32.xlu1 %v1223_v1 }
 0x649   :  { %1468 = vrot.lane.b32.xlu1 %v3889_v25, %s3792_s22 }
 0x64d   :  { %1472 = vrot.lane.b32.xlu1 %v3871_v16, %s3792_s22 }
 0x651   :  { %1476 = vrot.lane.b32.xlu1 %v3879_v22, %s3792_s22 }
 0x684   :  { %v1213_v5 = vpop.xlane.xlu1 %1212 }
 0x685   :  { %3677 = vrcp.f32 %v1213_v5 }
 0x688   :  { %v1216_v7 = vpop.xlane.xlu0 %1215 }
 0x689   :  { %3679 = vrcp.f32 %v1216_v7 }
 0x68c   :  { %v1219_v8 = vpop.xlane.xlu1 %1218 }
 0x68d   :  { %3681 = vrcp.f32 %v1219_v8 }
 0x690   :  { %v1222_v9 = vpop.xlane.xlu0 %1221  ;;  %v1481_v11 = vpop.permute.xlu1 %1480 }
 0x691   :  { %3683 = vrcp.f32 %v1222_v9 }
 0x692   :  { %v3678_v10 = vpop.eup %3677 }
 0x693   :  { %v1231_v12 = vmul.f32 %v3678_v10, %v3668_v43 }
 0x694   :  { %v1483_v20 = vpop.permute.xlu0 %1482 }
 0x695   :  { %3348 = vmatmul.mubr.msk.f32.vlgmr.msra.gmra.mxu0 %vm334_vm6, %v1231_v12 }
 0x696   :  { %v3680_v14 = vpop.eup %3679  ;;  %3380 = vmatpush3.xpose.msk.msra.mxu0 %vm213_vm2, %v1487_v3  ;;  %3350 = vmatprep.mubr.msk.f32.mxu0 %vm3781_vm0, %v3780_v0 }
 0x697   :  { %3381 = vmatprep.subr.mxu0 %v3780_v0  ;;  %v1232_v15 = vmul.f32 %v3680_v14, %v3670_v49 }
 0x698   :  { %v1479_v27 = vpop.permute.xlu0 %1478 }
 0x699   :  { %3351 = vmatmul.mubr.msk.f32.gmra.mxu0 %vm334_vm6, %v1232_v15 }
 0x69a   :  { %v3682_v17 = vpop.eup %3681  ;;  %3382 = vmatpush3.xpose.msk.msra.mxu0 %vm213_vm2, %v1485_v2  ;;  %3353 = vmatprep.mubr.msk.f32.mxu0 %vm3781_vm0, %v3780_v0 }
 0x69b   :  { %3383 = vmatprep.subr.mxu0 %v3780_v0  ;;  %v1233_v59 = vmul.f32 %v3682_v17, %v3672_v52 }
 0x69c   :  { %v1471_v39 = vpop.permute.xlu0 %1470 }
 0x69d   :  { %3354 = vmatmul.mubr.msk.f32.gmra.mxu0 %vm334_vm6, %v1233_v59 }
 0x69e   :  { %v3684_v4 = vpop.eup %3683  ;;  %3384 = vmatpush3.xpose.msk.msra.mxu0 %vm213_vm2, %v1483_v20  ;;  %3356 = vmatprep.mubr.msk.f32.mxu0 %vm3781_vm0, %v3780_v0 }
 0x69f   :  { %3385 = vmatprep.subr.mxu0 %v3780_v0  ;;  %v1234_v23 = vmul.f32 %v3684_v4, %v3674_v60 }
 0x6a0   :  { %v1475_v43 = vpop.permute.xlu0 %1474 }
 0x6a1   :  { %3357 = vmatmul.mubr.msk.f32.gmra.mxu0 %vm334_vm6, %v1234_v23 }
 0x6a2   :  { %3386 = vmatpush3.xpose.msk.msra.mxu0 %vm213_vm2, %v1481_v11  ;;  %3359 = vmatprep.mubr.msk.f32.mxu0 %vm3781_vm0, %v3780_v0 }
 0x6a3   :  { %3387 = vmatprep.subr.mxu0 %v3780_v0 }
 0x6a6   :  { %3388 = vmatpush3.xpose.msk.msra.mxu0 %vm213_vm2, %v1479_v27 }
 0x6a7   :  { %3404 = vmatprep.subr.mxu0 %v3780_v0 }
 0x6c1   :  { %v1225_v29 = vpop.xlane.xlu1 %1224 }
 0x6c2   :  { %3685 = vrcp.f32 %v1225_v29 }
 0x6c5   :  { %v1469_v35 = vpop.permute.xlu1 %1468 }
 0x6c9   :  { %v1473_v41 = vpop.permute.xlu1 %1472 }
 0x6cd   :  { %v1477_v44 = vpop.permute.xlu1 %1476 }
 0x6cf   :  { %v3686_v31 = vpop.eup %3685 }
 0x6d0   :  { %v1235_v34 = vmul.f32 %v3686_v31, %v3676_v57 }
 0x6d2   :  { %3360 = vmatmul.mubr.msk.f32.gmra.mxu0 %vm334_vm6, %v1235_v34 }
 0x6d3   :  { %3389 = vmatprep.mubr.msk.f32.mxu0 %vm3781_vm0, %v3780_v0 }
 0x6d6   :  { %3390 = vmatmul.mubr.msk.f32.vlgmr.msra.gmra.mxu0 %vm213_vm2, %v1469_v35  ;;  %v1023_v35 = vadd.f32 %v4204_v18, %v4214_v36 }
 0x6d7   :  { %3392 = vmatprep.mubr.msk.f32.mxu0 %vm3781_vm0, %v3780_v0 }
 0x6da   :  { %3393 = vmatmul.mubr.msk.f32.gmra.mxu0 %vm213_vm2, %v1471_v39 }
 0x6db   :  { %3395 = vmatprep.mubr.msk.f32.mxu0 %vm3781_vm0, %v3780_v0 }
 0x6de   :  { %3396 = vmatmul.mubr.msk.f32.gmra.mxu0 %vm213_vm2, %v1473_v41 }
 0x6df   :  { %3398 = vmatprep.mubr.msk.f32.mxu0 %vm3781_vm0, %v3780_v0 }
 0x6e2   :  { %3399 = vmatmul.mubr.msk.f32.gmra.mxu0 %vm213_vm2, %v1475_v43 }
 0x6e3   :  { %3401 = vmatprep.mubr.msk.f32.mxu0 %vm3781_vm0, %v3780_v0 }
 0x6e6   :  { %3402 = vmatmul.mubr.msk.f32.gmra.mxu0 %vm213_vm2, %v1477_v44 }
 0x6e7   :  { %3414 = vmatprep.mubr.msk.f32.mxu0 %vm3781_vm0, %v3780_v0 }
 0x755   :  { %v1333_v48 = vpop.f32.mrf.mxu0 }
 0x756   :  { %3365 = vmatmul.mubr.msk.f32.vlgmr.msra.gmra.mxu1 %vm213_vm2, %v1333_v48 }
 0x757   :  { %v3349_v49 = vpop.f32.mrf.mxu0  ;;  %3367 = vmatprep.mubr.msk.f32.mxu1 %vm3781_vm0, %v3780_v0 }
 0x759   :  { %v1338_v50 = vpop.f32.mrf.mxu0 }
 0x75a   :  { %3368 = vmatmul.mubr.msk.f32.gmra.mxu1 %vm213_vm2, %v1338_v50 }
 0x75b   :  { %v3352_v51 = vpop.f32.mrf.mxu0  ;;  %3370 = vmatprep.mubr.msk.f32.mxu1 %vm3781_vm0, %v3780_v0 }
 0x75d   :  { %v1343_v52 = vpop.f32.mrf.mxu0 }
 0x75e   :  { %3371 = vmatmul.mubr.msk.f32.gmra.mxu1 %vm213_vm2, %v1343_v52 }
 0x75f   :  { %v3355_v53 = vpop.f32.mrf.mxu0  ;;  %3373 = vmatprep.mubr.msk.f32.mxu1 %vm3781_vm0, %v3780_v0 }
 0x761   :  { %v1348_v56 = vpop.f32.mrf.mxu0 }
 0x762   :  { %3374 = vmatmul.mubr.msk.f32.gmra.mxu1 %vm213_vm2, %v1348_v56 }
 0x763   :  { %v3358_v58 = vpop.f32.mrf.mxu0  ;;  %3376 = vmatprep.mubr.msk.f32.mxu1 %vm3781_vm0, %v3780_v0 }
 0x792   :  { %v1353_v60 = vpop.f32.mrf.mxu0 }
 0x793   :  { %3377 = vmatmul.mubr.msk.f32.gmra.mxu1 %vm213_vm2, %v1353_v60 }
 0x794   :  { %v3361_v55 = vpop.f32.mrf.mxu0  ;;  %3420 = vmatprep.mubr.msk.f32.mxu1 %vm3781_vm0, %v3780_v0 }
 0x796   :  { %v1574_v62 = vpop.f32.mrf.mxu0 }
 0x797   :  { %v1598_v63 = vmul.f32 0.35355338, %v1574_v62 }
 0x798   :  { %v3391_v57 = vpop.f32.mrf.mxu0 }
 0x799   :  { %v1603_v1 = vadd.f32 %v1598_v63, %v3977_v54 }
 0x79a   :  { %v1579_v2 = vpop.f32.mrf.mxu0 }
 0x79b   :  { %v1599_v3 = vmul.f32 0.35355338, %v1579_v2  ;;  %v1608_v5 = vsel %vm334_vm6, %v1603_v1, -inf }
 0x79c   :  { %1609 = vmax.xlane.f32.xlu0 %v1608_v5  ;;  %v3394_v7 = vpop.f32.mrf.mxu0 }
 0x79d   :  { %v1604_v8 = vadd.f32 %v1599_v3, %v3983_v61 }
 0x79e   :  { %v1584_v9 = vpop.f32.mrf.mxu0 }
 0x79f   :  { %v1600_v10 = vmul.f32 0.35355338, %v1584_v9  ;;  %v1611_v12 = vsel %vm334_vm6, %v1604_v8, -inf }
 0x7a0   :  { %1612 = vmax.xlane.f32.xlu1 %v1611_v12  ;;  %v3397_v14 = vpop.f32.mrf.mxu0 }
 0x7a1   :  { %v1605_v15 = vadd.f32 %v1600_v10, %v3991_v6  ;;  %v1018_v6 = vadd.f32 %v4202_v26, %v4212_v33  ;;  %v1033_v26 = vadd.f32 %v4208_v30, %v4218_v40 }
 0x7a2   :  { %v1589_v17 = vpop.f32.mrf.mxu0 }
 0x7a3   :  { %v1601_v59 = vmul.f32 0.35355338, %v1589_v17  ;;  %v1614_v54 = vsel %vm334_vm6, %v1605_v15, -inf }
 0x7a4   :  { %1615 = vmax.xlane.f32.xlu0 %v1614_v54  ;;  %v3400_v20 = vpop.f32.mrf.mxu0 }
 0x7a5   :  { %v1606_v4 = vadd.f32 %v1601_v59, %v3998_v13 }
 0x7a6   :  { %v1594_v23 = vpop.f32.mrf.mxu0 }
 0x7a7   :  { %v1602_v11 = vmul.f32 0.35355338, %v1594_v23  ;;  %v1617_v61 = vsel %vm334_vm6, %v1606_v4, -inf }
 0x7a8   :  { %1618 = vmax.xlane.f32.xlu0 %v1617_v61  ;;  %v3403_v27 = vpop.f32.mrf.mxu0 }
 0x7a9   :  { %v1607_v29 = vadd.f32 %v1602_v11, %v4003_v21 }
 0x7ab   :  { %v1620_v31 = vsel %vm347_vm10, %v1607_v29, -inf }
 0x7ac   :  { %1621 = vmax.xlane.f32.xlu1 %v1620_v31 }
 0x7bd   :  { %1671 = vrot.lane.b32.xlu1 %v3879_v22, %s3793_s23 }
 0x7be   :  { %1669 = vrot.lane.b32.xlu0 %v3884_v24, %s3793_s23  ;;  %v1028_v24 = vadd.f32 %v4206_v28, %v4216_v38 }
 0x7c1   :  { %1667 = vrot.lane.b32.xlu1 %v3871_v16, %s3793_s23 }
 0x816   :  { %v1439_v13 = vpop.f32.mrf.mxu1 }
 0x817   :  { %v4337_v34 = vadd.f32 %v1439_v13, %v1018_v6 }
 0x818   :  { %v3366_v21 = vpop.f32.mrf.mxu1 }
 0x81a   :  { %v1444_v37 = vpop.f32.mrf.mxu1 }
 0x81b   :  { %v4341_v39 = vadd.f32 %v1444_v37, %v1023_v35 }
 0x81c   :  { %v3369_v22 = vpop.f32.mrf.mxu1 }
 0x81d   :  { %v1784_v22 = vld [vmem:[#allocation3 + $0x40] sm:$0xff] }
 0x81e   :  { %v1449_v41 = vpop.f32.mrf.mxu1 }
 0x81f   :  { %v4345_v43 = vadd.f32 %v1449_v41, %v1028_v24 }
 0x820   :  { %v3372_v16 = vpop.f32.mrf.mxu1 }
 0x822   :  { %v1454_v33 = vpop.f32.mrf.mxu1 }
 0x823   :  { %v4349_v44 = vadd.f32 %v1454_v33, %v1033_v26 }
 0x824   :  { %v3375_v48 = vpop.f32.mrf.mxu1 }
 0x825   :  { %v1610_v49 = vpop.xlane.xlu0 %1609 }
 0x826   :  { %v1623_v18 = vsub.f32 %v1603_v1, %v1610_v49 }
 0x828   :  { %v1628_v36 = vmul.f32 1.442695, %v1623_v18 }
 0x829   :  { %v1613_v50 = vpop.xlane.xlu1 %1612 }
 0x82a   :  { %3687 = vpow2.f32 %v1628_v36  ;;  %v1624_v51 = vsub.f32 %v1604_v8, %v1613_v50 }
 0x82c   :  { %v1630_v52 = vmul.f32 1.442695, %v1624_v51 }
 0x82d   :  { %v1616_v53 = vpop.xlane.xlu0 %1615 }
 0x82e   :  { %3689 = vpow2.f32 %v1630_v52  ;;  %v1625_v28 = vsub.f32 %v1605_v15, %v1616_v53  ;;  %v1038_v15 = vadd.f32 %v4210_v32, %v4220_v42 }
 0x830   :  { %v1632_v38 = vmul.f32 1.442695, %v1625_v28  ;;  %v2942_v28 = vld [vmem:[#allocation3 + $0x21] ss:$0 sm:$0xff] }
 0x831   :  { %v1619_v56 = vpop.xlane.xlu0 %1618 }
 0x832   :  { %3691 = vpow2.f32 %v1632_v38  ;;  %v1626_v58 = vsub.f32 %v1606_v4, %v1619_v56  ;;  %v3727_v38 = vld [vmem:[%s4632_s0] sm:$0xff] }
 0x834   :  { %v1634_v60 = vmul.f32 1.442695, %v1626_v58 }
 0x835   :  { %v1622_v30 = vpop.xlane.xlu1 %1621  ;;  %v1670_v2 = vpop.permute.xlu0 %1669 }
 0x836   :  { %3693 = vpow2.f32 %v1634_v60  ;;  %v1627_v40 = vsub.f32 %v1607_v29, %v1622_v30 }
 0x837   :  { %v3688_v55 = vpop.eup %3687 }
 0x838   :  { %v1636_v62 = vmul.f32 1.442695, %v1627_v40  ;;  %v1638_v63 = vsel %vm334_vm6, %v3688_v55, 0.0 }
 0x839   :  { %1639 = vadd.xlane.f32.xlu0 %v1638_v63  ;;  %v1672_v57 = vpop.permute.xlu1 %1671 }
 0x83a   :  { %3695 = vpow2.f32 %v1636_v62  ;;  %3405 = vmatpush3.msk.msra.mxu0 %vm420_vm3, %v1672_v57  ;;  %3603 = vmatpush3.msk.msra.mxu1 %vm420_vm3, %v1672_v57 }
 0x83b   :  { %v3690_v1 = vpop.eup %3689  ;;  %3406 = vmatprep.subr.mxu0 %v3780_v0  ;;  %3599 = vmatprep.subr.mxu1 %v3780_v0 }
 0x83c   :  { %3407 = vmatpush3.msra.mxu0 %v1670_v2  ;;  %3604 = vmatpush3.msra.mxu1 %v1670_v2  ;;  %v1641_v3 = vsel %vm334_vm6, %v3690_v1, 0.0 }
 0x83d   :  { %1642 = vadd.xlane.f32.xlu1 %v1641_v3  ;;  %3408 = vmatprep.subr.mxu0 %v3780_v0  ;;  %v1668_v5 = vpop.permute.xlu1 %1667  ;;  %v3729_v3 = vld [vmem:[%s4632_s0 + $0x10] sm:$0xff] }
 0x83e   :  { %3600 = vmatprep.subr.mxu1 %v3780_v0  ;;  %3409 = vmatpush3.msra.mxu0 %v1668_v5 }
 0x83f   :  { %v3692_v7 = vpop.eup %3691  ;;  %3605 = vmatpush3.msra.mxu1 %v1668_v5  ;;  %3410 = vmatprep.subr.mxu0 %v3780_v0 }
 0x840   :  { %v1644_v8 = vsel %vm334_vm6, %v3692_v7, 0.0  ;;  %3601 = vmatprep.subr.mxu1 %v3780_v0 }
 0x841   :  { %1645 = vadd.xlane.f32.xlu0 %v1644_v8 }
 0x843   :  { %v3694_v9 = vpop.eup %3693 }
 0x844   :  { %v1647_v10 = vsel %vm334_vm6, %v3694_v9, 0.0 }
 0x845   :  { %1648 = vadd.xlane.f32.xlu1 %v1647_v10 }
 0x847   :  { %v3696_v12 = vpop.eup %3695 }
 0x848   :  { %v1650_v14 = vsel %vm347_vm10, %v3696_v12, 0.0 }
 0x849   :  { %1651 = vadd.xlane.f32.xlu0 %v1650_v14 }
 0x853   :  { %v1459_v17 = vpop.f32.mrf.mxu1 }
 0x854   :  { %v4366_v59 = vadd.f32 %v1459_v17, %v1038_v15 }
 0x855   :  { %v3378_v54 = vpop.f32.mrf.mxu1 }
 0x856   :  { %1665 = vrot.lane.b32.xlu1 %v3875_v19, %s3793_s23 }
 0x85f   :  { %1663 = vrot.lane.b32.xlu0 %v3889_v25, %s3793_s23 }
 0x8c2   :  { %v1640_v20 = vpop.xlane.xlu0 %1639 }
 0x8c3   :  { %3697 = vrcp.f32 %v1640_v20 }
 0x8c6   :  { %v1643_v4 = vpop.xlane.xlu1 %1642 }
 0x8c7   :  { %3699 = vrcp.f32 %v1643_v4  ;;  %v3731_v4 = vld [vmem:[%s4632_s0 + $0x20] sm:$0x3] }
 0x8ca   :  { %v1646_v23 = vpop.xlane.xlu0 %1645 }
 0x8cb   :  { %3701 = vrcp.f32 %v1646_v23 }
 0x8ce   :  { %v1649_v11 = vpop.xlane.xlu1 %1648 }
 0x8cf   :  { %3703 = vrcp.f32 %v1649_v11 }
 0x8d0   :  { %v3698_v42 = vpop.eup %3697 }
 0x8d1   :  { %v1658_v19 = vmul.f32 %v3698_v42, %v3688_v55  ;;  %v3728_v55 = vld [vmem:[%s4632_s0 + $0x8] sm:$0xff] }
 0x8d2   :  { %v1652_v61 = vpop.xlane.xlu0 %1651  ;;  %v1666_v32 = vpop.permute.xlu1 %1665 }
 0x8d3   :  { %3705 = vrcp.f32 %v1652_v61  ;;  %3411 = vmatpush3.msra.mxu0 %v1666_v32  ;;  %3606 = vmatpush3.msra.mxu1 %v1666_v32 }
 0x8d4   :  { %3412 = vmatprep.subr.mxu0 %v3780_v0  ;;  %3602 = vmatprep.subr.mxu1 %v3780_v0  ;;  %v3700_v27 = vpop.eup %3699 }
 0x8d5   :  { %v1659_v6 = vmul.f32 %v3700_v27, %v3690_v1 }
 0x8d6   :  { %v1664_v25 = vpop.permute.xlu0 %1663 }
 0x8d7   :  { %3413 = vmatpush3.msra.mxu0 %v1664_v25  ;;  %3607 = vmatpush3.msra.mxu1 %v1664_v25 }
 0x8d8   :  { %v3702_v29 = vpop.eup %3701  ;;  %3415 = vmatmul.mubr.msk.f32.vlgmr.msra.gmra.mxu0 %vm334_vm6, %v1658_v19  ;;  %3429 = vmatprep.subr.mxu0 %v3780_v0 }
 0x8d9   :  { %v1660_v31 = vmul.f32 %v3702_v29, %v3692_v7  ;;  %3417 = vmatprep.mubr.msk.f32.mxu0 %vm3781_vm0, %v3780_v0  ;;  %3446 = vmatprep.subr.mxu1 %v3780_v0 }
 0x8da   :  { %3430 = vmatpush3.msra.mxu0 %v1784_v22 }
 0x8db   :  { %3421 = vmatmul.mubr.msk.f32.vlgmr.msra.gmra.mxu1 %vm334_vm6, %v1660_v31  ;;  %3469 = vmatprep.subr.mxu0 %v3780_v0 }
 0x8dc   :  { %v3704_v13 = vpop.eup %3703  ;;  %3418 = vmatmul.mubr.msk.f32.gmra.mxu0 %vm334_vm6, %v1659_v6  ;;  %3423 = vmatprep.mubr.msk.f32.mxu1 %vm3781_vm0, %v3780_v0 }
 0x8dd   :  { %v1661_v21 = vmul.f32 %v3704_v13, %v3694_v9  ;;  %3431 = vmatprep.mubr.msk.f32.mxu0 %vm3781_vm0, %v3780_v0 }
 0x8df   :  { %3424 = vmatmul.mubr.msk.f32.gmra.mxu1 %vm334_vm6, %v1661_v21 }
 0x8e0   :  { %v3706_v35 = vpop.eup %3705  ;;  %3426 = vmatprep.mubr.msk.f32.mxu1 %vm3781_vm0, %v3780_v0 }
 0x8e1   :  { %v1662_v37 = vmul.f32 %v3706_v35, %v3696_v12  ;;  %v3730_v12 = vld [vmem:[%s4632_s0 + $0x18] sm:$0xff] }
 0x8e3   :  { %3427 = vmatmul.mubr.msk.f32.gmra.mxu1 %vm334_vm6, %v1662_v37 }
 0x8e4   :  { %3454 = vmatprep.mubr.msk.f32.mxu1 %vm3781_vm0, %v3780_v0 }
 0x998   :  { %v1760_v24 = vpop.f32.mrf.mxu0 }
 0x999   :  { %3432 = vmatmul.mubr.msk.f32.vlgmr.msra.gmra.mxu0 %vm213_vm2, %v1760_v24 }
 0x99a   :  { %v3416_v41 = vpop.f32.mrf.mxu0  ;;  %3434 = vmatprep.mubr.msk.f32.mxu0 %vm3781_vm0, %v3780_v0 }
 0x99b   :  { %v1770_v16 = vpop.f32.mrf.mxu1 }
 0x99c   :  { %v1765_v26 = vpop.f32.mrf.mxu0 }
 0x99d   :  { %v3422_v33 = vpop.f32.mrf.mxu1  ;;  %3435 = vmatmul.mubr.msk.f32.gmra.mxu0 %vm213_vm2, %v1765_v26 }
 0x99e   :  { %v3419_v48 = vpop.f32.mrf.mxu0  ;;  %3437 = vmatprep.mubr.msk.f32.mxu0 %vm3781_vm0, %v3780_v0 }
 0x99f   :  { %v1775_v49 = vpop.f32.mrf.mxu1 }
 0x9a1   :  { %v3425_v18 = vpop.f32.mrf.mxu1  ;;  %3438 = vmatmul.mubr.msk.f32.gmra.mxu0 %vm213_vm2, %v1770_v16 }
 0x9a2   :  { %3440 = vmatprep.mubr.msk.f32.mxu0 %vm3781_vm0, %v3780_v0 }
 0x9a3   :  { %v1780_v36 = vpop.f32.mrf.mxu1 }
 0x9a5   :  { %v3428_v50 = vpop.f32.mrf.mxu1  ;;  %3441 = vmatmul.mubr.msk.f32.gmra.mxu0 %vm213_vm2, %v1775_v49 }
 0x9a6   :  { %3443 = vmatprep.mubr.msk.f32.mxu0 %vm3781_vm0, %v3780_v0 }
 0x9a9   :  { %3444 = vmatmul.mubr.msk.f32.gmra.mxu0 %vm213_vm2, %v1780_v36 }
 0x9aa   :  { %3485 = vmatprep.mubr.msk.f32.mxu0 %vm3781_vm0, %v3780_v0 }
 0xa59   :  { %v1866_v51 = vpop.f32.mrf.mxu0 }
 0xa5a   :  { %v1890_v52 = vadd.f32 %v1866_v51, %v4337_v34 }
 0xa5b   :  { %v3433_v53 = vpop.f32.mrf.mxu0 }
 0xa5c   :  { %v1895_v56 = vadd.f32 %v3727_v38, %v1890_v52  ;;  %v1997_v52 = vld [vmem:[#allocation3 + $0x60] sm:$0xff]  ;;  %v1996_v53 = vld [vmem:[#allocation3 + $0x58] sm:$0xff]  ;;  %v1994_v38 = vld [vmem:[#allocation3 + $0x48] sm:$0xff] }
 0xa5d   :  { %v1871_v58 = vpop.f32.mrf.mxu0  ;;  %3447 = vmatpush3.msra.mxu1 %v1997_v52 }
 0xa5e   :  { %v1891_v60 = vadd.f32 %v1871_v58, %v4341_v39  ;;  %v1904_v30 = vadd.f32 %v2942_v28, %v1895_v56  ;;  %3448 = vmatprep.subr.mxu1 %v3780_v0  ;;  %v2005_v56 = vld [vmem:[#allocation3 + $0xa0] sm:$0xff]  ;;  %v2004_v58 = vld [vmem:[#allocation3 + $0x98] sm:$0xff] }
 0xa5f   :  { %v3436_v40 = vpop.f32.mrf.mxu0  ;;  %3449 = vmatpush3.msra.mxu1 %v1996_v53  ;;  %3470 = vmatpush3.msra.mxu0 %v2005_v56 }
 0xa60   :  { %v1896_v62 = vadd.f32 %v3728_v55, %v1891_v60  ;;  %v1909_v63 = vsel %vm92_vm1, %v1904_v30, 0.0  ;;  %3450 = vmatprep.subr.mxu1 %v3780_v0  ;;  %3471 = vmatprep.subr.mxu0 %v3780_v0  ;;  %v2003_v60 = vld [vmem:[#allocation3 + $0x90] sm:$0xff]  ;;  %v2001_v40 = vld [vmem:[#allocation3 + $0x80] sm:$0xff] }
 0xa61   :  { %1910 = vadd.xlane.f32.xlu1 %v1909_v63  ;;  %v1876_v34 = vpop.f32.mrf.mxu0  ;;  %3472 = vmatpush3.msra.mxu0 %v2004_v58 }
 0xa62   :  { %v1892_v57 = vadd.f32 %v1876_v34, %v4345_v43  ;;  %v1905_v1 = vadd.f32 %v2942_v28, %v1896_v62  ;;  %3473 = vmatprep.subr.mxu0 %v3780_v0 }
 0xa63   :  { %v3439_v2 = vpop.f32.mrf.mxu0  ;;  %3474 = vmatpush3.msra.mxu0 %v2003_v60 }
 0xa64   :  { %v1897_v39 = vadd.f32 %v3729_v3, %v1892_v57  ;;  %v1912_v5 = vsel %vm92_vm1, %v1905_v1, 0.0  ;;  %3475 = vmatprep.subr.mxu0 %v3780_v0 }
 0xa65   :  { %1913 = vadd.xlane.f32.xlu0 %v1912_v5  ;;  %v1881_v7 = vpop.f32.mrf.mxu0 }
 0xa66   :  { %v1893_v8 = vadd.f32 %v1881_v7, %v4349_v44  ;;  %v1906_v9 = vadd.f32 %v2942_v28, %v1897_v39 }
 0xa67   :  { %v3442_v10 = vpop.f32.mrf.mxu0 }
 0xa68   :  { %v1898_v43 = vadd.f32 %v3730_v12, %v1893_v8  ;;  %v1915_v14 = vsel %vm92_vm1, %v1906_v9, 0.0 }
 0xa69   :  { %1916 = vadd.xlane.f32.xlu0 %v1915_v14  ;;  %v1886_v15 = vpop.f32.mrf.mxu0 }
 0xa6a   :  { %v1894_v17 = vadd.f32 %v1886_v15, %v4366_v59  ;;  %v1907_v54 = vadd.f32 %v2942_v28, %v1898_v43  ;;  %v2943_v43 = vld [vmem:[#allocation3 + $0x24] ss:$0 sm:$0xff] }
 0xa6b   :  { %v3445_v20 = vpop.f32.mrf.mxu0 }
 0xa6c   :  { %v1899_v44 = vadd.f32 %v3731_v4, %v1894_v17  ;;  %v1918_v23 = vsel %vm92_vm1, %v1907_v54, 0.0  ;;  %v2944_v17 = vld [vmem:[#allocation3 + $0x25] ss:$0 sm:$0xff] }
 0xa6d   :  { %1919 = vadd.xlane.f32.xlu1 %v1918_v23 }
 0xa6e   :  { %v1908_v11 = vadd.f32 %v2942_v28, %v1899_v44  ;;  %v1995_v28 = vld [vmem:[#allocation3 + $0x50] sm:$0xff] }
 0xa6f   :  { %3451 = vmatpush3.msra.mxu1 %v1995_v28 }
 0xa70   :  { %v1922_v61 = vsel %vm1921_vm11, %v1908_v11, 0.0  ;;  %3452 = vmatprep.subr.mxu1 %v3780_v0 }
 0xa71   :  { %1923 = vadd.xlane.f32.xlu0 %v1922_v61  ;;  %3453 = vmatpush3.msra.mxu1 %v1994_v38 }
 0xa72   :  { %3500 = vmatprep.subr.mxu1 %v3780_v0 }
 0xaea   :  { %v1911_v32 = vpop.xlane.xlu1 %1910 }
 0xaeb   :  { %v1926_v42 = vmul.f32 0.03125, %v1911_v32 }
 0xaed   :  { %v4432_v19 = vsub.f32 %v1904_v30, %v1926_v42  ;;  %v2002_v30 = vld [vmem:[#allocation3 + $0x88] sm:$0xff] }
 0xaee   :  { %v1914_v59 = vpop.xlane.xlu0 %1913  ;;  %3476 = vmatpush3.msra.mxu0 %v2002_v30 }
 0xaef   :  { %v1927_v25 = vmul.f32 0.03125, %v1914_v59  ;;  %v1936_v27 = vmul.f32 %v4432_v19, %v4432_v19  ;;  %3477 = vmatprep.subr.mxu0 %v3780_v0 }
 0xaf0   :  { %3478 = vmatpush3.msra.mxu0 %v2001_v40 }
 0xaf1   :  { %v4436_v29 = vsub.f32 %v1905_v1, %v1927_v25  ;;  %v1941_v31 = vsel %vm92_vm1, %v1936_v27, 0.0  ;;  %3479 = vmatprep.subr.mxu0 %v3780_v0 }
 0xaf2   :  { %v1917_v6 = vpop.xlane.xlu0 %1916  ;;  %1942 = vadd.xlane.f32.xlu1 %v1941_v31 }
 0xaf3   :  { %v1928_v13 = vmul.f32 0.03125, %v1917_v6  ;;  %v1937_v21 = vmul.f32 %v4436_v29, %v4436_v29 }
 0xaf5   :  { %v4441_v35 = vsub.f32 %v1906_v9, %v1928_v13  ;;  %v1944_v37 = vsel %vm92_vm1, %v1937_v21, 0.0 }
 0xaf6   :  { %v1920_v22 = vpop.xlane.xlu1 %1919  ;;  %1945 = vadd.xlane.f32.xlu0 %v1944_v37  ;;  %v1999_v37 = vld [vmem:[#allocation3 + $0x70] sm:$0xff] }
 0xaf7   :  { %v1929_v24 = vmul.f32 0.03125, %v1920_v22  ;;  %v1938_v41 = vmul.f32 %v4441_v35, %v4441_v35  ;;  %v1998_v22 = vld [vmem:[#allocation3 + $0x68] sm:$0xff] }
 0xaf9   :  { %v4446_v16 = vsub.f32 %v1907_v54, %v1929_v24  ;;  %v1947_v26 = vsel %vm92_vm1, %v1938_v41, 0.0  ;;  %v2945_v24 = vld [vmem:[#allocation3 + $0x22] ss:$0 sm:$0xff] }
 0xafa   :  { %1948 = vadd.xlane.f32.xlu1 %v1947_v26  ;;  %v1924_v33 = vpop.xlane.xlu0 %1923 }
 0xafb   :  { %v1930_v48 = vmul.f32 0.03125, %v1924_v33  ;;  %v1939_v49 = vmul.f32 %v4446_v16, %v4446_v16 }
 0xafd   :  { %v4451_v18 = vsub.f32 %v1908_v11, %v1930_v48  ;;  %v1950_v36 = vsel %vm92_vm1, %v1939_v49, 0.0 }
 0xafe   :  { %1951 = vadd.xlane.f32.xlu0 %v1950_v36 }
 0xaff   :  { %v1940_v50 = vmul.f32 %v4451_v18, %v4451_v18 }
 0xb01   :  { %v1953_v51 = vsel %vm1921_vm11, %v1940_v50, 0.0 }
 0xb02   :  { %1954 = vadd.xlane.f32.xlu1 %v1953_v51 }
 0xb7b   :  { %v1943_v55 = vpop.xlane.xlu1 %1942 }
 0xb7c   :  { %v1956_v62 = vmul.f32 0.03125, %v1943_v55 }
 0xb7e   :  { %v1961_v63 = vadd.f32 1e-05, %v1956_v62 }
 0xb7f   :  { %v1946_v34 = vpop.xlane.xlu0 %1945 }
 0xb80   :  { %3707 = vrsqrt.f32 %v1961_v63  ;;  %v1957_v57 = vmul.f32 0.03125, %v1946_v34 }
 0xb82   :  { %v1962_v1 = vadd.f32 1e-05, %v1957_v57 }
 0xb83   :  { %v1949_v2 = vpop.xlane.xlu1 %1948 }
 0xb84   :  { %3709 = vrsqrt.f32 %v1962_v1  ;;  %v1958_v3 = vmul.f32 0.03125, %v1949_v2 }
 0xb86   :  { %v1963_v39 = vadd.f32 1e-05, %v1958_v3  ;;  %v2951_v3 = vld [vmem:[#allocation3 + $0x23] ss:$0 sm:$0xff] }
 0xb87   :  { %v1952_v5 = vpop.xlane.xlu0 %1951 }
 0xb88   :  { %3711 = vrsqrt.f32 %v1963_v39  ;;  %v1959_v7 = vmul.f32 0.03125, %v1952_v5 }
 0xb8a   :  { %v1964_v8 = vadd.f32 1e-05, %v1959_v7 }
 0xb8b   :  { %v1955_v9 = vpop.xlane.xlu1 %1954 }
 0xb8c   :  { %3713 = vrsqrt.f32 %v1964_v8  ;;  %v1960_v10 = vmul.f32 0.03125, %v1955_v9 }
 0xb8d   :  { %v3708_v12 = vpop.eup %3707 }
 0xb8e   :  { %v1971_v14 = vmul.f32 %v3708_v12, %v4432_v19  ;;  %v1965_v15 = vadd.f32 1e-05, %v1960_v10 }
 0xb90   :  { %v1980_v54 = vmul.f32 %v2943_v43, %v1971_v14  ;;  %3715 = vrsqrt.f32 %v1965_v15 }
 0xb91   :  { %v3710_v20 = vpop.eup %3709 }
 0xb92   :  { %v4467_v4 = vadd.f32 %v2944_v17, %v1980_v54  ;;  %v1972_v44 = vmul.f32 %v3710_v20, %v4436_v29 }
 0xb94   :  { %3455 = vmatmul.mubr.msk.f32.vlgmr.msra.gmra.mxu1 %vm92_vm1, %v4467_v4  ;;  %v1981_v23 = vmul.f32 %v2943_v43, %v1972_v44 }
 0xb95   :  { %v3712_v11 = vpop.eup %3711  ;;  %3457 = vmatprep.mubr.msk.f32.mxu1 %vm3781_vm0, %v3780_v0 }
 0xb96   :  { %v4474_v61 = vadd.f32 %v2944_v17, %v1981_v23  ;;  %v1973_v32 = vmul.f32 %v3712_v11, %v4441_v35  ;;  %v2000_v35 = vld [vmem:[#allocation3 + $0x78] sm:$0xff] }
 0xb97   :  { %3480 = vmatpush3.msra.mxu0 %v2000_v35 }
 0xb98   :  { %3458 = vmatmul.mubr.msk.f32.gmra.mxu1 %vm92_vm1, %v4474_v61  ;;  %v1982_v42 = vmul.f32 %v2943_v43, %v1973_v32  ;;  %3481 = vmatprep.subr.mxu0 %v3780_v0 }
 0xb99   :  { %v3714_v19 = vpop.eup %3713  ;;  %3460 = vmatprep.mubr.msk.f32.mxu1 %vm3781_vm0, %v3780_v0  ;;  %3482 = vmatpush3.msra.mxu0 %v1999_v37 }
 0xb9a   :  { %v4481_v59 = vadd.f32 %v2944_v17, %v1982_v42  ;;  %v1974_v25 = vmul.f32 %v3714_v19, %v4446_v16  ;;  %3483 = vmatprep.subr.mxu0 %v3780_v0 }
 0xb9b   :  { %3484 = vmatpush3.msra.mxu0 %v1998_v22 }
 0xb9c   :  { %3461 = vmatmul.mubr.msk.f32.gmra.mxu1 %vm92_vm1, %v4481_v59  ;;  %v1983_v27 = vmul.f32 %v2943_v43, %v1974_v25  ;;  %3513 = vmatprep.subr.mxu0 %v3780_v0 }
 0xb9d   :  { %v3716_v29 = vpop.eup %3715  ;;  %3463 = vmatprep.mubr.msk.f32.mxu1 %vm3781_vm0, %v3780_v0 }
 0xb9e   :  { %v1992_v31 = vadd.f32 %v2944_v17, %v1983_v27  ;;  %v1975_v6 = vmul.f32 %v3716_v29, %v4451_v18 }
 0xba0   :  { %3464 = vmatmul.mubr.msk.f32.gmra.mxu1 %vm92_vm1, %v1992_v31  ;;  %v1984_v13 = vmul.f32 %v2943_v43, %v1975_v6 }
 0xba1   :  { %3466 = vmatprep.mubr.msk.f32.mxu1 %vm3781_vm0, %v3780_v0 }
 0xba2   :  { %v4492_v21 = vadd.f32 %v2944_v17, %v1984_v13 }
 0xba4   :  { %3467 = vmatmul.mubr.msk.f32.gmra.mxu1 %vm92_vm1, %v4492_v21 }
 0xba5   :  { %3510 = vmatprep.mubr.msk.f32.mxu1 %vm3781_vm0, %v3780_v0 }
 0xc54   :  { %v2091_v41 = vpop.f32.mrf.mxu1 }
 0xc55   :  { %v2092_v16 = vadd.f32 %v2945_v24, %v2091_v41 }
 0xc56   :  { %v3456_v26 = vpop.f32.mrf.mxu1 }
 0xc57   :  { %v2115_v33 = vmax.f32 %v2092_v16, 0.0 }
 0xc58   :  { %v2096_v48 = vpop.f32.mrf.mxu1 }
 0xc59   :  { %v2097_v49 = vadd.f32 %v2945_v24, %v2096_v48  ;;  %3486 = vmatmul.mubr.msk.f32.vlgmr.msra.gmra.mxu0 %vm2124_vm12, %v2115_v33 }
 0xc5a   :  { %v3459_v18 = vpop.f32.mrf.mxu1  ;;  %3488 = vmatprep.mubr.msk.f32.mxu0 %vm3781_vm0, %v3780_v0 }
 0xc5b   :  { %v2116_v36 = vmax.f32 %v2097_v49, 0.0 }
 0xc5c   :  { %v2101_v50 = vpop.f32.mrf.mxu1 }
 0xc5d   :  { %v2102_v51 = vadd.f32 %v2945_v24, %v2101_v50  ;;  %3489 = vmatmul.mubr.msk.f32.gmra.mxu0 %vm2124_vm12, %v2116_v36 }
 0xc5e   :  { %v3462_v52 = vpop.f32.mrf.mxu1  ;;  %3491 = vmatprep.mubr.msk.f32.mxu0 %vm3781_vm0, %v3780_v0 }
 0xc5f   :  { %v2117_v53 = vmax.f32 %v2102_v51, 0.0 }
 0xc60   :  { %v2106_v28 = vpop.f32.mrf.mxu1 }
 0xc61   :  { %v2107_v38 = vadd.f32 %v2945_v24, %v2106_v28  ;;  %3492 = vmatmul.mubr.msk.f32.gmra.mxu0 %vm2124_vm12, %v2117_v53 }
 0xc62   :  { %v3465_v56 = vpop.f32.mrf.mxu1  ;;  %3494 = vmatprep.mubr.msk.f32.mxu0 %vm3781_vm0, %v3780_v0 }
 0xc63   :  { %v2118_v58 = vmax.f32 %v2107_v38, 0.0 }
 0xc64   :  { %v2111_v60 = vpop.f32.mrf.mxu1 }
 0xc65   :  { %v2112_v30 = vadd.f32 %v2945_v24, %v2111_v60  ;;  %3495 = vmatmul.mubr.msk.f32.gmra.mxu0 %vm2124_vm12, %v2118_v58 }
 0xc66   :  { %v3468_v40 = vpop.f32.mrf.mxu1  ;;  %3497 = vmatprep.mubr.msk.f32.mxu0 %vm3781_vm0, %v3780_v0 }
 0xc67   :  { %v2119_v55 = vmax.f32 %v2112_v30, 0.0 }
 0xc69   :  { %3498 = vmatmul.mubr.msk.f32.gmra.mxu0 %vm2124_vm12, %v2119_v55 }
 0xc6a   :  { %3523 = vmatprep.mubr.msk.f32.mxu0 %vm3781_vm0, %v3780_v0 }
 0xd19   :  { %v2206_v62 = vpop.f32.mrf.mxu0 }
 0xd1a   :  { %v2207_v20 = vadd.f32 %v2951_v3, %v2206_v62 }
 0xd1b   :  { %v3487_v63 = vpop.f32.mrf.mxu0 }
 0xd1c   :  { %v2230_v32 = vadd.f32 %v2207_v20, %v4467_v4 }
 0xd1d   :  { %v2211_v34 = vpop.f32.mrf.mxu0 }
 0xd1e   :  { %v2212_v5 = vadd.f32 %v2951_v3, %v2211_v34  ;;  %v2235_v42 = vsel %vm92_vm1, %v2230_v32, 0.0  ;;  %v2323_v34 = vshra.s32 %v3966_v45, 1 }
 0xd1f   :  { %v3490_v57 = vpop.f32.mrf.mxu0 }
 0xd20   :  { %v2231_v12 = vadd.f32 %v2212_v5, %v4474_v61 }
 0xd21   :  { %v2216_v1 = vpop.f32.mrf.mxu0 }
 0xd22   :  { %v2217_v43 = vadd.f32 %v2951_v3, %v2216_v1  ;;  %v2238_v23 = vsel %vm92_vm1, %v2231_v12, 0.0 }
 0xd23   :  { %v3493_v2 = vpop.f32.mrf.mxu0 }
 0xd24   :  { %v2232_v44 = vadd.f32 %v2217_v43, %v4481_v59 }
 0xd25   :  { %v2221_v39 = vpop.f32.mrf.mxu0 }
 0xd26   :  { %v2222_v7 = vadd.f32 %v2951_v3, %v2221_v39  ;;  %v2241_v61 = vsel %vm92_vm1, %v2232_v44, 0.0 }
 0xd27   :  { %v3496_v8 = vpop.f32.mrf.mxu0 }
 0xd28   :  { %v2233_v9 = vadd.f32 %v2222_v7, %v1992_v31  ;;  %v2957_v8 = vld [vmem:[#allocation3 + $0x26] ss:$0 sm:$0xff] }
 0xd29   :  { %v2226_v10 = vpop.f32.mrf.mxu0 }
 0xd2a   :  { %v2227_v14 = vadd.f32 %v2951_v3, %v2226_v10  ;;  %v2244_v15 = vsel %vm92_vm1, %v2233_v9, 0.0  ;;  %v2324_v3 = vmul.u32 4, %v2323_v34  ;;  %v2958_v10 = vld [vmem:[#allocation3 + $0x27] ss:$0 sm:$0xff]  ;;  %v2663_v34 = vld [vmem:[#allocation5] sm:$0xff] }
 0xd2b   :  { %2245 = vadd.xlane.f32.xlu1 %v2244_v15  ;;  %v3499_v17 = vpop.f32.mrf.mxu0 }
 0xd2c   :  { %v2234_v54 = vadd.f32 %v2227_v14, %v4492_v21  ;;  %v2325_v5 = vadd.s32 1, %v2324_v3 }
 0xd2e   :  { %v2247_v11 = vsel %vm1921_vm11, %v2234_v54, 0.0  ;;  %v2408_v43 = vadd.s32 1, %v2325_v5 }
 0xd2f   :  { %2239 = vadd.xlane.f32.xlu1 %v2238_v23  ;;  %2248 = vadd.xlane.f32.xlu0 %v2247_v11 }
 0xd30   :  { %v2409_v23 = vmul.u32 2, %v2408_v43  ;;  %v2679_v43 = vld [vmem:[#allocation5 + $0x80] sm:$0xff] }
 0xd33   :  { %2242 = vadd.xlane.f32.xlu0 %v2241_v61 }
 0xd37   :  { %2236 = vadd.xlane.f32.xlu0 %v2235_v42 }
 0xdb4   :  { %v2246_v19 = vpop.xlane.xlu1 %2245 }
 0xdb5   :  { %v2253_v25 = vmul.f32 0.03125, %v2246_v19 }
 0xdb7   :  { %v2258_v27 = vsub.f32 %v2233_v9, %v2253_v25 }
 0xdb8   :  { %v2240_v29 = vpop.xlane.xlu1 %2239  ;;  %v2249_v31 = vpop.xlane.xlu0 %2248 }
 0xdb9   :  { %v2251_v59 = vmul.f32 0.03125, %v2240_v29  ;;  %v2254_v6 = vmul.f32 0.03125, %v2249_v31  ;;  %v2263_v13 = vmul.f32 %v2258_v27, %v2258_v27  ;;  %v2410_v29 = vadd.s32 %v2409_v23, %v3971_v47  ;;  %v2839_v23 = vld [vmem:[%s4635_s3] sm:$0xff] }
 0xdbb   :  { %v2256_v21 = vsub.f32 %v2231_v12, %v2251_v59  ;;  %v2259_v35 = vsub.f32 %v2234_v54, %v2254_v6  ;;  %v2274_v37 = vsel %vm92_vm1, %v2263_v13, 0.0  ;;  %v2493_v13 = vadd.s32 2, %v2325_v5 }
 0xdbc   :  { %2275 = vadd.xlane.f32.xlu0 %v2274_v37  ;;  %v2243_v4 = vpop.xlane.xlu0 %2242  ;;  %vm2411_vm14 = vcmp.eq.s32.totalorder %v3968_v46, %v2410_v29 }
 0xdbd   :  { %v2252_v22 = vmul.f32 0.03125, %v2243_v4  ;;  %v2261_v24 = vmul.f32 %v2256_v21, %v2256_v21  ;;  %v2264_v41 = vmul.f32 %v2259_v35, %v2259_v35 }
 0xdbf   :  { %v2257_v16 = vsub.f32 %v2232_v44, %v2252_v22  ;;  %v2268_v26 = vsel %vm92_vm1, %v2261_v24, 0.0  ;;  %v2277_v33 = vsel %vm1921_vm11, %v2264_v41, 0.0  ;;  %v2326_v44 = vmul.u32 2, %v2325_v5 }
 0xdc0   :  { %2269 = vadd.xlane.f32.xlu0 %v2268_v26  ;;  %2278 = vadd.xlane.f32.xlu1 %v2277_v33  ;;  %v2237_v48 = vpop.xlane.xlu0 %2236  ;;  %v2962_v22 = vsel %vm2411_vm14, 1.0, %v3780_v0  ;;  %v2494_v24 = vmul.u32 2, %v2493_v13 }
 0xdc1   :  { %v2250_v49 = vmul.f32 0.03125, %v2237_v48  ;;  %v2262_v18 = vmul.f32 %v2257_v16, %v2257_v16  ;;  %v2677_v48 = vld [vmem:[#allocation5 + $0x70] sm:$0xff] }
 0xdc3   :  { %v2255_v36 = vsub.f32 %v2230_v32, %v2250_v49  ;;  %v2271_v50 = vsel %vm92_vm1, %v2262_v18, 0.0  ;;  %v2676_v49 = vld [vmem:[#allocation5 + $0x68] sm:$0xff]  ;;  %v2675_v18 = vld [vmem:[#allocation5 + $0x60] sm:$0xff] }
 0xdc4   :  { %2272 = vadd.xlane.f32.xlu1 %v2271_v50  ;;  %v2673_v50 = vld [vmem:[#allocation5 + $0x50] sm:$0xff] }
 0xdc5   :  { %v2260_v51 = vmul.f32 %v2255_v36, %v2255_v36 }
 0xdc7   :  { %v2265_v52 = vsel %vm92_vm1, %v2260_v51, 0.0  ;;  %v2672_v51 = vld [vmem:[#allocation5 + $0x48] sm:$0xff] }
 0xdc8   :  { %2266 = vadd.xlane.f32.xlu1 %v2265_v52  ;;  %v2671_v52 = vld [vmem:[#allocation5 + $0x40] sm:$0xff] }
 0xe45   :  { %v2276_v53 = vpop.xlane.xlu0 %2275 }
 0xe46   :  { %v2283_v28 = vmul.f32 0.03125, %v2276_v53  ;;  %v2670_v53 = vld [vmem:[#allocation5 + $0x38] sm:$0xff] }
 0xe48   :  { %v2288_v38 = vadd.f32 1e-05, %v2283_v28  ;;  %v2669_v28 = vld [vmem:[#allocation5 + $0x30] sm:$0xff] }
 0xe49   :  { %v2279_v56 = vpop.xlane.xlu1 %2278  ;;  %v2270_v58 = vpop.xlane.xlu0 %2269 }
 0xe4a   :  { %3717 = vrsqrt.f32 %v2288_v38  ;;  %v2284_v60 = vmul.f32 0.03125, %v2279_v56  ;;  %v2281_v30 = vmul.f32 0.03125, %v2270_v58  ;;  %v2668_v38 = vld [vmem:[#allocation5 + $0x28] sm:$0xff]  ;;  %v2667_v56 = vld [vmem:[#allocation5 + $0x20] sm:$0xff] }
 0xe4c   :  { %v2289_v40 = vadd.f32 1e-05, %v2284_v60  ;;  %v2286_v55 = vadd.f32 1e-05, %v2281_v30 }
 0xe4d   :  { %v2273_v62 = vpop.xlane.xlu1 %2272 }
 0xe4e   :  { %3719 = vrsqrt.f32 %v2289_v40  ;;  %v2282_v63 = vmul.f32 0.03125, %v2273_v62  ;;  %v2665_v62 = vld [vmem:[#allocation5 + $0x10] sm:$0xff] }
 0xe4f   :  { %3721 = vrsqrt.f32 %v2286_v55  ;;  %v2666_v55 = vld [vmem:[#allocation5 + $0x18] sm:$0xff] }
 0xe50   :  { %v2287_v57 = vadd.f32 1e-05, %v2282_v63  ;;  %v2664_v63 = vld [vmem:[#allocation5 + $0x8] sm:$0xff] }
 0xe51   :  { %v2267_v1 = vpop.xlane.xlu1 %2266 }
 0xe52   :  { %3723 = vrsqrt.f32 %v2287_v57  ;;  %v2280_v2 = vmul.f32 0.03125, %v2267_v1 }
 0xe54   :  { %v2285_v39 = vadd.f32 1e-05, %v2280_v2  ;;  %v2682_v2 = vld [vmem:[#allocation5 + $0x98] sm:$0xff] }
 0xe56   :  { %3725 = vrsqrt.f32 %v2285_v39 }
 0xe57   :  { %v3718_v7 = vpop.eup %3717 }
 0xe58   :  { %v2298_v9 = vmul.f32 %v3718_v7, %v2258_v27  ;;  %v2327_v27 = vadd.s32 %v2326_v44, %v3971_v47 }
 0xe5a   :  { %v2307_v12 = vmul.f32 %v2957_v8, %v2298_v9  ;;  %vm2328_vm13 = vcmp.eq.s32.totalorder %v3968_v46, %v2327_v27 }
 0xe5b   :  { %v3720_v14 = vpop.eup %3719  ;;  %v2959_v4 = vsel %vm2328_vm13, 1.0, %v3780_v0 }
 0xe5c   :  { %v3722_v15 = vpop.eup %3721  ;;  %v2299_v17 = vmul.f32 %v3720_v14, %v2259_v35  ;;  %v2316_v54 = vadd.f32 %v2958_v10, %v2307_v12  ;;  %v2680_v12 = vld [vmem:[#allocation5 + $0x88] sm:$0xff]  ;;  %v2971_v14 = vld [vmem:[#allocation5 + $0xa0] ss:$0 sm:$0xff] }
 0xe5d   :  { %v2296_v45 = vmul.f32 %v3722_v15, %v2256_v21  ;;  %v2578_v21 = vadd.s32 3, %v2325_v5 }
 0xe5e   :  { %v2308_v20 = vmul.f32 %v2957_v8, %v2299_v17  ;;  %2321 = vst.msk [vmem:[%s4636_s4 + $0x18] sm:$0xff] %vm92_vm1, %v2316_v54 }
 0xe5f   :  { %v3724_v11 = vpop.eup %3723  ;;  %v2305_v32 = vmul.f32 %v2957_v8, %v2296_v45  ;;  %v2579_v41 = vmul.u32 2, %v2578_v21 }
 0xe60   :  { %v2297_v61 = vmul.f32 %v3724_v11, %v2257_v16  ;;  %v2317_v42 = vadd.f32 %v2958_v10, %v2308_v20  ;;  %v2495_v16 = vadd.s32 %v2494_v24, %v3971_v47  ;;  %v2972_v20 = vld [vmem:[#allocation5 + $0xa1] ss:$0 sm:$0xff] }
 0xe61   :  { %v2314_v19 = vadd.f32 %v2958_v10, %v2305_v32  ;;  %v2580_v26 = vadd.s32 %v2579_v41, %v3971_v47 }
 0xe62   :  { %2322 = vst.msk [vmem:[%s4636_s4 + $0x20] sm:$0x3] %vm1921_vm11, %v2317_v42  ;;  %3501 = vmatpush3.msk.msra.mxu1 %vm420_vm3, %v2317_v42  ;;  %3514 = vmatpush3.msk.msra.mxu0 %vm420_vm3, %v2317_v42  ;;  %v2306_v25 = vmul.f32 %v2957_v8, %v2297_v61  ;;  %vm2496_vm15 = vcmp.eq.s32.totalorder %v3968_v46, %v2495_v16 }
 0xe63   :  { %v3726_v31 = vpop.eup %3725  ;;  %3502 = vmatprep.subr.mxu1 %v3780_v0  ;;  %3515 = vmatprep.subr.mxu0 %v3780_v0  ;;  %2319 = vst.msk [vmem:[%s4636_s4 + $0x8] sm:$0xff] %vm92_vm1, %v2314_v19  ;;  %vm2581_vm2 = vcmp.eq.s32.totalorder %v3968_v46, %v2580_v26  ;;  %v2965_v47 = vsel %vm2496_vm15, 1.0, %v3780_v0  ;;  %v2678_v46 = vld [vmem:[#allocation5 + $0x78] sm:$0xff] }
 0xe64   :  { %v2295_v59 = vmul.f32 %v3726_v31, %v2255_v36  ;;  %3503 = vmatpush3.msra.mxu1 %v2316_v54  ;;  %3516 = vmatpush3.msra.mxu0 %v2316_v54  ;;  %v2315_v6 = vadd.f32 %v2958_v10, %v2306_v25  ;;  %v2968_v33 = vsel %vm2581_vm2, 1.0, %v3780_v0  ;;  %v2674_v36 = vld [vmem:[#allocation5 + $0x58] sm:$0xff] }
 0xe65   :  { %3504 = vmatprep.subr.mxu1 %v3780_v0  ;;  %3517 = vmatprep.subr.mxu0 %v3780_v0 }
 0xe66   :  { %v2304_v35 = vmul.f32 %v2957_v8, %v2295_v59  ;;  %2320 = vst.msk [vmem:[%s4636_s4 + $0x10] sm:$0xff] %vm92_vm1, %v2315_v6  ;;  %3505 = vmatpush3.msra.mxu1 %v2315_v6  ;;  %3518 = vmatpush3.msra.mxu0 %v2315_v6 }
 0xe67   :  { %3506 = vmatprep.subr.mxu1 %v3780_v0  ;;  %3519 = vmatprep.subr.mxu0 %v3780_v0 }
 0xe68   :  { %3507 = vmatpush3.msra.mxu1 %v2314_v19  ;;  %3520 = vmatpush3.msra.mxu0 %v2314_v19  ;;  %v2313_v37 = vadd.f32 %v2958_v10, %v2304_v35  ;;  %v2681_v10 = vld [vmem:[#allocation5 + $0x90] sm:$0xff] }
 0xe69   :  { %3508 = vmatprep.subr.mxu1 %v3780_v0  ;;  %3521 = vmatprep.subr.mxu0 %v3780_v0 }
 0xe6a   :  { %2318 = vst.msk [vmem:[%s4636_s4] sm:$0xff] %vm92_vm1, %v2313_v37  ;;  %3509 = vmatpush3.msra.mxu1 %v2313_v37  ;;  %3522 = vmatpush3.msra.mxu0 %v2313_v37  ;;  %s3794_s4 = smov 32  }
 0xe6b   :  { %2838 = vst.msk [vmem:[%s4637_s5] sm:$0x3] %vm1921_vm11, %v2313_v37  ;;  %3526 = vmatprep.subr.mxu1 %v3780_v0  ;;  %3539 = vmatprep.subr.mxu0 %v3780_v0 }
 0xe6c   :  { %3511 = vmatmul.mubr.msk.f32.vlgmr.msra.gmra.mxu1 %vm334_vm6, %v2959_v4  ;;  %3524 = vmatmul.mubr.msk.f32.vlgmr.msra.gmra.mxu0 %vm334_vm6, %v2962_v22 }
 0xe6d   :  { %3527 = vmatpush3.msk.msra.mxu1 %vm420_vm3, %v2317_v42  ;;  %3540 = vmatpush3.msk.msra.mxu0 %vm420_vm3, %v2317_v42  ;;  %vm2576_vm3 = vcmask 785920  }
 0xe6e   :  { %3528 = vmatprep.subr.mxu1 %v3780_v0  ;;  %3541 = vmatprep.subr.mxu0 %v3780_v0 }
 0xe6f   :  { %3529 = vmatpush3.msra.mxu1 %v2316_v54  ;;  %3542 = vmatpush3.msra.mxu0 %v2316_v54 }
 0xe70   :  { %3530 = vmatprep.subr.mxu1 %v3780_v0  ;;  %3543 = vmatprep.subr.mxu0 %v3780_v0 }
 0xe71   :  { %3531 = vmatpush3.msra.mxu1 %v2315_v6  ;;  %3544 = vmatpush3.msra.mxu0 %v2315_v6 }
 0xe72   :  { %3532 = vmatprep.subr.mxu1 %v3780_v0  ;;  %3545 = vmatprep.subr.mxu0 %v3780_v0 }
 0xe73   :  { %3533 = vmatpush3.msra.mxu1 %v2314_v19  ;;  %3546 = vmatpush3.msra.mxu0 %v2314_v19 }
 0xe74   :  { %3534 = vmatprep.subr.mxu1 %v3780_v0  ;;  %3547 = vmatprep.subr.mxu0 %v3780_v0 }
 0xe75   :  { %3535 = vmatpush3.msra.mxu1 %v2313_v37  ;;  %3548 = vmatpush3.msra.mxu0 %v2313_v37 }
 0xe76   :  { %3536 = vmatprep.mubr.msk.f32.mxu1 %vm3781_vm0, %v3780_v0  ;;  %3549 = vmatprep.mubr.msk.f32.mxu0 %vm3781_vm0, %v3780_v0 }
 0xe77   :  { %3537 = vmatmul.mubr.msk.f32.vlgmr.msra.gmra.mxu1 %vm334_vm6, %v2965_v47  ;;  %3550 = vmatmul.mubr.msk.f32.vlgmr.msra.gmra.mxu0 %vm334_vm6, %v2968_v33 }
 0xe78   :  { %3552 = vmatprep.subr.mxu1 %v3780_v0  ;;  %3584 = vmatprep.mubr.msk.f32.mxu1 %vm3781_vm0, %v3780_v0 }
 0xe79   :  { %3587 = vmatprep.subr.mxu0 %v3780_v0  ;;  %3595 = vmatprep.mubr.msk.f32.mxu0 %vm3781_vm0, %v3780_v0  ;;  %vm2491_vm0 = vcmask 523520  }
 0xe7a   :  { %3553 = vmatpush3.msra.mxu1 %v2678_v46  ;;  %3588 = vmatpush3.msra.mxu0 %v2682_v2 }
 0xe7b   :  { %3554 = vmatprep.subr.mxu1 %v3780_v0  ;;  %3589 = vmatprep.subr.mxu0 %v3780_v0 }
 0xe7c   :  { %3555 = vmatpush3.msra.mxu1 %v2677_v48  ;;  %3590 = vmatpush3.msra.mxu0 %v2681_v10 }
 0xe7d   :  { %3556 = vmatprep.subr.mxu1 %v3780_v0  ;;  %3591 = vmatprep.subr.mxu0 %v3780_v0 }
 0xe7e   :  { %3557 = vmatpush3.msra.mxu1 %v2676_v49  ;;  %3592 = vmatpush3.msra.mxu0 %v2680_v12 }
 0xe7f   :  { %3558 = vmatprep.subr.mxu1 %v3780_v0  ;;  %3593 = vmatprep.subr.mxu0 %v3780_v0 }
 0xe80   :  { %3559 = vmatpush3.msra.mxu1 %v2675_v18  ;;  %3594 = vmatpush3.msra.mxu0 %v2679_v43 }
 0xe81   :  { %3560 = vmatprep.subr.mxu1 %v3780_v0 }
 0xe82   :  { %3561 = vmatpush3.msra.mxu1 %v2674_v36 }
 0xe83   :  { %3562 = vmatprep.subr.mxu1 %v3780_v0 }
 0xe84   :  { %3563 = vmatpush3.msra.mxu1 %v2673_v50 }
 0xe85   :  { %3564 = vmatprep.subr.mxu1 %v3780_v0 }
 0xe86   :  { %3565 = vmatpush3.msra.mxu1 %v2672_v51 }
 0xe87   :  { %3566 = vmatprep.subr.mxu1 %v3780_v0 }
 0xe88   :  { %3567 = vmatpush3.msra.mxu1 %v2671_v52 }
 0xe89   :  { %3568 = vmatprep.subr.mxu1 %v3780_v0 }
 0xe8a   :  { %3569 = vmatpush3.msra.mxu1 %v2670_v53 }
 0xe8b   :  { %3570 = vmatprep.subr.mxu1 %v3780_v0 }
 0xe8c   :  { %3571 = vmatpush3.msra.mxu1 %v2669_v28 }
 0xe8d   :  { %3572 = vmatprep.subr.mxu1 %v3780_v0 }
 0xe8e   :  { %3573 = vmatpush3.msra.mxu1 %v2668_v38 }
 0xe8f   :  { %3574 = vmatprep.subr.mxu1 %v3780_v0 }
 0xe90   :  { %3575 = vmatpush3.msra.mxu1 %v2667_v56 }
 0xe91   :  { %3576 = vmatprep.subr.mxu1 %v3780_v0 }
 0xe92   :  { %3577 = vmatpush3.msra.mxu1 %v2666_v55 }
 0xe93   :  { %3578 = vmatprep.subr.mxu1 %v3780_v0 }
 0xe94   :  { %3579 = vmatpush3.msra.mxu1 %v2665_v62 }
 0xe95   :  { %3580 = vmatprep.subr.mxu1 %v3780_v0 }
 0xe96   :  { %3581 = vmatpush3.msra.mxu1 %v2664_v63 }
 0xe97   :  { %3582 = vmatprep.subr.mxu1 %v3780_v0 }
 0xe98   :  { %3583 = vmatpush3.msra.mxu1 %v2663_v34 }
 0xf2c   :  { %v2403_v58 = vpop.f32.mrf.mxu1  ;;  %v2483_v60 = vpop.f32.mrf.mxu0 }
 0xf2d   :  { %2407 = vst.msk [vmem:[#allocation2] sm:$0xff] %vm92_vm1, %v2403_v58  ;;  %2488 = vrot.lane.b32.xlu0 %v2483_v60, %s3794_s4 }
 0xf2e   :  { %v3512_v30 = vpop.f32.mrf.mxu1  ;;  %v3525_v40 = vpop.f32.mrf.mxu0 }
 0xf37   :  { %v2568_v57 = vpop.f32.mrf.mxu1  ;;  %v2653_v1 = vpop.f32.mrf.mxu0 }
 0xf38   :  { %2573 = vrot.lane.b32.xlu1 %v2568_v57, %s3785_s16 }
 0xf39   :  { %v3538_v3 = vpop.f32.mrf.mxu1  ;;  %v3551_v39 = vpop.f32.mrf.mxu0 }
 0xf3c   :  { %2658 = vrot.lane.b32.xlu1 %v2653_v1, %s3782_s13 }
 0xf9f   :  { %v2489_v5 = vpop.permute.xlu0 %2488 }
 0xfa0   :  { %2492 = vst.msk [vmem:[#allocation2] sm:$0xff] %vm2491_vm0, %v2489_v5 }
 0xfaa   :  { %v2574_v7 = vpop.permute.xlu1 %2573 }
 0xfab   :  { %2577 = vst.msk [vmem:[#allocation2] sm:$0xff] %vm2576_vm3, %v2574_v7 }
 0xfae   :  { %v2659_v8 = vpop.permute.xlu1 %2658 }
 0xfaf   :  { %2662 = vst.msk [vmem:[#allocation2] sm:$0xff] %vm2661_vm4, %v2659_v8 }
 0xfb6   :  { %v2685_v9 = vld [vmem:[#allocation2] sm:$0xff] }
 0xfb7   :  { %3585 = vmatmul.mubr.f32.vlgmr.msra.gmra.mxu1 %v2685_v9 }
0x1077   :  { %v2756_v15 = vpop.f32.mrf.mxu1 }
0x1078   :  { %v2757_v17 = vadd.f32 %v2971_v14, %v2756_v15 }
0x1079   :  { %v3586_v54 = vpop.f32.mrf.mxu1 }
0x107a   :  { %v2760_v45 = vmax.f32 %v2757_v17, 0.0 }
0x107c   :  { %3596 = vmatmul.mubr.msk.f32.vlgmr.msra.gmra.mxu0 %vm92_vm1, %v2760_v45 }
0x113c   :  { %v2834_v44 = vpop.f32.mrf.mxu0 }
0x113d   :  { %v2835_v11 = vadd.f32 %v2972_v20, %v2834_v44 }
0x113e   :  { %v3597_v32 = vpop.f32.mrf.mxu0 }
0x113f   :  { %v2840_v61 = vadd.f32 %v2839_v23, %v2835_v11 }
0x1141   :  { %2841 = vst.msk [vmem:[%s4637_s5 + $0x2] sm:$0xff] %vm92_vm1, %v2840_v61 }
0x1142   :  { %2850 = vsyncpa [#allocation4], 1 }
0x1143   :  { %2851 = vsyncpa [#allocation6], 1 }

// kernel: forward.4
= control target key start
LH: loop header
LB: loop body
LE: loop exit
PB: predicated region body
PF: predicated region fallthrough
CT: control target
= control target key end

     0   :  { %vm53_vm0 = vcmask 261120   ;;  %vm141_vm1 = vcmask 64512   ;;  %s3519_s15 = smov 88   ;;  %s3521_s16 = smov 120   ;;  %v25_v17 = vlaneseq  ;;  %v3522_v26 = vmov -1e+09   ;;  %s4052_s1 = inlined_call_operand.vmem [shape: f32[168,128], index: 1, kind: input, shape index: {}]   ;;  %s4053_s4 = inlined_call_operand.vmem [shape: f32[4,32], index: 4, kind: input, shape index: {}]   ;;  %s4054_s7 = inlined_call_operand.vmem [shape: f32[4,32], index: 7, kind: output, shape index: {2}]   ;;  %s4055_s0 = inlined_call_operand.vmem [shape: f32[10,32], index: 0, kind: input, shape index: {}]   ;;  %s4056_s2 = inlined_call_operand.vmem [shape: f32[104,128], index: 2, kind: input, shape index: {}]   ;;  %s4057_s5 = inlined_call_operand.vmem [shape: f32[10,32], index: 5, kind: output, shape index: {0}]   ;;  %s4058_s6 = inlined_call_operand.vmem [shape: f32[26,32], index: 6, kind: output, shape index: {1}]   ;;  %s4059_s3 = inlined_call_operand.vmem [shape: f32[24,32], index: 3, kind: input, shape index: {}]  }
   0x1   :  { %v40_v0 = vld [vmem:[%s4052_s1 + $0x18] sm:$0xff]  ;;  %v39_v1 = vld [vmem:[%s4052_s1 + $0x10] sm:$0xff]  ;;  %v3586_v2 = vld [vmem:[%s4055_s0] sm:$0xff]  ;;  %vm233_vm4 = vcmask 74752   ;;  %vm229_vm5 = vcmask 80896   ;;  %s3523_s17 = smov 64  }
   0x2   :  { %3192 = vmatprep.subr.mxu0 %v40_v0  ;;  %v38_v3 = vld [vmem:[%s4052_s1 + $0x8] sm:$0xff]  ;;  %3200 = vmatprep.mubr.msk.f32.mxu0 %vm53_vm0, %v3586_v2  ;;  %v37_v4 = vld [vmem:[%s4052_s1] sm:$0xff]  ;;  %v3630_v18 = vand.u32 127, %v25_v17  ;;  %v3635_v20 = vshrl.u32 %v25_v17, 7  ;;  %vm264_vm6 = vcmask 1041408   ;;  %s3524_s18 = smov 56  }
   0x3   :  { %3193 = vmatpush3.msra.mxu0 %v40_v0  ;;  %v3599_v5 = vld [vmem:[%s4055_s0 + $0x8] sm:$0x3]  ;;  %v2984_v6 = vld [vmem:[%s4052_s1 + $0x20] ss:$0 sm:$0xff]  ;;  %s3520_s0 = smov 96   ;;  %s3525_s19 = smov 80  }
   0x4   :  { %3194 = vmatprep.subr.mxu0 %v39_v1  ;;  %v3633_v19 = vcvt.s32.f32 %v3630_v18  ;;  %v3638_v21 = vadd.s32 8, %v3635_v20  ;;  %v32_v23 = vand.u32 1, %v3630_v18  ;;  %v3645_v24 = vand.u32 1, %v3635_v20  ;;  %s3526_s20 = smov 112   ;;  %s3527_s21 = smov 72  }
   0x5   :  { %3195 = vmatpush3.msra.mxu0 %v39_v1  ;;  %s3528_s22 = smov 104   ;;  %s3529_s27 = smov 48   ;;  %vm1300_vm7 = vcmask 254976   ;;  %vm1440_vm8 = vcmask 523264   ;;  %vm3532_vm9 = vmmov 0  }
   0x6   :  { %3196 = vmatprep.subr.mxu0 %v38_v3  ;;  %v3641_v22 = vand.u32 1, %v3638_v21  ;;  %vm33_vm3 = vcmp.eq.s32.totalorder %v3645_v24, %v32_v23  ;;  %s3530_s28 = smov 40  }
   0x7   :  { %3197 = vmatpush3.msra.mxu0 %v38_v3  ;;  %v3651_v30 = vsel %vm33_vm3, 0.0, %v3522_v26 }
   0x8   :  { %3198 = vmatprep.subr.mxu0 %v37_v4  ;;  %vm34_vm2 = vcmp.eq.s32.totalorder %v3641_v22, %v32_v23 }
   0x9   :  { %3199 = vmatpush3.msra.mxu0 %v37_v4  ;;  %v3649_v27 = vsel %vm34_vm2, 0.0, %v3522_v26 }
   0xa   :  { %3201 = vmatmul.mubr.msk.f32.vlgmr.msra.gmra.mxu0 %vm53_vm0, %v3599_v5 }
  0xca   :  { %v3202_v7 = vpop.f32.mrf.mxu0 }
  0xcb   :  { %v3606_v8 = vadd.f32 %v3202_v7, %v2984_v6 }
  0xcc   :  { %v126_v9 = vpop.f32.mrf.mxu0 }
  0xcd   :  { %v3608_v10 = vadd.f32 %v2984_v6, %v126_v9  ;;  %349 = vrot.lane.b32.xlu1 %v3606_v8, %s3519_s15  ;;  %139 = vrot.lane.b32.xlu0 %v3606_v8, %s3520_s0 }
  0xcf   :  { %3207 = vmatprep.mubr.msk.f32.mxu1 %vm141_vm1, %v3608_v10 }
  0xd1   :  { %347 = vrot.lane.b32.xlu1 %v3608_v10, %s3519_s15  ;;  %137 = vrot.lane.b32.xlu0 %v3608_v10, %s3520_s0 }
  0xd5   :  { %345 = vrot.lane.b32.xlu1 %v3606_v8, %s3521_s16  ;;  %343 = vrot.lane.b32.xlu0 %v3608_v10, %s3521_s16 }
 0x13f   :  { %v140_v11 = vpop.permute.xlu0 %139  ;;  %v350_v12 = vpop.permute.xlu1 %349 }
 0x140   :  { %3203 = vmatprep.subr.msk.mxu1 %vm141_vm1, %v140_v11 }
 0x141   :  { %3204 = vmatpush3.xpose.msk.msra.mxu1 %vm141_vm1, %v140_v11 }
 0x143   :  { %v138_v13 = vpop.permute.xlu0 %137  ;;  %v348_v15 = vpop.permute.xlu1 %347 }
 0x144   :  { %3205 = vmatprep.subr.msk.mxu1 %vm141_vm1, %v138_v13 }
 0x145   :  { %3206 = vmatpush3.xpose.msk.msra.mxu1 %vm141_vm1, %v138_v13 }
 0x146   :  { %3217 = vmatprep.subr.msk.mxu1 %vm141_vm1, %v350_v12 }
 0x147   :  { %v344_v14 = vpop.permute.xlu0 %343  ;;  %v346_v16 = vpop.permute.xlu1 %345 }
 0x148   :  { %3208 = vmatmul.mubr.msk.f32.vlgmr.msra.gmra.mxu1 %vm141_vm1, %v3606_v8 }
 0x149   :  { %3218 = vmatpush3.xpose.msk.msra.mxu1 %vm141_vm1, %v350_v12  ;;  %3221 = vmatprep.mubr.msk.f32.mxu1 %vm141_vm1, %v344_v14 }
 0x14a   :  { %3219 = vmatprep.subr.msk.mxu1 %vm141_vm1, %v348_v15 }
 0x14d   :  { %3220 = vmatpush3.xpose.msk.msra.mxu1 %vm141_vm1, %v348_v15 }
 0x150   :  { %3222 = vmatmul.mubr.msk.f32.vlgmr.msra.gmra.mxu1 %vm141_vm1, %v346_v16  ;;  %v548_v16 = vld [vmem:[%s4052_s1 + $0x30] sm:$0xff] }
 0x208   :  { %v3209_v25 = vpop.f32.mrf.mxu1 }
 0x209   :  { %v226_v28 = vmul.f32 0.35355338, %v3209_v25 }
 0x20a   :  { %v216_v29 = vpop.f32.mrf.mxu1 }
 0x20b   :  { %v225_v31 = vmul.f32 0.35355338, %v216_v29  ;;  %v228_v32 = vadd.f32 %v226_v28, %v3649_v27  ;;  %v342_v29 = vld [vmem:[%s4052_s1 + $0x28] sm:$0xff] }
 0x20c   :  { %3236 = vmatprep.subr.mxu1 %v342_v29 }
 0x20d   :  { %v234_v33 = vsel %vm233_vm4, %v228_v32, -inf  ;;  %v227_v34 = vadd.f32 %v225_v31, %v3651_v30  ;;  %3237 = vmatpush3.msra.mxu1 %v342_v29 }
 0x20e   :  { %235 = vmax.xlane.f32.xlu1 %v234_v33 }
 0x20f   :  { %v230_v35 = vsel %vm229_vm5, %v227_v34, -inf }
 0x210   :  { %v3223_v36 = vpop.f32.mrf.mxu1  ;;  %231 = vmax.xlane.f32.xlu0 %v230_v35 }
 0x211   :  { %v435_v38 = vmul.f32 0.35355338, %v3223_v36 }
 0x212   :  { %v425_v37 = vpop.f32.mrf.mxu1 }
 0x213   :  { %v434_v39 = vmul.f32 0.35355338, %v425_v37  ;;  %v437_v42 = vadd.f32 %v435_v38, %v3649_v27 }
 0x215   :  { %v436_v40 = vadd.f32 %v434_v39, %v3651_v30  ;;  %v441_v43 = vsel %vm233_vm4, %v437_v42, -inf }
 0x217   :  { %v438_v41 = vsel %vm229_vm5, %v436_v40, -inf }
 0x218   :  { %439 = vmax.xlane.f32.xlu0 %v438_v41 }
 0x21c   :  { %442 = vmax.xlane.f32.xlu0 %v441_v43 }
 0x21f   :  { %255 = vrot.lane.b32.xlu1 %v3606_v8, %s3523_s17 }
 0x297   :  { %v236_v44 = vpop.xlane.xlu1 %235 }
 0x298   :  { %v238_v45 = vsub.f32 %v228_v32, %v236_v44 }
 0x299   :  { %v232_v46 = vpop.xlane.xlu0 %231 }
 0x29a   :  { %v241_v47 = vmul.f32 1.442695, %v238_v45  ;;  %v237_v48 = vsub.f32 %v227_v34, %v232_v46 }
 0x29b   :  { %v256_v49 = vpop.permute.xlu1 %255 }
 0x29c   :  { %3455 = vpow2.f32 %v241_v47  ;;  %v239_v50 = vmul.f32 1.442695, %v237_v48  ;;  %3210 = vmatprep.subr.msk.mxu0 %vm264_vm6, %v256_v49 }
 0x29d   :  { %3211 = vmatpush3.msk.msra.mxu0 %vm264_vm6, %v256_v49 }
 0x29e   :  { %3457 = vpow2.f32 %v239_v50 }
 0x2a1   :  { %v440_v51 = vpop.xlane.xlu0 %439 }
 0x2a2   :  { %v444_v61 = vsub.f32 %v436_v40, %v440_v51 }
 0x2a4   :  { %v446_v62 = vmul.f32 1.442695, %v444_v61 }
 0x2a5   :  { %v443_v52 = vpop.xlane.xlu0 %442 }
 0x2a6   :  { %v445_v53 = vsub.f32 %v437_v42, %v443_v52 }
 0x2a8   :  { %v448_v54 = vmul.f32 1.442695, %v445_v53 }
 0x2a9   :  { %v3456_v55 = vpop.eup %3455 }
 0x2aa   :  { %3459 = vpow2.f32 %v448_v54  ;;  %v246_v56 = vsel %vm233_vm4, %v3456_v55, 0.0 }
 0x2ab   :  { %v3458_v57 = vpop.eup %3457  ;;  %247 = vadd.xlane.f32.xlu0 %v246_v56  ;;  %3461 = vpow2.f32 %v446_v62 }
 0x2ac   :  { %v243_v58 = vsel %vm229_vm5, %v3458_v57, 0.0 }
 0x2ad   :  { %244 = vadd.xlane.f32.xlu1 %v243_v58 }
 0x2b7   :  { %v3460_v59 = vpop.eup %3459 }
 0x2b8   :  { %v453_v60 = vsel %vm233_vm4, %v3460_v59, 0.0  ;;  %v3462_v63 = vpop.eup %3461 }
 0x2b9   :  { %454 = vadd.xlane.f32.xlu0 %v453_v60  ;;  %v450_v0 = vsel %vm229_vm5, %v3462_v63, 0.0 }
 0x2be   :  { %462 = vrot.lane.b32.xlu1 %v3606_v8, %s3524_s18 }
 0x2cf   :  { %253 = vrot.lane.b32.xlu0 %v3608_v10, %s3523_s17  ;;  %s3989_s17 = smov 0  }
 0x2d3   :  { %717 = vrot.lane.b32.xlu0 %v3606_v8, %s3525_s19 }
 0x2d7   :  { %711 = vrot.lane.b32.xlu0 %v3608_v10, %s3526_s20 }
 0x2db   :  { %1006 = vrot.lane.b32.xlu0 %v3606_v8, %s3527_s21 }
 0x2df   :  { %1000 = vrot.lane.b32.xlu0 %v3608_v10, %s3528_s22 }
 0x2e2   :  { %451 = vadd.xlane.f32.xlu1 %v450_v0 }
 0x2f3   :  { %460 = vrot.lane.b32.xlu1 %v3608_v10, %s3524_s18 }
 0x2f7   :  { %715 = vrot.lane.b32.xlu1 %v3608_v10, %s3525_s19 }
 0x2fb   :  { %713 = vrot.lane.b32.xlu1 %v3606_v8, %s3526_s20 }
 0x2ff   :  { %1004 = vrot.lane.b32.xlu1 %v3608_v10, %s3527_s21 }
 0x303   :  { %1002 = vrot.lane.b32.xlu1 %v3606_v8, %s3528_s22 }
 0x334   :  { %v248_v1 = vpop.xlane.xlu0 %247 }
 0x335   :  { %3463 = vrcp.f32 %v248_v1 }
 0x336   :  { %v245_v3 = vpop.xlane.xlu1 %244 }
 0x337   :  { %3465 = vrcp.f32 %v245_v3 }
 0x33a   :  { %v463_v13 = vpop.permute.xlu1 %462 }
 0x342   :  { %v455_v4 = vpop.xlane.xlu0 %454  ;;  %v3464_v6 = vpop.eup %3463 }
 0x343   :  { %v252_v12 = vmul.f32 %v3464_v6, %v3456_v55  ;;  %3467 = vrcp.f32 %v455_v4 }
 0x344   :  { %v3466_v7 = vpop.eup %3465 }
 0x345   :  { %v251_v9 = vmul.f32 %v3466_v7, %v3458_v57 }
 0x346   :  { %v254_v11 = vpop.permute.xlu0 %253 }
 0x347   :  { %3212 = vmatprep.subr.mxu0 %v254_v11  ;;  %3214 = vmatprep.mubr.msk.f32.mxu0 %vm229_vm5, %v251_v9 }
 0x348   :  { %3213 = vmatpush3.msra.mxu0 %v254_v11 }
 0x349   :  { %3215 = vmatmul.mubr.msk.f32.vlgmr.msra.gmra.mxu0 %vm229_vm5, %v252_v12  ;;  %3224 = vmatprep.subr.msk.mxu0 %vm264_vm6, %v463_v13 }
 0x34a   :  { %3225 = vmatpush3.msk.msra.mxu0 %vm264_vm6, %v463_v13  ;;  %v718_v28 = vpop.permute.xlu0 %717 }
 0x34e   :  { %v712_v33 = vpop.permute.xlu0 %711 }
 0x350   :  { %v3468_v17 = vpop.eup %3467 }
 0x351   :  { %v459_v26 = vmul.f32 %v3468_v17, %v3460_v59 }
 0x352   :  { %v1007_v37 = vpop.permute.xlu0 %1006 }
 0x356   :  { %v1001_v39 = vpop.permute.xlu0 %1000 }
 0x36b   :  { %v452_v14 = vpop.xlane.xlu1 %451 }
 0x36c   :  { %3469 = vrcp.f32 %v452_v14 }
 0x36f   :  { %v461_v15 = vpop.permute.xlu1 %460 }
 0x370   :  { %3226 = vmatprep.subr.mxu0 %v461_v15 }
 0x371   :  { %3227 = vmatpush3.msra.mxu0 %v461_v15 }
 0x372   :  { %3231 = vmatprep.subr.mxu0 %v548_v16 }
 0x373   :  { %v716_v35 = vpop.permute.xlu1 %715 }
 0x377   :  { %v714_v38 = vpop.permute.xlu1 %713 }
 0x379   :  { %v3470_v23 = vpop.eup %3469 }
 0x37a   :  { %v458_v25 = vmul.f32 %v3470_v23, %v3462_v63 }
 0x37b   :  { %v1005_v40 = vpop.permute.xlu1 %1004 }
 0x37c   :  { %3228 = vmatprep.mubr.msk.f32.mxu0 %vm229_vm5, %v458_v25 }
 0x37d   :  { %3229 = vmatmul.mubr.msk.f32.vlgmr.msra.gmra.mxu0 %vm229_vm5, %v459_v26  ;;  %v916_v26 = vld [vmem:[%s4052_s1 + $0x38] sm:$0xff] }
 0x37e   :  { %3232 = vmatpush3.msra.mxu0 %v548_v16 }
 0x37f   :  { %3241 = vmatprep.subr.msk.mxu0 %vm141_vm1, %v718_v28  ;;  %v1003_v41 = vpop.permute.xlu1 %1002 }
 0x409   :  { %v3216_v31 = vpop.f32.mrf.mxu0 }
 0x40b   :  { %v333_v32 = vpop.f32.mrf.mxu0 }
 0x40c   :  { %3238 = vmatprep.mubr.msk.f32.mxu1 %vm141_vm1, %v333_v32 }
 0x40d   :  { %3239 = vmatmul.mubr.msk.f32.vlgmr.msra.gmra.mxu1 %vm141_vm1, %v3216_v31 }
 0x43d   :  { %v3230_v34 = vpop.f32.mrf.mxu0 }
 0x43f   :  { %v539_v36 = vpop.f32.mrf.mxu0 }
 0x440   :  { %3233 = vmatprep.mubr.msk.f32.mxu0 %vm141_vm1, %v539_v36 }
 0x441   :  { %3234 = vmatmul.mubr.msk.f32.vlgmr.msra.gmra.mxu0 %vm141_vm1, %v3230_v34 }
 0x442   :  { %3242 = vmatpush3.xpose.msk.msra.mxu0 %vm141_vm1, %v718_v28  ;;  %3245 = vmatprep.mubr.msk.f32.mxu0 %vm141_vm1, %v712_v33 }
 0x443   :  { %3243 = vmatprep.subr.msk.mxu0 %vm141_vm1, %v716_v35 }
 0x446   :  { %3244 = vmatpush3.xpose.msk.msra.mxu0 %vm141_vm1, %v716_v35 }
 0x447   :  { %3260 = vmatprep.subr.msk.mxu0 %vm141_vm1, %v1007_v37 }
 0x449   :  { %3246 = vmatmul.mubr.msk.f32.vlgmr.msra.gmra.mxu0 %vm141_vm1, %v714_v38 }
 0x44a   :  { %3261 = vmatpush3.xpose.msk.msra.mxu0 %vm141_vm1, %v1007_v37  ;;  %3264 = vmatprep.mubr.msk.f32.mxu0 %vm141_vm1, %v1001_v39 }
 0x44b   :  { %3262 = vmatprep.subr.msk.mxu0 %vm141_vm1, %v1005_v40 }
 0x44e   :  { %3263 = vmatpush3.xpose.msk.msra.mxu0 %vm141_vm1, %v1005_v40 }
 0x451   :  { %3265 = vmatmul.mubr.msk.f32.vlgmr.msra.gmra.mxu0 %vm141_vm1, %v1003_v41 }
 0x4cd   :  { %v3240_v42 = vpop.f32.mrf.mxu1 }
 0x4cf   :  { %v702_v38 = vpop.f32.mrf.mxu1 }
 0x501   :  { %v3235_v43 = vpop.f32.mrf.mxu0 }
 0x502   :  { %v3709_v44 = vadd.f32 %v3240_v42, %v3235_v43 }
 0x503   :  { %v3711_v45 = vpop.f32.mrf.mxu0 }
 0x509   :  { %v3247_v46 = vpop.f32.mrf.mxu0 }
 0x50a   :  { %v803_v47 = vmul.f32 0.35355338, %v3247_v46 }
 0x50b   :  { %v793_v48 = vpop.f32.mrf.mxu0 }
 0x50c   :  { %v802_v49 = vmul.f32 0.35355338, %v793_v48  ;;  %v805_v50 = vadd.f32 %v803_v47, %v3649_v27  ;;  %v1205_v48 = vld [vmem:[%s4052_s1 + $0x40] sm:$0xff] }
 0x50e   :  { %v809_v51 = vsel %vm233_vm4, %v805_v50, -inf  ;;  %v804_v52 = vadd.f32 %v802_v49, %v3651_v30 }
 0x50f   :  { %810 = vmax.xlane.f32.xlu1 %v809_v51 }
 0x510   :  { %v806_v53 = vsel %vm229_vm5, %v804_v52, -inf }
 0x511   :  { %807 = vmax.xlane.f32.xlu0 %v806_v53  ;;  %v3266_v54 = vpop.f32.mrf.mxu0 }
 0x512   :  { %v1092_v12 = vmul.f32 0.35355338, %v3266_v54 }
 0x513   :  { %v1082_v55 = vpop.f32.mrf.mxu0 }
 0x514   :  { %v1091_v56 = vmul.f32 0.35355338, %v1082_v55  ;;  %v1094_v15 = vadd.f32 %v1092_v12, %v3649_v27  ;;  %v1340_v12 = vld [vmem:[%s4052_s1 + $0x60] sm:$0xff] }
 0x515   :  { %3279 = vmatprep.subr.mxu0 %v1340_v12 }
 0x516   :  { %v1093_v57 = vadd.f32 %v1091_v56, %v3651_v30  ;;  %v1098_v16 = vsel %vm233_vm4, %v1094_v15, -inf  ;;  %3280 = vmatpush3.msra.mxu0 %v1340_v12  ;;  %v1571_v12 = vld [vmem:[%s4056_s2 + $0x38] sm:$0xff] }
 0x518   :  { %v1095_v58 = vsel %vm229_vm5, %v1093_v57, -inf }
 0x520   :  { %830 = vrot.lane.b32.xlu1 %v3606_v8, %s3529_s27 }
 0x544   :  { %1096 = vmax.xlane.f32.xlu1 %v1095_v58 }
 0x598   :  { %v811_v59 = vpop.xlane.xlu1 %810 }
 0x599   :  { %v813_v60 = vsub.f32 %v805_v50, %v811_v59  ;;  %v703_v50 = vadd.f32 %v702_v38, %v3711_v45  ;;  %v3023_v59 = vld [vmem:[%s4052_s1 + $0x21] ss:$0 sm:$0xff]  ;;  %v3025_v38 = vld [vmem:[%s4052_s1 + $0x25] ss:$0 sm:$0xff] }
 0x59a   :  { %v808_v61 = vpop.xlane.xlu0 %807 }
 0x59b   :  { %v816_v62 = vmul.f32 1.442695, %v813_v60  ;;  %v812_v63 = vsub.f32 %v804_v52, %v808_v61 }
 0x59c   :  { %v831_v0 = vpop.permute.xlu1 %830 }
 0x59d   :  { %3471 = vpow2.f32 %v816_v62  ;;  %v814_v1 = vmul.f32 1.442695, %v812_v63  ;;  %3248 = vmatprep.subr.msk.mxu1 %vm264_vm6, %v831_v0 }
 0x59e   :  { %3249 = vmatpush3.msk.msra.mxu1 %vm264_vm6, %v831_v0 }
 0x59f   :  { %3473 = vpow2.f32 %v814_v1 }
 0x5aa   :  { %v3472_v3 = vpop.eup %3471 }
 0x5ab   :  { %v821_v4 = vsel %vm233_vm4, %v3472_v3, 0.0 }
 0x5ac   :  { %v3474_v30 = vpop.eup %3473  ;;  %822 = vadd.xlane.f32.xlu0 %v821_v4 }
 0x5ad   :  { %v818_v6 = vsel %vm229_vm5, %v3474_v30, 0.0 }
 0x5b0   :  { %819 = vadd.xlane.f32.xlu0 %v818_v6 }
 0x5c6   :  { %828 = vrot.lane.b32.xlu0 %v3608_v10, %s3529_s27 }
 0x5cd   :  { %v1097_v7 = vpop.xlane.xlu1 %1096 }
 0x5ce   :  { %v1101_v9 = vsub.f32 %v1093_v57, %v1097_v7 }
 0x5d0   :  { %v1103_v11 = vmul.f32 1.442695, %v1101_v9 }
 0x5d2   :  { %3475 = vpow2.f32 %v1103_v11 }
 0x5df   :  { %v3476_v13 = vpop.eup %3475 }
 0x5e0   :  { %v1107_v14 = vsel %vm229_vm5, %v3476_v13, 0.0 }
 0x5e1   :  { %1108 = vadd.xlane.f32.xlu1 %v1107_v14  ;;  %v1338_v14 = vld [vmem:[%s4052_s1 + $0x50] sm:$0xff] }
 0x5e5   :  { %1099 = vmax.xlane.f32.xlu0 %v1098_v16  ;;  %v1348_v16 = vld [vmem:[%s4052_s1 + $0xa0] sm:$0xff] }
 0x5f2   :  { %1119 = vrot.lane.b32.xlu1 %v3606_v8, %s3530_s28 }
 0x635   :  { %v823_v17 = vpop.xlane.xlu0 %822 }
 0x636   :  { %3477 = vrcp.f32 %v823_v17  ;;  %v1347_v17 = vld [vmem:[%s4052_s1 + $0x98] sm:$0xff] }
 0x639   :  { %v820_v23 = vpop.xlane.xlu0 %819 }
 0x63a   :  { %3479 = vrcp.f32 %v820_v23  ;;  %v1346_v23 = vld [vmem:[%s4052_s1 + $0x90] sm:$0xff] }
 0x63d   :  { %v829_v25 = vpop.permute.xlu0 %828 }
 0x63e   :  { %3250 = vmatprep.subr.mxu1 %v829_v25 }
 0x63f   :  { %3251 = vmatpush3.msra.mxu1 %v829_v25  ;;  %v1345_v25 = vld [vmem:[%s4052_s1 + $0x88] sm:$0xff] }
 0x640   :  { %3255 = vmatprep.subr.mxu1 %v916_v26 }
 0x643   :  { %v3478_v27 = vpop.eup %3477 }
 0x644   :  { %v827_v31 = vmul.f32 %v3478_v27, %v3472_v3 }
 0x647   :  { %v3480_v28 = vpop.eup %3479 }
 0x648   :  { %v826_v29 = vmul.f32 %v3480_v28, %v3474_v30 }
 0x64a   :  { %3252 = vmatprep.mubr.msk.f32.mxu1 %vm229_vm5, %v826_v29 }
 0x64b   :  { %3253 = vmatmul.mubr.msk.f32.vlgmr.msra.gmra.mxu1 %vm229_vm5, %v827_v31 }
 0x64c   :  { %3256 = vmatpush3.msra.mxu1 %v916_v26 }
 0x66a   :  { %v1109_v8 = vpop.xlane.xlu1 %1108 }
 0x66e   :  { %v1120_v32 = vpop.permute.xlu1 %1119  ;;  %v1100_v33 = vpop.xlane.xlu0 %1099 }
 0x66f   :  { %v1102_v34 = vsub.f32 %v1094_v15, %v1100_v33  ;;  %3267 = vmatprep.subr.msk.mxu1 %vm264_vm6, %v1120_v32  ;;  %v1337_v15 = vld [vmem:[%s4052_s1 + $0x48] sm:$0xff]  ;;  %v3024_v33 = vld [vmem:[%s4052_s1 + $0x24] ss:$0 sm:$0xff] }
 0x671   :  { %v1105_v35 = vmul.f32 1.442695, %v1102_v34 }
 0x673   :  { %3481 = vpow2.f32 %v1105_v35 }
 0x674   :  { %3483 = vrcp.f32 %v1109_v8 }
 0x680   :  { %v3482_v36 = vpop.eup %3481 }
 0x681   :  { %v1110_v37 = vsel %vm233_vm4, %v3482_v36, 0.0  ;;  %v3484_v39 = vpop.eup %3483 }
 0x682   :  { %1111 = vadd.xlane.f32.xlu0 %v1110_v37  ;;  %v1115_v43 = vmul.f32 %v3484_v39, %v3476_v13  ;;  %v1339_v13 = vld [vmem:[%s4052_s1 + $0x58] sm:$0xff] }
 0x683   :  { %3281 = vmatprep.subr.mxu0 %v1339_v13 }
 0x684   :  { %3282 = vmatpush3.msra.mxu0 %v1339_v13 }
 0x685   :  { %3283 = vmatprep.subr.mxu0 %v1338_v14 }
 0x686   :  { %3284 = vmatpush3.msra.mxu0 %v1338_v14 }
 0x687   :  { %3285 = vmatprep.subr.mxu0 %v1337_v15 }
 0x688   :  { %3286 = vmatpush3.msra.mxu0 %v1337_v15 }
 0x698   :  { %1117 = vrot.lane.b32.xlu0 %v3608_v10, %s3530_s28 }
 0x70b   :  { %v3254_v40 = vpop.f32.mrf.mxu1  ;;  %v1112_v41 = vpop.xlane.xlu0 %1111 }
 0x70c   :  { %3485 = vrcp.f32 %v1112_v41 }
 0x70d   :  { %v907_v42 = vpop.f32.mrf.mxu1 }
 0x70e   :  { %3257 = vmatprep.mubr.msk.f32.mxu1 %vm141_vm1, %v907_v42  ;;  %v1344_v42 = vld [vmem:[%s4052_s1 + $0x80] sm:$0xff] }
 0x70f   :  { %3258 = vmatmul.mubr.msk.f32.vlgmr.msra.gmra.mxu1 %vm141_vm1, %v3254_v40  ;;  %v1118_v46 = vpop.permute.xlu0 %1117 }
 0x710   :  { %3268 = vmatpush3.msk.msra.mxu1 %vm264_vm6, %v1120_v32  ;;  %3271 = vmatprep.mubr.msk.f32.mxu1 %vm229_vm5, %v1115_v43  ;;  %v1343_v43 = vld [vmem:[%s4052_s1 + $0x78] sm:$0xff] }
 0x711   :  { %3269 = vmatprep.subr.mxu1 %v1118_v46 }
 0x712   :  { %3270 = vmatpush3.msra.mxu1 %v1118_v46  ;;  %v1342_v46 = vld [vmem:[%s4052_s1 + $0x70] sm:$0xff] }
 0x713   :  { %3274 = vmatprep.subr.mxu1 %v1205_v48 }
 0x719   :  { %v3486_v10 = vpop.eup %3485 }
 0x71a   :  { %v1116_v47 = vmul.f32 %v3486_v10, %v3482_v36  ;;  %v1341_v10 = vld [vmem:[%s4052_s1 + $0x68] sm:$0xff] }
 0x71c   :  { %3272 = vmatmul.mubr.msk.f32.vlgmr.msra.gmra.mxu1 %vm229_vm5, %v1116_v47  ;;  %v3026_v47 = vld [vmem:[%s4052_s1 + $0x22] ss:$0 sm:$0xff] }
 0x71d   :  { %3275 = vmatpush3.msra.mxu1 %v1205_v48 }
 0x71e   :  { %3290 = vmatprep.subr.mxu1 %v1348_v16 }
 0x7cf   :  { %v3259_v49 = vpop.f32.mrf.mxu1 }
 0x7d0   :  { %v999_v51 = vadd.f32 %v3259_v49, %v3709_v44 }
 0x7d1   :  { %v989_v52 = vpop.f32.mrf.mxu1 }
 0x7d2   :  { %v998_v53 = vadd.f32 %v989_v52, %v703_v50 }
 0x7dc   :  { %v3273_v54 = vpop.f32.mrf.mxu1 }
 0x7de   :  { %v1196_v55 = vpop.f32.mrf.mxu1 }
 0x7df   :  { %3276 = vmatprep.mubr.msk.f32.mxu1 %vm141_vm1, %v1196_v55 }
 0x7e0   :  { %3277 = vmatmul.mubr.msk.f32.vlgmr.msra.gmra.mxu1 %vm141_vm1, %v3273_v54  ;;  %v3029_v54 = vld [vmem:[%s4052_s1 + $0x23] ss:$0 sm:$0xff] }
 0x7e1   :  { %3291 = vmatpush3.msra.mxu1 %v1348_v16 }
 0x7e2   :  { %3292 = vmatprep.subr.mxu1 %v1347_v17 }
 0x7e3   :  { %3293 = vmatpush3.msra.mxu1 %v1347_v17 }
 0x7e4   :  { %3294 = vmatprep.subr.mxu1 %v1346_v23 }
 0x7e5   :  { %3295 = vmatpush3.msra.mxu1 %v1346_v23 }
 0x7e6   :  { %3296 = vmatprep.subr.mxu1 %v1345_v25 }
 0x7e7   :  { %3297 = vmatpush3.msra.mxu1 %v1345_v25 }
 0x7e8   :  { %3298 = vmatprep.subr.mxu1 %v1344_v42 }
 0x7e9   :  { %3299 = vmatpush3.msra.mxu1 %v1344_v42  ;;  %v3533_v42 = vmov 0  }
 0x7ea   :  { %3300 = vmatprep.subr.mxu1 %v1343_v43 }
 0x7eb   :  { %3301 = vmatpush3.msra.mxu1 %v1343_v43 }
 0x7ec   :  { %3302 = vmatprep.subr.mxu1 %v1342_v46 }
 0x7ed   :  { %3303 = vmatpush3.msra.mxu1 %v1342_v46 }
 0x7ee   :  { %3304 = vmatprep.subr.mxu1 %v1341_v10 }
 0x7ef   :  { %3305 = vmatpush3.msra.mxu1 %v1341_v10 }
 0x8a0   :  { %v3278_v56 = vpop.f32.mrf.mxu1 }
 0x8a1   :  { %v1288_v57 = vadd.f32 %v3278_v56, %v999_v51 }
 0x8a2   :  { %v1278_v58 = vpop.f32.mrf.mxu1 }
 0x8a3   :  { %v1290_v60 = vadd.f32 %v1288_v57, %v3599_v5  ;;  %v1287_v45 = vadd.f32 %v1278_v58, %v998_v53 }
 0x8a5   :  { %v1289_v44 = vadd.f32 %v1287_v45, %v3586_v2  ;;  %v1296_v61 = vadd.f32 %v3023_v59, %v1290_v60 }
 0x8a7   :  { %v1301_v62 = vsel %vm1300_vm7, %v1296_v61, 0.0  ;;  %v1295_v63 = vadd.f32 %v3023_v59, %v1289_v44 }
 0x8a8   :  { %1302 = vadd.xlane.f32.xlu0 %v1301_v62 }
 0x8a9   :  { %v1297_v0 = vsel %vm53_vm0, %v1295_v63, 0.0 }
 0x8aa   :  { %1298 = vadd.xlane.f32.xlu1 %v1297_v0 }
 0x931   :  { %v1303_v1 = vpop.xlane.xlu0 %1302 }
 0x932   :  { %v1306_v3 = vmul.f32 0.03125, %v1303_v1 }
 0x933   :  { %v1299_v4 = vpop.xlane.xlu1 %1298 }
 0x934   :  { %v1308_v30 = vsub.f32 %v1296_v61, %v1306_v3  ;;  %v1305_v6 = vmul.f32 0.03125, %v1299_v4 }
 0x936   :  { %v1307_v7 = vsub.f32 %v1295_v63, %v1305_v6  ;;  %v1310_v9 = vmul.f32 %v1308_v30, %v1308_v30 }
 0x938   :  { %v1314_v5 = vsel %vm1300_vm7, %v1310_v9, 0.0  ;;  %v1309_v11 = vmul.f32 %v1307_v7, %v1307_v7  ;;  %v1567_v9 = vld [vmem:[%s4056_s2 + $0x18] sm:$0xff] }
 0x939   :  { %1315 = vadd.xlane.f32.xlu0 %v1314_v5  ;;  %3309 = vmatprep.subr.mxu0 %v1567_v9  ;;  %v1566_v5 = vld [vmem:[%s4056_s2 + $0x10] sm:$0xff] }
 0x93a   :  { %v1311_v2 = vsel %vm53_vm0, %v1309_v11, 0.0  ;;  %v1565_v11 = vld [vmem:[%s4056_s2 + $0x8] sm:$0xff] }
 0x93b   :  { %1312 = vadd.xlane.f32.xlu1 %v1311_v2  ;;  %v1564_v2 = vld [vmem:[%s4056_s2] sm:$0xff] }
 0x9c2   :  { %v1316_v26 = vpop.xlane.xlu0 %1315 }
 0x9c3   :  { %v1318_v27 = vmul.f32 0.03125, %v1316_v26  ;;  %v3032_v26 = vld [vmem:[%s4052_s1 + $0x26] ss:$0 sm:$0xff] }
 0x9c4   :  { %v1313_v28 = vpop.xlane.xlu1 %1312 }
 0x9c5   :  { %v1320_v29 = vadd.f32 1e-05, %v1318_v27  ;;  %v1317_v31 = vmul.f32 0.03125, %v1313_v28 }
 0x9c7   :  { %3487 = vrsqrt.f32 %v1320_v29  ;;  %v1319_v8 = vadd.f32 1e-05, %v1317_v31  ;;  %v3033_v29 = vld [vmem:[%s4052_s1 + $0x27] ss:$0 sm:$0xff] }
 0x9c9   :  { %3489 = vrsqrt.f32 %v1319_v8 }
 0x9d4   :  { %v3488_v32 = vpop.eup %3487 }
 0x9d5   :  { %v1324_v34 = vmul.f32 %v3488_v32, %v1308_v30 }
 0x9d6   :  { %v3490_v35 = vpop.eup %3489 }
 0x9d7   :  { %v1323_v36 = vmul.f32 %v3490_v35, %v1307_v7  ;;  %v1330_v37 = vmul.f32 %v3024_v33, %v1324_v34  ;;  %v1570_v35 = vld [vmem:[%s4056_s2 + $0x30] sm:$0xff] }
 0x9d9   :  { %v1329_v39 = vmul.f32 %v3024_v33, %v1323_v36  ;;  %v1336_v41 = vadd.f32 %v3025_v38, %v1330_v37  ;;  %v1569_v36 = vld [vmem:[%s4056_s2 + $0x28] sm:$0xff]  ;;  %v1568_v37 = vld [vmem:[%s4056_s2 + $0x20] sm:$0xff] }
 0x9db   :  { %v1335_v40 = vadd.f32 %v3025_v38, %v1329_v39  ;;  %v3531_v38 = vmov 0.0   ;;  %v1735_v39 = vshra.s32 %v3635_v20, 1 }
 0x9dc   :  { %3331 = vmatprep.subr.mxu1 %v3531_v38 }
 0x9dd   :  { %3287 = vmatprep.mubr.msk.f32.mxu0 %vm53_vm0, %v1335_v40  ;;  %vm1739_vm10 = vcmp.ge.s32.totalorder %v1735_v39, 3  ;;  %vm1745_vm11 = vcmp.ge.s32.totalorder %v1735_v39, 6  ;;  %vm1754_vm12 = vcmp.ge.s32.totalorder %v1735_v39, 9 }
 0x9de   :  { %3288 = vmatmul.mubr.msk.f32.vlgmr.msra.gmra.mxu0 %vm53_vm0, %v1336_v41  ;;  %v1742_v43 = vsel %vm1739_vm10, 1, %v3533_v42  ;;  %v1748_v46 = vsel %vm1745_vm11, 1, %v3533_v42 }
 0x9df   :  { %3310 = vmatpush3.msra.mxu0 %v1567_v9 }
 0x9e0   :  { %3311 = vmatprep.subr.mxu0 %v1566_v5 }
 0x9e1   :  { %3312 = vmatpush3.msra.mxu0 %v1566_v5 }
 0x9e2   :  { %3313 = vmatprep.subr.mxu0 %v1565_v11 }
 0x9e3   :  { %3314 = vmatpush3.msra.mxu0 %v1565_v11 }
 0x9e4   :  { %3315 = vmatprep.subr.mxu0 %v1564_v2 }
 0x9e5   :  { %3316 = vmatpush3.msra.mxu0 %v1564_v2  ;;  %v2112_v2 = vand.u32 3, %v3635_v20 }
 0x9e6   :  { %3320 = vmatprep.subr.mxu0 %v1571_v12 }
 0xa9e   :  { %v3289_v48 = vpop.f32.mrf.mxu0 }
 0xa9f   :  { %v1431_v49 = vadd.f32 %v3289_v48, %v3026_v47  ;;  %v1757_v48 = vsel %vm1754_vm12, 1, %v3533_v42 }
 0xaa0   :  { %v1425_v50 = vpop.f32.mrf.mxu0 }
 0xaa1   :  { %v1426_v51 = vadd.f32 %v3026_v47, %v1425_v50  ;;  %v1435_v53 = vmax.f32 %v1431_v49, 0.0  ;;  %v1751_v47 = vadd.s32 %v1748_v46, %v1742_v43 }
 0xaa3   :  { %v1434_v52 = vmax.f32 %v1426_v51, 0.0  ;;  %v1760_v51 = vadd.s32 %v1757_v48, %v1751_v47  ;;  %v1575_v47 = vld [vmem:[%s4056_s2 + $0x58] sm:$0xff]  ;;  %v1574_v48 = vld [vmem:[%s4056_s2 + $0x50] sm:$0xff] }
 0xaa5   :  { %3306 = vmatprep.mubr.msk.f32.mxu1 %vm1440_vm8, %v1434_v52 }
 0xaa6   :  { %3307 = vmatmul.mubr.msk.f32.vlgmr.msra.gmra.mxu1 %vm1440_vm8, %v1435_v53 }
 0xaa7   :  { %3335 = vmatprep.mubr.msk.f32.mxu1 %vm3532_vm9, %v3531_v38 }
 0xb66   :  { %v3308_v55 = vpop.f32.mrf.mxu1 }
 0xb67   :  { %v1519_v56 = vadd.f32 %v3308_v55, %v3029_v54  ;;  %v1763_v55 = vmul.u32 3, %v1760_v51 }
 0xb68   :  { %v1513_v57 = vpop.f32.mrf.mxu1 }
 0xb69   :  { %v1514_v58 = vadd.f32 %v3029_v54, %v1513_v57  ;;  %v1523_v59 = vadd.f32 %v1519_v56, %v1336_v41  ;;  %v3878_v41 = vadd.s32 16, %v3635_v20 }
 0xb6b   :  { %v1527_v60 = vsel %vm1300_vm7, %v1523_v59, 0.0  ;;  %v1522_v45 = vadd.f32 %v1514_v58, %v1335_v40  ;;  %v1736_v40 = vshra.s32 %v3638_v21, 1  ;;  %v1737_v10 = vshra.s32 %v3878_v41, 1 }
 0xb6c   :  { %1528 = vadd.xlane.f32.xlu0 %v1527_v60 }
 0xb6d   :  { %v1524_v44 = vsel %vm53_vm0, %v1522_v45, 0.0  ;;  %vm1740_vm13 = vcmp.ge.s32.totalorder %v1736_v40, 3  ;;  %vm1746_vm14 = vcmp.ge.s32.totalorder %v1736_v40, 6  ;;  %vm1755_vm15 = vcmp.ge.s32.totalorder %v1736_v40, 9 }
 0xb6e   :  { %1525 = vadd.xlane.f32.xlu1 %v1524_v44  ;;  %v1743_v49 = vsel %vm1740_vm13, 1, %v3533_v42  ;;  %v1749_v50 = vsel %vm1746_vm14, 1, %v3533_v42  ;;  %vm1741_vm2 = vcmp.ge.s32.totalorder %v1737_v10, 3  ;;  %vm1747_vm3 = vcmp.ge.s32.totalorder %v1737_v10, 6 }
 0xb6f   :  { %v1752_v21 = vadd.s32 %v1749_v50, %v1743_v49  ;;  %v1758_v52 = vsel %vm1755_vm15, 1, %v3533_v42  ;;  %v1744_v53 = vsel %vm1741_vm2, 1, %v3533_v42  ;;  %v1750_v54 = vsel %vm1747_vm3, 1, %v3533_v42  ;;  %v1573_v49 = vld [vmem:[%s4056_s2 + $0x48] sm:$0xff]  ;;  %v1572_v50 = vld [vmem:[%s4056_s2 + $0x40] sm:$0xff] }
 0xb70   :  { %vm1756_vm4 = vcmp.ge.s32.totalorder %v1737_v10, 9  ;;  %v1753_v57 = vadd.s32 %v1750_v54, %v1744_v53  ;;  %v3052_v54 = vld [vmem:[%s4056_s2 + $0x60] ss:$0 sm:$0xff] }
 0xb71   :  { %v1761_v56 = vadd.s32 %v1758_v52, %v1752_v21  ;;  %v1759_v58 = vsel %vm1756_vm4, 1, %v3533_v42 }
 0xb72   :  { %v1762_v60 = vadd.s32 %v1759_v58, %v1753_v57 }
 0xb74   :  { %v1780_v9 = vadd.s32 1, %v1762_v60 }
 0xbf5   :  { %v1529_v61 = vpop.xlane.xlu0 %1528 }
 0xbf6   :  { %v1531_v62 = vmul.f32 0.03125, %v1529_v61  ;;  %v1765_v61 = vmul.u32 3, %v1762_v60 }
 0xbf7   :  { %v1526_v63 = vpop.xlane.xlu1 %1525 }
 0xbf8   :  { %v1533_v0 = vsub.f32 %v1523_v59, %v1531_v62  ;;  %v1530_v1 = vmul.f32 0.03125, %v1526_v63  ;;  %v1766_v59 = vsub.s32 %v1735_v39, %v1763_v55  ;;  %v1778_v62 = vadd.s32 1, %v1760_v51 }
 0xbfa   :  { %v1532_v3 = vsub.f32 %v1522_v45, %v1530_v1  ;;  %v1535_v4 = vmul.f32 %v1533_v0, %v1533_v0  ;;  %v1764_v45 = vmul.u32 3, %v1761_v56  ;;  %vm1769_vm8 = vcmp.ge.s32.totalorder %v1766_v59, %v1760_v51 }
 0xbfb   :  { %v1772_v63 = vsel %vm1769_vm8, 1, %v3533_v42  ;;  %v1779_v1 = vadd.s32 1, %v1761_v56 }
 0xbfc   :  { %v1539_v30 = vsel %vm1300_vm7, %v1535_v4, 0.0  ;;  %v1534_v6 = vmul.f32 %v1532_v3, %v1532_v3  ;;  %v1767_v44 = vsub.s32 %v1736_v40, %v1764_v45  ;;  %v1781_v4 = vmul.u32 2, %v1778_v62 }
 0xbfd   :  { %1540 = vadd.xlane.f32.xlu0 %v1539_v30 }
 0xbfe   :  { %v1536_v7 = vsel %vm53_vm0, %v1534_v6, 0.0  ;;  %vm1770_vm10 = vcmp.ge.s32.totalorder %v1767_v44, %v1761_v56  ;;  %v1782_v6 = vmul.u32 2, %v1779_v1  ;;  %v1784_v5 = vadd.s32 %v1781_v4, %v3645_v24 }
 0xbff   :  { %1537 = vadd.xlane.f32.xlu1 %v1536_v7  ;;  %v1773_v30 = vsel %vm1770_vm10, 1, %v3533_v42 }
 0xc00   :  { %v1776_v11 = vadd.s32 %v1773_v30, %v1767_v44  ;;  %vm1787_vm12 = vcmp.eq.s32.totalorder %v3630_v18, %v1784_v5 }
 0xc86   :  { %v1541_v13 = vpop.xlane.xlu0 %1540 }
 0xc87   :  { %v1543_v14 = vmul.f32 0.03125, %v1541_v13  ;;  %v1785_v13 = vadd.s32 %v1782_v6, %v3641_v22 }
 0xc88   :  { %v1538_v15 = vpop.xlane.xlu1 %1537 }
 0xc89   :  { %v1545_v16 = vadd.f32 1e-05, %v1543_v14  ;;  %v1542_v17 = vmul.f32 0.03125, %v1538_v15  ;;  %v1738_v15 = vand.u32 1, %v3878_v41  ;;  %vm1788_vm13 = vcmp.eq.s32.totalorder %v3630_v18, %v1785_v13 }
 0xc8b   :  { %3491 = vrsqrt.f32 %v1545_v16  ;;  %v1544_v23 = vadd.f32 1e-05, %v1542_v17  ;;  %v1783_v16 = vmul.u32 2, %v1780_v9  ;;  %v1797_v17 = vadd.s32 1, %v1776_v11 }
 0xc8d   :  { %3493 = vrsqrt.f32 %v1544_v23  ;;  %v2113_v23 = vadd.s32 1, %v2112_v2 }
 0xc98   :  { %v3492_v25 = vpop.eup %3491 }
 0xc99   :  { %v1549_v27 = vmul.f32 %v3492_v25, %v1533_v0  ;;  %v1768_v0 = vsub.s32 %v1737_v10, %v1765_v61 }
 0xc9a   :  { %v3494_v28 = vpop.eup %3493 }
 0xc9b   :  { %v1548_v31 = vmul.f32 %v3494_v28, %v1532_v3  ;;  %v1555_v8 = vmul.f32 %v3032_v26, %v1549_v27  ;;  %v1775_v3 = vadd.s32 %v1772_v63, %v1766_v59  ;;  %vm1771_vm11 = vcmp.ge.s32.totalorder %v1768_v0, %v1762_v60 }
 0xc9c   :  { %v3038_v27 = vsel %vm1787_vm12, 1.0, %v3531_v38 }
 0xc9d   :  { %v1554_v32 = vmul.f32 %v3032_v26, %v1548_v31  ;;  %v3833_v33 = vadd.f32 %v3033_v29, %v1555_v8  ;;  %v1796_v7 = vadd.s32 1, %v1775_v3  ;;  %v1800_v8 = vmul.u32 2, %v1797_v17  ;;  %v2102_v17 = vld [vmem:[%s4059_s3] sm:$0xff] }
 0xc9f   :  { %v3835_v34 = vadd.f32 %v3033_v29, %v1554_v32  ;;  %1563 = vst.msk [vmem:[%s4057_s5 + $0x8] sm:$0x3] %vm1300_vm7, %v3833_v33  ;;  %v1799_v14 = vmul.u32 2, %v1796_v7  ;;  %v1786_v29 = vadd.s32 %v1783_v16, %v1738_v15  ;;  %v2111_v32 = vshra.s32 %v3635_v20, 2 }
 0xca1   :  { %3317 = vmatprep.mubr.msk.f32.mxu0 %vm53_vm0, %v3835_v34  ;;  %1562 = vst.msk [vmem:[%s4057_s5] sm:$0xff] %vm53_vm0, %v3835_v34  ;;  %v1802_v28 = vadd.s32 %v1799_v14, %v3645_v24  ;;  %v3039_v24 = vsel %vm1788_vm13, 1.0, %v3531_v38  ;;  %vm1789_vm15 = vcmp.eq.s32.totalorder %v3630_v18, %v1786_v29 }
 0xca2   :  { %2101 = vst.msk [vmem:[%s4058_s6] sm:$0x3] %vm1300_vm7, %v3835_v34  ;;  %3318 = vmatmul.mubr.msk.f32.vlgmr.msra.gmra.mxu0 %vm53_vm0, %v3833_v33 }
 0xca3   :  { %3321 = vmatpush3.msra.mxu0 %v1571_v12  ;;  %3328 = vmatprep.mubr.msk.f32.mxu0 %vm53_vm0, %v3835_v34  ;;  %v1774_v12 = vsel %vm1771_vm11, 1, %v3533_v42  ;;  %vm1805_vm14 = vcmp.eq.s32.totalorder %v3630_v18, %v1802_v28  ;;  %v3040_v42 = vsel %vm1789_vm15, 1.0, %v3531_v38  ;;  %v2103_v28 = vld [vmem:[%s4059_s3 + $0x8] sm:$0xff] }
 0xca4   :  { %3322 = vmatprep.subr.mxu0 %v1570_v35  ;;  %v1777_v25 = vadd.s32 %v1774_v12, %v1768_v0 }
 0xca5   :  { %3323 = vmatpush3.msra.mxu0 %v1570_v35  ;;  %v2114_v35 = vmul.u32 2, %v2113_v23 }
 0xca6   :  { %3324 = vmatprep.subr.mxu0 %v1569_v36 }
 0xca7   :  { %3325 = vmatpush3.msra.mxu0 %v1569_v36  ;;  %v1798_v36 = vadd.s32 1, %v1777_v25  ;;  %v2115_v39 = vadd.s32 %v2114_v35, %v2111_v32  ;;  %v2104_v35 = vld [vmem:[%s4059_s3 + $0x10] sm:$0xff] }
 0xca8   :  { %3326 = vmatprep.subr.mxu0 %v1568_v37 }
 0xca9   :  { %3327 = vmatpush3.msra.mxu0 %v1568_v37  ;;  %v1803_v37 = vadd.s32 %v1800_v8, %v3641_v22  ;;  %v1801_v40 = vmul.u32 2, %v1798_v36  ;;  %vm2116_vm3 = vcmp.eq.s32.totalorder %v3630_v18, %v2115_v39 }
 0xcaa   :  { %3329 = vmatmul.mubr.msk.f32.vlgmr.msra.gmra.mxu0 %vm53_vm0, %v3833_v33  ;;  %3344 = vmatprep.subr.mxu0 %v3531_v38  ;;  %v3057_v46 = vsel %vm2116_vm3, 1.0, %v3531_v38 }
 0xcab   :  { %3348 = vmatprep.mubr.msk.f32.mxu0 %vm3532_vm9, %v3531_v38  ;;  %vm1806_vm2 = vcmp.eq.s32.totalorder %v3630_v18, %v1803_v37  ;;  %v1804_v22 = vadd.s32 %v1801_v40, %v1738_v15  ;;  %v3053_v15 = vld [vmem:[%s4056_s2 + $0x61] ss:$0 sm:$0xff] }
 0xcad   :  { %vm1807_vm4 = vcmp.eq.s32.totalorder %v3630_v18, %v1804_v22 }
 0xcae   :  { %v3043_v10 = vsel %vm1807_vm4, 1.0, %v3531_v38 }
 0xd62   :  { %v3319_v26 = vpop.f32.mrf.mxu0 }
 0xd63   :  { %3345 = vmatpush3.msk.msra.mxu0 %vm264_vm6, %v3319_v26 }
 0xd64   :  { %v1650_v31 = vpop.f32.mrf.mxu0  ;;  %3346 = vmatprep.subr.mxu0 %v3531_v38 }
 0xd65   :  { %3347 = vmatpush3.msra.mxu0 %v1650_v31 }
 0xd66   :  { %3349 = vmatmul.mubr.msk.f32.vlgmr.msra.gmra.mxu0 %vm229_vm5, %v3038_v27  ;;  %3374 = vmatprep.subr.mxu0 %v3531_v38 }
 0xd67   :  { %3375 = vmatpush3.msk.msra.mxu0 %vm264_vm6, %v3833_v33  ;;  %3351 = vmatprep.mubr.msk.f32.mxu0 %vm3532_vm9, %v3531_v38  ;;  %v3041_v33 = vsel %vm1805_vm14, 1.0, %v3531_v38 }
 0xd68   :  { %3376 = vmatprep.subr.mxu0 %v3531_v38 }
 0xd69   :  { %3377 = vmatpush3.msra.mxu0 %v3835_v34  ;;  %v3042_v34 = vsel %vm1806_vm2, 1.0, %v3531_v38 }
 0xd6a   :  { %v3330_v41 = vpop.f32.mrf.mxu0  ;;  %3352 = vmatmul.mubr.msk.f32.gmra.mxu0 %vm229_vm5, %v3039_v24 }
 0xd6b   :  { %3332 = vmatpush3.msk.msra.mxu1 %vm264_vm6, %v3330_v41  ;;  %3354 = vmatprep.mubr.msk.f32.mxu0 %vm3532_vm9, %v3531_v38 }
 0xd6c   :  { %v1725_v43 = vpop.f32.mrf.mxu0  ;;  %3333 = vmatprep.subr.mxu1 %v3531_v38 }
 0xd6d   :  { %3334 = vmatpush3.msra.mxu1 %v1725_v43 }
 0xd6e   :  { %3336 = vmatmul.mubr.msk.f32.vlgmr.msra.gmra.mxu1 %vm229_vm5, %v3041_v33  ;;  %3355 = vmatmul.mubr.msk.f32.gmra.mxu0 %vm229_vm5, %v3040_v42 }
 0xd6f   :  { %3338 = vmatprep.mubr.msk.f32.mxu1 %vm3532_vm9, %v3531_v38  ;;  %3378 = vmatprep.mubr.msk.f32.mxu0 %vm3532_vm9, %v3531_v38 }
 0xd70   :  { %3357 = vmatprep.subr.mxu1 %v3531_v38 }
 0xd71   :  { %3358 = vmatpush3.msra.mxu1 %v1575_v47 }
 0xd72   :  { %3339 = vmatmul.mubr.msk.f32.gmra.mxu1 %vm229_vm5, %v3042_v34  ;;  %3379 = vmatmul.mubr.msk.f32.vlgmr.msra.gmra.mxu0 %vm229_vm5, %v3057_v46 }
 0xd73   :  { %3341 = vmatprep.mubr.msk.f32.mxu1 %vm3532_vm9, %v3531_v38  ;;  %3359 = vmatprep.subr.mxu1 %v3531_v38 }
 0xd74   :  { %3360 = vmatpush3.msra.mxu1 %v1574_v48 }
 0xd75   :  { %3361 = vmatprep.subr.mxu1 %v3531_v38 }
 0xd76   :  { %3342 = vmatmul.mubr.msk.f32.gmra.mxu1 %vm229_vm5, %v3043_v10 }
 0xd77   :  { %3365 = vmatprep.mubr.msk.f32.mxu1 %vm3532_vm9, %v3531_v38  ;;  %3362 = vmatpush3.msra.mxu1 %v1573_v49 }
 0xd78   :  { %3363 = vmatprep.subr.mxu1 %v3531_v38 }
 0xd79   :  { %3364 = vmatpush3.msra.mxu1 %v1572_v50 }
 0xe26   :  { %v1984_v51 = vpop.f32.mrf.mxu0 }
 0xe28   :  { %v3350_v21 = vpop.f32.mrf.mxu0 }
 0xe2a   :  { %v1989_v52 = vpop.f32.mrf.mxu0 }
 0xe2c   :  { %v3353_v53 = vpop.f32.mrf.mxu0 }
 0xe2e   :  { %v1892_v55 = vpop.f32.mrf.mxu1  ;;  %v1994_v56 = vpop.f32.mrf.mxu0 }
 0xe2f   :  { %v1985_v57 = vadd.f32 %v1984_v51, %v1892_v55 }
 0xe30   :  { %v3337_v58 = vpop.f32.mrf.mxu1  ;;  %v3356_v59 = vpop.f32.mrf.mxu0 }
 0xe31   :  { %v2002_v60 = vadd.f32 %v3052_v54, %v1985_v57 }
 0xe32   :  { %v1897_v45 = vpop.f32.mrf.mxu1  ;;  %v3949_v44 = vpop.f32.mrf.mxu0 }
 0xe33   :  { %v2005_v61 = vmax.f32 %v2002_v60, 0.0  ;;  %v1990_v62 = vadd.f32 %v1989_v52, %v1897_v45  ;;  %v2194_v63 = vmul.f32 %v3949_v44, %v3949_v44 }
 0xe34   :  { %v3340_v0 = vpop.f32.mrf.mxu1  ;;  %v3380_v1 = vpop.f32.mrf.mxu0 }
 0xe35   :  { %v2003_v3 = vadd.f32 %v3052_v54, %v1990_v62  ;;  %3366 = vmatmul.mubr.msk.f32.vlgmr.msra.gmra.mxu1 %vm53_vm0, %v2005_v61  ;;  %v2195_v4 = vsel %vm53_vm0, %v2194_v63, 0.0 }
 0xe36   :  { %v1902_v30 = vpop.f32.mrf.mxu1  ;;  %2196 = vadd.xlane.f32.xlu1 %v2195_v4  ;;  %3368 = vmatprep.mubr.msk.f32.mxu1 %vm3532_vm9, %v3531_v38 }
 0xe37   :  { %v2006_v6 = vmax.f32 %v2003_v3, 0.0  ;;  %v1995_v7 = vadd.f32 %v1994_v56, %v1902_v30 }
 0xe38   :  { %v3343_v9 = vpop.f32.mrf.mxu1 }
 0xe39   :  { %v2004_v5 = vadd.f32 %v3052_v54, %v1995_v7  ;;  %3369 = vmatmul.mubr.msk.f32.gmra.mxu1 %vm53_vm0, %v2006_v6 }
 0xe3a   :  { %3371 = vmatprep.mubr.msk.f32.mxu1 %vm3532_vm9, %v3531_v38 }
 0xe3b   :  { %v2007_v11 = vmax.f32 %v2004_v5, 0.0 }
 0xe3d   :  { %3372 = vmatmul.mubr.msk.f32.gmra.mxu1 %vm53_vm0, %v2007_v11 }
 0xebf   :  { %v2197_v2 = vpop.xlane.xlu1 %2196 }
 0xec0   :  { %v2198_v12 = vmax.f32 %v2197_v2, 1e-12 }
 0xec2   :  { %3495 = vrsqrt.f32 %v2198_v12 }
 0xecf   :  { %v3496_v13 = vpop.eup %3495 }
 0xed0   :  { %v3962_v14 = vmul.f32 %v3496_v13, %v3949_v44  }
 0xed2   :  { %v3511_v39 = vmov %v3962_v14  }
 0xef5   :  { %v2087_v16 = vpop.f32.mrf.mxu1 }
 0xef6   :  { %v2088_v23 = vadd.f32 %v3053_v15, %v2087_v16 }
 0xef7   :  { %v3367_v25 = vpop.f32.mrf.mxu1 }
 0xef8   :  { %v2105_v26 = vadd.f32 %v2102_v17, %v2088_v23 }
 0xef9   :  { %v2092_v27 = vpop.f32.mrf.mxu1 }
 0xefa   :  { %2108 = vst.msk [vmem:[%s4058_s6 + $0x2] sm:$0xff] %vm53_vm0, %v2105_v26  ;;  %v2093_v29 = vadd.f32 %v3053_v15, %v2092_v27 }
 0xefb   :  { %v3370_v31 = vpop.f32.mrf.mxu1 }
 0xefc   :  { %v2106_v8 = vadd.f32 %v2103_v28, %v2093_v29 }
 0xefd   :  { %v2097_v32 = vpop.f32.mrf.mxu1 }
 0xefe   :  { %2109 = vst.msk [vmem:[%s4058_s6 + $0xa] sm:$0xff] %vm53_vm0, %v2106_v8  ;;  %v2098_v36 = vadd.f32 %v3053_v15, %v2097_v32 }
 0xeff   :  { %v3373_v24 = vpop.f32.mrf.mxu1 }
 0xf00   :  { %v2107_v37 = vadd.f32 %v2104_v35, %v2098_v36 }
 0xf02   :  { %2110 = vst.msk [vmem:[%s4058_s6 + $0x12] sm:$0xff] %vm53_vm0, %v2107_v37 }
 0xf03 LB: > { %v2209_v40 = vmul.f32 %v3513_v39, %v3513_v39  ;;  %v3534_v33 = vmov 0.0   ;;  %vm3535_vm5 = vmmov 0   ;;  %vm2292_vm8 = vcmask 15360   ;;  %s2207_s17 = sadd.s32 1, %s3517_s17   ;;  %s3517_s17 = sphi %s3989_s17, %s2207_s17   ;;  %v3513_v39 = vphi %v3511_v39, %v3512_v39  }
 0xf04   : > { %3381 = vmatprep.subr.mxu0 %v3534_v33  ;;  %3386 = vmatprep.subr.mxu1 %v3534_v33  ;;  %v3536_v53 = vmov 1.0   ;;  %p2204_p0 = scmp.ge.s32.totalorder %s2207_s17, 10  }
 0xf05   : > { %v2210_v41 = vsel %vm1300_vm7, %v2209_v40, 0.0  ;;  %3387 = vmatpush3.msra.mxu1 %v3962_v14  ;;  %3383 = vmatprep.mubr.msk.f32.mxu0 %vm3535_vm5, %v3534_v33  ;;  %vm2611_vm13 = vcmask (%p2204_p0), 31744   ;;  %v2728_v13 = vrot.slane (%p2204_p0), %v3949_v44, 4 }
 0xf06   : > { %2211 = vadd.xlane.f32.xlu0 %v2210_v41  ;;  %3391 = vmatprep.subr.mxu1 %v3534_v33 }
 0xf07   : > { %3388 = vmatprep.mubr.msk.f32.mxu1 %vm3535_vm5, %v3534_v33 }
 0xf8f   : > { %v2212_v42 = vpop.xlane.xlu0 %2211 }
 0xf90   : > { %v2213_v43 = vmax.f32 %v2212_v42, 1e-12 }
 0xf92   : > { %3497 = vrsqrt.f32 %v2213_v43 }
 0xf9f   : > { %v3498_v22 = vpop.eup %3497 }
 0xfa0   : > { %v2215_v34 = vmul.f32 %v3513_v39, %v3498_v22 }
 0xfa2   : > { %3382 = vmatpush3.xpose.msk.msra.mxu0 %vm53_vm0, %v2215_v34 }
 0xfa3   :  { %3396 = vmatprep.subr.mxu0 (%p2204_p0), %v3531_v38 }
 0xfa5   : > { %3384 = vmatmul.mubr.msk.f32.vlgmr.msra.gmra.mxu0 %vm53_vm0, %v3962_v14 }
 0xfa6   :  { %3398 = vmatprep.mubr.msk.f32.mxu0 (%p2204_p0), %vm3532_vm9, %v3531_v38 }
0x1065   : > { %v2288_v46 = vpop.f32.mrf.mxu0 }
0x1066   : > { %v2293_v10 = vsel %vm2292_vm8, %v2288_v46, -inf }
0x1067   : > { %2294 = vmax.xlane.f32.xlu0 %v2293_v10  ;;  %v3385_v47 = vpop.f32.mrf.mxu0 }
0x10f0   : > { %v2295_v48 = vpop.xlane.xlu0 %2294 }
0x10f1   : > { %vm2296_vm10 = vcmp.ge.f32.partialorder %v2288_v46, %v2295_v48 }
0x10f2   : > { %v2297_v49 = vsel %vm2296_vm10, %v3633_v19, 2.0 }
0x10f3   : > { %v2298_v50 = vsel %vm2292_vm8, %v2297_v49, inf }
0x10f4   : > { %2299 = vmin.xlane.f32.xlu1 %v2298_v50 }
0x117d   : > { %v2300_v51 = vpop.xlane.xlu1 %2299 }
0x117e   : > { %vm2301_vm11 = vcmp.eq.f32.partialorder %v3633_v19, %v2300_v51 }
0x117f   : > { %v3062_v21 = vsel %vm2301_vm11, 1.0, %v3534_v33 }
0x1180   : > { %2304 = vxpose.xlu1.b32.start.end [1/1] (short) (narrow) %v3062_v21, 8 }
0x11fc   : > { %v2320_v52 = vpop.trf.xlu1 }
0x11fd   : > { %3389 = vmatmul.mubr.msk.f32.vlgmr.msra.gmra.mxu1 %vm141_vm1, %v2320_v52 }
0x11fe   : > { %3392 = vmatpush3.msra.mxu1 %v3536_v53  ;;  %3393 = vmatprep.mubr.msk.f32.mxu1 %vm3535_vm5, %v3534_v33 }
0x11ff   :  { %3401 = vmatprep.subr.mxu1 (%p2204_p0), %v3531_v38 }
0x1201   : > { %3394 = vmatmul.mubr.msk.f32.vlgmr.msra.gmra.mxu1 %vm141_vm1, %v2320_v52 }
0x1202   :  { %3403 = vmatprep.mubr.msk.f32.mxu1 (%p2204_p0), %vm3532_vm9, %v3531_v38 }
0x12bd   : > { %v2405_v54 = vpop.f32.mrf.mxu1 }
0x12bf   : > { %v3390_v55 = vpop.f32.mrf.mxu1 }
0x12c1   : > { %v2475_v56 = vpop.f32.mrf.mxu1 }
0x12c2   : > { %v2480_v57 = vmax.f32 %v2475_v56, 1.0  ;;  %vm2479_vm12 = vcmp.gt.f32.partialorder %v2475_v56, 0.5 }
0x12c3   : > { %v3395_v58 = vpop.f32.mrf.mxu1 }
0x12c4   : > { %3499 = vrcp.f32 %v2480_v57 }
0x12d1   : > { %v3500_v59 = vpop.eup %3499  ;;  %2206 = sbr.rel (!%p2204_p0) target bundleno = 3843 (0xf03), region = 63 }
0x12d2   : > { %v2482_v60 = vmul.f32 %v3500_v59, %v2405_v54 }
0x12d4   : > { %v2483_v45 = vsel %vm2479_vm12, %v2482_v60, %v3513_v39  }
0x12d5   : > { %v3512_v39 = vmov %v2483_v45   ;;  %v2484_v61 = vmul.f32 (%p2204_p0), %v2483_v45, %v2483_v45 }
0x12d7   :  { %v2485_v62 = vsel %vm1300_vm7, %v2484_v61, 0.0  ;;  %vm2615_vm7 = vcmask 1043456  }
0x12d8   :  { %2486 = vadd.xlane.f32.xlu0 %v2485_v62  ;;  %3402 = vmatpush3.msk.msra.mxu1 %vm2615_vm7, %v3949_v44 }
0x12d9   :  { %3406 = vmatprep.subr.mxu1 %v3531_v38 }
0x1361   :  { %v2487_v63 = vpop.xlane.xlu0 %2486 }
0x1362   :  { %v2488_v0 = vmax.f32 %v2487_v63, 1e-12 }
0x1364   :  { %3501 = vrsqrt.f32 %v2488_v0 }
0x1371   :  { %v3502_v1 = vpop.eup %3501 }
0x1372   :  { %v2490_v3 = vmul.f32 %v3502_v1, %v2483_v45 }
0x1374   :  { %3397 = vmatpush3.xpose.msk.msra.mxu0 %vm53_vm0, %v2490_v3 }
0x1375   :  { %3411 = vmatprep.subr.mxu0 %v3531_v38 }
0x1377   :  { %3399 = vmatmul.mubr.msk.f32.vlgmr.msra.gmra.mxu0 %vm53_vm0, %v3962_v14 }
0x1378   :  { %3413 = vmatprep.mubr.msk.f32.mxu0 %vm3532_vm9, %v3531_v38 }
0x1437   :  { %v2563_v4 = vpop.f32.mrf.mxu0 }
0x1438   :  { %v2568_v30 = vsel %vm2292_vm8, %v2563_v4, -inf }
0x1439   :  { %2569 = vmax.xlane.f32.xlu0 %v2568_v30  ;;  %v3400_v6 = vpop.f32.mrf.mxu0 }
0x14c2   :  { %v2570_v7 = vpop.xlane.xlu0 %2569 }
0x14c3   :  { %vm2571_vm1 = vcmp.ge.f32.partialorder %v2563_v4, %v2570_v7 }
0x14c4   :  { %v2572_v9 = vsel %vm2571_vm1, %v3633_v19, 2.0 }
0x14c5   :  { %v2573_v5 = vsel %vm2292_vm8, %v2572_v9, inf }
0x14c6   :  { %2574 = vmin.xlane.f32.xlu1 %v2573_v5 }
0x154f   :  { %v2575_v11 = vpop.xlane.xlu1 %2574 }
0x1550   :  { %vm2576_vm0 = vcmp.eq.f32.partialorder %v3633_v19, %v2575_v11  ;;  %v2689_v19 = vmul.u32 2, %v3630_v18 }
0x1551   :  { %v3067_v2 = vsel %vm2576_vm0, 1.0, %v3531_v38 }
0x1552   :  { %2579 = vxpose.xlu1.b32.start.end [1/1] (short) (narrow) %v3067_v2, 8  ;;  %v2694_v12 = vrot.slane %v3067_v2, 4  ;;  %v2804_v16 = vadd.s32 1, %v2689_v19  ;;  %vm2690_vm14 = vcmp.eq.s32.totalorder %v3635_v20, %v2689_v19 }
0x1553   :  { %v3070_v44 = vsel %vm2690_vm14, 1.0, %v3531_v38 }
0x1554   :  { %2696 = vxpose.xlu0.b32.start.end [1/1] (short) (narrow) %v2694_v12, 8  ;;  %vm2805_vm15 = vcmp.eq.s32.totalorder %v3635_v20, %v2804_v16  ;;  %v2960_v20 = vld [vmem:[%s4053_s4] sm:$0xf] }
0x1555   :  { %v3073_v25 = vsel %vm2805_vm15, 1.0, %v3531_v38 }
0x15ce   :  { %v2595_v14 = vpop.trf.xlu1 }
0x15cf   :  { %3404 = vmatmul.mubr.msk.f32.vlgmr.msra.gmra.mxu1 %vm2611_vm13, %v2595_v14 }
0x15d0   :  { %3407 = vmatpush3.msk.msra.mxu1 %vm2615_vm7, %v2728_v13  ;;  %3408 = vmatprep.mubr.msk.f32.mxu1 %vm3532_vm9, %v3531_v38  ;;  %v2712_v15 = vpop.trf.xlu0 }
0x15d1   :  { %3416 = vmatprep.subr.mxu1 %v3531_v38 }
0x15d3   :  { %3409 = vmatmul.mubr.msk.f32.vlgmr.msra.gmra.mxu1 %vm2611_vm13, %v2712_v15 }
0x15d4   :  { %3418 = vmatprep.mubr.msk.f32.mxu1 %vm3532_vm9, %v3531_v38  ;;  %vm2962_vm9 = vcmask 257024  }
0x168f   :  { %v2685_v17 = vpop.f32.mrf.mxu1 }
0x1690   :  { %3417 = vmatpush3.msk.msra.mxu1 %vm264_vm6, %v2685_v17 }
0x1691   :  { %v3405_v23 = vpop.f32.mrf.mxu1  ;;  %3419 = vmatmul.mubr.msk.f32.vlgmr.msra.gmra.mxu1 %vm2292_vm8, %v3070_v44 }
0x1693   :  { %v2800_v26 = vpop.f32.mrf.mxu1 }
0x1694   :  { %3412 = vmatpush3.msk.msra.mxu0 %vm264_vm6, %v2800_v26 }
0x1695   :  { %v3410_v27 = vpop.f32.mrf.mxu1  ;;  %3414 = vmatmul.mubr.msk.f32.vlgmr.msra.gmra.mxu0 %vm2292_vm8, %v3073_v25 }
0x1751   :  { %v2956_v18 = vpop.f32.mrf.mxu1 }
0x1753   :  { %v3420_v28 = vpop.f32.mrf.mxu1 }
0x1755   :  { %v2880_v29 = vpop.f32.mrf.mxu0 }
0x1756   :  { %v2957_v31 = vadd.f32 %v2956_v18, %v2880_v29 }
0x1757   :  { %v3415_v8 = vpop.f32.mrf.mxu0 }
0x1758   :  { %v2961_v32 = vadd.f32 %v2960_v20, %v2957_v31 }
0x175a   :  { %2963 = vst.msk [vmem:[%s4054_s7] sm:$0xf] %vm2962_vm9, %v2961_v32 }

// kernel: forward.5
= control target key start
LH: loop header
LB: loop body
LE: loop exit
PB: predicated region body
PF: predicated region fallthrough
CT: control target
= control target key end

     0   :  { %vm59_vm0 = vcmask 261120   ;;  %vm169_vm1 = vcmask 64512   ;;  %s4033_s11 = smov 96   ;;  %s4034_s12 = smov 64   ;;  %vm348_vm2 = vcmask 1041408   ;;  %v23_v25 = vlaneseq  ;;  %s4779_s1 = inlined_call_operand.vmem [shape: f32[168,128], index: 1, kind: input, shape index: {}]   ;;  %s4780_s0 = inlined_call_operand.vmem [shape: f32[26,32], index: 0, kind: input, shape index: {}]   ;;  %s4781_s3 = inlined_call_operand.vmem [shape: f32[4,32], index: 3, kind: input, shape index: {}]   ;;  %s4782_s2 = inlined_call_operand.vmem [shape: f32[168,128], index: 2, kind: input, shape index: {}]   ;;  %s4783_s4 = inlined_call_operand.vmem [shape: f32[26,32], index: 4, kind: output, shape index: {0}]   ;;  %s4784_s5 = inlined_call_operand.vmem [shape: f32[6,32], index: 5, kind: output, shape index: {1}]  }
   0x1   :  { %v46_v0 = vld [vmem:[%s4779_s1 + $0x18] sm:$0xff]  ;;  %v45_v1 = vld [vmem:[%s4779_s1 + $0x10] sm:$0xff]  ;;  %v19_v2 = vld [vmem:[%s4780_s0] sm:$0xff]  ;;  %v4035_v36 = vmov -1e+09   ;;  %vm279_vm6 = vcmask 211968  }
   0x2   :  { %3620 = vmatprep.subr.mxu1 %v46_v0  ;;  %v44_v3 = vld [vmem:[%s4779_s1 + $0x8] sm:$0xff]  ;;  %3628 = vmatprep.mubr.msk.f32.mxu1 %vm59_vm0, %v19_v2  ;;  %v43_v4 = vld [vmem:[%s4779_s1] sm:$0xff]  ;;  %v21_v6 = vld [vmem:[%s4780_s0 + $0x10] sm:$0xff]  ;;  %v24_v26 = vshrl.u32 %v23_v25, 7  ;;  %v29_v28 = vand.u32 127, %v23_v25  ;;  %vm289_vm8 = vcmask 205824  }
   0x3   :  { %3621 = vmatpush3.msra.mxu1 %v46_v0  ;;  %v20_v5 = vld [vmem:[%s4780_s0 + $0x8] sm:$0xff]  ;;  %v22_v7 = vld [vmem:[%s4780_s0 + $0x18] sm:$0x3]  ;;  %v3346_v8 = vld [vmem:[%s4779_s1 + $0x20] ss:$0 sm:$0xff]  ;;  %s4036_s13 = smov 88  }
   0x4   :  { %3622 = vmatprep.subr.mxu1 %v45_v1  ;;  %v25_v27 = vadd.s32 8, %v24_v26  ;;  %v34_v30 = vand.u32 1, %v29_v28  ;;  %v27_v31 = vadd.s32 24, %v24_v26  ;;  %v30_v32 = vand.u32 1, %v24_v26  ;;  %s4037_s14 = smov 120   ;;  %s4038_s17 = smov 56  }
   0x5   :  { %3623 = vmatpush3.msra.mxu1 %v45_v1  ;;  %v26_v34 = vadd.s32 16, %v24_v26  ;;  %s4039_s18 = smov 80   ;;  %s4040_s19 = smov 112   ;;  %vm1876_vm9 = vcmask 523264   ;;  %vm1694_vm10 = vcmask 254976   ;;  %vm2052_vm11 = vcmask 257024  }
   0x6   :  { %3624 = vmatprep.subr.mxu1 %v44_v3  ;;  %v31_v29 = vand.u32 1, %v25_v27  ;;  %v33_v33 = vand.u32 1, %v27_v31  ;;  %vm35_vm4 = vcmp.eq.s32.totalorder %v30_v32, %v34_v30  ;;  %s4041_s20 = smov 72   ;;  %s4042_s21 = smov 104   ;;  %vm4046_vm12 = vmmov 0  }
   0x7   :  { %3625 = vmatpush3.msra.mxu1 %v44_v3  ;;  %v32_v39 = vand.u32 1, %v26_v34  ;;  %v4152_v41 = vsel %vm35_vm4, 0.0, %v4035_v36  ;;  %s4043_s24 = smov 48   ;;  %s4044_s25 = smov 40   ;;  %vm2223_vm13 = vcmask 46080   ;;  %vm2241_vm14 = vcmask 1045504  }
   0x8   :  { %3626 = vmatprep.subr.mxu1 %v43_v4  ;;  %vm36_vm3 = vcmp.eq.s32.totalorder %v31_v29, %v34_v30  ;;  %vm38_vm5 = vcmp.eq.s32.totalorder %v33_v33, %v34_v30  ;;  %vm2237_vm15 = vcmask 48128  }
   0x9   :  { %3627 = vmatpush3.msra.mxu1 %v43_v4  ;;  %v4150_v37 = vsel %vm36_vm3, 0.0, %v4035_v36  ;;  %v4155_v45 = vsel %vm38_vm5, 0.0, %v4035_v36  ;;  %vm37_vm7 = vcmp.eq.s32.totalorder %v32_v39, %v34_v30 }
   0xa   :  { %3629 = vmatmul.mubr.msk.f32.vlgmr.msra.gmra.mxu1 %vm59_vm0, %v20_v5  ;;  %v4161_v53 = vsel %vm37_vm7, 0.0, %v4035_v36 }
   0xb   :  { %3631 = vmatprep.mubr.msk.f32.mxu1 %vm59_vm0, %v21_v6 }
   0xe   :  { %3632 = vmatmul.mubr.msk.f32.gmra.mxu1 %vm59_vm0, %v22_v7 }
  0xca   :  { %v3630_v9 = vpop.f32.mrf.mxu1 }
  0xcb   :  { %v4108_v10 = vadd.f32 %v3630_v9, %v3346_v8 }
  0xcc   :  { %v138_v11 = vpop.f32.mrf.mxu1 }
  0xcd   :  { %v4110_v12 = vadd.f32 %v3346_v8, %v138_v11  ;;  %163 = vrot.lane.b32.xlu1 %v4108_v10, %s4033_s11 }
  0xce   :  { %v3633_v13 = vpop.f32.mrf.mxu1 }
  0xcf   :  { %v4114_v14 = vadd.f32 %v3633_v13, %v3346_v8  ;;  %3642 = vmatprep.mubr.msk.f32.mxu1 %vm169_vm1, %v4110_v12 }
  0xd0   :  { %v148_v15 = vpop.f32.mrf.mxu1 }
  0xd1   :  { %167 = vrot.lane.b32.xlu0 %v4114_v14, %s4033_s11  ;;  %161 = vrot.lane.b32.xlu1 %v4110_v12, %s4033_s11  ;;  %v4122_v16 = vadd.f32 %v3346_v8, %v148_v15 }
  0xd5   :  { %165 = vrot.lane.b32.xlu0 %v4122_v16, %s4033_s11  ;;  %331 = vrot.lane.b32.xlu1 %v4114_v14, %s4034_s12 }
  0xd9   :  { %329 = vrot.lane.b32.xlu0 %v4122_v16, %s4034_s12  ;;  %327 = vrot.lane.b32.xlu1 %v4108_v10, %s4034_s12 }
  0xdd   :  { %325 = vrot.lane.b32.xlu1 %v4110_v12, %s4034_s12 }
 0x13f   :  { %v164_v17 = vpop.permute.xlu1 %163 }
 0x143   :  { %v168_v18 = vpop.permute.xlu0 %167  ;;  %v162_v19 = vpop.permute.xlu1 %161 }
 0x144   :  { %3634 = vmatprep.subr.msk.mxu1 %vm169_vm1, %v168_v18 }
 0x145   :  { %3635 = vmatpush3.xpose.msk.msra.mxu1 %vm169_vm1, %v168_v18 }
 0x147   :  { %v166_v20 = vpop.permute.xlu0 %165  ;;  %v332_v21 = vpop.permute.xlu1 %331 }
 0x148   :  { %3636 = vmatprep.subr.msk.mxu1 %vm169_vm1, %v166_v20  ;;  %3648 = vmatprep.subr.msk.mxu0 %vm348_vm2, %v332_v21 }
 0x149   :  { %3637 = vmatpush3.xpose.msk.msra.mxu1 %vm169_vm1, %v166_v20  ;;  %3649 = vmatpush3.msk.msra.mxu0 %vm348_vm2, %v332_v21 }
 0x14a   :  { %3638 = vmatprep.subr.msk.mxu1 %vm169_vm1, %v164_v17 }
 0x14b   :  { %v330_v22 = vpop.permute.xlu0 %329  ;;  %v328_v23 = vpop.permute.xlu1 %327 }
 0x14c   :  { %3650 = vmatprep.subr.mxu0 %v330_v22 }
 0x14d   :  { %3639 = vmatpush3.xpose.msk.msra.mxu1 %vm169_vm1, %v164_v17  ;;  %3651 = vmatpush3.msra.mxu0 %v330_v22 }
 0x14e   :  { %3640 = vmatprep.subr.msk.mxu1 %vm169_vm1, %v162_v19  ;;  %3652 = vmatprep.subr.mxu0 %v328_v23 }
 0x14f   :  { %3653 = vmatpush3.msra.mxu0 %v328_v23  ;;  %v326_v24 = vpop.permute.xlu1 %325 }
 0x150   :  { %3654 = vmatprep.subr.mxu0 %v326_v24 }
 0x151   :  { %3641 = vmatpush3.xpose.msk.msra.mxu1 %vm169_vm1, %v162_v19  ;;  %3655 = vmatpush3.msra.mxu0 %v326_v24 }
 0x154   :  { %3643 = vmatmul.mubr.msk.f32.vlgmr.msra.gmra.mxu1 %vm169_vm1, %v4108_v10 }
 0x155   :  { %3645 = vmatprep.mubr.msk.f32.mxu1 %vm169_vm1, %v4122_v16 }
 0x158   :  { %3646 = vmatmul.mubr.msk.f32.gmra.mxu1 %vm169_vm1, %v4114_v14 }
 0x214   :  { %v3644_v35 = vpop.f32.mrf.mxu1 }
 0x215   :  { %v272_v38 = vmul.f32 0.35355338, %v3644_v35 }
 0x216   :  { %v252_v40 = vpop.f32.mrf.mxu1 }
 0x217   :  { %v271_v42 = vmul.f32 0.35355338, %v252_v40  ;;  %v276_v43 = vadd.f32 %v272_v38, %v4150_v37  ;;  %v436_v38 = vld [vmem:[%s4779_s1 + $0x28] sm:$0xff] }
 0x218   :  { %v3647_v44 = vpop.f32.mrf.mxu1 }
 0x219   :  { %v274_v46 = vmul.f32 0.35355338, %v3647_v44  ;;  %v283_v47 = vsel %vm279_vm6, %v276_v43, -inf  ;;  %v275_v48 = vadd.f32 %v271_v42, %v4152_v41 }
 0x21a   :  { %284 = vmax.xlane.f32.xlu1 %v283_v47  ;;  %v262_v49 = vpop.f32.mrf.mxu1 }
 0x21b   :  { %v273_v50 = vmul.f32 0.35355338, %v262_v49  ;;  %v280_v51 = vsel %vm279_vm6, %v275_v48, -inf  ;;  %v278_v52 = vadd.f32 %v274_v46, %v4155_v45 }
 0x21c   :  { %281 = vmax.xlane.f32.xlu0 %v280_v51 }
 0x21d   :  { %v290_v54 = vsel %vm289_vm8, %v278_v52, -inf  ;;  %v277_v55 = vadd.f32 %v273_v50, %v4161_v53 }
 0x21f   :  { %v286_v56 = vsel %vm279_vm6, %v277_v55, -inf }
 0x220   :  { %291 = vmax.xlane.f32.xlu0 %v290_v54 }
 0x224   :  { %287 = vmax.xlane.f32.xlu0 %v286_v56 }
 0x22b   :  { %449 = vrot.lane.b32.xlu1 %v4122_v16, %s4036_s13 }
 0x23a   :  { %451 = vrot.lane.b32.xlu0 %v4114_v14, %s4036_s13 }
 0x2a3   :  { %v285_v57 = vpop.xlane.xlu1 %284 }
 0x2a4   :  { %v294_v58 = vsub.f32 %v276_v43, %v285_v57 }
 0x2a5   :  { %v282_v59 = vpop.xlane.xlu0 %281 }
 0x2a6   :  { %v299_v60 = vmul.f32 1.442695, %v294_v58  ;;  %v293_v61 = vsub.f32 %v275_v48, %v282_v59 }
 0x2a7   :  { %v450_v18 = vpop.permute.xlu1 %449 }
 0x2a8   :  { %3929 = vpow2.f32 %v299_v60  ;;  %v297_v62 = vmul.f32 1.442695, %v293_v61 }
 0x2a9   :  { %v292_v63 = vpop.xlane.xlu0 %291 }
 0x2aa   :  { %3931 = vpow2.f32 %v297_v62  ;;  %v296_v6 = vsub.f32 %v278_v52, %v292_v63 }
 0x2ac   :  { %v303_v8 = vmul.f32 1.442695, %v296_v6 }
 0x2ad   :  { %v288_v0 = vpop.xlane.xlu0 %287 }
 0x2ae   :  { %v295_v7 = vsub.f32 %v277_v55, %v288_v0  ;;  %3933 = vpow2.f32 %v303_v8 }
 0x2b0   :  { %v301_v9 = vmul.f32 1.442695, %v295_v7 }
 0x2b1   :  { %v452_v1 = vpop.permute.xlu0 %451 }
 0x2b2   :  { %3662 = vmatprep.subr.msk.mxu0 %vm169_vm1, %v452_v1  ;;  %3935 = vpow2.f32 %v301_v9 }
 0x2b5   :  { %v3930_v2 = vpop.eup %3929 }
 0x2b6   :  { %v308_v3 = vsel %vm279_vm6, %v3930_v2, 0.0 }
 0x2b7   :  { %v3932_v4 = vpop.eup %3931  ;;  %309 = vadd.xlane.f32.xlu0 %v308_v3 }
 0x2b8   :  { %v305_v5 = vsel %vm279_vm6, %v3932_v4, 0.0 }
 0x2b9   :  { %306 = vadd.xlane.f32.xlu1 %v305_v5 }
 0x2bb   :  { %v3934_v11 = vpop.eup %3933 }
 0x2bc   :  { %v314_v15 = vsel %vm289_vm8, %v3934_v11, 0.0 }
 0x2bf   :  { %v3936_v13 = vpop.eup %3935 }
 0x2c0   :  { %v311_v17 = vsel %vm279_vm6, %v3936_v13, 0.0 }
 0x2ca   :  { %445 = vrot.lane.b32.xlu1 %v4110_v12, %s4036_s13 }
 0x2cd   :  { %447 = vrot.lane.b32.xlu0 %v4108_v10, %s4036_s13 }
 0x2ec   :  { %315 = vadd.xlane.f32.xlu0 %v314_v15 }
 0x2ee   :  { %312 = vadd.xlane.f32.xlu1 %v311_v17 }
 0x2ff   :  { %439 = vrot.lane.b32.xlu1 %v4108_v10, %s4037_s14 }
 0x302   :  { %437 = vrot.lane.b32.xlu0 %v4110_v12, %s4037_s14 }
 0x303   :  { %443 = vrot.lane.b32.xlu1 %v4114_v14, %s4037_s14 }
 0x306   :  { %441 = vrot.lane.b32.xlu0 %v4122_v16, %s4037_s14 }
 0x340   :  { %v310_v19 = vpop.xlane.xlu0 %309 }
 0x341   :  { %3937 = vrcp.f32 %v310_v19 }
 0x342   :  { %v307_v20 = vpop.xlane.xlu1 %306 }
 0x343   :  { %3939 = vrcp.f32 %v307_v20 }
 0x344   :  { %v448_v25 = vpop.permute.xlu0 %447 }
 0x346   :  { %v446_v26 = vpop.permute.xlu1 %445 }
 0x34e   :  { %v3938_v21 = vpop.eup %3937 }
 0x34f   :  { %v322_v24 = vmul.f32 %v3938_v21, %v3930_v2 }
 0x350   :  { %v3940_v22 = vpop.eup %3939 }
 0x351   :  { %v321_v23 = vmul.f32 %v3940_v22, %v3932_v4 }
 0x353   :  { %3656 = vmatprep.mubr.msk.f32.mxu0 %vm279_vm6, %v321_v23 }
 0x354   :  { %3657 = vmatmul.mubr.msk.f32.vlgmr.msra.gmra.mxu0 %vm279_vm6, %v322_v24 }
 0x355   :  { %3663 = vmatpush3.xpose.msk.msra.mxu0 %vm169_vm1, %v452_v1 }
 0x356   :  { %3664 = vmatprep.subr.msk.mxu0 %vm169_vm1, %v450_v18 }
 0x359   :  { %3665 = vmatpush3.xpose.msk.msra.mxu0 %vm169_vm1, %v450_v18 }
 0x35a   :  { %3666 = vmatprep.subr.msk.mxu0 %vm169_vm1, %v448_v25 }
 0x35d   :  { %3667 = vmatpush3.xpose.msk.msra.mxu0 %vm169_vm1, %v448_v25 }
 0x35e   :  { %3668 = vmatprep.subr.msk.mxu0 %vm169_vm1, %v446_v26 }
 0x361   :  { %3669 = vmatpush3.xpose.msk.msra.mxu0 %vm169_vm1, %v446_v26 }
 0x362   :  { %3698 = vmatprep.subr.mxu0 %v436_v38 }
 0x375   :  { %v316_v27 = vpop.xlane.xlu0 %315 }
 0x376   :  { %3941 = vrcp.f32 %v316_v27 }
 0x377   :  { %v313_v28 = vpop.xlane.xlu1 %312 }
 0x378   :  { %3943 = vrcp.f32 %v313_v28 }
 0x379   :  { %v438_v32 = vpop.permute.xlu0 %437 }
 0x37b   :  { %v440_v34 = vpop.permute.xlu1 %439 }
 0x37d   :  { %v442_v35 = vpop.permute.xlu0 %441 }
 0x37f   :  { %v444_v36 = vpop.permute.xlu1 %443 }
 0x383   :  { %v3942_v29 = vpop.eup %3941 }
 0x384   :  { %v324_v33 = vmul.f32 %v3942_v29, %v3934_v11 }
 0x385   :  { %v3944_v30 = vpop.eup %3943 }
 0x386   :  { %v323_v31 = vmul.f32 %v3944_v30, %v3936_v13 }
 0x388   :  { %3659 = vmatprep.mubr.msk.f32.mxu0 %vm279_vm6, %v323_v31 }
 0x389   :  { %3660 = vmatmul.mubr.msk.f32.gmra.mxu0 %vm279_vm6, %v324_v33  ;;  %v716_v33 = vld [vmem:[%s4779_s1 + $0x30] sm:$0xff] }
 0x38a   :  { %3670 = vmatprep.mubr.msk.f32.mxu0 %vm169_vm1, %v438_v32 }
 0x38d   :  { %3671 = vmatmul.mubr.msk.f32.vlgmr.msra.gmra.mxu0 %vm169_vm1, %v440_v34 }
 0x38e   :  { %3673 = vmatprep.mubr.msk.f32.mxu0 %vm169_vm1, %v442_v35  ;;  %3699 = vmatpush3.msra.mxu0 %v436_v38 }
 0x391   :  { %3674 = vmatmul.mubr.msk.f32.gmra.mxu0 %vm169_vm1, %v444_v36 }
 0x414   :  { %v3658_v39 = vpop.f32.mrf.mxu0 }
 0x416   :  { %v417_v40 = vpop.f32.mrf.mxu0 }
 0x417   :  { %3700 = vmatprep.mubr.msk.f32.mxu0 %vm169_vm1, %v417_v40 }
 0x418   :  { %3701 = vmatmul.mubr.msk.f32.vlgmr.msra.gmra.mxu0 %vm169_vm1, %v3658_v39 }
 0x449   :  { %v3661_v42 = vpop.f32.mrf.mxu0 }
 0x44b   :  { %v427_v43 = vpop.f32.mrf.mxu0 }
 0x44c   :  { %3703 = vmatprep.mubr.msk.f32.mxu0 %vm169_vm1, %v427_v43 }
 0x44d   :  { %v3672_v44 = vpop.f32.mrf.mxu0  ;;  %3704 = vmatmul.mubr.msk.f32.gmra.mxu0 %vm169_vm1, %v3661_v42 }
 0x44e   :  { %v555_v46 = vmul.f32 0.35355338, %v3672_v44 }
 0x44f   :  { %v535_v47 = vpop.f32.mrf.mxu0 }
 0x450   :  { %v554_v48 = vmul.f32 0.35355338, %v535_v47  ;;  %v559_v49 = vadd.f32 %v555_v46, %v4150_v37 }
 0x451   :  { %v3675_v50 = vpop.f32.mrf.mxu0 }
 0x452   :  { %v565_v51 = vsel %vm279_vm6, %v559_v49, -inf  ;;  %v558_v52 = vadd.f32 %v554_v48, %v4152_v41  ;;  %v557_v55 = vmul.f32 0.35355338, %v3675_v50 }
 0x453   :  { %566 = vmax.xlane.f32.xlu1 %v565_v51  ;;  %v545_v54 = vpop.f32.mrf.mxu0 }
 0x454   :  { %v556_v56 = vmul.f32 0.35355338, %v545_v54  ;;  %v562_v57 = vsel %vm279_vm6, %v558_v52, -inf  ;;  %v561_v60 = vadd.f32 %v557_v55, %v4155_v45 }
 0x455   :  { %563 = vmax.xlane.f32.xlu0 %v562_v57 }
 0x456   :  { %v560_v58 = vadd.f32 %v556_v56, %v4161_v53  ;;  %v571_v61 = vsel %vm289_vm8, %v561_v60, -inf }
 0x458   :  { %v568_v59 = vsel %vm279_vm6, %v560_v58, -inf }
 0x459   :  { %569 = vmax.xlane.f32.xlu0 %v568_v59 }
 0x45d   :  { %572 = vmax.xlane.f32.xlu0 %v571_v61 }
 0x464   :  { %612 = vrot.lane.b32.xlu1 %v4114_v14, %s4038_s17 }
 0x4dc   :  { %v567_v62 = vpop.xlane.xlu1 %566 }
 0x4dd   :  { %v575_v63 = vsub.f32 %v559_v49, %v567_v62 }
 0x4de   :  { %v564_v0 = vpop.xlane.xlu0 %563 }
 0x4df   :  { %v580_v1 = vmul.f32 1.442695, %v575_v63  ;;  %v574_v2 = vsub.f32 %v558_v52, %v564_v0 }
 0x4e0   :  { %v613_v3 = vpop.permute.xlu1 %612 }
 0x4e1   :  { %3945 = vpow2.f32 %v580_v1  ;;  %v578_v4 = vmul.f32 1.442695, %v574_v2  ;;  %3676 = vmatprep.subr.msk.mxu1 %vm348_vm2, %v613_v3 }
 0x4e2   :  { %3677 = vmatpush3.msk.msra.mxu1 %vm348_vm2, %v613_v3  ;;  %v570_v5 = vpop.xlane.xlu0 %569 }
 0x4e3   :  { %3947 = vpow2.f32 %v578_v4  ;;  %v576_v19 = vsub.f32 %v560_v58, %v570_v5 }
 0x4e5   :  { %v582_v20 = vmul.f32 1.442695, %v576_v19 }
 0x4e6   :  { %v573_v6 = vpop.xlane.xlu0 %572 }
 0x4e7   :  { %v577_v7 = vsub.f32 %v561_v60, %v573_v6 }
 0x4e9   :  { %v584_v8 = vmul.f32 1.442695, %v577_v7 }
 0x4eb   :  { %3949 = vpow2.f32 %v584_v8 }
 0x4ec   :  { %3951 = vpow2.f32 %v582_v20 }
 0x4ee   :  { %v3946_v9 = vpop.eup %3945 }
 0x4ef   :  { %v589_v11 = vsel %vm279_vm6, %v3946_v9, 0.0 }
 0x4f0   :  { %v3948_v13 = vpop.eup %3947  ;;  %590 = vadd.xlane.f32.xlu0 %v589_v11 }
 0x4f1   :  { %v586_v15 = vsel %vm279_vm6, %v3948_v13, 0.0 }
 0x4f2   :  { %587 = vadd.xlane.f32.xlu1 %v586_v15 }
 0x4f8   :  { %v3950_v17 = vpop.eup %3949 }
 0x4f9   :  { %v595_v18 = vsel %vm289_vm8, %v3950_v17, 0.0  ;;  %v3952_v21 = vpop.eup %3951 }
 0x4fa   :  { %596 = vadd.xlane.f32.xlu0 %v595_v18  ;;  %v592_v22 = vsel %vm279_vm6, %v3952_v21, 0.0 }
 0x503   :  { %608 = vrot.lane.b32.xlu1 %v4108_v10, %s4038_s17 }
 0x510   :  { %610 = vrot.lane.b32.xlu0 %v4122_v16, %s4038_s17 }
 0x514   :  { %925 = vrot.lane.b32.xlu0 %v4114_v14, %s4039_s18 }
 0x518   :  { %921 = vrot.lane.b32.xlu0 %v4108_v10, %s4039_s18 }
 0x51c   :  { %911 = vrot.lane.b32.xlu0 %v4110_v12, %s4040_s19 }
 0x520   :  { %915 = vrot.lane.b32.xlu0 %v4122_v16, %s4040_s19 }
 0x524   :  { %1306 = vrot.lane.b32.xlu0 %v4114_v14, %s4041_s20 }
 0x527   :  { %593 = vadd.xlane.f32.xlu1 %v592_v22 }
 0x528   :  { %1302 = vrot.lane.b32.xlu0 %v4108_v10, %s4041_s20 }
 0x52c   :  { %1292 = vrot.lane.b32.xlu0 %v4110_v12, %s4042_s21 }
 0x538   :  { %606 = vrot.lane.b32.xlu1 %v4110_v12, %s4038_s17 }
 0x53c   :  { %923 = vrot.lane.b32.xlu1 %v4122_v16, %s4039_s18 }
 0x540   :  { %919 = vrot.lane.b32.xlu1 %v4110_v12, %s4039_s18 }
 0x544   :  { %913 = vrot.lane.b32.xlu1 %v4108_v10, %s4040_s19 }
 0x548   :  { %917 = vrot.lane.b32.xlu1 %v4114_v14, %s4040_s19 }
 0x54c   :  { %1304 = vrot.lane.b32.xlu1 %v4122_v16, %s4041_s20 }
 0x550   :  { %1300 = vrot.lane.b32.xlu1 %v4110_v12, %s4041_s20 }
 0x554   :  { %1294 = vrot.lane.b32.xlu1 %v4108_v10, %s4042_s21 }
 0x579   :  { %v591_v24 = vpop.xlane.xlu0 %590 }
 0x57b   :  { %v588_v23 = vpop.xlane.xlu1 %587 }
 0x57c   :  { %3953 = vrcp.f32 %v588_v23 }
 0x57d   :  { %3955 = vrcp.f32 %v591_v24 }
 0x57f   :  { %v609_v28 = vpop.permute.xlu1 %608 }
 0x583   :  { %v597_v25 = vpop.xlane.xlu0 %596 }
 0x584   :  { %3957 = vrcp.f32 %v597_v25 }
 0x587   :  { %v611_v26 = vpop.permute.xlu0 %610 }
 0x588   :  { %3678 = vmatprep.subr.mxu1 %v611_v26 }
 0x589   :  { %v3954_v27 = vpop.eup %3953  ;;  %3679 = vmatpush3.msra.mxu1 %v611_v26 }
 0x58a   :  { %3680 = vmatprep.subr.mxu1 %v609_v28  ;;  %v602_v29 = vmul.f32 %v3954_v27, %v3948_v13  ;;  %v3956_v31 = vpop.eup %3955 }
 0x58b   :  { %3681 = vmatpush3.msra.mxu1 %v609_v28  ;;  %v603_v34 = vmul.f32 %v3956_v31, %v3946_v9  ;;  %v926_v35 = vpop.permute.xlu0 %925 }
 0x58c   :  { %3684 = vmatprep.mubr.msk.f32.mxu1 %vm279_vm6, %v602_v29 }
 0x58f   :  { %v922_v42 = vpop.permute.xlu0 %921 }
 0x591   :  { %v3958_v36 = vpop.eup %3957 }
 0x592   :  { %v605_v40 = vmul.f32 %v3958_v36, %v3950_v17 }
 0x593   :  { %v912_v44 = vpop.permute.xlu0 %911 }
 0x597   :  { %v916_v49 = vpop.permute.xlu0 %915 }
 0x59b   :  { %v1307_v52 = vpop.permute.xlu0 %1306 }
 0x59f   :  { %v1303_v56 = vpop.permute.xlu0 %1302 }
 0x5a3   :  { %v1293_v58 = vpop.permute.xlu0 %1292 }
 0x5b0   :  { %v594_v30 = vpop.xlane.xlu1 %593 }
 0x5b1   :  { %3959 = vrcp.f32 %v594_v30 }
 0x5b4   :  { %v607_v32 = vpop.permute.xlu1 %606 }
 0x5b5   :  { %3682 = vmatprep.subr.mxu1 %v607_v32 }
 0x5b6   :  { %3683 = vmatpush3.msra.mxu1 %v607_v32 }
 0x5b7   :  { %3685 = vmatmul.mubr.msk.f32.vlgmr.msra.gmra.mxu1 %vm279_vm6, %v603_v34  ;;  %3690 = vmatprep.subr.mxu1 %v716_v33 }
 0x5b8   :  { %3691 = vmatpush3.msra.mxu1 %v716_v33  ;;  %v924_v43 = vpop.permute.xlu1 %923 }
 0x5b9   :  { %3706 = vmatprep.subr.msk.mxu1 %vm169_vm1, %v926_v35 }
 0x5bc   :  { %v920_v48 = vpop.permute.xlu1 %919 }
 0x5be   :  { %v3960_v38 = vpop.eup %3959 }
 0x5bf   :  { %v604_v39 = vmul.f32 %v3960_v38, %v3952_v21 }
 0x5c0   :  { %v914_v50 = vpop.permute.xlu1 %913 }
 0x5c1   :  { %3687 = vmatprep.mubr.msk.f32.mxu1 %vm279_vm6, %v604_v39 }
 0x5c2   :  { %3688 = vmatmul.mubr.msk.f32.gmra.mxu1 %vm279_vm6, %v605_v40 }
 0x5c4   :  { %v918_v55 = vpop.permute.xlu1 %917 }
 0x5c8   :  { %v1305_v57 = vpop.permute.xlu1 %1304 }
 0x5cc   :  { %v1301_v59 = vpop.permute.xlu1 %1300 }
 0x5d0   :  { %v1295_v60 = vpop.permute.xlu1 %1294 }
 0x677   :  { %v3686_v46 = vpop.f32.mrf.mxu1 }
 0x679   :  { %v697_v47 = vpop.f32.mrf.mxu1 }
 0x67a   :  { %3692 = vmatprep.mubr.msk.f32.mxu1 %vm169_vm1, %v697_v47 }
 0x67b   :  { %3693 = vmatmul.mubr.msk.f32.vlgmr.msra.gmra.mxu1 %vm169_vm1, %v3686_v46 }
 0x67c   :  { %3707 = vmatpush3.xpose.msk.msra.mxu1 %vm169_vm1, %v926_v35 }
 0x67d   :  { %3708 = vmatprep.subr.msk.mxu1 %vm169_vm1, %v924_v43 }
 0x680   :  { %3709 = vmatpush3.xpose.msk.msra.mxu1 %vm169_vm1, %v924_v43 }
 0x681   :  { %3710 = vmatprep.subr.msk.mxu1 %vm169_vm1, %v922_v42 }
 0x682   :  { %v3689_v51 = vpop.f32.mrf.mxu1 }
 0x684   :  { %3711 = vmatpush3.xpose.msk.msra.mxu1 %vm169_vm1, %v922_v42  ;;  %v707_v54 = vpop.f32.mrf.mxu1 }
 0x685   :  { %3712 = vmatprep.subr.msk.mxu1 %vm169_vm1, %v920_v48  ;;  %3695 = vmatprep.mubr.msk.f32.mxu1 %vm169_vm1, %v707_v54 }
 0x686   :  { %3696 = vmatmul.mubr.msk.f32.gmra.mxu1 %vm169_vm1, %v3689_v51 }
 0x687   :  { %3714 = vmatprep.mubr.msk.f32.mxu1 %vm169_vm1, %v912_v44 }
 0x688   :  { %3713 = vmatpush3.xpose.msk.msra.mxu1 %vm169_vm1, %v920_v48 }
 0x689   :  { %3742 = vmatprep.subr.msk.mxu1 %vm169_vm1, %v1307_v52 }
 0x68b   :  { %3715 = vmatmul.mubr.msk.f32.vlgmr.msra.gmra.mxu1 %vm169_vm1, %v914_v50 }
 0x68c   :  { %3717 = vmatprep.mubr.msk.f32.mxu1 %vm169_vm1, %v916_v49  ;;  %3743 = vmatpush3.xpose.msk.msra.mxu1 %vm169_vm1, %v1307_v52 }
 0x68d   :  { %3744 = vmatprep.subr.msk.mxu1 %vm169_vm1, %v1305_v57 }
 0x68f   :  { %3718 = vmatmul.mubr.msk.f32.gmra.mxu1 %vm169_vm1, %v918_v55 }
 0x690   :  { %3745 = vmatpush3.xpose.msk.msra.mxu1 %vm169_vm1, %v1305_v57  ;;  %3750 = vmatprep.mubr.msk.f32.mxu1 %vm169_vm1, %v1293_v58 }
 0x691   :  { %3746 = vmatprep.subr.msk.mxu1 %vm169_vm1, %v1303_v56 }
 0x694   :  { %3747 = vmatpush3.xpose.msk.msra.mxu1 %vm169_vm1, %v1303_v56 }
 0x695   :  { %3748 = vmatprep.subr.msk.mxu1 %vm169_vm1, %v1301_v59 }
 0x698   :  { %3749 = vmatpush3.xpose.msk.msra.mxu1 %vm169_vm1, %v1301_v59 }
 0x69b   :  { %3751 = vmatmul.mubr.msk.f32.vlgmr.msra.gmra.mxu1 %vm169_vm1, %v1295_v60 }
 0x73b   :  { %v4292_v61 = vpop.f32.mrf.mxu1 }
 0x73d   :  { %v4294_v62 = vpop.f32.mrf.mxu1 }
 0x746   :  { %v4296_v63 = vpop.f32.mrf.mxu1 }
 0x748   :  { %v4298_v0 = vpop.f32.mrf.mxu1 }
 0x74b   :  { %v3716_v1 = vpop.f32.mrf.mxu1 }
 0x74c   :  { %v1029_v2 = vmul.f32 0.35355338, %v3716_v1  ;;  %v1190_v1 = vld [vmem:[%s4779_s1 + $0x38] sm:$0xff] }
 0x74d   :  { %v1009_v3 = vpop.f32.mrf.mxu1 }
 0x74e   :  { %v1028_v4 = vmul.f32 0.35355338, %v1009_v3  ;;  %v1033_v5 = vadd.f32 %v1029_v2, %v4150_v37 }
 0x74f   :  { %v3719_v6 = vpop.f32.mrf.mxu1 }
 0x750   :  { %v1039_v7 = vsel %vm279_vm6, %v1033_v5, -inf  ;;  %v1032_v8 = vadd.f32 %v1028_v4, %v4152_v41  ;;  %v1031_v11 = vmul.f32 0.35355338, %v3719_v6 }
 0x751   :  { %1040 = vmax.xlane.f32.xlu1 %v1039_v7  ;;  %v1019_v9 = vpop.f32.mrf.mxu1 }
 0x752   :  { %v1030_v13 = vmul.f32 0.35355338, %v1019_v9  ;;  %v1036_v15 = vsel %vm279_vm6, %v1032_v8, -inf  ;;  %v1035_v19 = vadd.f32 %v1031_v11, %v4155_v45 }
 0x753   :  { %1037 = vmax.xlane.f32.xlu0 %v1036_v15 }
 0x754   :  { %v1034_v17 = vadd.f32 %v1030_v13, %v4161_v53  ;;  %v1045_v20 = vsel %vm289_vm8, %v1035_v19, -inf }
 0x756   :  { %v1042_v18 = vsel %vm279_vm6, %v1034_v17, -inf }
 0x757   :  { %1043 = vmax.xlane.f32.xlu0 %v1042_v18 }
 0x75b   :  { %1046 = vmax.xlane.f32.xlu0 %v1045_v20  ;;  %v3752_v43 = vpop.f32.mrf.mxu1 }
 0x75c   :  { %v1410_v50 = vmul.f32 0.35355338, %v3752_v43 }
 0x75d   :  { %v1390_v46 = vpop.f32.mrf.mxu1 }
 0x75e   :  { %v1409_v47 = vmul.f32 0.35355338, %v1390_v46  ;;  %v1414_v51 = vadd.f32 %v1410_v50, %v4150_v37 }
 0x760   :  { %v1413_v48 = vadd.f32 %v1409_v47, %v4152_v41  ;;  %v1420_v52 = vsel %vm279_vm6, %v1414_v51, -inf }
 0x762   :  { %1086 = vrot.lane.b32.xlu1 %v4114_v14, %s4043_s24  ;;  %v1417_v49 = vsel %vm279_vm6, %v1413_v48, -inf }
 0x7da   :  { %v1041_v21 = vpop.xlane.xlu1 %1040 }
 0x7db   :  { %v1049_v22 = vsub.f32 %v1033_v5, %v1041_v21 }
 0x7dc   :  { %v1038_v23 = vpop.xlane.xlu0 %1037 }
 0x7dd   :  { %v1054_v24 = vmul.f32 1.442695, %v1049_v22  ;;  %v1048_v25 = vsub.f32 %v1032_v8, %v1038_v23  ;;  %v3702_v23 = vpop.f32.mrf.mxu0 }
 0x7de   :  { %v1087_v26 = vpop.permute.xlu1 %1086 }
 0x7df   :  { %3961 = vpow2.f32 %v1054_v24  ;;  %v1052_v27 = vmul.f32 1.442695, %v1048_v25  ;;  %3720 = vmatprep.subr.msk.mxu0 %vm348_vm2, %v1087_v26  ;;  %v892_v24 = vpop.f32.mrf.mxu0 }
 0x7e0   :  { %3721 = vmatpush3.msk.msra.mxu0 %vm348_vm2, %v1087_v26  ;;  %v1044_v28 = vpop.xlane.xlu0 %1043 }
 0x7e1   :  { %3963 = vpow2.f32 %v1052_v27  ;;  %v1050_v39 = vsub.f32 %v1034_v17, %v1044_v28  ;;  %v4350_v25 = vpop.f32.mrf.mxu0 }
 0x7e3   :  { %v1056_v40 = vmul.f32 1.442695, %v1050_v39  ;;  %v4352_v26 = vpop.f32.mrf.mxu0 }
 0x7e4   :  { %v1047_v29 = vpop.xlane.xlu0 %1046 }
 0x7e5   :  { %v1051_v30 = vsub.f32 %v1035_v19, %v1047_v29 }
 0x7e7   :  { %v1058_v31 = vmul.f32 1.442695, %v1051_v30 }
 0x7e9   :  { %3965 = vpow2.f32 %v1058_v31 }
 0x7ea   :  { %3967 = vpow2.f32 %v1056_v40 }
 0x7ec   :  { %v3962_v32 = vpop.eup %3961 }
 0x7ed   :  { %v1063_v33 = vsel %vm279_vm6, %v3962_v32, 0.0 }
 0x7ee   :  { %v3964_v34 = vpop.eup %3963  ;;  %1064 = vadd.xlane.f32.xlu0 %v1063_v33 }
 0x7ef   :  { %v1060_v35 = vsel %vm279_vm6, %v3964_v34, 0.0 }
 0x7f0   :  { %1061 = vadd.xlane.f32.xlu1 %v1060_v35 }
 0x7f6   :  { %v3966_v36 = vpop.eup %3965 }
 0x7f7   :  { %v1069_v38 = vsel %vm289_vm8, %v3966_v36, 0.0  ;;  %v3968_v42 = vpop.eup %3967 }
 0x7f8   :  { %1070 = vadd.xlane.f32.xlu0 %v1069_v38  ;;  %v1066_v44 = vsel %vm279_vm6, %v3968_v42, 0.0 }
 0x801   :  { %1082 = vrot.lane.b32.xlu1 %v4108_v10, %s4043_s24 }
 0x80e   :  { %1084 = vrot.lane.b32.xlu0 %v4122_v16, %s4043_s24 }
 0x812   :  { %1296 = vrot.lane.b32.xlu0 %v4122_v16, %s4042_s21 }
 0x825   :  { %1067 = vadd.xlane.f32.xlu1 %v1066_v44 }
 0x831   :  { %1418 = vmax.xlane.f32.xlu0 %v1417_v49 }
 0x836   :  { %1080 = vrot.lane.b32.xlu1 %v4110_v12, %s4043_s24 }
 0x83a   :  { %1298 = vrot.lane.b32.xlu1 %v4114_v14, %s4042_s21 }
 0x85e   :  { %1421 = vmax.xlane.f32.xlu1 %v1420_v52 }
 0x86f   :  { %1467 = vrot.lane.b32.xlu1 %v4114_v14, %s4044_s25 }
 0x873   :  { %1463 = vrot.lane.b32.xlu1 %v4108_v10, %s4044_s25 }
 0x877   :  { %1461 = vrot.lane.b32.xlu1 %v4110_v12, %s4044_s25  ;;  %v1065_v55 = vpop.xlane.xlu0 %1064 }
 0x879   :  { %v1062_v54 = vpop.xlane.xlu1 %1061 }
 0x87a   :  { %3969 = vrcp.f32 %v1062_v54 }
 0x87b   :  { %3971 = vrcp.f32 %v1065_v55 }
 0x87d   :  { %v1083_v58 = vpop.permute.xlu1 %1082 }
 0x881   :  { %v1071_v56 = vpop.xlane.xlu0 %1070 }
 0x882   :  { %3973 = vrcp.f32 %v1071_v56 }
 0x885   :  { %v1085_v57 = vpop.permute.xlu0 %1084 }
 0x886   :  { %3722 = vmatprep.subr.mxu0 %v1085_v57 }
 0x887   :  { %v3970_v37 = vpop.eup %3969  ;;  %3723 = vmatpush3.msra.mxu0 %v1085_v57 }
 0x888   :  { %3724 = vmatprep.subr.mxu0 %v1083_v58  ;;  %v1076_v59 = vmul.f32 %v3970_v37, %v3964_v34  ;;  %v3972_v12 = vpop.eup %3971 }
 0x889   :  { %3725 = vmatpush3.msra.mxu0 %v1083_v58  ;;  %v1297_v60 = vpop.permute.xlu0 %1296  ;;  %v1077_v2 = vmul.f32 %v3972_v12, %v3962_v32  ;;  %v1571_v58 = vld [vmem:[%s4779_s1 + $0x40] sm:$0xff] }
 0x88a   :  { %3728 = vmatprep.mubr.msk.f32.mxu0 %vm279_vm6, %v1076_v59  ;;  %3753 = vmatprep.mubr.msk.f32.mxu1 %vm169_vm1, %v1297_v60  ;;  %v898_v59 = vadd.f32 %v3702_v23, %v4292_v61 }
 0x88f   :  { %v3974_v4 = vpop.eup %3973 }
 0x890   :  { %v1079_v7 = vmul.f32 %v3974_v4, %v3966_v36  ;;  %v903_v4 = vadd.f32 %v4352_v26, %v4298_v0 }
 0x8ae   :  { %v1068_v10 = vpop.xlane.xlu1 %1067 }
 0x8af   :  { %3975 = vrcp.f32 %v1068_v10  ;;  %v893_v10 = vadd.f32 %v892_v24, %v4294_v62 }
 0x8b2   :  { %v1081_v14 = vpop.permute.xlu1 %1080 }
 0x8b3   :  { %3726 = vmatprep.subr.mxu0 %v1081_v14 }
 0x8b4   :  { %3727 = vmatpush3.msra.mxu0 %v1081_v14 }
 0x8b5   :  { %3729 = vmatmul.mubr.msk.f32.vlgmr.msra.gmra.mxu0 %vm279_vm6, %v1077_v2  ;;  %3734 = vmatprep.subr.mxu0 %v1190_v1  ;;  %v908_v2 = vadd.f32 %v4350_v25, %v4296_v63  ;;  %v4030_v25 = vld [vmem:[%s4780_s0] sm:$0xff] }
 0x8b6   :  { %v1299_v3 = vpop.permute.xlu1 %1298  ;;  %3735 = vmatpush3.msra.mxu0 %v1190_v1 }
 0x8b7   :  { %3754 = vmatmul.mubr.msk.f32.gmra.mxu1 %vm169_vm1, %v1299_v3 }
 0x8ba   :  { %v1419_v8 = vpop.xlane.xlu0 %1418 }
 0x8bb   :  { %v1429_v9 = vsub.f32 %v1413_v48, %v1419_v8 }
 0x8bc   :  { %v3976_v5 = vpop.eup %3975 }
 0x8bd   :  { %v1078_v6 = vmul.f32 %v3976_v5, %v3968_v42  ;;  %v1433_v15 = vmul.f32 1.442695, %v1429_v9 }
 0x8bf   :  { %3731 = vmatprep.mubr.msk.f32.mxu0 %vm279_vm6, %v1078_v6 }
 0x8c0   :  { %3732 = vmatmul.mubr.msk.f32.gmra.mxu0 %vm279_vm6, %v1079_v7 }
 0x8e7   :  { %v1422_v11 = vpop.xlane.xlu1 %1421 }
 0x8e8   :  { %v1430_v13 = vsub.f32 %v1414_v51, %v1422_v11 }
 0x8ea   :  { %v1435_v17 = vmul.f32 1.442695, %v1430_v13 }
 0x8eb   :  { %v1468_v18 = vpop.permute.xlu1 %1467 }
 0x8ec   :  { %3977 = vpow2.f32 %v1435_v17  ;;  %3756 = vmatprep.subr.msk.mxu0 %vm348_vm2, %v1468_v18 }
 0x8ed   :  { %3979 = vpow2.f32 %v1433_v15 }
 0x8ef   :  { %v1464_v42 = vpop.permute.xlu1 %1463 }
 0x8f9   :  { %v3978_v19 = vpop.eup %3977 }
 0x8fa   :  { %v1444_v20 = vsel %vm279_vm6, %v3978_v19, 0.0  ;;  %v3980_v21 = vpop.eup %3979 }
 0x8fb   :  { %1445 = vadd.xlane.f32.xlu0 %v1444_v20  ;;  %v1441_v22 = vsel %vm279_vm6, %v3980_v21, 0.0 }
 0x8ff   :  { %1442 = vadd.xlane.f32.xlu0 %v1441_v22  ;;  %v4029_v22 = vld [vmem:[%s4780_s0 + $0x8] sm:$0xff] }
 0x915   :  { %1465 = vrot.lane.b32.xlu0 %v4122_v16, %s4044_s25 }
 0x975   :  { %v3730_v27 = vpop.f32.mrf.mxu0 }
 0x977   :  { %v1171_v28 = vpop.f32.mrf.mxu0  ;;  %v3755_v29 = vpop.f32.mrf.mxu1 }
 0x978   :  { %v1412_v30 = vmul.f32 0.35355338, %v3755_v29  ;;  %3736 = vmatprep.mubr.msk.f32.mxu0 %vm169_vm1, %v1171_v28 }
 0x979   :  { %3737 = vmatmul.mubr.msk.f32.vlgmr.msra.gmra.mxu0 %vm169_vm1, %v3730_v27  ;;  %v1400_v31 = vpop.f32.mrf.mxu1 }
 0x97a   :  { %v1411_v32 = vmul.f32 0.35355338, %v1400_v31  ;;  %3757 = vmatpush3.msk.msra.mxu0 %vm348_vm2, %v1468_v18  ;;  %v1416_v16 = vadd.f32 %v1412_v30, %v4155_v45  ;;  %vm3122_vm2 = vcmask 259072  }
 0x97c   :  { %v1426_v33 = vsel %vm289_vm8, %v1416_v16, -inf  ;;  %v1415_v34 = vadd.f32 %v1411_v32, %v4161_v53  ;;  %v1462_v53 = vpop.permute.xlu1 %1461 }
 0x97d   :  { %1427 = vmax.xlane.f32.xlu1 %v1426_v33 }
 0x97e   :  { %v1423_v35 = vsel %vm279_vm6, %v1415_v34, -inf }
 0x97f   :  { %1424 = vmax.xlane.f32.xlu0 %v1423_v35 }
 0x980   :  { %v3733_v36 = vpop.f32.mrf.mxu0 }
 0x982   :  { %v1181_v38 = vpop.f32.mrf.mxu0 }
 0x983   :  { %3739 = vmatprep.mubr.msk.f32.mxu0 %vm169_vm1, %v1181_v38 }
 0x984   :  { %3740 = vmatmul.mubr.msk.f32.gmra.mxu0 %vm169_vm1, %v3733_v36  ;;  %v1446_v39 = vpop.xlane.xlu0 %1445 }
 0x985   :  { %3981 = vrcp.f32 %v1446_v39 }
 0x988   :  { %v1443_v40 = vpop.xlane.xlu0 %1442 }
 0x989   :  { %3983 = vrcp.f32 %v1443_v40 }
 0x98c   :  { %v1466_v45 = vpop.permute.xlu0 %1465 }
 0x98d   :  { %3758 = vmatprep.subr.mxu0 %v1466_v45 }
 0x98e   :  { %3759 = vmatpush3.msra.mxu0 %v1466_v45  ;;  %v1757_v45 = vld [vmem:[%s4779_s1 + $0x58] sm:$0xff] }
 0x98f   :  { %3760 = vmatprep.subr.mxu0 %v1464_v42 }
 0x990   :  { %3761 = vmatpush3.msra.mxu0 %v1464_v42  ;;  %v1758_v42 = vld [vmem:[%s4779_s1 + $0x60] sm:$0xff] }
 0x991   :  { %3762 = vmatprep.subr.mxu0 %v1462_v53  ;;  %3778 = vmatprep.subr.mxu1 %v1758_v42 }
 0x992   :  { %3763 = vmatpush3.msra.mxu0 %v1462_v53  ;;  %v3982_v43 = vpop.eup %3981  ;;  %3779 = vmatpush3.msra.mxu1 %v1758_v42  ;;  %v1756_v53 = vld [vmem:[%s4779_s1 + $0x50] sm:$0xff] }
 0x993   :  { %v1458_v47 = vmul.f32 %v3982_v43, %v3978_v19  ;;  %3770 = vmatprep.subr.mxu0 %v1571_v58  ;;  %3780 = vmatprep.subr.mxu1 %v1757_v45  ;;  %v1755_v43 = vld [vmem:[%s4779_s1 + $0x48] sm:$0xff] }
 0x994   :  { %3781 = vmatpush3.msra.mxu1 %v1757_v45 }
 0x995   :  { %3782 = vmatprep.subr.mxu1 %v1756_v53 }
 0x996   :  { %v3984_v44 = vpop.eup %3983  ;;  %3783 = vmatpush3.msra.mxu1 %v1756_v53 }
 0x997   :  { %v1457_v46 = vmul.f32 %v3984_v44, %v3980_v21  ;;  %v4385_v21 = vld [vmem:[%s4779_s1 + $0x21] ss:$0 sm:$0xff]  ;;  %3784 = vmatprep.subr.mxu1 %v1755_v43 }
 0x998   :  { %3785 = vmatpush3.msra.mxu1 %v1755_v43 }
 0x999   :  { %3764 = vmatprep.mubr.msk.f32.mxu0 %vm279_vm6, %v1457_v46 }
 0x99a   :  { %3765 = vmatmul.mubr.msk.f32.vlgmr.msra.gmra.mxu0 %vm279_vm6, %v1458_v47 }
 0x99b   :  { %3771 = vmatpush3.msra.mxu0 %v1571_v58 }
 0xa06   :  { %v1428_v48 = vpop.xlane.xlu1 %1427 }
 0xa07   :  { %v1432_v49 = vsub.f32 %v1416_v16, %v1428_v48 }
 0xa08   :  { %v1425_v50 = vpop.xlane.xlu0 %1424 }
 0xa09   :  { %v1431_v51 = vsub.f32 %v1415_v34, %v1425_v50  ;;  %v1439_v52 = vmul.f32 1.442695, %v1432_v49  ;;  %v4031_v49 = vld [vmem:[%s4780_s0 + $0x10] sm:$0xff] }
 0xa0b   :  { %v1437_v54 = vmul.f32 1.442695, %v1431_v51 }
 0xa0d   :  { %3985 = vpow2.f32 %v1437_v54  ;;  %v1766_v54 = vld [vmem:[%s4779_s1 + $0xa0] sm:$0xff] }
 0xa0e   :  { %3987 = vpow2.f32 %v1439_v52  ;;  %3792 = vmatprep.subr.mxu0 %v1766_v54 }
 0xa1a   :  { %v3986_v55 = vpop.eup %3985 }
 0xa1b   :  { %v1447_v56 = vsel %vm279_vm6, %v3986_v55, 0.0  ;;  %v3988_v57 = vpop.eup %3987 }
 0xa1c   :  { %1448 = vadd.xlane.f32.xlu0 %v1447_v56  ;;  %v1450_v37 = vsel %vm289_vm8, %v3988_v57, 0.0  ;;  %v1764_v56 = vld [vmem:[%s4779_s1 + $0x90] sm:$0xff] }
 0xa20   :  { %1451 = vadd.xlane.f32.xlu0 %v1450_v37 }
 0xa39   :  { %v3738_v60 = vpop.f32.mrf.mxu0 }
 0xa3a   :  { %v1289_v12 = vadd.f32 %v3738_v60, %v898_v59 }
 0xa3b   :  { %v1269_v14 = vpop.f32.mrf.mxu0 }
 0xa3c   :  { %v1288_v1 = vadd.f32 %v1269_v14, %v893_v10 }
 0xa44   :  { %v3741_v3 = vpop.f32.mrf.mxu0 }
 0xa45   :  { %v1291_v5 = vadd.f32 %v3741_v3, %v908_v2  ;;  %v4436_v2 = vld [vmem:[%s4779_s1 + $0x24] ss:$0 sm:$0xff] }
 0xa46   :  { %v1279_v6 = vpop.f32.mrf.mxu0 }
 0xa47   :  { %v1290_v7 = vadd.f32 %v1279_v6, %v903_v4  ;;  %v4442_v6 = vld [vmem:[%s4779_s1 + $0x25] ss:$0 sm:$0xff] }
 0xa5a   :  { %v3766_v62 = vpop.f32.mrf.mxu0 }
 0xa5c   :  { %v1552_v17 = vpop.f32.mrf.mxu0 }
 0xaa5   :  { %v1449_v8 = vpop.xlane.xlu0 %1448 }
 0xaa6   :  { %3989 = vrcp.f32 %v1449_v8 }
 0xaa9   :  { %v1452_v61 = vpop.xlane.xlu0 %1451 }
 0xaaa   :  { %3991 = vrcp.f32 %v1452_v61 }
 0xab3   :  { %v3990_v9 = vpop.eup %3989 }
 0xab4   :  { %v1459_v11 = vmul.f32 %v3990_v9, %v3986_v55  ;;  %v1765_v55 = vld [vmem:[%s4779_s1 + $0x98] sm:$0xff]  ;;  %v1762_v9 = vld [vmem:[%s4779_s1 + $0x80] sm:$0xff] }
 0xab6   :  { %3767 = vmatprep.mubr.msk.f32.mxu0 %vm279_vm6, %v1459_v11  ;;  %v1761_v11 = vld [vmem:[%s4779_s1 + $0x78] sm:$0xff] }
 0xab7   :  { %v3992_v13 = vpop.eup %3991 }
 0xab8   :  { %v1460_v15 = vmul.f32 %v3992_v13, %v3988_v57  ;;  %v1763_v57 = vld [vmem:[%s4779_s1 + $0x88] sm:$0xff] }
 0xab9   :  { %v1759_v13 = vld [vmem:[%s4779_s1 + $0x68] sm:$0xff] }
 0xaba   :  { %3768 = vmatmul.mubr.msk.f32.gmra.mxu0 %vm279_vm6, %v1460_v15  ;;  %v4467_v15 = vld [vmem:[%s4779_s1 + $0x22] ss:$0 sm:$0xff] }
 0xabb   :  { %3772 = vmatprep.mubr.msk.f32.mxu0 %vm169_vm1, %v1552_v17 }
 0xabe   :  { %3773 = vmatmul.mubr.msk.f32.vlgmr.msra.gmra.mxu0 %vm169_vm1, %v3766_v62  ;;  %v1760_v62 = vld [vmem:[%s4779_s1 + $0x70] sm:$0xff] }
 0xabf   :  { %3793 = vmatpush3.msra.mxu0 %v1766_v54  ;;  %v2051_v54 = vld [vmem:[%s4781_s3] sm:$0xf] }
 0xac0   :  { %3794 = vmatprep.subr.mxu0 %v1765_v55  ;;  %2053 = vst.msk [vmem:[#allocation2 + $0x2] sm:$0xf] %vm2052_vm11, %v2051_v54 }
 0xac1   :  { %3795 = vmatpush3.msra.mxu0 %v1765_v55  ;;  %v4045_v55 = vmov 0.0  }
 0xac2   :  { %3796 = vmatprep.subr.mxu0 %v1764_v56  ;;  %3814 = vmatprep.subr.mxu1 %v4045_v55 }
 0xac3   :  { %3797 = vmatpush3.msra.mxu0 %v1764_v56  ;;  %v2058_v56 = vld [vmem:[%s4782_s2 + $0x18] sm:$0xff] }
 0xac4   :  { %3798 = vmatprep.subr.mxu0 %v1763_v57 }
 0xac5   :  { %3799 = vmatpush3.msra.mxu0 %v1763_v57  ;;  %v2057_v57 = vld [vmem:[%s4782_s2 + $0x10] sm:$0xff] }
 0xac6   :  { %3800 = vmatprep.subr.mxu0 %v1762_v9 }
 0xac7   :  { %3801 = vmatpush3.msra.mxu0 %v1762_v9 }
 0xac8   :  { %3802 = vmatprep.subr.mxu0 %v1761_v11 }
 0xac9   :  { %3803 = vmatpush3.msra.mxu0 %v1761_v11 }
 0xaca   :  { %3804 = vmatprep.subr.mxu0 %v1760_v62 }
 0xacb   :  { %3805 = vmatpush3.msra.mxu0 %v1760_v62 }
 0xacc   :  { %3806 = vmatprep.subr.mxu0 %v1759_v13 }
 0xacd   :  { %3807 = vmatpush3.msra.mxu0 %v1759_v13 }
 0xace   :  { %3840 = vmatprep.subr.mxu0 %v4045_v55 }
 0xb7a   :  { %v3769_v63 = vpop.f32.mrf.mxu0 }
 0xb7c   :  { %v1562_v0 = vpop.f32.mrf.mxu0 }
 0xb7d   :  { %3775 = vmatprep.mubr.msk.f32.mxu0 %vm169_vm1, %v1562_v0 }
 0xb7e   :  { %v3774_v18 = vpop.f32.mrf.mxu0  ;;  %3776 = vmatmul.mubr.msk.f32.gmra.mxu0 %vm169_vm1, %v3769_v63 }
 0xb7f   :  { %v1670_v19 = vadd.f32 %v3774_v18, %v1289_v12 }
 0xb80   :  { %v1650_v20 = vpop.f32.mrf.mxu0 }
 0xb81   :  { %v1674_v23 = vadd.f32 %v4029_v22, %v1670_v19  ;;  %v1669_v24 = vadd.f32 %v1650_v20, %v1288_v1 }
 0xb83   :  { %v1673_v26 = vadd.f32 %v4030_v25, %v1669_v24  ;;  %v1682_v27 = vadd.f32 %v4385_v21, %v1674_v23  ;;  %v4478_v24 = vld [vmem:[%s4779_s1 + $0x23] ss:$0 sm:$0xff] }
 0xb85   :  { %v1688_v28 = vsel %vm59_vm0, %v1682_v27, 0.0  ;;  %v1681_v29 = vadd.f32 %v4385_v21, %v1673_v26  ;;  %v4032_v26 = vld [vmem:[%s4780_s0 + $0x18] sm:$0x3] }
 0xb86   :  { %1689 = vadd.xlane.f32.xlu0 %v1688_v28 }
 0xb87   :  { %v1685_v30 = vsel %vm59_vm0, %v1681_v29, 0.0 }
 0xb88   :  { %1686 = vadd.xlane.f32.xlu1 %v1685_v30 }
 0xc0f   :  { %v1690_v31 = vpop.xlane.xlu0 %1689 }
 0xc10   :  { %v1700_v32 = vmul.f32 0.03125, %v1690_v31 }
 0xc11   :  { %v1687_v16 = vpop.xlane.xlu1 %1686 }
 0xc12   :  { %v1704_v33 = vsub.f32 %v1682_v27, %v1700_v32  ;;  %v1699_v34 = vmul.f32 0.03125, %v1687_v16 }
 0xc14   :  { %v1703_v35 = vsub.f32 %v1681_v29, %v1699_v34  ;;  %v1708_v36 = vmul.f32 %v1704_v33, %v1704_v33 }
 0xc16   :  { %v1714_v38 = vsel %vm59_vm0, %v1708_v36, 0.0  ;;  %v1707_v39 = vmul.f32 %v1703_v35, %v1703_v35 }
 0xc17   :  { %1715 = vadd.xlane.f32.xlu0 %v1714_v38 }
 0xc18   :  { %v1711_v40 = vsel %vm59_vm0, %v1707_v39, 0.0 }
 0xc19   :  { %1712 = vadd.xlane.f32.xlu1 %v1711_v40 }
 0xc3e   :  { %v3777_v44 = vpop.f32.mrf.mxu0 }
 0xc3f   :  { %v4411_v46 = vadd.f32 %v3777_v44, %v1291_v5 }
 0xc40   :  { %v1660_v47 = vpop.f32.mrf.mxu0 }
 0xc41   :  { %v1671_v48 = vadd.f32 %v1660_v47, %v1290_v7  ;;  %v1676_v27 = vadd.f32 %v4032_v26, %v4411_v46 }
 0xc43   :  { %v1675_v50 = vadd.f32 %v4031_v49, %v1671_v48  ;;  %v1684_v16 = vadd.f32 %v4385_v21, %v1676_v27 }
 0xc45   :  { %v4417_v51 = vadd.f32 %v4385_v21, %v1675_v50 }
 0xc47   :  { %v1691_v52 = vsel %vm59_vm0, %v4417_v51, 0.0 }
 0xc48   :  { %1692 = vadd.xlane.f32.xlu0 %v1691_v52 }
 0xca0   :  { %v1716_v37 = vpop.xlane.xlu0 %1715 }
 0xca1   :  { %v1724_v58 = vmul.f32 0.03125, %v1716_v37  ;;  %v2056_v37 = vld [vmem:[%s4782_s2 + $0x8] sm:$0xff] }
 0xca2   :  { %v1713_v59 = vpop.xlane.xlu1 %1712 }
 0xca3   :  { %v1728_v60 = vadd.f32 1e-05, %v1724_v58  ;;  %v1723_v10 = vmul.f32 0.03125, %v1713_v59  ;;  %v2055_v58 = vld [vmem:[%s4782_s2] sm:$0xff] }
 0xca5   :  { %3993 = vrsqrt.f32 %v1728_v60  ;;  %v1727_v12 = vadd.f32 1e-05, %v1723_v10 }
 0xca7   :  { %3995 = vrsqrt.f32 %v1727_v12 }
 0xcb2   :  { %v3994_v14 = vpop.eup %3993 }
 0xcb3   :  { %v1736_v1 = vmul.f32 %v3994_v14, %v1704_v33  ;;  %v1695_v33 = vsel %vm1694_vm10, %v1684_v16, 0.0 }
 0xcb4   :  { %v3996_v3 = vpop.eup %3995 }
 0xcb5   :  { %v1735_v4 = vmul.f32 %v3996_v3, %v1703_v35  ;;  %v1744_v5 = vmul.f32 %v4436_v2, %v1736_v1 }
 0xcb7   :  { %v1743_v7 = vmul.f32 %v4436_v2, %v1735_v4  ;;  %v4447_v61 = vadd.f32 %v4442_v6, %v1744_v5  ;;  %v4522_v4 = vld [vmem:[%s4779_s1 + $0x26] ss:$0 sm:$0xff] }
 0xcb9   :  { %v1751_v8 = vadd.f32 %v4442_v6, %v1743_v7  ;;  %v4527_v7 = vld [vmem:[%s4779_s1 + $0x27] ss:$0 sm:$0xff] }
 0xcbb   :  { %3786 = vmatprep.mubr.msk.f32.mxu1 %vm59_vm0, %v1751_v8 }
 0xcbc   :  { %3787 = vmatmul.mubr.msk.f32.vlgmr.msra.gmra.mxu1 %vm59_vm0, %v4447_v61 }
 0xcbd   :  { %3815 = vmatpush3.msra.mxu1 %v2058_v56 }
 0xcbe   :  { %3816 = vmatprep.subr.mxu1 %v4045_v55 }
 0xcbf   :  { %3817 = vmatpush3.msra.mxu1 %v2057_v57 }
 0xcc0   :  { %3818 = vmatprep.subr.mxu1 %v4045_v55 }
 0xcc1   :  { %3819 = vmatpush3.msra.mxu1 %v2056_v37 }
 0xcc2   :  { %3820 = vmatprep.subr.mxu1 %v4045_v55 }
 0xcc3   :  { %3821 = vmatpush3.msra.mxu1 %v2055_v58  ;;  %v2483_v58 = vld [vmem:[%s4782_s2 + $0x30] sm:$0xff] }
 0xcc4   :  { %3825 = vmatprep.subr.mxu1 %v4045_v55 }
 0xcd1   :  { %v1693_v22 = vpop.xlane.xlu0 %1692 }
 0xcd2   :  { %v1701_v28 = vmul.f32 0.03125, %v1693_v22 }
 0xcd4   :  { %v1705_v31 = vsub.f32 %v4417_v51, %v1701_v28 }
 0xcd6   :  { %v1709_v34 = vmul.f32 %v1705_v31, %v1705_v31 }
 0xcd8   :  { %v1717_v35 = vsel %vm59_vm0, %v1709_v34, 0.0 }
 0xd7c   :  { %v3788_v17 = vpop.f32.mrf.mxu1 }
 0xd7d   :  { %v1855_v63 = vadd.f32 %v3788_v17, %v4467_v15 }
 0xd7e   :  { %v1849_v0 = vpop.f32.mrf.mxu1 }
 0xd7f   :  { %v1850_v18 = vadd.f32 %v4467_v15, %v1849_v0  ;;  %v1869_v20 = vmax.f32 %v1855_v63, 0.0 }
 0xd81   :  { %v1868_v19 = vmax.f32 %v1850_v18, 0.0  ;;  %v3434_v18 = vld [vmem:[%s4782_s2 + $0x20] ss:$0 sm:$0xff] }
 0xd83   :  { %3808 = vmatprep.mubr.msk.f32.mxu0 %vm1876_vm9, %v1868_v19 }
 0xd84   :  { %3809 = vmatmul.mubr.msk.f32.vlgmr.msra.gmra.mxu0 %vm1876_vm9, %v1869_v20 }
 0xe44   :  { %v4473_v23 = vpop.f32.mrf.mxu0 }
 0xe46   :  { %v1955_v25 = vpop.f32.mrf.mxu0 }
 0xe47   :  { %v1956_v29 = vadd.f32 %v4478_v24, %v1955_v25 }
 0xe49   :  { %v1974_v30 = vadd.f32 %v1956_v29, %v1751_v8 }
 0xe4b   :  { %v1978_v32 = vsel %vm59_vm0, %v1974_v30, 0.0 }
 0xe4c   :  { %1979 = vadd.xlane.f32.xlu1 %v1978_v32 }
 0xe50   :  { %1696 = vadd.xlane.f32.xlu1 %v1695_v33 }
 0xe54   :  { %1718 = vadd.xlane.f32.xlu1 %v1717_v35 }
 0xed5   :  { %v1980_v36 = vpop.xlane.xlu1 %1979 }
 0xed6   :  { %v1990_v38 = vmul.f32 0.03125, %v1980_v36 }
 0xed8   :  { %v1994_v39 = vsub.f32 %v1974_v30, %v1990_v38 }
 0xed9   :  { %v1697_v40 = vpop.xlane.xlu1 %1696 }
 0xeda   :  { %v1702_v42 = vmul.f32 0.03125, %v1697_v40  ;;  %v1998_v45 = vmul.f32 %v1994_v39, %v1994_v39 }
 0xedc   :  { %v1706_v53 = vsub.f32 %v1684_v16, %v1702_v42  ;;  %v2002_v43 = vsel %vm59_vm0, %v1998_v45, 0.0 }
 0xedd   :  { %2003 = vadd.xlane.f32.xlu0 %v2002_v43  ;;  %v1719_v21 = vpop.xlane.xlu1 %1718 }
 0xede   :  { %v1725_v44 = vmul.f32 0.03125, %v1719_v21  ;;  %v1710_v46 = vmul.f32 %v1706_v53, %v1706_v53 }
 0xee0   :  { %v1729_v47 = vadd.f32 1e-05, %v1725_v44  ;;  %v1720_v48 = vsel %vm1694_vm10, %v1710_v46, 0.0 }
 0xee1   :  { %1721 = vadd.xlane.f32.xlu0 %v1720_v48 }
 0xee2   :  { %3997 = vrsqrt.f32 %v1729_v47 }
 0xeef   :  { %v3998_v49 = vpop.eup %3997 }
 0xef0   :  { %v1737_v50 = vmul.f32 %v3998_v49, %v1705_v31 }
 0xef2   :  { %v1745_v51 = vmul.f32 %v4436_v2, %v1737_v50 }
 0xef4   :  { %v4494_v52 = vadd.f32 %v4442_v6, %v1745_v51 }
 0xef6   :  { %3789 = vmatprep.mubr.msk.f32.mxu1 %vm59_vm0, %v4494_v52 }
 0xf66   :  { %v2004_v59 = vpop.xlane.xlu0 %2003 }
 0xf67   :  { %v2014_v60 = vmul.f32 0.03125, %v2004_v59 }
 0xf69   :  { %v2018_v10 = vadd.f32 1e-05, %v2014_v60 }
 0xf6a   :  { %v1722_v12 = vpop.xlane.xlu0 %1721 }
 0xf6b   :  { %3999 = vrsqrt.f32 %v2018_v10  ;;  %v1726_v14 = vmul.f32 0.03125, %v1722_v12  ;;  %v2314_v12 = vld [vmem:[%s4782_s2 + $0x28] sm:$0xff] }
 0xf6d   :  { %v1730_v1 = vadd.f32 1e-05, %v1726_v14 }
 0xf6f   :  { %4001 = vrsqrt.f32 %v1730_v1 }
 0xf78   :  { %v4000_v3 = vpop.eup %3999 }
 0xf79   :  { %v2026_v5 = vmul.f32 %v4000_v3, %v1994_v39 }
 0xf7b   :  { %v2034_v8 = vmul.f32 %v4522_v4, %v2026_v5 }
 0xf7c   :  { %v4002_v9 = vpop.eup %4001 }
 0xf7d   :  { %v2042_v11 = vadd.f32 %v4527_v7, %v2034_v8  ;;  %v1738_v62 = vmul.f32 %v4002_v9, %v1706_v53 }
 0xf7f   :  { %2046 = vst.msk [vmem:[%s4783_s4] sm:$0xff] %vm59_vm0, %v2042_v11  ;;  %v1746_v13 = vmul.f32 %v4436_v2, %v1738_v62 }
 0xf80   :  { %2050 = vst.msk [vmem:[#allocation2] sm:$0x3] %vm1694_vm10, %v2042_v11 }
 0xf81   :  { %v4538_v17 = vadd.f32 %v4442_v6, %v1746_v13 }
 0xf83   :  { %3790 = vmatmul.mubr.msk.f32.gmra.mxu1 %vm59_vm0, %v4538_v17 }
 0xf84   :  { %3822 = vmatprep.mubr.msk.f32.mxu1 %vm4046_vm12, %v4045_v55 }
 0xf87   :  { %v4544_v63 = vld [vmem:[#allocation2] sm:$0x3f] }
 0xf88   :  { %3823 = vmatmul.mubr.msk.f32.vlgmr.msra.gmra.mxu1 %vm59_vm0, %v4544_v63 }
 0xf89   :  { %3827 = vmatprep.mubr.msk.f32.mxu1 %vm4046_vm12, %v4045_v55 }
0x1043   :  { %v3791_v0 = vpop.f32.mrf.mxu1 }
0x1044   :  { %v1865_v2 = vadd.f32 %v3791_v0, %v4467_v15 }
0x1045   :  { %v1859_v6 = vpop.f32.mrf.mxu1 }
0x1046   :  { %v1860_v19 = vadd.f32 %v4467_v15, %v1859_v6  ;;  %v1871_v26 = vmax.f32 %v1865_v2, 0.0 }
0x1048   :  { %v2140_v20 = vpop.f32.mrf.mxu1  ;;  %v1870_v22 = vmax.f32 %v1860_v19, 0.0 }
0x1049   :  { %v4555_v25 = vadd.f32 %v3434_v18, %v2140_v20 }
0x104a   :  { %v3824_v27 = vpop.f32.mrf.mxu1  ;;  %3811 = vmatprep.mubr.msk.f32.mxu0 %vm1876_vm9, %v1870_v22 }
0x104b   :  { %2145 = vrot.lane.b32.xlu1 %v4555_v25, %s4033_s11  ;;  %3812 = vmatmul.mubr.msk.f32.gmra.mxu0 %vm1876_vm9, %v1871_v26 }
0x104c   :  { %3842 = vmatprep.mubr.msk.f32.mxu0 %vm4046_vm12, %v4045_v55 }
0x104f   :  { %2317 = vrot.lane.b32.xlu1 %v4555_v25, %s4036_s13 }
0x1053   :  { %2315 = vrot.lane.b32.xlu1 %v4555_v25, %s4037_s14 }
0x10bd   :  { %v2146_v15 = vpop.permute.xlu1 %2145 }
0x10be   :  { %3826 = vmatpush3.xpose.msk.msra.mxu1 %vm169_vm1, %v2146_v15 }
0x10bf   :  { %3830 = vmatprep.subr.mxu1 %v4045_v55 }
0x10c1   :  { %3828 = vmatmul.mubr.msk.f32.vlgmr.msra.gmra.mxu1 %vm169_vm1, %v4555_v25  ;;  %v2318_v42 = vpop.permute.xlu1 %2317 }
0x10c2   :  { %3832 = vmatprep.mubr.msk.f32.mxu1 %vm4046_vm12, %v4045_v55 }
0x10c5   :  { %v2316_v53 = vpop.permute.xlu1 %2315 }
0x110b   :  { %v4613_v14 = vpop.f32.mrf.mxu0 }
0x110d   :  { %v4615_v1 = vpop.f32.mrf.mxu0 }
0x1181   :  { %v2217_v28 = vpop.f32.mrf.mxu1 }
0x1182   :  { %v2221_v29 = vmul.f32 0.35355338, %v2217_v28 }
0x1183   :  { %v3829_v30 = vpop.f32.mrf.mxu1 }
0x1184   :  { %v2222_v31 = vadd.f32 %v2221_v29, %v4152_v41 }
0x1186   :  { %v2224_v32 = vsel %vm2223_vm13, %v2222_v31, -inf }
0x1187   :  { %2225 = vmax.xlane.f32.xlu0 %v2224_v32 }
0x1210   :  { %v2226_v16 = vpop.xlane.xlu0 %2225 }
0x1211   :  { %v2227_v33 = vsub.f32 %v2222_v31, %v2226_v16 }
0x1213   :  { %v2228_v34 = vmul.f32 1.442695, %v2227_v33 }
0x1215   :  { %4003 = vpow2.f32 %v2228_v34  ;;  %v2798_v34 = vld [vmem:[%s4782_s2 + $0x38] sm:$0xff] }
0x1222   :  { %v4004_v35 = vpop.eup %4003 }
0x1223   :  { %v2230_v36 = vsel %vm2223_vm13, %v4004_v35, 0.0 }
0x1224   :  { %2231 = vadd.xlane.f32.xlu0 %v2230_v36 }
0x123a   :  { %2235 = vrot.lane.b32.xlu0 %v4555_v25, %s4034_s12 }
0x12ad   :  { %v2232_v38 = vpop.xlane.xlu0 %2231 }
0x12ae   :  { %4005 = vrcp.f32 %v2232_v38 }
0x12b1   :  { %v2236_v39 = vpop.permute.xlu0 %2235 }
0x12b2   :  { %3831 = vmatpush3.msk.msra.mxu1 %vm2241_vm14, %v2236_v39 }
0x12b3   :  { %3835 = vmatprep.subr.mxu1 %v4045_v55 }
0x12bb   :  { %v4006_v40 = vpop.eup %4005 }
0x12bc   :  { %v2234_v45 = vmul.f32 %v4006_v40, %v4004_v35 }
0x12be   :  { %3833 = vmatmul.mubr.msk.f32.vlgmr.msra.gmra.mxu1 %vm2237_vm15, %v2234_v45 }
0x12bf   :  { %3836 = vmatpush3.xpose.msk.msra.mxu1 %vm169_vm1, %v2318_v42  ;;  %3837 = vmatprep.mubr.msk.f32.mxu1 %vm4046_vm12, %v4045_v55 }
0x12c0   :  { %3845 = vmatprep.subr.mxu1 %v4045_v55 }
0x12c2   :  { %3838 = vmatmul.mubr.msk.f32.vlgmr.msra.gmra.mxu1 %vm169_vm1, %v2316_v53 }
0x12c3   :  { %3847 = vmatprep.mubr.msk.f32.mxu1 %vm4046_vm12, %v4045_v55  ;;  %3846 = vmatpush3.msra.mxu1 %v2483_v58 }
0x12c4   :  { %3855 = vmatprep.subr.mxu1 %v4045_v55 }
0x137e   :  { %v2310_v43 = vpop.f32.mrf.mxu1 }
0x1380   :  { %v3834_v21 = vpop.f32.mrf.mxu1 }
0x1382   :  { %v2389_v44 = vpop.f32.mrf.mxu1 }
0x1383   :  { %v2393_v46 = vmul.f32 0.35355338, %v2389_v44 }
0x1384   :  { %v3839_v47 = vpop.f32.mrf.mxu1 }
0x1385   :  { %v2394_v48 = vadd.f32 %v2393_v46, %v4152_v41 }
0x1387   :  { %v2395_v49 = vsel %vm2223_vm13, %v2394_v48, -inf }
0x1388   :  { %2396 = vmax.xlane.f32.xlu1 %v2395_v49  ;;  %v3041_v49 = vld [vmem:[%s4782_s2 + $0x40] sm:$0xff] }
0x1399   :  { %2406 = vrot.lane.b32.xlu1 %v4555_v25, %s4038_s17 }
0x139d   :  { %2630 = vrot.lane.b32.xlu1 %v4555_v25, %s4040_s19 }
0x1411   :  { %v2397_v50 = vpop.xlane.xlu1 %2396 }
0x1412   :  { %v2398_v51 = vsub.f32 %v2394_v48, %v2397_v50 }
0x1414   :  { %v2399_v54 = vmul.f32 1.442695, %v2398_v51 }
0x1415   :  { %v2407_v56 = vpop.permute.xlu1 %2406 }
0x1416   :  { %4007 = vpow2.f32 %v2399_v54  ;;  %3841 = vmatpush3.msk.msra.mxu0 %vm2241_vm14, %v2407_v56 }
0x1417   :  { %3850 = vmatprep.subr.mxu0 %v4045_v55 }
0x1419   :  { %v2631_v9 = vpop.permute.xlu1 %2630 }
0x1423   :  { %v4008_v57 = vpop.eup %4007 }
0x1424   :  { %v2401_v37 = vsel %vm2223_vm13, %v4008_v57, 0.0 }
0x1425   :  { %2402 = vadd.xlane.f32.xlu0 %v2401_v37 }
0x143b   :  { %2632 = vrot.lane.b32.xlu0 %v4555_v25, %s4039_s18 }
0x14ae   :  { %v2403_v59 = vpop.xlane.xlu0 %2402 }
0x14af   :  { %4009 = vrcp.f32 %v2403_v59 }
0x14b2   :  { %v2633_v5 = vpop.permute.xlu0 %2632 }
0x14bc   :  { %v4010_v60 = vpop.eup %4009 }
0x14bd   :  { %v2405_v10 = vmul.f32 %v4010_v60, %v4008_v57 }
0x14bf   :  { %3843 = vmatmul.mubr.msk.f32.vlgmr.msra.gmra.mxu0 %vm2237_vm15, %v2405_v10  ;;  %v3456_v10 = vld [vmem:[%s4782_s2 + $0x21] ss:$0 sm:$0xff] }
0x14c0   :  { %3851 = vmatpush3.msra.mxu0 %v2314_v12  ;;  %3852 = vmatprep.mubr.msk.f32.mxu0 %vm4046_vm12, %v4045_v55 }
0x14c1   :  { %3860 = vmatprep.subr.mxu0 %v4045_v55 }
0x14c3   :  { %3853 = vmatmul.mubr.msk.f32.vlgmr.msra.gmra.mxu0 %vm169_vm1, %v2310_v43 }
0x14c4   :  { %3862 = vmatprep.mubr.msk.f32.mxu0 %vm4046_vm12, %v4045_v55 }
0x157f   :  { %v2479_v3 = vpop.f32.mrf.mxu0 }
0x1580   :  { %3848 = vmatmul.mubr.msk.f32.vlgmr.msra.gmra.mxu1 %vm169_vm1, %v2479_v3 }
0x1581   :  { %3856 = vmatpush3.xpose.msk.msra.mxu1 %vm169_vm1, %v2633_v5  ;;  %v3844_v8 = vpop.f32.mrf.mxu0  ;;  %3857 = vmatprep.mubr.msk.f32.mxu1 %vm4046_vm12, %v4045_v55 }
0x1582   :  { %3865 = vmatprep.subr.mxu1 %v4045_v55 }
0x1583   :  { %v2626_v11 = vpop.f32.mrf.mxu0 }
0x1584   :  { %3858 = vmatmul.mubr.msk.f32.vlgmr.msra.gmra.mxu1 %vm169_vm1, %v2631_v9 }
0x1585   :  { %v3854_v62 = vpop.f32.mrf.mxu0  ;;  %3867 = vmatprep.mubr.msk.f32.mxu1 %vm4046_vm12, %v4045_v55  ;;  %3866 = vmatpush3.msra.mxu1 %v2798_v34 }
0x1586   :  { %3875 = vmatprep.subr.mxu1 %v4045_v55 }
0x1640   :  { %v2553_v13 = vpop.f32.mrf.mxu1 }
0x1642   :  { %v3849_v0 = vpop.f32.mrf.mxu1 }
0x1644   :  { %v2704_v2 = vpop.f32.mrf.mxu1 }
0x1645   :  { %v2708_v6 = vmul.f32 0.35355338, %v2704_v2  ;;  %v1966_v2 = vadd.f32 %v4478_v24, %v4615_v1  ;;  %v3149_v1 = vld [vmem:[%s4782_s2 + $0x60] sm:$0xff] }
0x1646   :  { %v3859_v18 = vpop.f32.mrf.mxu1 }
0x1647   :  { %v2709_v19 = vadd.f32 %v2708_v6, %v4152_v41  ;;  %v1976_v18 = vadd.f32 %v1966_v2, %v4494_v52  ;;  %v3147_v52 = vld [vmem:[%s4782_s2 + $0x50] sm:$0xff] }
0x1649   :  { %v2710_v20 = vsel %vm2223_vm13, %v2709_v19, -inf }
0x164a   :  { %2711 = vmax.xlane.f32.xlu1 %v2710_v20  ;;  %v1984_v20 = vsel %vm59_vm0, %v1976_v18, 0.0 }
0x165b   :  { %2875 = vrot.lane.b32.xlu1 %v4555_v25, %s4041_s20 }
0x165f   :  { %2873 = vrot.lane.b32.xlu1 %v4555_v25, %s4042_s21 }
0x16d3   :  { %v2712_v22 = vpop.xlane.xlu1 %2711 }
0x16d4   :  { %v2713_v26 = vsub.f32 %v2709_v19, %v2712_v22 }
0x16d6   :  { %v2714_v27 = vmul.f32 1.442695, %v2713_v26 }
0x16d7   :  { %v2876_v32 = vpop.permute.xlu1 %2875 }
0x16d8   :  { %4011 = vpow2.f32 %v2714_v27 }
0x16db   :  { %v2874_v33 = vpop.permute.xlu1 %2873 }
0x16e5   :  { %v4012_v15 = vpop.eup %4011 }
0x16e6   :  { %v2716_v28 = vsel %vm2223_vm13, %v4012_v15, 0.0 }
0x16e7   :  { %2717 = vadd.xlane.f32.xlu0 %v2716_v28 }
0x16fd   :  { %2721 = vrot.lane.b32.xlu0 %v4555_v25, %s4043_s24 }
0x1770   :  { %v2718_v29 = vpop.xlane.xlu0 %2717 }
0x1771   :  { %4013 = vrcp.f32 %v2718_v29 }
0x1774   :  { %v2722_v30 = vpop.permute.xlu0 %2721 }
0x1775   :  { %3861 = vmatpush3.msk.msra.mxu0 %vm2241_vm14, %v2722_v30 }
0x1776   :  { %3870 = vmatprep.subr.mxu0 %v4045_v55 }
0x177e   :  { %v4014_v31 = vpop.eup %4013 }
0x177f   :  { %v2720_v16 = vmul.f32 %v4014_v31, %v4012_v15 }
0x1781   :  { %3863 = vmatmul.mubr.msk.f32.vlgmr.msra.gmra.mxu0 %vm2237_vm15, %v2720_v16 }
0x1782   :  { %3871 = vmatpush3.xpose.msk.msra.mxu0 %vm169_vm1, %v2876_v32  ;;  %3872 = vmatprep.mubr.msk.f32.mxu0 %vm4046_vm12, %v4045_v55 }
0x1783   :  { %3880 = vmatprep.subr.mxu0 %v4045_v55 }
0x1785   :  { %3873 = vmatmul.mubr.msk.f32.vlgmr.msra.gmra.mxu0 %vm169_vm1, %v2874_v33 }
0x1786   :  { %3882 = vmatprep.mubr.msk.f32.mxu0 %vm4046_vm12, %v4045_v55  ;;  %3881 = vmatpush3.msra.mxu0 %v3041_v49  ;;  %v3153_v49 = vld [vmem:[%s4782_s2 + $0x80] sm:$0xff] }
0x1787   :  { %3896 = vmatprep.subr.mxu0 %v4045_v55 }
0x1841   :  { %v2794_v35 = vpop.f32.mrf.mxu0 }
0x1842   :  { %3868 = vmatmul.mubr.msk.f32.vlgmr.msra.gmra.mxu1 %vm169_vm1, %v2794_v35 }
0x1843   :  { %v3864_v36 = vpop.f32.mrf.mxu0  ;;  %3877 = vmatprep.mubr.msk.f32.mxu1 %vm4046_vm12, %v4045_v55 }
0x1845   :  { %v2947_v38 = vpop.f32.mrf.mxu0 }
0x1846   :  { %v2951_v39 = vmul.f32 0.35355338, %v2947_v38 }
0x1847   :  { %v3874_v40 = vpop.f32.mrf.mxu0 }
0x1848   :  { %v2952_v42 = vadd.f32 %v2951_v39, %v4152_v41  ;;  %v2627_v41 = vadd.f32 %v2626_v11, %v2553_v13  ;;  %v1961_v11 = vadd.f32 %v4473_v23, %v4478_v24 }
0x184a   :  { %v2953_v45 = vsel %vm2223_vm13, %v2952_v42, -inf  ;;  %v1975_v0 = vadd.f32 %v1961_v11, %v4447_v61 }
0x184b   :  { %2954 = vmax.xlane.f32.xlu0 %v2953_v45 }
0x184c   :  { %v1981_v19 = vsel %vm59_vm0, %v1975_v0, 0.0 }
0x1861   :  { %2964 = vrot.lane.b32.xlu0 %v4555_v25, %s4044_s25 }
0x18d4   :  { %v2955_v53 = vpop.xlane.xlu0 %2954 }
0x18d5   :  { %v2956_v43 = vsub.f32 %v2952_v42, %v2955_v53  ;;  %v3457_v42 = vld [vmem:[%s4782_s2 + $0x24] ss:$0 sm:$0xff] }
0x18d7   :  { %v2957_v21 = vmul.f32 1.442695, %v2956_v43  ;;  %v3458_v43 = vld [vmem:[%s4782_s2 + $0x25] ss:$0 sm:$0xff] }
0x18d8   :  { %v2965_v44 = vpop.permute.xlu0 %2964 }
0x18d9   :  { %4015 = vpow2.f32 %v2957_v21  ;;  %3876 = vmatpush3.msk.msra.mxu1 %vm2241_vm14, %v2965_v44 }
0x18da   :  { %3885 = vmatprep.subr.mxu1 %v4045_v55 }
0x18e6   :  { %v4016_v46 = vpop.eup %4015 }
0x18e7   :  { %v2959_v47 = vsel %vm2223_vm13, %v4016_v46, 0.0 }
0x18e8   :  { %2960 = vadd.xlane.f32.xlu1 %v2959_v47  ;;  %v3156_v47 = vld [vmem:[%s4782_s2 + $0x98] sm:$0xff] }
0x1902   :  { %v2868_v48 = vpop.f32.mrf.mxu1 }
0x1903   :  { %v2872_v25 = vadd.f32 %v2868_v48, %v2627_v41  ;;  %v3155_v41 = vld [vmem:[%s4782_s2 + $0x90] sm:$0xff]  ;;  %v3154_v48 = vld [vmem:[%s4782_s2 + $0x88] sm:$0xff] }
0x1904   :  { %v3869_v50 = vpop.f32.mrf.mxu1 }
0x1905   :  { %v3151_v50 = vld [vmem:[%s4782_s2 + $0x70] sm:$0xff] }
0x1971   :  { %v2961_v51 = vpop.xlane.xlu1 %2960 }
0x1972   :  { %4017 = vrcp.f32 %v2961_v51  ;;  %v3150_v51 = vld [vmem:[%s4782_s2 + $0x68] sm:$0xff] }
0x197f   :  { %v4018_v54 = vpop.eup %4017 }
0x1980   :  { %v2963_v56 = vmul.f32 %v4018_v54, %v4016_v46  ;;  %v3157_v46 = vld [vmem:[%s4782_s2 + $0xa0] sm:$0xff] }
0x1982   :  { %3878 = vmatmul.mubr.msk.f32.vlgmr.msra.gmra.mxu1 %vm2237_vm15, %v2963_v56 }
0x1983   :  { %3893 = vmatprep.mubr.msk.f32.mxu1 %vm4046_vm12, %v4045_v55  ;;  %3886 = vmatpush3.msra.mxu1 %v3149_v1 }
0x1984   :  { %3887 = vmatprep.subr.mxu1 %v4045_v55 }
0x1a42   :  { %v3037_v57 = vpop.f32.mrf.mxu1 }
0x1a43   :  { %3883 = vmatmul.mubr.msk.f32.vlgmr.msra.gmra.mxu0 %vm169_vm1, %v3037_v57 }
0x1a44   :  { %v3879_v37 = vpop.f32.mrf.mxu1  ;;  %3912 = vmatprep.mubr.msk.f32.mxu0 %vm4046_vm12, %v4045_v55  ;;  %3897 = vmatpush3.msra.mxu0 %v3157_v46 }
0x1a45   :  { %3898 = vmatprep.subr.mxu0 %v4045_v55 }
0x1a46   :  { %3899 = vmatpush3.msra.mxu0 %v3156_v47 }
0x1a47   :  { %3900 = vmatprep.subr.mxu0 %v4045_v55 }
0x1a48   :  { %3901 = vmatpush3.msra.mxu0 %v3155_v41 }
0x1a49   :  { %3902 = vmatprep.subr.mxu0 %v4045_v55 }
0x1a4a   :  { %3903 = vmatpush3.msra.mxu0 %v3154_v48 }
0x1a4b   :  { %3904 = vmatprep.subr.mxu0 %v4045_v55 }
0x1a4c   :  { %3905 = vmatpush3.msra.mxu0 %v3153_v49 }
0x1a4d   :  { %3906 = vmatprep.subr.mxu0 %v4045_v55 }
0x1b03   :  { %v3111_v58 = vpop.f32.mrf.mxu0 }
0x1b04   :  { %v3115_v59 = vadd.f32 %v3111_v58, %v2872_v25  ;;  %v3152_v25 = vld [vmem:[%s4782_s2 + $0x78] sm:$0xff] }
0x1b05   :  { %v3884_v60 = vpop.f32.mrf.mxu0  ;;  %3907 = vmatpush3.msra.mxu0 %v3152_v25 }
0x1b06   :  { %v3116_v12 = vadd.f32 %v3115_v59, %v4544_v63  ;;  %v1971_v63 = vadd.f32 %v4613_v14, %v4478_v24  ;;  %v3148_v24 = vld [vmem:[%s4782_s2 + $0x58] sm:$0xff]  ;;  %3908 = vmatprep.subr.mxu0 %v4045_v55 }
0x1b07   :  { %3888 = vmatpush3.msra.mxu1 %v3148_v24  ;;  %3909 = vmatpush3.msra.mxu0 %v3151_v50 }
0x1b08   :  { %v3121_v3 = vadd.f32 %v3456_v10, %v3116_v12  ;;  %v1977_v23 = vadd.f32 %v1971_v63, %v4538_v17  ;;  %3889 = vmatprep.subr.mxu1 %v4045_v55  ;;  %v3146_v17 = vld [vmem:[%s4782_s2 + $0x48] sm:$0xff]  ;;  %3910 = vmatprep.subr.mxu0 %v4045_v55 }
0x1b09   :  { %3890 = vmatpush3.msra.mxu1 %v3147_v52  ;;  %3911 = vmatpush3.msra.mxu0 %v3150_v51 }
0x1b0a   :  { %v3123_v5 = vsel %vm3122_vm2, %v3121_v3, 0.0  ;;  %v1987_v61 = vsel %vm1694_vm10, %v1977_v23, 0.0  ;;  %3891 = vmatprep.subr.mxu1 %v4045_v55 }
0x1b0b   :  { %3124 = vadd.xlane.f32.xlu1 %v3123_v5  ;;  %3892 = vmatpush3.msra.mxu1 %v3146_v17 }
0x1b94   :  { %v3125_v8 = vpop.xlane.xlu1 %3124 }
0x1b95   :  { %v3126_v9 = vmul.f32 0.03125, %v3125_v8 }
0x1b97   :  { %v3127_v62 = vsub.f32 %v3121_v3, %v3126_v9 }
0x1b99   :  { %v3128_v13 = vmul.f32 %v3127_v62, %v3127_v62 }
0x1b9b   :  { %v3129_v6 = vsel %vm3122_vm2, %v3128_v13, 0.0 }
0x1b9c   :  { %3130 = vadd.xlane.f32.xlu1 %v3129_v6 }
0x1ba0   :  { %1982 = vadd.xlane.f32.xlu1 %v1981_v19 }
0x1ba4   :  { %1985 = vadd.xlane.f32.xlu1 %v1984_v20 }
0x1ba8   :  { %1988 = vadd.xlane.f32.xlu1 %v1987_v61 }
0x1c25   :  { %v3131_v14 = vpop.xlane.xlu1 %3130 }
0x1c26   :  { %v3132_v22 = vmul.f32 0.03125, %v3131_v14 }
0x1c28   :  { %v3133_v26 = vadd.f32 1e-05, %v3132_v22 }
0x1c29   :  { %v1983_v27 = vpop.xlane.xlu1 %1982 }
0x1c2a   :  { %4019 = vrsqrt.f32 %v3133_v26  ;;  %v1991_v15 = vmul.f32 0.03125, %v1983_v27 }
0x1c2c   :  { %v1995_v28 = vsub.f32 %v1975_v0, %v1991_v15 }
0x1c2d   :  { %v1986_v29 = vpop.xlane.xlu1 %1985 }
0x1c2e   :  { %v1992_v30 = vmul.f32 0.03125, %v1986_v29  ;;  %v1999_v31 = vmul.f32 %v1995_v28, %v1995_v28 }
0x1c30   :  { %v1996_v32 = vsub.f32 %v1976_v18, %v1992_v30  ;;  %v2005_v16 = vsel %vm59_vm0, %v1999_v31, 0.0  ;;  %v3459_v18 = vld [vmem:[%s4782_s2 + $0x22] ss:$0 sm:$0xff] }
0x1c31   :  { %2006 = vadd.xlane.f32.xlu1 %v2005_v16  ;;  %v1989_v33 = vpop.xlane.xlu1 %1988 }
0x1c32   :  { %v1993_v34 = vmul.f32 0.03125, %v1989_v33  ;;  %v2000_v35 = vmul.f32 %v1996_v32, %v1996_v32  ;;  %v3464_v33 = vld [vmem:[%s4782_s2 + $0x27] ss:$0 sm:$0xff] }
0x1c34   :  { %v1997_v36 = vsub.f32 %v1977_v23, %v1993_v34  ;;  %v2008_v38 = vsel %vm59_vm0, %v2000_v35, 0.0 }
0x1c35   :  { %2009 = vadd.xlane.f32.xlu1 %v2008_v38 }
0x1c36   :  { %v2001_v39 = vmul.f32 %v1997_v36, %v1997_v36 }
0x1c37   :  { %v4020_v40 = vpop.eup %4019 }
0x1c38   :  { %v3135_v45 = vmul.f32 %v4020_v40, %v3127_v62  ;;  %v2011_v53 = vsel %vm1694_vm10, %v2001_v39, 0.0 }
0x1c39   :  { %2012 = vadd.xlane.f32.xlu1 %v2011_v53 }
0x1c3a   :  { %v3140_v21 = vmul.f32 %v3457_v42, %v3135_v45 }
0x1c3c   :  { %v3145_v44 = vadd.f32 %v3458_v43, %v3140_v21 }
0x1c3e   :  { %3894 = vmatmul.mubr.msk.f32.vlgmr.msra.gmra.mxu1 %vm59_vm0, %v3145_v44 }
0x1cba   :  { %v2007_v54 = vpop.xlane.xlu1 %2006 }
0x1cbb   :  { %v2015_v56 = vmul.f32 0.03125, %v2007_v54 }
0x1cbd   :  { %v2019_v57 = vadd.f32 1e-05, %v2015_v56 }
0x1cbe   :  { %v2010_v37 = vpop.xlane.xlu1 %2009 }
0x1cbf   :  { %4021 = vrsqrt.f32 %v2019_v57  ;;  %v2016_v58 = vmul.f32 0.03125, %v2010_v37 }
0x1cc1   :  { %v2020_v59 = vadd.f32 1e-05, %v2016_v58 }
0x1cc2   :  { %v2013_v60 = vpop.xlane.xlu1 %2012 }
0x1cc3   :  { %4023 = vrsqrt.f32 %v2020_v59  ;;  %v2017_v10 = vmul.f32 0.03125, %v2013_v60 }
0x1cc5   :  { %v2021_v12 = vadd.f32 1e-05, %v2017_v10 }
0x1cc7   :  { %4025 = vrsqrt.f32 %v2021_v12 }
0x1ccc   :  { %v4022_v3 = vpop.eup %4021 }
0x1ccd   :  { %v2027_v5 = vmul.f32 %v4022_v3, %v1995_v28 }
0x1ccf   :  { %v2035_v8 = vmul.f32 %v4522_v4, %v2027_v5 }
0x1cd0   :  { %v4024_v9 = vpop.eup %4023 }
0x1cd1   :  { %v2043_v55 = vadd.f32 %v4527_v7, %v2035_v8  ;;  %v2028_v11 = vmul.f32 %v4024_v9, %v1996_v32  ;;  %v3463_v32 = vld [vmem:[%s4782_s2 + $0x26] ss:$0 sm:$0xff] }
0x1cd3   :  { %2047 = vst.msk [vmem:[%s4783_s4 + $0x8] sm:$0xff] %vm59_vm0, %v2043_v55  ;;  %v2036_v62 = vmul.f32 %v4522_v4, %v2028_v11 }
0x1cd4   :  { %v4026_v13 = vpop.eup %4025 }
0x1cd5   :  { %v2044_v0 = vadd.f32 %v4527_v7, %v2036_v62  ;;  %v2029_v2 = vmul.f32 %v4026_v13, %v1997_v36 }
0x1cd7   :  { %2048 = vst.msk [vmem:[%s4783_s4 + $0x10] sm:$0xff] %vm59_vm0, %v2044_v0  ;;  %v2037_v6 = vmul.f32 %v4522_v4, %v2029_v2  ;;  %v3461_v4 = vld [vmem:[%s4782_s2 + $0x23] ss:$0 sm:$0xff] }
0x1cd9   :  { %v2045_v63 = vadd.f32 %v4527_v7, %v2037_v6 }
0x1cdb   :  { %2049 = vst.msk [vmem:[%s4783_s4 + $0x18] sm:$0x3] %vm1694_vm10, %v2045_v63 }
0x1cfe   :  { %v3231_v19 = vpop.f32.mrf.mxu1 }
0x1cff   :  { %v3232_v23 = vadd.f32 %v3459_v18, %v3231_v19 }
0x1d00   :  { %v3895_v20 = vpop.f32.mrf.mxu1 }
0x1d01   :  { %v3235_v61 = vmax.f32 %v3232_v23, 0.0 }
0x1d03   :  { %3913 = vmatmul.mubr.msk.f32.vlgmr.msra.gmra.mxu0 %vm1876_vm9, %v3235_v61 }
0x1dc3   :  { %v3309_v7 = vpop.f32.mrf.mxu0 }
0x1dc4   :  { %v3310_v1 = vadd.f32 %v3461_v4, %v3309_v7 }
0x1dc5   :  { %v3914_v24 = vpop.f32.mrf.mxu0 }
0x1dc6   :  { %v3313_v52 = vadd.f32 %v3310_v1, %v3145_v44 }
0x1dc8   :  { %v3314_v17 = vsel %vm3122_vm2, %v3313_v52, 0.0 }
0x1dc9   :  { %3315 = vadd.xlane.f32.xlu0 %v3314_v17 }
0x1e52   :  { %v3316_v14 = vpop.xlane.xlu0 %3315 }
0x1e53   :  { %v3317_v22 = vmul.f32 0.03125, %v3316_v14 }
0x1e55   :  { %v3318_v26 = vsub.f32 %v3313_v52, %v3317_v22 }
0x1e57   :  { %v3319_v27 = vmul.f32 %v3318_v26, %v3318_v26 }
0x1e59   :  { %v3320_v15 = vsel %vm3122_vm2, %v3319_v27, 0.0 }
0x1e5a   :  { %3321 = vadd.xlane.f32.xlu1 %v3320_v15 }
0x1ee3   :  { %v3322_v28 = vpop.xlane.xlu1 %3321 }
0x1ee4   :  { %v3323_v29 = vmul.f32 0.03125, %v3322_v28 }
0x1ee6   :  { %v3324_v30 = vadd.f32 1e-05, %v3323_v29 }
0x1ee8   :  { %4027 = vrsqrt.f32 %v3324_v30 }
0x1ef5   :  { %v4028_v31 = vpop.eup %4027 }
0x1ef6   :  { %v3326_v16 = vmul.f32 %v4028_v31, %v3318_v26 }
0x1ef8   :  { %v3331_v34 = vmul.f32 %v3463_v32, %v3326_v16 }
0x1efa   :  { %v3336_v35 = vadd.f32 %v3464_v33, %v3331_v34 }
0x1efc   :  { %3337 = vst.msk [vmem:[%s4784_s5] sm:$0x3f] %vm3122_vm2, %v3336_v35 }

</bundles_post_ra>
